<compile_context>
chip_gen: v5e
topology: v5e:2x2
jax: 0.10.0
libtpu: 0.0.40
codegen_flags: <defaults>
</compile_context>

<pallas_src>
import functools

import jax
import jax.numpy as jnp
import numpy as np
from jax.experimental import pallas as pl
from jax.experimental.pallas import tpu as pltpu

# Keep each pallas_call's double-buffered working set under the v5e 16 MiB
# scoped-VMEM default (v6e/v7x have >= 32 MiB scoped, so this is safe everywhere).
_VMEM_BUDGET = 13 * 1024 * 1024


def _round_up(n, m):
    return ((n + m - 1) // m) * m


def _pick_tile_m(M, max_tile=512, prefer_split=False):
    """16-aligned row tile (bf16 LHS packing) with bounded padding waste."""
    Mp = _round_up(M, 16)
    if Mp <= max_tile:
        if prefer_split and Mp >= 64 and Mp % 32 == 0:
            return Mp // 2          # >=2 grid steps so v7x megacore can shard rows
        return Mp
    best = 16
    tm = 32
    while tm <= max_tile:
        if _round_up(M, tm) - M <= max(M // 8, 15):   # waste <= ~12.5% of M
            best = tm
        tm *= 2
    return best


# ----------------------------------------------------------------------------
# Generic tiled linear:
#   y = act( (x * ps + pt if prologue) @ w + b ),  optional masked col-stats of y
# bf16 matmul, f32 accumulate, fused bias/ReLU epilogue, bf16 (or f32) output.
# ----------------------------------------------------------------------------
def _linear_kernel(*refs, n_rows, relu, prologue, pre_relu, stats):
    i = 0
    x_ref = refs[i]; i += 1
    if prologue:
        ps_ref, pt_ref = refs[i], refs[i + 1]; i += 2
    w_ref, b_ref = refs[i], refs[i + 1]; i += 2
    o_ref = refs[i]; i += 1
    if stats:
        s_ref, q_ref = refs[i], refs[i + 1]

    if prologue:
        xf = x_ref[...].astype(jnp.float32) * ps_ref[...] + pt_ref[...]
        if pre_relu:
            xf = jnp.maximum(xf, 0.0)
        xm = xf.astype(jnp.bfloat16)
    else:
        xm = x_ref[...].astype(jnp.bfloat16)

    y = jnp.dot(xm, w_ref[...], preferred_element_type=jnp.float32) + b_ref[...]
    if relu:
        y = jnp.maximum(y, 0.0)
    o_ref[...] = y.astype(o_ref.dtype)

    if stats:
        @pl.when(pl.program_id(0) == 0)
        def _():
            s_ref[...] = jnp.zeros_like(s_ref)
            q_ref[...] = jnp.zeros_like(q_ref)

        tm = y.shape[0]
        row = jax.lax.broadcasted_iota(jnp.int32, (tm, 1), 0) + pl.program_id(0) * tm
        ym = jnp.where(row < n_rows, y, 0.0)          # padded rows excluded from BN stats
        s_ref[...] += jnp.sum(ym, axis=0, keepdims=True)
        q_ref[...] += jnp.sum(ym * ym, axis=0, keepdims=True)


def pallas_linear(x, w, b=None, *, relu=False, prologue=None, pre_relu=False,
                  stats=False, out_dtype=jnp.bfloat16, max_tile=512):
    """x: (M, K); w: (K, N) (= PyTorch W.T); prologue=(scale, shift) each (K,).

    Returns y (M, N) in out_dtype, plus (sum, sumsq) each (N,) f32 if stats=True.
    Tiled & pipelined over rows; "parallel" unless stats accumulation forces
    sequential ("arbitrary") grid.
    """
    M, K = x.shape
    N = w.shape[1]
    if b is None:
        b = jnp.zeros((N,), jnp.float32)

    tm = _pick_tile_m(M, max_tile=max_tile, prefer_split=not stats)
    ob = jnp.dtype(out_dtype).itemsize
    # double-buffered x/out blocks + (conservatively double-buffered) weights
    while tm > 16 and (2 * tm * K * 2 + 2 * tm * N * ob
                       + 2 * K * N * 2 + 8 * (K + N) * 4) > _VMEM_BUDGET:
        tm = max(16, _round_up(tm // 2, 16))
    Mp = _round_up(M, tm)

    xpad = x if Mp == M else jnp.pad(x, ((0, Mp - M), (0, 0)))
    xpad = xpad.astype(jnp.bfloat16)

    ins = [xpad]
    in_specs = [pl.BlockSpec((tm, K), lambda i: (i, 0))]
    if prologue is not None:
        ps, pt = prologue
        ins += [ps.reshape(1, K).astype(jnp.float32),
                pt.reshape(1, K).astype(jnp.float32)]
        in_specs += [pl.BlockSpec((1, K), lambda i: (0, 0)),
                     pl.BlockSpec((1, K), lambda i: (0, 0))]
    ins += [w.astype(jnp.bfloat16), b.reshape(1, N).astype(jnp.float32)]
    in_specs += [pl.BlockSpec((K, N), lambda i: (0, 0)),
                 pl.BlockSpec((1, N), lambda i: (0, 0))]

    if stats:
        out_specs = (pl.BlockSpec((tm, N), lambda i: (i, 0)),
                     pl.BlockSpec((1, N), lambda i: (0, 0)),
                     pl.BlockSpec((1, N), lambda i: (0, 0)))
        out_shape = (jax.ShapeDtypeStruct((Mp, N), out_dtype),
                     jax.ShapeDtypeStruct((1, N), jnp.float32),
                     jax.ShapeDtypeStruct((1, N), jnp.float32))
        sem = ("arbitrary",)                  # resident stats accumulation is sequential
    else:
        out_specs = pl.BlockSpec((tm, N), lambda i: (i, 0))
        out_shape = jax.ShapeDtypeStruct((Mp, N), out_dtype)
        sem = ("parallel",)

    res = pl.pallas_call(
        functools.partial(_linear_kernel, n_rows=M, relu=relu,
                          prologue=prologue is not None, pre_relu=pre_relu,
                          stats=stats),
        grid=(Mp // tm,),
        in_specs=in_specs,
        out_specs=out_specs,
        out_shape=out_shape,
        compiler_params=pltpu.CompilerParams(dimension_semantics=sem),
    )(*ins)

    if stats:
        y, s, q = res
        return y[:M], s[0], q[0]
    return res[:M]


def bn_scale_shift(s, q, n_rows, gamma, beta, eps=1e-5):
    """Training-mode BatchNorm1d scale/shift from fused column sum/sumsq."""
    mean = s / n_rows
    var = jnp.maximum(q / n_rows - mean * mean, 0.0)   # biased var, clamped (cancellation)
    scale = gamma.astype(jnp.float32) * jax.lax.rsqrt(var + eps)
    shift = beta.astype(jnp.float32) - mean * scale
    return scale, shift


# ----------------------------------------------------------------------------
# ResBlock tail: out = affine2(h2) + (optionally relu(affine_in(residual_raw)))
# ----------------------------------------------------------------------------
def _affine_res_kernel(x_ref, s_ref, t_ref, r_ref, *rest, res_affine, res_relu):
    if res_affine:
        rs_ref, rt_ref, o_ref = rest
    else:
        (o_ref,) = rest
    y = x_ref[...].astype(jnp.float32) * s_ref[...] + t_ref[...]
    r = r_ref[...].astype(jnp.float32)
    if res_affine:
        r = r * rs_ref[...] + rt_ref[...]
        if res_relu:
            r = jnp.maximum(r, 0.0)
    o_ref[...] = (y + r).astype(o_ref.dtype)


def pallas_affine_res(x2d, scale, shift, residual, res_affine=None, res_relu=False,
                      out_dtype=jnp.bfloat16, max_tile=512):
    M, C = x2d.shape
    tm = _pick_tile_m(M, max_tile=max_tile, prefer_split=True)
    Mp = _round_up(M, tm)

    def padrows(a):
        return a if Mp == M else jnp.pad(a, ((0, Mp - M), (0, 0)))

    ins = [padrows(x2d).astype(jnp.bfloat16),
           scale.reshape(1, C).astype(jnp.float32),
           shift.reshape(1, C).astype(jnp.float32),
           padrows(residual).astype(jnp.bfloat16)]
    in_specs = [pl.BlockSpec((tm, C), lambda i: (i, 0)),
                pl.BlockSpec((1, C), lambda i: (0, 0)),
                pl.BlockSpec((1, C), lambda i: (0, 0)),
                pl.BlockSpec((tm, C), lambda i: (i, 0))]
    if res_affine is not None:
        rs, rt = res_affine
        ins += [rs.reshape(1, C).astype(jnp.float32),
                rt.reshape(1, C).astype(jnp.float32)]
        in_specs += [pl.BlockSpec((1, C), lambda i: (0, 0)),
                     pl.BlockSpec((1, C), lambda i: (0, 0))]

    out = pl.pallas_call(
        functools.partial(_affine_res_kernel, res_affine=res_affine is not None,
                          res_relu=res_relu),
        grid=(Mp // tm,),
        in_specs=in_specs,
        out_specs=pl.BlockSpec((tm, C), lambda i: (i, 0)),
        out_shape=jax.ShapeDtypeStruct((Mp, C), out_dtype),
        compiler_params=pltpu.CompilerParams(dimension_semantics=("parallel",)),
    )(*ins)
    return out[:M]


# ----------------------------------------------------------------------------
# GRU: chunked sequential kernel, time-major, batch split for v7x megacore,
# residual add fused into the bf16 output store.
# ----------------------------------------------------------------------------
def _gru_kernel(xp_ref, res_ref, wrz_ref, wn_ref, bhn_ref, o_ref, h_ref, *, tc, hidden):
    # xp_ref : (tc, bc, 3H) bf16   x@W_ih.T + (b_ih + [b_hr, b_hz, 0])
    # res_ref: (tc, bc, H)  bf16   residual added to the output
    # wrz_ref: (H, 2H) bf16        W_hh[:2H].T   (r,z gates)
    # wn_ref : (H, H)  bf16        W_hh[2H:].T   (n gate)
    # bhn_ref: (1, H)  f32         b_hn (stays inside r*(.) per PyTorch GRU)
    # o_ref  : (tc, bc, H) bf16
    # h_ref  : (bc, H) f32 scratch, carried across time-chunk grid steps
    @pl.when(pl.program_id(1) == 0)
    def _():
        h_ref[...] = jnp.zeros_like(h_ref)

    H = hidden
    wrz = wrz_ref[...]
    wn = wn_ref[...]
    bhn = bhn_ref[...]

    def step(i, h):
        xp = xp_ref[i]                                      # (bc, 3H) bf16
        hb = h.astype(jnp.bfloat16)
        g_rz = jnp.dot(hb, wrz, preferred_element_type=jnp.float32)   # (bc, 2H)
        r = jax.nn.sigmoid(xp[:, :H].astype(jnp.float32) + g_rz[:, :H])
        z = jax.nn.sigmoid(xp[:, H:2 * H].astype(jnp.float32) + g_rz[:, H:])
        g_n = jnp.dot(hb, wn, preferred_element_type=jnp.float32)     # (bc, H)
        n = jnp.tanh(xp[:, 2 * H:].astype(jnp.float32) + r * (g_n + bhn))
        h = (1.0 - z) * n + z * h
        o_ref[i] = (h + res_ref[i].astype(jnp.float32)).astype(o_ref.dtype)
        return h

    h_ref[...] = jax.lax.fori_loop(0, tc, step, h_ref[...], unroll=True)


def pallas_gru(x_tbk, res_tbh, rp, max_tc=32):
    """PyTorch nn.GRU(batch_first=True) with h0=0, run time-major.

    x_tbk: (T, B, K) GRU input; res_tbh: (T, B, H) residual added to the output.
    Returns (T, B, H) bf16 = gru(x) + res.
    """
    T, B, K = x_tbk.shape
    H = rp["w_hh"].shape[1]
    # Fold b_hr, b_hz into the input-projection bias; only b_hn is needed per step.
    b_fold = rp["b_ih"] + jnp.concatenate(
        [rp["b_hh"][:2 * H], jnp.zeros((H,), rp["b_hh"].dtype)])
    xp = pallas_linear(x_tbk.reshape(T * B, K), rp["w_ih"].T, b_fold)   # bf16 (T*B, 3H)
    xp = xp.reshape(T, B, 3 * H)                                        # already time-major

    Bp = _round_up(max(B, 16), 16)        # bf16-packed sublanes
    nb = 2 if Bp >= 32 else 1             # batch halves -> v7x megacore ("parallel" axis)
    bc = Bp // nb

    tc = min(max_tc, max(8, _round_up(T, 8)))
    # double-buffered xp/res/out blocks + double-buffered weights + h scratch
    while tc > 8 and (4 * tc * bc * 5 * H + 12 * H * H + 4 * bc * H) > _VMEM_BUDGET:
        tc //= 2
    Tp = _round_up(T, tc)                 # padded steps run after all real ones (harmless)

    xpad = jnp.pad(xp, ((0, Tp - T), (0, Bp - B), (0, 0))).astype(jnp.bfloat16)
    rpad = jnp.pad(res_tbh, ((0, Tp - T), (0, Bp - B), (0, 0))).astype(jnp.bfloat16)
    w_hh = rp["w_hh"].astype(jnp.bfloat16)

    out = pl.pallas_call(
        functools.partial(_gru_kernel, tc=tc, hidden=H),
        grid=(nb, Tp // tc),
        in_specs=[
            pl.BlockSpec((tc, bc, 3 * H), lambda bi, ti: (ti, bi, 0)),
            pl.BlockSpec((tc, bc, H), lambda bi, ti: (ti, bi, 0)),
            pl.BlockSpec((H, 2 * H), lambda bi, ti: (0, 0)),
            pl.BlockSpec((H, H), lambda bi, ti: (0, 0)),
            pl.BlockSpec((1, H), lambda bi, ti: (0, 0)),
        ],
        out_specs=pl.BlockSpec((tc, bc, H), lambda bi, ti: (ti, bi, 0)),
        out_shape=jax.ShapeDtypeStruct((Tp, Bp, H), jnp.bfloat16),
        scratch_shapes=[pltpu.VMEM((bc, H), jnp.float32)],
        compiler_params=pltpu.CompilerParams(
            dimension_semantics=("parallel", "arbitrary")),
    )(xpad, rpad, w_hh[:2 * H].T, w_hh[2 * H:].T,
      rp["b_hh"][2 * H:].reshape(1, H).astype(jnp.float32))
    return out[:T, :B]


# ----------------------------------------------------------------------------
# Model pieces (glue in JAX, compute in Pallas)
# ----------------------------------------------------------------------------
def mel_resnet(p, mels, pad):
    """MelResNet.  mels: (B, C_in, L) NCL -> channels-last (B, L_out, R) bf16.

    BatchNorm (training-mode batch stats) is fused: moments come out of the
    preceding matmul, scale/shift(+ReLU) goes in as the next matmul's prologue.
    """
    B, Cin, L = mels.shape
    k = 2 * pad + 1
    Lout = L - 2 * pad
    M = B * Lout
    # im2col for the valid conv_in (kernel size k, no bias)
    cols = jnp.stack([mels[:, :, j:j + Lout] for j in range(k)], axis=2)   # (B,Cin,k,Lout)
    cols = cols.transpose(0, 3, 1, 2).reshape(M, Cin * k)                  # (B*Lout, Cin*k)
    w_in = p["conv_in_w"].reshape(p["conv_in_w"].shape[0], Cin * k)

    # conv_in with fused BN-moments epilogue (raw pre-BN output kept in bf16)
    y0, s0, q0 = pallas_linear(cols, w_in.T, stats=True)
    sc0, sh0 = bn_scale_shift(s0, q0, M, p["bn_in_g"], p["bn_in_b"])

    x = None   # materialized block input (block 0 recomputes relu(bn_in(y0)) on the fly)
    for bi, blk in enumerate(p["blocks"]):
        if bi == 0:
            h1, s1, q1 = pallas_linear(y0, blk["conv1_w"][:, :, 0].T,
                                       prologue=(sc0, sh0), pre_relu=True, stats=True)
        else:
            h1, s1, q1 = pallas_linear(x, blk["conv1_w"][:, :, 0].T, stats=True)
        sc1, sh1 = bn_scale_shift(s1, q1, M, blk["bn1_g"], blk["bn1_b"])

        h2, s2, q2 = pallas_linear(h1, blk["conv2_w"][:, :, 0].T,
                                   prologue=(sc1, sh1), pre_relu=True, stats=True)
        sc2, sh2 = bn_scale_shift(s2, q2, M, blk["bn2_g"], blk["bn2_b"])

        if bi == 0:
            # residual = relu(bn_in(conv_in(mels))), recomputed from the raw y0
            x = pallas_affine_res(h2, sc2, sh2, y0,
                                  res_affine=(sc0, sh0), res_relu=True)
        else:
            x = pallas_affine_res(h2, sc2, sh2, x)

    if not p["blocks"]:
        out = pallas_linear(y0, p["conv_out_w"][:, :, 0].T, p["conv_out_b"],
                            prologue=(sc0, sh0), pre_relu=True)
    else:
        out = pallas_linear(x, p["conv_out_w"][:, :, 0].T, p["conv_out_b"])
    return out.reshape(B, Lout, -1)


def upsample_network(p, mels, pad, upsample_scales):
    """UpsampleNetwork.  Returns time-major (mels_t (T,B,F) f32, aux (T,B,R) bf16)."""
    total_scale = int(np.prod(upsample_scales))
    indent = pad * total_scale

    # aux path: MelResNet then stretch along time by total_scale
    aux = mel_resnet(p["resnet"], mels, pad)             # (B, L_aux, R) bf16
    aux = jnp.repeat(aux, total_scale, axis=1)           # Stretch2d(total_scale, 1)
    aux = aux.transpose(1, 0, 2)                         # (T, B, R) time-major

    # mel path: repeat + fixed 1/(2s+1) moving-average convs (tiny; plain JAX glue)
    m = mels[:, None]                                    # (B, 1, F, W)
    for scale in upsample_scales:
        m = jnp.repeat(m, scale, axis=-1)                # Stretch2d(scale, 1)
        k = 2 * scale + 1
        W = m.shape[-1]
        mp_ = jnp.pad(m, ((0, 0), (0, 0), (0, 0), (scale, scale)))
        acc = jnp.zeros_like(m)
        for j in range(k):
            acc = acc + mp_[..., j:j + W]
        m = acc / float(k)                               # Conv2d(1,1,(1,k)) with weights 1/k
    m = m[:, 0, :, indent:-indent]                       # (B, F, T)
    return m.transpose(2, 0, 1), aux                     # (T, B, F), (T, B, R)


def wave_rnn_forward(params, x, mels, cfg):
    """WaveRNN.forward.  x: (B, 4, T), mels: (B, feat_dims, T_mel)."""
    # TODO(synk): the `self.step += 1` buffer increment is a stateful counter with no
    # functional effect on the output; omitted here.  BatchNorm running stats are
    # likewise not updated (training-mode batch statistics are used, as in .train()).
    B = x.shape[0]
    mels_tm, aux_tm = upsample_network(params["upsample"], mels, cfg["pad"],
                                       cfg["upsample_factors"])
    d = cfg["aux_dims"]
    a1 = aux_tm[:, :, 0 * d:1 * d]
    a2 = aux_tm[:, :, 1 * d:2 * d]
    a3 = aux_tm[:, :, 2 * d:3 * d]
    a4 = aux_tm[:, :, 3 * d:4 * d]
    T = mels_tm.shape[0]

    x_tm = x.transpose(2, 0, 1).astype(jnp.bfloat16)                # (T, B, 4)
    h = jnp.concatenate([x_tm, mels_tm.astype(jnp.bfloat16), a1], axis=2)
    K = h.shape[2]
    h = pallas_linear(h.reshape(T * B, K), params["I_w"].T,
                      params["I_b"]).reshape(T, B, -1)              # (T, B, H) bf16

    h = pallas_gru(h, h, params["rnn1"])                            # rnn1(h) + h
    h2_in = jnp.concatenate([h, a2], axis=2)
    h = pallas_gru(h2_in, h, params["rnn2"])                        # rnn2([h,a2]) + h

    h = jnp.concatenate([h, a3], axis=2)
    h = pallas_linear(h.reshape(T * B, -1), params["fc1_w"].T,
                      params["fc1_b"], relu=True).reshape(T, B, -1)
    h = jnp.concatenate([h, a4], axis=2)
    hf = pallas_linear(h.reshape(T * B, -1), params["fc2_w"].T,
                       params["fc2_b"], relu=True)                  # (T*B, FC) bf16

    # Fused output heads: interleaved columns (class c, head h) -> c*4 + h,
    # so the reshape below directly matches torch.cat([...], dim=3).  f32 output.
    # TODO(synk): for very small configs (4*NC < 128) the head store is lane-masked;
    # standard 512-dim WaveRNN is already lane-aligned so no padding is propagated.
    NC = cfg["n_classes"]
    w_heads = jnp.stack([params["fc30_w"].T, params["fc31_w"].T,
                         params["fc32_w"].T, params["fc33_w"].T], axis=-1)
    w_heads = w_heads.reshape(w_heads.shape[0], 4 * NC)
    b_heads = jnp.stack([params["fc30_b"], params["fc31_b"],
                         params["fc32_b"], params["fc33_b"]], axis=-1).reshape(4 * NC)
    out = pallas_linear(hf, w_heads, b_heads, out_dtype=jnp.float32)  # (T*B, 4*NC)
    out = out.reshape(T, B, NC, 4)
    return out.transpose(1, 0, 2, 3)                                  # (B, T, NC, 4)


# ----------------------------------------------------------------------------
# Deterministic parameter initialization (synthetic, matches module __init__ shapes)
# ----------------------------------------------------------------------------
def init_params(key, cfg):
    keys = iter(jax.random.split(key, 64))

    def nrm(shape, scale=0.1):
        return scale * jax.random.normal(next(keys), shape, jnp.float32)

    F, Cd, R = cfg["feat_dims"], cfg["compute_dims"], cfg["res_out_dims"]
    H, FC, NC, d = cfg["rnn_dims"], cfg["fc_dims"], cfg["n_classes"], cfg["aux_dims"]
    k = 2 * cfg["pad"] + 1

    def bn(c):
        return jnp.ones((c,), jnp.float32), jnp.zeros((c,), jnp.float32)

    bn_in_g, bn_in_b = bn(Cd)
    blocks = []
    for _ in range(cfg["res_blocks"]):
        g1, b1 = bn(Cd)
        g2, b2 = bn(Cd)
        blocks.append(dict(conv1_w=nrm((Cd, Cd, 1)), bn1_g=g1, bn1_b=b1,
                           conv2_w=nrm((Cd, Cd, 1)), bn2_g=g2, bn2_b=b2))
    resnet = dict(conv_in_w=nrm((Cd, F, k)), bn_in_g=bn_in_g, bn_in_b=bn_in_b,
                  blocks=blocks, conv_out_w=nrm((R, Cd, 1)),
                  conv_out_b=jnp.zeros((R,), jnp.float32))

    def gru(in_dim):
        return dict(w_ih=nrm((3 * H, in_dim)), w_hh=nrm((3 * H, H)),
                    b_ih=jnp.zeros((3 * H,), jnp.float32),
                    b_hh=jnp.zeros((3 * H,), jnp.float32))

    return dict(
        upsample=dict(resnet=resnet),
        I_w=nrm((H, F + d + 4)), I_b=jnp.zeros((H,), jnp.float32),
        rnn1=gru(H), rnn2=gru(H + d),
        fc1_w=nrm((FC, H + d)), fc1_b=jnp.zeros((FC,), jnp.float32),
        fc2_w=nrm((FC, FC + d)), fc2_b=jnp.zeros((FC,), jnp.float32),
        fc30_w=nrm((NC, FC)), fc30_b=jnp.zeros((NC,), jnp.float32),
        fc31_w=nrm((NC, FC)), fc31_b=jnp.zeros((NC,), jnp.float32),
        fc32_w=nrm((NC, FC)), fc32_b=jnp.zeros((NC,), jnp.float32),
        fc33_w=nrm((NC, FC)), fc33_b=jnp.zeros((NC,), jnp.float32),
    )


# ----------------------------------------------------------------------------
if __name__ == "__main__":
    cfg = dict(rnn_dims=32, fc_dims=32, bits=4, pad=2,
               upsample_factors=(2, 2), feat_dims=8, compute_dims=16,
               res_out_dims=16, res_blocks=2, hop_length=4,
               sample_rate=16000, pad_val=0.0, mode="RAW")
    cfg["n_classes"] = 2 ** cfg["bits"]          # mode == 'RAW'
    cfg["aux_dims"] = cfg["res_out_dims"] // 4

    params = init_params(jax.random.PRNGKey(0), cfg)

    B, T_mel = 2, 10
    total_scale = int(np.prod(cfg["upsample_factors"]))
    T = (T_mel - 2 * cfg["pad"]) * total_scale   # 24

    kx, km = jax.random.split(jax.random.PRNGKey(0))
    x = jax.random.normal(kx, (B, 4, T), jnp.float32)
    mels = jax.random.normal(km, (B, cfg["feat_dims"], T_mel), jnp.float32)

    fwd = jax.jit(functools.partial(wave_rnn_forward, cfg=cfg))
    out = jax.block_until_ready(fwd(params, x, mels))

    assert out.shape == (B, T, cfg["n_classes"], 4), out.shape
    assert bool(jnp.all(jnp.isfinite(out)))
    print("KERNEL_OK")
</pallas_src>

<mosaic_0001>
module attributes {stable_mosaic.version = 11 : i64} {
  func.func @_linear_kernel(%arg0: i32, %arg1: memref<16x40xbf16, #tpu.memory_space<vmem>>, %arg2: memref<40x16xbf16, #tpu.memory_space<vmem>>, %arg3: memref<1x16xf32, #tpu.memory_space<vmem>>, %arg4: memref<16x16xbf16, #tpu.memory_space<vmem>>, %arg5: memref<1x16xf32, #tpu.memory_space<vmem>>, %arg6: memref<1x16xf32, #tpu.memory_space<vmem>>) attributes {dimension_semantics = [#tpu.dimension_semantics<arbitrary>], iteration_bounds = array<i64: 1>, scalar_prefetch = 0 : i64, scratch_operands = 0 : i64, tpu.core_type = #tpu.core_type<tc>, window_params = [{transform_indices = @transform_0, window_bounds = array<i64: 16, 40>}, {pipeline_mode = #tpu.pipeline_mode<synchronous>, transform_indices = @transform_1, window_bounds = array<i64: 40, 16>}, {pipeline_mode = #tpu.pipeline_mode<synchronous>, transform_indices = @transform_2, window_bounds = array<i64: 1, 16>}, {transform_indices = @transform_3, window_bounds = array<i64: 16, 16>}, {pipeline_mode = #tpu.pipeline_mode<synchronous>, transform_indices = @transform_4, window_bounds = array<i64: 1, 16>}, {pipeline_mode = #tpu.pipeline_mode<synchronous>, transform_indices = @transform_5, window_bounds = array<i64: 1, 16>}]} {
    %c0 = arith.constant 0 : index
    %c0_0 = arith.constant 0 : index
    %0 = vector.load %arg1[%c0, %c0_0] : memref<16x40xbf16, #tpu.memory_space<vmem>>, vector<16x40xbf16>
    %c0_1 = arith.constant 0 : index
    %c0_2 = arith.constant 0 : index
    %1 = vector.load %arg2[%c0_1, %c0_2] : memref<40x16xbf16, #tpu.memory_space<vmem>>, vector<40x16xbf16>
    %cst = arith.constant dense<0.000000e+00> : vector<16x16xf32>
    %2 = tpu.matmul %0, %1, %cst {dimension_numbers = #tpu.dot_dimension_numbers<[1], [0], [0], [1], [0, 0, 1, 1], [], []>} : vector<16x40xbf16>, vector<40x16xbf16>, vector<16x16xf32> -> vector<16x16xf32>
    %c0_3 = arith.constant 0 : index
    %c0_4 = arith.constant 0 : index
    %3 = vector.load %arg3[%c0_3, %c0_4] : memref<1x16xf32, #tpu.memory_space<vmem>>, vector<1x16xf32>
    %4 = vector.broadcast %3 : vector<1x16xf32> to vector<16x16xf32>
    %5 = arith.addf %2, %4 : vector<16x16xf32>
    %6 = arith.truncf %5 : vector<16x16xf32> to vector<16x16xbf16>
    %c0_5 = arith.constant 0 : index
    %c0_6 = arith.constant 0 : index
    %7 = vector.load %arg4[%c0_5, %c0_6] : memref<16x16xbf16, #tpu.memory_space<vmem>>, vector<16x16xbf16>
    tpu.vector_store %arg4[%c0_5, %c0_6], %6 {strides = array<i32>} : memref<16x16xbf16, #tpu.memory_space<vmem>>, vector<16x16xbf16>,
    %c0_i32 = arith.constant 0 : i32
    %8 = arith.cmpi eq, %arg0, %c0_i32 : i32
    %9 = arith.extui %8 : i1 to i32
    %c0_i32_7 = arith.constant 0 : i32
    %10 = arith.cmpi ne, %9, %c0_i32_7 : i32
    scf.if %10 {
      %cst_19 = arith.constant 0.000000e+00 : f32
      %32 = vector.broadcast %cst_19 : f32 to vector<1x16xf32>
      %c0_20 = arith.constant 0 : index
      %c0_21 = arith.constant 0 : index
      %33 = vector.load %arg5[%c0_20, %c0_21] : memref<1x16xf32, #tpu.memory_space<vmem>>, vector<1x16xf32>
      tpu.vector_store %arg5[%c0_20, %c0_21], %32 {strides = array<i32>} : memref<1x16xf32, #tpu.memory_space<vmem>>, vector<1x16xf32>,
      %cst_22 = arith.constant 0.000000e+00 : f32
      %34 = vector.broadcast %cst_22 : f32 to vector<1x16xf32>
      %c0_23 = arith.constant 0 : index
      %c0_24 = arith.constant 0 : index
      %35 = vector.load %arg6[%c0_23, %c0_24] : memref<1x16xf32, #tpu.memory_space<vmem>>, vector<1x16xf32>
      tpu.vector_store %arg6[%c0_23, %c0_24], %34 {strides = array<i32>} : memref<1x16xf32, #tpu.memory_space<vmem>>, vector<1x16xf32>,
    } else {
    }
    %11 = tpu.iota {dimensions = array<i32: 0>} : vector<16x1xi32>
    %c16_i32 = arith.constant 16 : i32
    %12 = arith.muli %arg0, %c16_i32 : i32
    %13 = vector.broadcast %12 : i32 to vector<16x1xi32>
    %14 = arith.addi %11, %13 : vector<16x1xi32>
    %c12_i32 = arith.constant 12 : i32
    %15 = vector.broadcast %c12_i32 : i32 to vector<16x1xi32>
    %16 = arith.cmpi slt, %14, %15 : vector<16x1xi32>
    %cst_8 = arith.constant 0.000000e+00 : f32
    %17 = vector.shape_cast %16 : vector<16x1xi1> to vector<16x1xi1>
    %18 = vector.broadcast %17 : vector<16x1xi1> to vector<16x16xi1>
    %19 = vector.broadcast %cst_8 : f32 to vector<16x16xf32>
    %20 = arith.select %18, %5, %19 : vector<16x16xi1>, vector<16x16xf32>
    %c0_9 = arith.constant 0 : index
    %c0_10 = arith.constant 0 : index
    %21 = vector.load %arg5[%c0_9, %c0_10] : memref<1x16xf32, #tpu.memory_space<vmem>>, vector<1x16xf32>
    %cst_11 = arith.constant dense<0.000000e+00> : vector<16xf32>
    %22 = vector.multi_reduction <add>, %20, %cst_11 [0] : vector<16x16xf32> to vector<16xf32>
    %23 = vector.shape_cast %22 : vector<16xf32> to vector<1x16xf32>
    %24 = arith.addf %21, %23 : vector<1x16xf32>
    %c0_12 = arith.constant 0 : index
    %c0_13 = arith.constant 0 : index
    %25 = vector.load %arg5[%c0_12, %c0_13] : memref<1x16xf32, #tpu.memory_space<vmem>>, vector<1x16xf32>
    tpu.vector_store %arg5[%c0_12, %c0_13], %24 {strides = array<i32>} : memref<1x16xf32, #tpu.memory_space<vmem>>, vector<1x16xf32>,
    %c0_14 = arith.constant 0 : index
    %c0_15 = arith.constant 0 : index
    %26 = vector.load %arg6[%c0_14, %c0_15] : memref<1x16xf32, #tpu.memory_space<vmem>>, vector<1x16xf32>
    %27 = arith.mulf %20, %20 : vector<16x16xf32>
    %cst_16 = arith.constant dense<0.000000e+00> : vector<16xf32>
    %28 = vector.multi_reduction <add>, %27, %cst_16 [0] : vector<16x16xf32> to vector<16xf32>
    %29 = vector.shape_cast %28 : vector<16xf32> to vector<1x16xf32>
    %30 = arith.addf %26, %29 : vector<1x16xf32>
    %c0_17 = arith.constant 0 : index
    %c0_18 = arith.constant 0 : index
    %31 = vector.load %arg6[%c0_17, %c0_18] : memref<1x16xf32, #tpu.memory_space<vmem>>, vector<1x16xf32>
    tpu.vector_store %arg6[%c0_17, %c0_18], %30 {strides = array<i32>} : memref<1x16xf32, #tpu.memory_space<vmem>>, vector<1x16xf32>,
    return
  }
  func.func @transform_0(%arg0: i32) -> (i32, i32) {
    %c0_i32 = arith.constant 0 : i32
    %c0_i32_0 = arith.constant 0 : i32
    return %arg0, %c0_i32 : i32, i32
  }
  func.func @transform_1(%arg0: i32) -> (i32, i32) {
    %c0_i32 = arith.constant 0 : i32
    %c0_i32_0 = arith.constant 0 : i32
    %c0_i32_1 = arith.constant 0 : i32
    return %c0_i32, %c0_i32_0 : i32, i32
  }
  func.func @transform_2(%arg0: i32) -> (i32, i32) {
    %c0_i32 = arith.constant 0 : i32
    %c0_i32_0 = arith.constant 0 : i32
    %c0_i32_1 = arith.constant 0 : i32
    return %c0_i32, %c0_i32_0 : i32, i32
  }
  func.func @transform_3(%arg0: i32) -> (i32, i32) {
    %c0_i32 = arith.constant 0 : i32
    %c0_i32_0 = arith.constant 0 : i32
    return %arg0, %c0_i32 : i32, i32
  }
  func.func @transform_4(%arg0: i32) -> (i32, i32) {
    %c0_i32 = arith.constant 0 : i32
    %c0_i32_0 = arith.constant 0 : i32
    %c0_i32_1 = arith.constant 0 : i32
    return %c0_i32, %c0_i32_0 : i32, i32
  }
  func.func @transform_5(%arg0: i32) -> (i32, i32) {
    %c0_i32 = arith.constant 0 : i32
    %c0_i32_0 = arith.constant 0 : i32
    %c0_i32_1 = arith.constant 0 : i32
    return %c0_i32, %c0_i32_0 : i32, i32
  }
}

module attributes {stable_mosaic.version = 11 : i64} {
  func.func @_affine_res_kernel(%arg0: i32, %arg1: memref<16x16xbf16, #tpu.memory_space<vmem>>, %arg2: memref<1x16xf32, #tpu.memory_space<vmem>>, %arg3: memref<1x16xf32, #tpu.memory_space<vmem>>, %arg4: memref<16x16xbf16, #tpu.memory_space<vmem>>, %arg5: memref<1x16xf32, #tpu.memory_space<vmem>>, %arg6: memref<1x16xf32, #tpu.memory_space<vmem>>, %arg7: memref<16x16xbf16, #tpu.memory_space<vmem>>) attributes {dimension_semantics = [#tpu.dimension_semantics<parallel>], iteration_bounds = array<i64: 1>, scalar_prefetch = 0 : i64, scratch_operands = 0 : i64, tpu.core_type = #tpu.core_type<tc>, window_params = [{transform_indices = @transform_0, window_bounds = array<i64: 16, 16>}, {pipeline_mode = #tpu.pipeline_mode<synchronous>, transform_indices = @transform_1, window_bounds = array<i64: 1, 16>}, {pipeline_mode = #tpu.pipeline_mode<synchronous>, transform_indices = @transform_2, window_bounds = array<i64: 1, 16>}, {transform_indices = @transform_3, window_bounds = array<i64: 16, 16>}, {pipeline_mode = #tpu.pipeline_mode<synchronous>, transform_indices = @transform_4, window_bounds = array<i64: 1, 16>}, {pipeline_mode = #tpu.pipeline_mode<synchronous>, transform_indices = @transform_5, window_bounds = array<i64: 1, 16>}, {transform_indices = @transform_6, window_bounds = array<i64: 16, 16>}]} {
    %c0 = arith.constant 0 : index
    %c0_0 = arith.constant 0 : index
    %0 = vector.load %arg1[%c0, %c0_0] : memref<16x16xbf16, #tpu.memory_space<vmem>>, vector<16x16xbf16>
    %1 = arith.extf %0 : vector<16x16xbf16> to vector<16x16xf32>
    %c0_1 = arith.constant 0 : index
    %c0_2 = arith.constant 0 : index
    %2 = vector.load %arg2[%c0_1, %c0_2] : memref<1x16xf32, #tpu.memory_space<vmem>>, vector<1x16xf32>
    %3 = vector.broadcast %2 : vector<1x16xf32> to vector<16x16xf32>
    %4 = arith.mulf %1, %3 : vector<16x16xf32>
    %c0_3 = arith.constant 0 : index
    %c0_4 = arith.constant 0 : index
    %5 = vector.load %arg3[%c0_3, %c0_4] : memref<1x16xf32, #tpu.memory_space<vmem>>, vector<1x16xf32>
    %6 = vector.broadcast %5 : vector<1x16xf32> to vector<16x16xf32>
    %7 = arith.addf %4, %6 : vector<16x16xf32>
    %c0_5 = arith.constant 0 : index
    %c0_6 = arith.constant 0 : index
    %8 = vector.load %arg4[%c0_5, %c0_6] : memref<16x16xbf16, #tpu.memory_space<vmem>>, vector<16x16xbf16>
    %9 = arith.extf %8 : vector<16x16xbf16> to vector<16x16xf32>
    %c0_7 = arith.constant 0 : index
    %c0_8 = arith.constant 0 : index
    %10 = vector.load %arg5[%c0_7, %c0_8] : memref<1x16xf32, #tpu.memory_space<vmem>>, vector<1x16xf32>
    %11 = vector.broadcast %10 : vector<1x16xf32> to vector<16x16xf32>
    %12 = arith.mulf %9, %11 : vector<16x16xf32>
    %c0_9 = arith.constant 0 : index
    %c0_10 = arith.constant 0 : index
    %13 = vector.load %arg6[%c0_9, %c0_10] : memref<1x16xf32, #tpu.memory_space<vmem>>, vector<1x16xf32>
    %14 = vector.broadcast %13 : vector<1x16xf32> to vector<16x16xf32>
    %15 = arith.addf %12, %14 : vector<16x16xf32>
    %cst = arith.constant 0.000000e+00 : f32
    %16 = vector.broadcast %cst : f32 to vector<16x16xf32>
    %17 = arith.maximumf %15, %16 : vector<16x16xf32>
    %18 = arith.addf %7, %17 : vector<16x16xf32>
    %19 = arith.truncf %18 : vector<16x16xf32> to vector<16x16xbf16>
    %c0_11 = arith.constant 0 : index
    %c0_12 = arith.constant 0 : index
    %20 = vector.load %arg7[%c0_11, %c0_12] : memref<16x16xbf16, #tpu.memory_space<vmem>>, vector<16x16xbf16>
    tpu.vector_store %arg7[%c0_11, %c0_12], %19 {strides = array<i32>} : memref<16x16xbf16, #tpu.memory_space<vmem>>, vector<16x16xbf16>,
    return
  }
  func.func @transform_0(%arg0: i32) -> (i32, i32) {
    %c0_i32 = arith.constant 0 : i32
    %c0_i32_0 = arith.constant 0 : i32
    return %arg0, %c0_i32 : i32, i32
  }
  func.func @transform_1(%arg0: i32) -> (i32, i32) {
    %c0_i32 = arith.constant 0 : i32
    %c0_i32_0 = arith.constant 0 : i32
    %c0_i32_1 = arith.constant 0 : i32
    return %c0_i32, %c0_i32_0 : i32, i32
  }
  func.func @transform_2(%arg0: i32) -> (i32, i32) {
    %c0_i32 = arith.constant 0 : i32
    %c0_i32_0 = arith.constant 0 : i32
    %c0_i32_1 = arith.constant 0 : i32
    return %c0_i32, %c0_i32_0 : i32, i32
  }
  func.func @transform_3(%arg0: i32) -> (i32, i32) {
    %c0_i32 = arith.constant 0 : i32
    %c0_i32_0 = arith.constant 0 : i32
    return %arg0, %c0_i32 : i32, i32
  }
  func.func @transform_4(%arg0: i32) -> (i32, i32) {
    %c0_i32 = arith.constant 0 : i32
    %c0_i32_0 = arith.constant 0 : i32
    %c0_i32_1 = arith.constant 0 : i32
    return %c0_i32, %c0_i32_0 : i32, i32
  }
  func.func @transform_5(%arg0: i32) -> (i32, i32) {
    %c0_i32 = arith.constant 0 : i32
    %c0_i32_0 = arith.constant 0 : i32
    %c0_i32_1 = arith.constant 0 : i32
    return %c0_i32, %c0_i32_0 : i32, i32
  }
  func.func @transform_6(%arg0: i32) -> (i32, i32) {
    %c0_i32 = arith.constant 0 : i32
    %c0_i32_0 = arith.constant 0 : i32
    return %arg0, %c0_i32 : i32, i32
  }
}

module attributes {stable_mosaic.version = 11 : i64} {
  func.func @_linear_kernel(%arg0: i32, %arg1: memref<16x16xbf16, #tpu.memory_space<vmem>>, %arg2: memref<16x16xbf16, #tpu.memory_space<vmem>>, %arg3: memref<1x16xf32, #tpu.memory_space<vmem>>, %arg4: memref<16x16xbf16, #tpu.memory_space<vmem>>, %arg5: memref<1x16xf32, #tpu.memory_space<vmem>>, %arg6: memref<1x16xf32, #tpu.memory_space<vmem>>) attributes {dimension_semantics = [#tpu.dimension_semantics<arbitrary>], iteration_bounds = array<i64: 1>, scalar_prefetch = 0 : i64, scratch_operands = 0 : i64, tpu.core_type = #tpu.core_type<tc>, window_params = [{transform_indices = @transform_0, window_bounds = array<i64: 16, 16>}, {pipeline_mode = #tpu.pipeline_mode<synchronous>, transform_indices = @transform_1, window_bounds = array<i64: 16, 16>}, {pipeline_mode = #tpu.pipeline_mode<synchronous>, transform_indices = @transform_2, window_bounds = array<i64: 1, 16>}, {transform_indices = @transform_3, window_bounds = array<i64: 16, 16>}, {pipeline_mode = #tpu.pipeline_mode<synchronous>, transform_indices = @transform_4, window_bounds = array<i64: 1, 16>}, {pipeline_mode = #tpu.pipeline_mode<synchronous>, transform_indices = @transform_5, window_bounds = array<i64: 1, 16>}]} {
    %c0 = arith.constant 0 : index
    %c0_0 = arith.constant 0 : index
    %0 = vector.load %arg1[%c0, %c0_0] : memref<16x16xbf16, #tpu.memory_space<vmem>>, vector<16x16xbf16>
    %c0_1 = arith.constant 0 : index
    %c0_2 = arith.constant 0 : index
    %1 = vector.load %arg2[%c0_1, %c0_2] : memref<16x16xbf16, #tpu.memory_space<vmem>>, vector<16x16xbf16>
    %cst = arith.constant dense<0.000000e+00> : vector<16x16xf32>
    %2 = tpu.matmul %0, %1, %cst {dimension_numbers = #tpu.dot_dimension_numbers<[1], [0], [0], [1], [0, 0, 1, 1], [], []>} : vector<16x16xbf16>, vector<16x16xbf16>, vector<16x16xf32> -> vector<16x16xf32>
    %c0_3 = arith.constant 0 : index
    %c0_4 = arith.constant 0 : index
    %3 = vector.load %arg3[%c0_3, %c0_4] : memref<1x16xf32, #tpu.memory_space<vmem>>, vector<1x16xf32>
    %4 = vector.broadcast %3 : vector<1x16xf32> to vector<16x16xf32>
    %5 = arith.addf %2, %4 : vector<16x16xf32>
    %6 = arith.truncf %5 : vector<16x16xf32> to vector<16x16xbf16>
    %c0_5 = arith.constant 0 : index
    %c0_6 = arith.constant 0 : index
    %7 = vector.load %arg4[%c0_5, %c0_6] : memref<16x16xbf16, #tpu.memory_space<vmem>>, vector<16x16xbf16>
    tpu.vector_store %arg4[%c0_5, %c0_6], %6 {strides = array<i32>} : memref<16x16xbf16, #tpu.memory_space<vmem>>, vector<16x16xbf16>,
    %c0_i32 = arith.constant 0 : i32
    %8 = arith.cmpi eq, %arg0, %c0_i32 : i32
    %9 = arith.extui %8 : i1 to i32
    %c0_i32_7 = arith.constant 0 : i32
    %10 = arith.cmpi ne, %9, %c0_i32_7 : i32
    scf.if %10 {
      %cst_19 = arith.constant 0.000000e+00 : f32
      %32 = vector.broadcast %cst_19 : f32 to vector<1x16xf32>
      %c0_20 = arith.constant 0 : index
      %c0_21 = arith.constant 0 : index
      %33 = vector.load %arg5[%c0_20, %c0_21] : memref<1x16xf32, #tpu.memory_space<vmem>>, vector<1x16xf32>
      tpu.vector_store %arg5[%c0_20, %c0_21], %32 {strides = array<i32>} : memref<1x16xf32, #tpu.memory_space<vmem>>, vector<1x16xf32>,
      %cst_22 = arith.constant 0.000000e+00 : f32
      %34 = vector.broadcast %cst_22 : f32 to vector<1x16xf32>
      %c0_23 = arith.constant 0 : index
      %c0_24 = arith.constant 0 : index
      %35 = vector.load %arg6[%c0_23, %c0_24] : memref<1x16xf32, #tpu.memory_space<vmem>>, vector<1x16xf32>
      tpu.vector_store %arg6[%c0_23, %c0_24], %34 {strides = array<i32>} : memref<1x16xf32, #tpu.memory_space<vmem>>, vector<1x16xf32>,
    } else {
    }
    %11 = tpu.iota {dimensions = array<i32: 0>} : vector<16x1xi32>
    %c16_i32 = arith.constant 16 : i32
    %12 = arith.muli %arg0, %c16_i32 : i32
    %13 = vector.broadcast %12 : i32 to vector<16x1xi32>
    %14 = arith.addi %11, %13 : vector<16x1xi32>
    %c12_i32 = arith.constant 12 : i32
    %15 = vector.broadcast %c12_i32 : i32 to vector<16x1xi32>
    %16 = arith.cmpi slt, %14, %15 : vector<16x1xi32>
    %cst_8 = arith.constant 0.000000e+00 : f32
    %17 = vector.shape_cast %16 : vector<16x1xi1> to vector<16x1xi1>
    %18 = vector.broadcast %17 : vector<16x1xi1> to vector<16x16xi1>
    %19 = vector.broadcast %cst_8 : f32 to vector<16x16xf32>
    %20 = arith.select %18, %5, %19 : vector<16x16xi1>, vector<16x16xf32>
    %c0_9 = arith.constant 0 : index
    %c0_10 = arith.constant 0 : index
    %21 = vector.load %arg5[%c0_9, %c0_10] : memref<1x16xf32, #tpu.memory_space<vmem>>, vector<1x16xf32>
    %cst_11 = arith.constant dense<0.000000e+00> : vector<16xf32>
    %22 = vector.multi_reduction <add>, %20, %cst_11 [0] : vector<16x16xf32> to vector<16xf32>
    %23 = vector.shape_cast %22 : vector<16xf32> to vector<1x16xf32>
    %24 = arith.addf %21, %23 : vector<1x16xf32>
    %c0_12 = arith.constant 0 : index
    %c0_13 = arith.constant 0 : index
    %25 = vector.load %arg5[%c0_12, %c0_13] : memref<1x16xf32, #tpu.memory_space<vmem>>, vector<1x16xf32>
    tpu.vector_store %arg5[%c0_12, %c0_13], %24 {strides = array<i32>} : memref<1x16xf32, #tpu.memory_space<vmem>>, vector<1x16xf32>,
    %c0_14 = arith.constant 0 : index
    %c0_15 = arith.constant 0 : index
    %26 = vector.load %arg6[%c0_14, %c0_15] : memref<1x16xf32, #tpu.memory_space<vmem>>, vector<1x16xf32>
    %27 = arith.mulf %20, %20 : vector<16x16xf32>
    %cst_16 = arith.constant dense<0.000000e+00> : vector<16xf32>
    %28 = vector.multi_reduction <add>, %27, %cst_16 [0] : vector<16x16xf32> to vector<16xf32>
    %29 = vector.shape_cast %28 : vector<16xf32> to vector<1x16xf32>
    %30 = arith.addf %26, %29 : vector<1x16xf32>
    %c0_17 = arith.constant 0 : index
    %c0_18 = arith.constant 0 : index
    %31 = vector.load %arg6[%c0_17, %c0_18] : memref<1x16xf32, #tpu.memory_space<vmem>>, vector<1x16xf32>
    tpu.vector_store %arg6[%c0_17, %c0_18], %30 {strides = array<i32>} : memref<1x16xf32, #tpu.memory_space<vmem>>, vector<1x16xf32>,
    return
  }
  func.func @transform_0(%arg0: i32) -> (i32, i32) {
    %c0_i32 = arith.constant 0 : i32
    %c0_i32_0 = arith.constant 0 : i32
    return %arg0, %c0_i32 : i32, i32
  }
  func.func @transform_1(%arg0: i32) -> (i32, i32) {
    %c0_i32 = arith.constant 0 : i32
    %c0_i32_0 = arith.constant 0 : i32
    %c0_i32_1 = arith.constant 0 : i32
    return %c0_i32, %c0_i32_0 : i32, i32
  }
  func.func @transform_2(%arg0: i32) -> (i32, i32) {
    %c0_i32 = arith.constant 0 : i32
    %c0_i32_0 = arith.constant 0 : i32
    %c0_i32_1 = arith.constant 0 : i32
    return %c0_i32, %c0_i32_0 : i32, i32
  }
  func.func @transform_3(%arg0: i32) -> (i32, i32) {
    %c0_i32 = arith.constant 0 : i32
    %c0_i32_0 = arith.constant 0 : i32
    return %arg0, %c0_i32 : i32, i32
  }
  func.func @transform_4(%arg0: i32) -> (i32, i32) {
    %c0_i32 = arith.constant 0 : i32
    %c0_i32_0 = arith.constant 0 : i32
    %c0_i32_1 = arith.constant 0 : i32
    return %c0_i32, %c0_i32_0 : i32, i32
  }
  func.func @transform_5(%arg0: i32) -> (i32, i32) {
    %c0_i32 = arith.constant 0 : i32
    %c0_i32_0 = arith.constant 0 : i32
    %c0_i32_1 = arith.constant 0 : i32
    return %c0_i32, %c0_i32_0 : i32, i32
  }
}

module attributes {stable_mosaic.version = 11 : i64} {
  func.func @_linear_kernel(%arg0: i32, %arg1: memref<16x16xbf16, #tpu.memory_space<vmem>>, %arg2: memref<1x16xf32, #tpu.memory_space<vmem>>, %arg3: memref<1x16xf32, #tpu.memory_space<vmem>>, %arg4: memref<16x16xbf16, #tpu.memory_space<vmem>>, %arg5: memref<1x16xf32, #tpu.memory_space<vmem>>, %arg6: memref<16x16xbf16, #tpu.memory_space<vmem>>, %arg7: memref<1x16xf32, #tpu.memory_space<vmem>>, %arg8: memref<1x16xf32, #tpu.memory_space<vmem>>) attributes {dimension_semantics = [#tpu.dimension_semantics<arbitrary>], iteration_bounds = array<i64: 1>, scalar_prefetch = 0 : i64, scratch_operands = 0 : i64, tpu.core_type = #tpu.core_type<tc>, window_params = [{transform_indices = @transform_0, window_bounds = array<i64: 16, 16>}, {pipeline_mode = #tpu.pipeline_mode<synchronous>, transform_indices = @transform_1, window_bounds = array<i64: 1, 16>}, {pipeline_mode = #tpu.pipeline_mode<synchronous>, transform_indices = @transform_2, window_bounds = array<i64: 1, 16>}, {pipeline_mode = #tpu.pipeline_mode<synchronous>, transform_indices = @transform_3, window_bounds = array<i64: 16, 16>}, {pipeline_mode = #tpu.pipeline_mode<synchronous>, transform_indices = @transform_4, window_bounds = array<i64: 1, 16>}, {transform_indices = @transform_5, window_bounds = array<i64: 16, 16>}, {pipeline_mode = #tpu.pipeline_mode<synchronous>, transform_indices = @transform_6, window_bounds = array<i64: 1, 16>}, {pipeline_mode = #tpu.pipeline_mode<synchronous>, transform_indices = @transform_7, window_bounds = array<i64: 1, 16>}]} {
    %c0 = arith.constant 0 : index
    %c0_0 = arith.constant 0 : index
    %0 = vector.load %arg1[%c0, %c0_0] : memref<16x16xbf16, #tpu.memory_space<vmem>>, vector<16x16xbf16>
    %1 = arith.extf %0 : vector<16x16xbf16> to vector<16x16xf32>
    %c0_1 = arith.constant 0 : index
    %c0_2 = arith.constant 0 : index
    %2 = vector.load %arg2[%c0_1, %c0_2] : memref<1x16xf32, #tpu.memory_space<vmem>>, vector<1x16xf32>
    %3 = vector.broadcast %2 : vector<1x16xf32> to vector<16x16xf32>
    %4 = arith.mulf %1, %3 : vector<16x16xf32>
    %c0_3 = arith.constant 0 : index
    %c0_4 = arith.constant 0 : index
    %5 = vector.load %arg3[%c0_3, %c0_4] : memref<1x16xf32, #tpu.memory_space<vmem>>, vector<1x16xf32>
    %6 = vector.broadcast %5 : vector<1x16xf32> to vector<16x16xf32>
    %7 = arith.addf %4, %6 : vector<16x16xf32>
    %cst = arith.constant 0.000000e+00 : f32
    %8 = vector.broadcast %cst : f32 to vector<16x16xf32>
    %9 = arith.maximumf %7, %8 : vector<16x16xf32>
    %10 = arith.truncf %9 : vector<16x16xf32> to vector<16x16xbf16>
    %c0_5 = arith.constant 0 : index
    %c0_6 = arith.constant 0 : index
    %11 = vector.load %arg4[%c0_5, %c0_6] : memref<16x16xbf16, #tpu.memory_space<vmem>>, vector<16x16xbf16>
    %cst_7 = arith.constant dense<0.000000e+00> : vector<16x16xf32>
    %12 = tpu.matmul %10, %11, %cst_7 {dimension_numbers = #tpu.dot_dimension_numbers<[1], [0], [0], [1], [0, 0, 1, 1], [], []>} : vector<16x16xbf16>, vector<16x16xbf16>, vector<16x16xf32> -> vector<16x16xf32>
    %c0_8 = arith.constant 0 : index
    %c0_9 = arith.constant 0 : index
    %13 = vector.load %arg5[%c0_8, %c0_9] : memref<1x16xf32, #tpu.memory_space<vmem>>, vector<1x16xf32>
    %14 = vector.broadcast %13 : vector<1x16xf32> to vector<16x16xf32>
    %15 = arith.addf %12, %14 : vector<16x16xf32>
    %16 = arith.truncf %15 : vector<16x16xf32> to vector<16x16xbf16>
    %c0_10 = arith.constant 0 : index
    %c0_11 = arith.constant 0 : index
    %17 = vector.load %arg6[%c0_10, %c0_11] : memref<16x16xbf16, #tpu.memory_space<vmem>>, vector<16x16xbf16>
    tpu.vector_store %arg6[%c0_10, %c0_11], %16 {strides = array<i32>} : memref<16x16xbf16, #tpu.memory_space<vmem>>, vector<16x16xbf16>,
    %c0_i32 = arith.constant 0 : i32
    %18 = arith.cmpi eq, %arg0, %c0_i32 : i32
    %19 = arith.extui %18 : i1 to i32
    %c0_i32_12 = arith.constant 0 : i32
    %20 = arith.cmpi ne, %19, %c0_i32_12 : i32
    scf.if %20 {
      %cst_24 = arith.constant 0.000000e+00 : f32
      %42 = vector.broadcast %cst_24 : f32 to vector<1x16xf32>
      %c0_25 = arith.constant 0 : index
      %c0_26 = arith.constant 0 : index
      %43 = vector.load %arg7[%c0_25, %c0_26] : memref<1x16xf32, #tpu.memory_space<vmem>>, vector<1x16xf32>
      tpu.vector_store %arg7[%c0_25, %c0_26], %42 {strides = array<i32>} : memref<1x16xf32, #tpu.memory_space<vmem>>, vector<1x16xf32>,
      %cst_27 = arith.constant 0.000000e+00 : f32
      %44 = vector.broadcast %cst_27 : f32 to vector<1x16xf32>
      %c0_28 = arith.constant 0 : index
      %c0_29 = arith.constant 0 : index
      %45 = vector.load %arg8[%c0_28, %c0_29] : memref<1x16xf32, #tpu.memory_space<vmem>>, vector<1x16xf32>
      tpu.vector_store %arg8[%c0_28, %c0_29], %44 {strides = array<i32>} : memref<1x16xf32, #tpu.memory_space<vmem>>, vector<1x16xf32>,
    } else {
    }
    %21 = tpu.iota {dimensions = array<i32: 0>} : vector<16x1xi32>
    %c16_i32 = arith.constant 16 : i32
    %22 = arith.muli %arg0, %c16_i32 : i32
    %23 = vector.broadcast %22 : i32 to vector<16x1xi32>
    %24 = arith.addi %21, %23 : vector<16x1xi32>
    %c12_i32 = arith.constant 12 : i32
    %25 = vector.broadcast %c12_i32 : i32 to vector<16x1xi32>
    %26 = arith.cmpi slt, %24, %25 : vector<16x1xi32>
    %cst_13 = arith.constant 0.000000e+00 : f32
    %27 = vector.shape_cast %26 : vector<16x1xi1> to vector<16x1xi1>
    %28 = vector.broadcast %27 : vector<16x1xi1> to vector<16x16xi1>
    %29 = vector.broadcast %cst_13 : f32 to vector<16x16xf32>
    %30 = arith.select %28, %15, %29 : vector<16x16xi1>, vector<16x16xf32>
    %c0_14 = arith.constant 0 : index
    %c0_15 = arith.constant 0 : index
    %31 = vector.load %arg7[%c0_14, %c0_15] : memref<1x16xf32, #tpu.memory_space<vmem>>, vector<1x16xf32>
    %cst_16 = arith.constant dense<0.000000e+00> : vector<16xf32>
    %32 = vector.multi_reduction <add>, %30, %cst_16 [0] : vector<16x16xf32> to vector<16xf32>
    %33 = vector.shape_cast %32 : vector<16xf32> to vector<1x16xf32>
    %34 = arith.addf %31, %33 : vector<1x16xf32>
    %c0_17 = arith.constant 0 : index
    %c0_18 = arith.constant 0 : index
    %35 = vector.load %arg7[%c0_17, %c0_18] : memref<1x16xf32, #tpu.memory_space<vmem>>, vector<1x16xf32>
    tpu.vector_store %arg7[%c0_17, %c0_18], %34 {strides = array<i32>} : memref<1x16xf32, #tpu.memory_space<vmem>>, vector<1x16xf32>,
    %c0_19 = arith.constant 0 : index
    %c0_20 = arith.constant 0 : index
    %36 = vector.load %arg8[%c0_19, %c0_20] : memref<1x16xf32, #tpu.memory_space<vmem>>, vector<1x16xf32>
    %37 = arith.mulf %30, %30 : vector<16x16xf32>
    %cst_21 = arith.constant dense<0.000000e+00> : vector<16xf32>
    %38 = vector.multi_reduction <add>, %37, %cst_21 [0] : vector<16x16xf32> to vector<16xf32>
    %39 = vector.shape_cast %38 : vector<16xf32> to vector<1x16xf32>
    %40 = arith.addf %36, %39 : vector<1x16xf32>
    %c0_22 = arith.constant 0 : index
    %c0_23 = arith.constant 0 : index
    %41 = vector.load %arg8[%c0_22, %c0_23] : memref<1x16xf32, #tpu.memory_space<vmem>>, vector<1x16xf32>
    tpu.vector_store %arg8[%c0_22, %c0_23], %40 {strides = array<i32>} : memref<1x16xf32, #tpu.memory_space<vmem>>, vector<1x16xf32>,
    return
  }
  func.func @transform_0(%arg0: i32) -> (i32, i32) {
    %c0_i32 = arith.constant 0 : i32
    %c0_i32_0 = arith.constant 0 : i32
    return %arg0, %c0_i32 : i32, i32
  }
  func.func @transform_1(%arg0: i32) -> (i32, i32) {
    %c0_i32 = arith.constant 0 : i32
    %c0_i32_0 = arith.constant 0 : i32
    %c0_i32_1 = arith.constant 0 : i32
    return %c0_i32, %c0_i32_0 : i32, i32
  }
  func.func @transform_2(%arg0: i32) -> (i32, i32) {
    %c0_i32 = arith.constant 0 : i32
    %c0_i32_0 = arith.constant 0 : i32
    %c0_i32_1 = arith.constant 0 : i32
    return %c0_i32, %c0_i32_0 : i32, i32
  }
  func.func @transform_3(%arg0: i32) -> (i32, i32) {
    %c0_i32 = arith.constant 0 : i32
    %c0_i32_0 = arith.constant 0 : i32
    %c0_i32_1 = arith.constant 0 : i32
    return %c0_i32, %c0_i32_0 : i32, i32
  }
  func.func @transform_4(%arg0: i32) -> (i32, i32) {
    %c0_i32 = arith.constant 0 : i32
    %c0_i32_0 = arith.constant 0 : i32
    %c0_i32_1 = arith.constant 0 : i32
    return %c0_i32, %c0_i32_0 : i32, i32
  }
  func.func @transform_5(%arg0: i32) -> (i32, i32) {
    %c0_i32 = arith.constant 0 : i32
    %c0_i32_0 = arith.constant 0 : i32
    return %arg0, %c0_i32 : i32, i32
  }
  func.func @transform_6(%arg0: i32) -> (i32, i32) {
    %c0_i32 = arith.constant 0 : i32
    %c0_i32_0 = arith.constant 0 : i32
    %c0_i32_1 = arith.constant 0 : i32
    return %c0_i32, %c0_i32_0 : i32, i32
  }
  func.func @transform_7(%arg0: i32) -> (i32, i32) {
    %c0_i32 = arith.constant 0 : i32
    %c0_i32_0 = arith.constant 0 : i32
    %c0_i32_1 = arith.constant 0 : i32
    return %c0_i32, %c0_i32_0 : i32, i32
  }
}

module attributes {stable_mosaic.version = 11 : i64} {
  func.func @_affine_res_kernel(%arg0: i32, %arg1: memref<16x16xbf16, #tpu.memory_space<vmem>>, %arg2: memref<1x16xf32, #tpu.memory_space<vmem>>, %arg3: memref<1x16xf32, #tpu.memory_space<vmem>>, %arg4: memref<16x16xbf16, #tpu.memory_space<vmem>>, %arg5: memref<16x16xbf16, #tpu.memory_space<vmem>>) attributes {dimension_semantics = [#tpu.dimension_semantics<parallel>], iteration_bounds = array<i64: 1>, scalar_prefetch = 0 : i64, scratch_operands = 0 : i64, tpu.core_type = #tpu.core_type<tc>, window_params = [{transform_indices = @transform_0, window_bounds = array<i64: 16, 16>}, {pipeline_mode = #tpu.pipeline_mode<synchronous>, transform_indices = @transform_1, window_bounds = array<i64: 1, 16>}, {pipeline_mode = #tpu.pipeline_mode<synchronous>, transform_indices = @transform_2, window_bounds = array<i64: 1, 16>}, {transform_indices = @transform_3, window_bounds = array<i64: 16, 16>}, {transform_indices = @transform_4, window_bounds = array<i64: 16, 16>}]} {
    %c0 = arith.constant 0 : index
    %c0_0 = arith.constant 0 : index
    %0 = vector.load %arg1[%c0, %c0_0] : memref<16x16xbf16, #tpu.memory_space<vmem>>, vector<16x16xbf16>
    %1 = arith.extf %0 : vector<16x16xbf16> to vector<16x16xf32>
    %c0_1 = arith.constant 0 : index
    %c0_2 = arith.constant 0 : index
    %2 = vector.load %arg2[%c0_1, %c0_2] : memref<1x16xf32, #tpu.memory_space<vmem>>, vector<1x16xf32>
    %3 = vector.broadcast %2 : vector<1x16xf32> to vector<16x16xf32>
    %4 = arith.mulf %1, %3 : vector<16x16xf32>
    %c0_3 = arith.constant 0 : index
    %c0_4 = arith.constant 0 : index
    %5 = vector.load %arg3[%c0_3, %c0_4] : memref<1x16xf32, #tpu.memory_space<vmem>>, vector<1x16xf32>
    %6 = vector.broadcast %5 : vector<1x16xf32> to vector<16x16xf32>
    %7 = arith.addf %4, %6 : vector<16x16xf32>
    %c0_5 = arith.constant 0 : index
    %c0_6 = arith.constant 0 : index
    %8 = vector.load %arg4[%c0_5, %c0_6] : memref<16x16xbf16, #tpu.memory_space<vmem>>, vector<16x16xbf16>
    %9 = arith.extf %8 : vector<16x16xbf16> to vector<16x16xf32>
    %10 = arith.addf %7, %9 : vector<16x16xf32>
    %11 = arith.truncf %10 : vector<16x16xf32> to vector<16x16xbf16>
    %c0_7 = arith.constant 0 : index
    %c0_8 = arith.constant 0 : index
    %12 = vector.load %arg5[%c0_7, %c0_8] : memref<16x16xbf16, #tpu.memory_space<vmem>>, vector<16x16xbf16>
    tpu.vector_store %arg5[%c0_7, %c0_8], %11 {strides = array<i32>} : memref<16x16xbf16, #tpu.memory_space<vmem>>, vector<16x16xbf16>,
    return
  }
  func.func @transform_0(%arg0: i32) -> (i32, i32) {
    %c0_i32 = arith.constant 0 : i32
    %c0_i32_0 = arith.constant 0 : i32
    return %arg0, %c0_i32 : i32, i32
  }
  func.func @transform_1(%arg0: i32) -> (i32, i32) {
    %c0_i32 = arith.constant 0 : i32
    %c0_i32_0 = arith.constant 0 : i32
    %c0_i32_1 = arith.constant 0 : i32
    return %c0_i32, %c0_i32_0 : i32, i32
  }
  func.func @transform_2(%arg0: i32) -> (i32, i32) {
    %c0_i32 = arith.constant 0 : i32
    %c0_i32_0 = arith.constant 0 : i32
    %c0_i32_1 = arith.constant 0 : i32
    return %c0_i32, %c0_i32_0 : i32, i32
  }
  func.func @transform_3(%arg0: i32) -> (i32, i32) {
    %c0_i32 = arith.constant 0 : i32
    %c0_i32_0 = arith.constant 0 : i32
    return %arg0, %c0_i32 : i32, i32
  }
  func.func @transform_4(%arg0: i32) -> (i32, i32) {
    %c0_i32 = arith.constant 0 : i32
    %c0_i32_0 = arith.constant 0 : i32
    return %arg0, %c0_i32 : i32, i32
  }
}

module attributes {stable_mosaic.version = 11 : i64} {
  func.func @_linear_kernel(%arg0: i32, %arg1: memref<16x16xbf16, #tpu.memory_space<vmem>>, %arg2: memref<16x16xbf16, #tpu.memory_space<vmem>>, %arg3: memref<1x16xf32, #tpu.memory_space<vmem>>, %arg4: memref<16x16xbf16, #tpu.memory_space<vmem>>) attributes {dimension_semantics = [#tpu.dimension_semantics<parallel>], iteration_bounds = array<i64: 1>, scalar_prefetch = 0 : i64, scratch_operands = 0 : i64, tpu.core_type = #tpu.core_type<tc>, window_params = [{transform_indices = @transform_0, window_bounds = array<i64: 16, 16>}, {pipeline_mode = #tpu.pipeline_mode<synchronous>, transform_indices = @transform_1, window_bounds = array<i64: 16, 16>}, {pipeline_mode = #tpu.pipeline_mode<synchronous>, transform_indices = @transform_2, window_bounds = array<i64: 1, 16>}, {transform_indices = @transform_3, window_bounds = array<i64: 16, 16>}]} {
    %c0 = arith.constant 0 : index
    %c0_0 = arith.constant 0 : index
    %0 = vector.load %arg1[%c0, %c0_0] : memref<16x16xbf16, #tpu.memory_space<vmem>>, vector<16x16xbf16>
    %c0_1 = arith.constant 0 : index
    %c0_2 = arith.constant 0 : index
    %1 = vector.load %arg2[%c0_1, %c0_2] : memref<16x16xbf16, #tpu.memory_space<vmem>>, vector<16x16xbf16>
    %cst = arith.constant dense<0.000000e+00> : vector<16x16xf32>
    %2 = tpu.matmul %0, %1, %cst {dimension_numbers = #tpu.dot_dimension_numbers<[1], [0], [0], [1], [0, 0, 1, 1], [], []>} : vector<16x16xbf16>, vector<16x16xbf16>, vector<16x16xf32> -> vector<16x16xf32>
    %c0_3 = arith.constant 0 : index
    %c0_4 = arith.constant 0 : index
    %3 = vector.load %arg3[%c0_3, %c0_4] : memref<1x16xf32, #tpu.memory_space<vmem>>, vector<1x16xf32>
    %4 = vector.broadcast %3 : vector<1x16xf32> to vector<16x16xf32>
    %5 = arith.addf %2, %4 : vector<16x16xf32>
    %6 = arith.truncf %5 : vector<16x16xf32> to vector<16x16xbf16>
    %c0_5 = arith.constant 0 : index
    %c0_6 = arith.constant 0 : index
    %7 = vector.load %arg4[%c0_5, %c0_6] : memref<16x16xbf16, #tpu.memory_space<vmem>>, vector<16x16xbf16>
    tpu.vector_store %arg4[%c0_5, %c0_6], %6 {strides = array<i32>} : memref<16x16xbf16, #tpu.memory_space<vmem>>, vector<16x16xbf16>,
    return
  }
  func.func @transform_0(%arg0: i32) -> (i32, i32) {
    %c0_i32 = arith.constant 0 : i32
    %c0_i32_0 = arith.constant 0 : i32
    return %arg0, %c0_i32 : i32, i32
  }
  func.func @transform_1(%arg0: i32) -> (i32, i32) {
    %c0_i32 = arith.constant 0 : i32
    %c0_i32_0 = arith.constant 0 : i32
    %c0_i32_1 = arith.constant 0 : i32
    return %c0_i32, %c0_i32_0 : i32, i32
  }
  func.func @transform_2(%arg0: i32) -> (i32, i32) {
    %c0_i32 = arith.constant 0 : i32
    %c0_i32_0 = arith.constant 0 : i32
    %c0_i32_1 = arith.constant 0 : i32
    return %c0_i32, %c0_i32_0 : i32, i32
  }
  func.func @transform_3(%arg0: i32) -> (i32, i32) {
    %c0_i32 = arith.constant 0 : i32
    %c0_i32_0 = arith.constant 0 : i32
    return %arg0, %c0_i32 : i32, i32
  }
}

module attributes {stable_mosaic.version = 11 : i64} {
  func.func @_linear_kernel(%arg0: i32, %arg1: memref<48x16xbf16, #tpu.memory_space<vmem>>, %arg2: memref<16x32xbf16, #tpu.memory_space<vmem>>, %arg3: memref<1x32xf32, #tpu.memory_space<vmem>>, %arg4: memref<48x32xbf16, #tpu.memory_space<vmem>>) attributes {dimension_semantics = [#tpu.dimension_semantics<parallel>], iteration_bounds = array<i64: 1>, scalar_prefetch = 0 : i64, scratch_operands = 0 : i64, tpu.core_type = #tpu.core_type<tc>, window_params = [{transform_indices = @transform_0, window_bounds = array<i64: 48, 16>}, {pipeline_mode = #tpu.pipeline_mode<synchronous>, transform_indices = @transform_1, window_bounds = array<i64: 16, 32>}, {pipeline_mode = #tpu.pipeline_mode<synchronous>, transform_indices = @transform_2, window_bounds = array<i64: 1, 32>}, {transform_indices = @transform_3, window_bounds = array<i64: 48, 32>}]} {
    %c0 = arith.constant 0 : index
    %c0_0 = arith.constant 0 : index
    %0 = vector.load %arg1[%c0, %c0_0] : memref<48x16xbf16, #tpu.memory_space<vmem>>, vector<48x16xbf16>
    %c0_1 = arith.constant 0 : index
    %c0_2 = arith.constant 0 : index
    %1 = vector.load %arg2[%c0_1, %c0_2] : memref<16x32xbf16, #tpu.memory_space<vmem>>, vector<16x32xbf16>
    %cst = arith.constant dense<0.000000e+00> : vector<48x32xf32>
    %2 = tpu.matmul %0, %1, %cst {dimension_numbers = #tpu.dot_dimension_numbers<[1], [0], [0], [1], [0, 0, 1, 1], [], []>} : vector<48x16xbf16>, vector<16x32xbf16>, vector<48x32xf32> -> vector<48x32xf32>
    %c0_3 = arith.constant 0 : index
    %c0_4 = arith.constant 0 : index
    %3 = vector.load %arg3[%c0_3, %c0_4] : memref<1x32xf32, #tpu.memory_space<vmem>>, vector<1x32xf32>
    %4 = vector.broadcast %3 : vector<1x32xf32> to vector<48x32xf32>
    %5 = arith.addf %2, %4 : vector<48x32xf32>
    %6 = arith.truncf %5 : vector<48x32xf32> to vector<48x32xbf16>
    %c0_5 = arith.constant 0 : index
    %c0_6 = arith.constant 0 : index
    %7 = vector.load %arg4[%c0_5, %c0_6] : memref<48x32xbf16, #tpu.memory_space<vmem>>, vector<48x32xbf16>
    tpu.vector_store %arg4[%c0_5, %c0_6], %6 {strides = array<i32>} : memref<48x32xbf16, #tpu.memory_space<vmem>>, vector<48x32xbf16>,
    return
  }
  func.func @transform_0(%arg0: i32) -> (i32, i32) {
    %c0_i32 = arith.constant 0 : i32
    %c0_i32_0 = arith.constant 0 : i32
    return %arg0, %c0_i32 : i32, i32
  }
  func.func @transform_1(%arg0: i32) -> (i32, i32) {
    %c0_i32 = arith.constant 0 : i32
    %c0_i32_0 = arith.constant 0 : i32
    %c0_i32_1 = arith.constant 0 : i32
    return %c0_i32, %c0_i32_0 : i32, i32
  }
  func.func @transform_2(%arg0: i32) -> (i32, i32) {
    %c0_i32 = arith.constant 0 : i32
    %c0_i32_0 = arith.constant 0 : i32
    %c0_i32_1 = arith.constant 0 : i32
    return %c0_i32, %c0_i32_0 : i32, i32
  }
  func.func @transform_3(%arg0: i32) -> (i32, i32) {
    %c0_i32 = arith.constant 0 : i32
    %c0_i32_0 = arith.constant 0 : i32
    return %arg0, %c0_i32 : i32, i32
  }
}

module attributes {stable_mosaic.version = 11 : i64} {
  func.func @_linear_kernel(%arg0: i32, %arg1: memref<48x32xbf16, #tpu.memory_space<vmem>>, %arg2: memref<32x96xbf16, #tpu.memory_space<vmem>>, %arg3: memref<1x96xf32, #tpu.memory_space<vmem>>, %arg4: memref<48x96xbf16, #tpu.memory_space<vmem>>) attributes {dimension_semantics = [#tpu.dimension_semantics<parallel>], iteration_bounds = array<i64: 1>, scalar_prefetch = 0 : i64, scratch_operands = 0 : i64, tpu.core_type = #tpu.core_type<tc>, window_params = [{transform_indices = @transform_0, window_bounds = array<i64: 48, 32>}, {pipeline_mode = #tpu.pipeline_mode<synchronous>, transform_indices = @transform_1, window_bounds = array<i64: 32, 96>}, {pipeline_mode = #tpu.pipeline_mode<synchronous>, transform_indices = @transform_2, window_bounds = array<i64: 1, 96>}, {transform_indices = @transform_3, window_bounds = array<i64: 48, 96>}]} {
    %c0 = arith.constant 0 : index
    %c0_0 = arith.constant 0 : index
    %0 = vector.load %arg1[%c0, %c0_0] : memref<48x32xbf16, #tpu.memory_space<vmem>>, vector<48x32xbf16>
    %c0_1 = arith.constant 0 : index
    %c0_2 = arith.constant 0 : index
    %1 = vector.load %arg2[%c0_1, %c0_2] : memref<32x96xbf16, #tpu.memory_space<vmem>>, vector<32x96xbf16>
    %cst = arith.constant dense<0.000000e+00> : vector<48x96xf32>
    %2 = tpu.matmul %0, %1, %cst {dimension_numbers = #tpu.dot_dimension_numbers<[1], [0], [0], [1], [0, 0, 1, 1], [], []>} : vector<48x32xbf16>, vector<32x96xbf16>, vector<48x96xf32> -> vector<48x96xf32>
    %c0_3 = arith.constant 0 : index
    %c0_4 = arith.constant 0 : index
    %3 = vector.load %arg3[%c0_3, %c0_4] : memref<1x96xf32, #tpu.memory_space<vmem>>, vector<1x96xf32>
    %4 = vector.broadcast %3 : vector<1x96xf32> to vector<48x96xf32>
    %5 = arith.addf %2, %4 : vector<48x96xf32>
    %6 = arith.truncf %5 : vector<48x96xf32> to vector<48x96xbf16>
    %c0_5 = arith.constant 0 : index
    %c0_6 = arith.constant 0 : index
    %7 = vector.load %arg4[%c0_5, %c0_6] : memref<48x96xbf16, #tpu.memory_space<vmem>>, vector<48x96xbf16>
    tpu.vector_store %arg4[%c0_5, %c0_6], %6 {strides = array<i32>} : memref<48x96xbf16, #tpu.memory_space<vmem>>, vector<48x96xbf16>,
    return
  }
  func.func @transform_0(%arg0: i32) -> (i32, i32) {
    %c0_i32 = arith.constant 0 : i32
    %c0_i32_0 = arith.constant 0 : i32
    return %arg0, %c0_i32 : i32, i32
  }
  func.func @transform_1(%arg0: i32) -> (i32, i32) {
    %c0_i32 = arith.constant 0 : i32
    %c0_i32_0 = arith.constant 0 : i32
    %c0_i32_1 = arith.constant 0 : i32
    return %c0_i32, %c0_i32_0 : i32, i32
  }
  func.func @transform_2(%arg0: i32) -> (i32, i32) {
    %c0_i32 = arith.constant 0 : i32
    %c0_i32_0 = arith.constant 0 : i32
    %c0_i32_1 = arith.constant 0 : i32
    return %c0_i32, %c0_i32_0 : i32, i32
  }
  func.func @transform_3(%arg0: i32) -> (i32, i32) {
    %c0_i32 = arith.constant 0 : i32
    %c0_i32_0 = arith.constant 0 : i32
    return %arg0, %c0_i32 : i32, i32
  }
}

module attributes {stable_mosaic.version = 11 : i64} {
  func.func @_linear_kernel(%arg0: i32, %arg1: memref<48x36xbf16, #tpu.memory_space<vmem>>, %arg2: memref<36x96xbf16, #tpu.memory_space<vmem>>, %arg3: memref<1x96xf32, #tpu.memory_space<vmem>>, %arg4: memref<48x96xbf16, #tpu.memory_space<vmem>>) attributes {dimension_semantics = [#tpu.dimension_semantics<parallel>], iteration_bounds = array<i64: 1>, scalar_prefetch = 0 : i64, scratch_operands = 0 : i64, tpu.core_type = #tpu.core_type<tc>, window_params = [{transform_indices = @transform_0, window_bounds = array<i64: 48, 36>}, {pipeline_mode = #tpu.pipeline_mode<synchronous>, transform_indices = @transform_1, window_bounds = array<i64: 36, 96>}, {pipeline_mode = #tpu.pipeline_mode<synchronous>, transform_indices = @transform_2, window_bounds = array<i64: 1, 96>}, {transform_indices = @transform_3, window_bounds = array<i64: 48, 96>}]} {
    %c0 = arith.constant 0 : index
    %c0_0 = arith.constant 0 : index
    %0 = vector.load %arg1[%c0, %c0_0] : memref<48x36xbf16, #tpu.memory_space<vmem>>, vector<48x36xbf16>
    %c0_1 = arith.constant 0 : index
    %c0_2 = arith.constant 0 : index
    %1 = vector.load %arg2[%c0_1, %c0_2] : memref<36x96xbf16, #tpu.memory_space<vmem>>, vector<36x96xbf16>
    %cst = arith.constant dense<0.000000e+00> : vector<48x96xf32>
    %2 = tpu.matmul %0, %1, %cst {dimension_numbers = #tpu.dot_dimension_numbers<[1], [0], [0], [1], [0, 0, 1, 1], [], []>} : vector<48x36xbf16>, vector<36x96xbf16>, vector<48x96xf32> -> vector<48x96xf32>
    %c0_3 = arith.constant 0 : index
    %c0_4 = arith.constant 0 : index
    %3 = vector.load %arg3[%c0_3, %c0_4] : memref<1x96xf32, #tpu.memory_space<vmem>>, vector<1x96xf32>
    %4 = vector.broadcast %3 : vector<1x96xf32> to vector<48x96xf32>
    %5 = arith.addf %2, %4 : vector<48x96xf32>
    %6 = arith.truncf %5 : vector<48x96xf32> to vector<48x96xbf16>
    %c0_5 = arith.constant 0 : index
    %c0_6 = arith.constant 0 : index
    %7 = vector.load %arg4[%c0_5, %c0_6] : memref<48x96xbf16, #tpu.memory_space<vmem>>, vector<48x96xbf16>
    tpu.vector_store %arg4[%c0_5, %c0_6], %6 {strides = array<i32>} : memref<48x96xbf16, #tpu.memory_space<vmem>>, vector<48x96xbf16>,
    return
  }
  func.func @transform_0(%arg0: i32) -> (i32, i32) {
    %c0_i32 = arith.constant 0 : i32
    %c0_i32_0 = arith.constant 0 : i32
    return %arg0, %c0_i32 : i32, i32
  }
  func.func @transform_1(%arg0: i32) -> (i32, i32) {
    %c0_i32 = arith.constant 0 : i32
    %c0_i32_0 = arith.constant 0 : i32
    %c0_i32_1 = arith.constant 0 : i32
    return %c0_i32, %c0_i32_0 : i32, i32
  }
  func.func @transform_2(%arg0: i32) -> (i32, i32) {
    %c0_i32 = arith.constant 0 : i32
    %c0_i32_0 = arith.constant 0 : i32
    %c0_i32_1 = arith.constant 0 : i32
    return %c0_i32, %c0_i32_0 : i32, i32
  }
  func.func @transform_3(%arg0: i32) -> (i32, i32) {
    %c0_i32 = arith.constant 0 : i32
    %c0_i32_0 = arith.constant 0 : i32
    return %arg0, %c0_i32 : i32, i32
  }
}

module attributes {stable_mosaic.version = 11 : i64} {
  func.func @_linear_kernel(%arg0: i32, %arg1: memref<48x36xbf16, #tpu.memory_space<vmem>>, %arg2: memref<36x32xbf16, #tpu.memory_space<vmem>>, %arg3: memref<1x32xf32, #tpu.memory_space<vmem>>, %arg4: memref<48x32xbf16, #tpu.memory_space<vmem>>) attributes {dimension_semantics = [#tpu.dimension_semantics<parallel>], iteration_bounds = array<i64: 1>, scalar_prefetch = 0 : i64, scratch_operands = 0 : i64, tpu.core_type = #tpu.core_type<tc>, window_params = [{transform_indices = @transform_0, window_bounds = array<i64: 48, 36>}, {pipeline_mode = #tpu.pipeline_mode<synchronous>, transform_indices = @transform_1, window_bounds = array<i64: 36, 32>}, {pipeline_mode = #tpu.pipeline_mode<synchronous>, transform_indices = @transform_2, window_bounds = array<i64: 1, 32>}, {transform_indices = @transform_3, window_bounds = array<i64: 48, 32>}]} {
    %c0 = arith.constant 0 : index
    %c0_0 = arith.constant 0 : index
    %0 = vector.load %arg1[%c0, %c0_0] : memref<48x36xbf16, #tpu.memory_space<vmem>>, vector<48x36xbf16>
    %c0_1 = arith.constant 0 : index
    %c0_2 = arith.constant 0 : index
    %1 = vector.load %arg2[%c0_1, %c0_2] : memref<36x32xbf16, #tpu.memory_space<vmem>>, vector<36x32xbf16>
    %cst = arith.constant dense<0.000000e+00> : vector<48x32xf32>
    %2 = tpu.matmul %0, %1, %cst {dimension_numbers = #tpu.dot_dimension_numbers<[1], [0], [0], [1], [0, 0, 1, 1], [], []>} : vector<48x36xbf16>, vector<36x32xbf16>, vector<48x32xf32> -> vector<48x32xf32>
    %c0_3 = arith.constant 0 : index
    %c0_4 = arith.constant 0 : index
    %3 = vector.load %arg3[%c0_3, %c0_4] : memref<1x32xf32, #tpu.memory_space<vmem>>, vector<1x32xf32>
    %4 = vector.broadcast %3 : vector<1x32xf32> to vector<48x32xf32>
    %5 = arith.addf %2, %4 : vector<48x32xf32>
    %cst_5 = arith.constant 0.000000e+00 : f32
    %6 = vector.broadcast %cst_5 : f32 to vector<48x32xf32>
    %7 = arith.maximumf %5, %6 : vector<48x32xf32>
    %8 = arith.truncf %7 : vector<48x32xf32> to vector<48x32xbf16>
    %c0_6 = arith.constant 0 : index
    %c0_7 = arith.constant 0 : index
    %9 = vector.load %arg4[%c0_6, %c0_7] : memref<48x32xbf16, #tpu.memory_space<vmem>>, vector<48x32xbf16>
    tpu.vector_store %arg4[%c0_6, %c0_7], %8 {strides = array<i32>} : memref<48x32xbf16, #tpu.memory_space<vmem>>, vector<48x32xbf16>,
    return
  }
  func.func @transform_0(%arg0: i32) -> (i32, i32) {
    %c0_i32 = arith.constant 0 : i32
    %c0_i32_0 = arith.constant 0 : i32
    return %arg0, %c0_i32 : i32, i32
  }
  func.func @transform_1(%arg0: i32) -> (i32, i32) {
    %c0_i32 = arith.constant 0 : i32
    %c0_i32_0 = arith.constant 0 : i32
    %c0_i32_1 = arith.constant 0 : i32
    return %c0_i32, %c0_i32_0 : i32, i32
  }
  func.func @transform_2(%arg0: i32) -> (i32, i32) {
    %c0_i32 = arith.constant 0 : i32
    %c0_i32_0 = arith.constant 0 : i32
    %c0_i32_1 = arith.constant 0 : i32
    return %c0_i32, %c0_i32_0 : i32, i32
  }
  func.func @transform_3(%arg0: i32) -> (i32, i32) {
    %c0_i32 = arith.constant 0 : i32
    %c0_i32_0 = arith.constant 0 : i32
    return %arg0, %c0_i32 : i32, i32
  }
}

module attributes {stable_mosaic.version = 11 : i64} {
  func.func @_gru_kernel(%arg0: i32, %arg1: i32, %arg2: memref<24x16x96xbf16, #tpu.memory_space<vmem>>, %arg3: memref<24x16x32xbf16, #tpu.memory_space<vmem>>, %arg4: memref<32x64xbf16, #tpu.memory_space<vmem>>, %arg5: memref<32x32xbf16, #tpu.memory_space<vmem>>, %arg6: memref<1x32xf32, #tpu.memory_space<vmem>>, %arg7: memref<24x16x32xbf16, #tpu.memory_space<vmem>>, %arg8: memref<16x32xf32, #tpu.memory_space<vmem>>) attributes {dimension_semantics = [#tpu.dimension_semantics<parallel>, #tpu.dimension_semantics<arbitrary>], iteration_bounds = array<i64: 1, 1>, scalar_prefetch = 0 : i64, scratch_operands = 1 : i64, tpu.core_type = #tpu.core_type<tc>, window_params = [{transform_indices = @transform_0, window_bounds = array<i64: 24, 16, 96>}, {transform_indices = @transform_1, window_bounds = array<i64: 24, 16, 32>}, {pipeline_mode = #tpu.pipeline_mode<synchronous>, transform_indices = @transform_2, window_bounds = array<i64: 32, 64>}, {pipeline_mode = #tpu.pipeline_mode<synchronous>, transform_indices = @transform_3, window_bounds = array<i64: 32, 32>}, {pipeline_mode = #tpu.pipeline_mode<synchronous>, transform_indices = @transform_4, window_bounds = array<i64: 1, 32>}, {transform_indices = @transform_5, window_bounds = array<i64: 24, 16, 32>}]} {
    %c0_i32 = arith.constant 0 : i32
    %0 = arith.cmpi eq, %arg1, %c0_i32 : i32
    %1 = arith.extui %0 : i1 to i32
    %c0_i32_0 = arith.constant 0 : i32
    %2 = arith.cmpi ne, %1, %c0_i32_0 : i32
    scf.if %2 {
      %cst_274 = arith.constant 0.000000e+00 : f32
      %1112 = vector.broadcast %cst_274 : f32 to vector<16x32xf32>
      %c0_275 = arith.constant 0 : index
      %c0_276 = arith.constant 0 : index
      %1113 = vector.load %arg8[%c0_275, %c0_276] : memref<16x32xf32, #tpu.memory_space<vmem>>, vector<16x32xf32>
      tpu.vector_store %arg8[%c0_275, %c0_276], %1112 {strides = array<i32>} : memref<16x32xf32, #tpu.memory_space<vmem>>, vector<16x32xf32>,
    } else {
    }
    %c0 = arith.constant 0 : index
    %c0_1 = arith.constant 0 : index
    %3 = vector.load %arg4[%c0, %c0_1] : memref<32x64xbf16, #tpu.memory_space<vmem>>, vector<32x64xbf16>
    %c0_2 = arith.constant 0 : index
    %c0_3 = arith.constant 0 : index
    %4 = vector.load %arg5[%c0_2, %c0_3] : memref<32x32xbf16, #tpu.memory_space<vmem>>, vector<32x32xbf16>
    %c0_4 = arith.constant 0 : index
    %c0_5 = arith.constant 0 : index
    %5 = vector.load %arg6[%c0_4, %c0_5] : memref<1x32xf32, #tpu.memory_space<vmem>>, vector<1x32xf32>
    %c0_6 = arith.constant 0 : index
    %c0_7 = arith.constant 0 : index
    %6 = vector.load %arg8[%c0_6, %c0_7] : memref<16x32xf32, #tpu.memory_space<vmem>>, vector<16x32xf32>
    %c0_i32_8 = arith.constant 0 : i32
    %7 = arith.index_cast %c0_i32_8 : i32 to index
    %c0_9 = arith.constant 0 : index
    %c0_10 = arith.constant 0 : index
    %8 = vector.load %arg2[%7, %c0_9, %c0_10] : memref<24x16x96xbf16, #tpu.memory_space<vmem>>, vector<1x16x96xbf16>
    %9 = vector.shape_cast %8 : vector<1x16x96xbf16> to vector<16x96xbf16>
    %10 = arith.truncf %6 : vector<16x32xf32> to vector<16x32xbf16>
    %cst = arith.constant dense<0.000000e+00> : vector<16x64xf32>
    %11 = tpu.matmul %10, %3, %cst {dimension_numbers = #tpu.dot_dimension_numbers<[1], [0], [0], [1], [0, 0, 1, 1], [], []>} : vector<16x32xbf16>, vector<32x64xbf16>, vector<16x64xf32> -> vector<16x64xf32>
    %12 = vector.extract_strided_slice %9 {offsets = [0, 0], sizes = [16, 32], strides = [1, 1]} : vector<16x96xbf16> to vector<16x32xbf16>
    %13 = arith.extf %12 : vector<16x32xbf16> to vector<16x32xf32>
    %14 = vector.extract_strided_slice %11 {offsets = [0, 0], sizes = [16, 32], strides = [1, 1]} : vector<16x64xf32> to vector<16x32xf32>
    %15 = arith.addf %13, %14 : vector<16x32xf32>
    %16 = arith.negf %15 : vector<16x32xf32>
    %17 = math.exp %16 : vector<16x32xf32>
    %cst_11 = arith.constant 1.000000e+00 : f32
    %18 = vector.broadcast %cst_11 : f32 to vector<16x32xf32>
    %19 = arith.addf %18, %17 : vector<16x32xf32>
    %20 = arith.divf %18, %19 : vector<16x32xf32>
    %21 = vector.extract_strided_slice %9 {offsets = [0, 32], sizes = [16, 32], strides = [1, 1]} : vector<16x96xbf16> to vector<16x32xbf16>
    %22 = arith.extf %21 : vector<16x32xbf16> to vector<16x32xf32>
    %23 = vector.extract_strided_slice %11 {offsets = [0, 32], sizes = [16, 32], strides = [1, 1]} : vector<16x64xf32> to vector<16x32xf32>
    %24 = arith.addf %22, %23 : vector<16x32xf32>
    %25 = arith.negf %24 : vector<16x32xf32>
    %26 = math.exp %25 : vector<16x32xf32>
    %cst_12 = arith.constant 1.000000e+00 : f32
    %27 = vector.broadcast %cst_12 : f32 to vector<16x32xf32>
    %28 = arith.addf %27, %26 : vector<16x32xf32>
    %29 = arith.divf %27, %28 : vector<16x32xf32>
    %cst_13 = arith.constant dense<0.000000e+00> : vector<16x32xf32>
    %30 = tpu.matmul %10, %4, %cst_13 {dimension_numbers = #tpu.dot_dimension_numbers<[1], [0], [0], [1], [0, 0, 1, 1], [], []>} : vector<16x32xbf16>, vector<32x32xbf16>, vector<16x32xf32> -> vector<16x32xf32>
    %31 = vector.extract_strided_slice %9 {offsets = [0, 64], sizes = [16, 32], strides = [1, 1]} : vector<16x96xbf16> to vector<16x32xbf16>
    %32 = arith.extf %31 : vector<16x32xbf16> to vector<16x32xf32>
    %33 = vector.broadcast %5 : vector<1x32xf32> to vector<16x32xf32>
    %34 = arith.addf %30, %33 : vector<16x32xf32>
    %35 = arith.mulf %20, %34 : vector<16x32xf32>
    %36 = arith.addf %32, %35 : vector<16x32xf32>
    %37 = math.tanh %36 : vector<16x32xf32>
    %cst_14 = arith.constant 1.000000e+00 : f32
    %38 = vector.broadcast %cst_14 : f32 to vector<16x32xf32>
    %39 = arith.subf %38, %29 : vector<16x32xf32>
    %40 = arith.mulf %39, %37 : vector<16x32xf32>
    %41 = arith.mulf %29, %6 : vector<16x32xf32>
    %42 = arith.addf %40, %41 : vector<16x32xf32>
    %43 = arith.index_cast %c0_i32_8 : i32 to index
    %c0_15 = arith.constant 0 : index
    %c0_16 = arith.constant 0 : index
    %44 = vector.load %arg3[%43, %c0_15, %c0_16] : memref<24x16x32xbf16, #tpu.memory_space<vmem>>, vector<1x16x32xbf16>
    %45 = vector.shape_cast %44 : vector<1x16x32xbf16> to vector<16x32xbf16>
    %46 = arith.extf %45 : vector<16x32xbf16> to vector<16x32xf32>
    %47 = arith.addf %42, %46 : vector<16x32xf32>
    %48 = arith.truncf %47 : vector<16x32xf32> to vector<16x32xbf16>
    %49 = arith.index_cast %c0_i32_8 : i32 to index
    %c0_17 = arith.constant 0 : index
    %c0_18 = arith.constant 0 : index
    %50 = vector.load %arg7[%49, %c0_17, %c0_18] : memref<24x16x32xbf16, #tpu.memory_space<vmem>>, vector<1x16x32xbf16>
    %51 = vector.shape_cast %50 : vector<1x16x32xbf16> to vector<16x32xbf16>
    %52 = vector.shape_cast %48 : vector<16x32xbf16> to vector<1x16x32xbf16>
    tpu.vector_store %arg7[%49, %c0_17, %c0_18], %52 {strides = array<i32>} : memref<24x16x32xbf16, #tpu.memory_space<vmem>>, vector<1x16x32xbf16>,
    %c1_i32 = arith.constant 1 : i32
    %53 = arith.index_cast %c1_i32 : i32 to index
    %c0_19 = arith.constant 0 : index
    %c0_20 = arith.constant 0 : index
    %54 = vector.load %arg2[%53, %c0_19, %c0_20] : memref<24x16x96xbf16, #tpu.memory_space<vmem>>, vector<1x16x96xbf16>
    %55 = vector.shape_cast %54 : vector<1x16x96xbf16> to vector<16x96xbf16>
    %56 = arith.truncf %42 : vector<16x32xf32> to vector<16x32xbf16>
    %cst_21 = arith.constant dense<0.000000e+00> : vector<16x64xf32>
    %57 = tpu.matmul %56, %3, %cst_21 {dimension_numbers = #tpu.dot_dimension_numbers<[1], [0], [0], [1], [0, 0, 1, 1], [], []>} : vector<16x32xbf16>, vector<32x64xbf16>, vector<16x64xf32> -> vector<16x64xf32>
    %58 = vector.extract_strided_slice %55 {offsets = [0, 0], sizes = [16, 32], strides = [1, 1]} : vector<16x96xbf16> to vector<16x32xbf16>
    %59 = arith.extf %58 : vector<16x32xbf16> to vector<16x32xf32>
    %60 = vector.extract_strided_slice %57 {offsets = [0, 0], sizes = [16, 32], strides = [1, 1]} : vector<16x64xf32> to vector<16x32xf32>
    %61 = arith.addf %59, %60 : vector<16x32xf32>
    %62 = arith.negf %61 : vector<16x32xf32>
    %63 = math.exp %62 : vector<16x32xf32>
    %cst_22 = arith.constant 1.000000e+00 : f32
    %64 = vector.broadcast %cst_22 : f32 to vector<16x32xf32>
    %65 = arith.addf %64, %63 : vector<16x32xf32>
    %66 = arith.divf %64, %65 : vector<16x32xf32>
    %67 = vector.extract_strided_slice %55 {offsets = [0, 32], sizes = [16, 32], strides = [1, 1]} : vector<16x96xbf16> to vector<16x32xbf16>
    %68 = arith.extf %67 : vector<16x32xbf16> to vector<16x32xf32>
    %69 = vector.extract_strided_slice %57 {offsets = [0, 32], sizes = [16, 32], strides = [1, 1]} : vector<16x64xf32> to vector<16x32xf32>
    %70 = arith.addf %68, %69 : vector<16x32xf32>
    %71 = arith.negf %70 : vector<16x32xf32>
    %72 = math.exp %71 : vector<16x32xf32>
    %cst_23 = arith.constant 1.000000e+00 : f32
    %73 = vector.broadcast %cst_23 : f32 to vector<16x32xf32>
    %74 = arith.addf %73, %72 : vector<16x32xf32>
    %75 = arith.divf %73, %74 : vector<16x32xf32>
    %cst_24 = arith.constant dense<0.000000e+00> : vector<16x32xf32>
    %76 = tpu.matmul %56, %4, %cst_24 {dimension_numbers = #tpu.dot_dimension_numbers<[1], [0], [0], [1], [0, 0, 1, 1], [], []>} : vector<16x32xbf16>, vector<32x32xbf16>, vector<16x32xf32> -> vector<16x32xf32>
    %77 = vector.extract_strided_slice %55 {offsets = [0, 64], sizes = [16, 32], strides = [1, 1]} : vector<16x96xbf16> to vector<16x32xbf16>
    %78 = arith.extf %77 : vector<16x32xbf16> to vector<16x32xf32>
    %79 = vector.broadcast %5 : vector<1x32xf32> to vector<16x32xf32>
    %80 = arith.addf %76, %79 : vector<16x32xf32>
    %81 = arith.mulf %66, %80 : vector<16x32xf32>
    %82 = arith.addf %78, %81 : vector<16x32xf32>
    %83 = math.tanh %82 : vector<16x32xf32>
    %cst_25 = arith.constant 1.000000e+00 : f32
    %84 = vector.broadcast %cst_25 : f32 to vector<16x32xf32>
    %85 = arith.subf %84, %75 : vector<16x32xf32>
    %86 = arith.mulf %85, %83 : vector<16x32xf32>
    %87 = arith.mulf %75, %42 : vector<16x32xf32>
    %88 = arith.addf %86, %87 : vector<16x32xf32>
    %89 = arith.index_cast %c1_i32 : i32 to index
    %c0_26 = arith.constant 0 : index
    %c0_27 = arith.constant 0 : index
    %90 = vector.load %arg3[%89, %c0_26, %c0_27] : memref<24x16x32xbf16, #tpu.memory_space<vmem>>, vector<1x16x32xbf16>
    %91 = vector.shape_cast %90 : vector<1x16x32xbf16> to vector<16x32xbf16>
    %92 = arith.extf %91 : vector<16x32xbf16> to vector<16x32xf32>
    %93 = arith.addf %88, %92 : vector<16x32xf32>
    %94 = arith.truncf %93 : vector<16x32xf32> to vector<16x32xbf16>
    %95 = arith.index_cast %c1_i32 : i32 to index
    %c0_28 = arith.constant 0 : index
    %c0_29 = arith.constant 0 : index
    %96 = vector.load %arg7[%95, %c0_28, %c0_29] : memref<24x16x32xbf16, #tpu.memory_space<vmem>>, vector<1x16x32xbf16>
    %97 = vector.shape_cast %96 : vector<1x16x32xbf16> to vector<16x32xbf16>
    %98 = vector.shape_cast %94 : vector<16x32xbf16> to vector<1x16x32xbf16>
    tpu.vector_store %arg7[%95, %c0_28, %c0_29], %98 {strides = array<i32>} : memref<24x16x32xbf16, #tpu.memory_space<vmem>>, vector<1x16x32xbf16>,
    %c2_i32 = arith.constant 2 : i32
    %99 = arith.index_cast %c2_i32 : i32 to index
    %c0_30 = arith.constant 0 : index
    %c0_31 = arith.constant 0 : index
    %100 = vector.load %arg2[%99, %c0_30, %c0_31] : memref<24x16x96xbf16, #tpu.memory_space<vmem>>, vector<1x16x96xbf16>
    %101 = vector.shape_cast %100 : vector<1x16x96xbf16> to vector<16x96xbf16>
    %102 = arith.truncf %88 : vector<16x32xf32> to vector<16x32xbf16>
    %cst_32 = arith.constant dense<0.000000e+00> : vector<16x64xf32>
    %103 = tpu.matmul %102, %3, %cst_32 {dimension_numbers = #tpu.dot_dimension_numbers<[1], [0], [0], [1], [0, 0, 1, 1], [], []>} : vector<16x32xbf16>, vector<32x64xbf16>, vector<16x64xf32> -> vector<16x64xf32>
    %104 = vector.extract_strided_slice %101 {offsets = [0, 0], sizes = [16, 32], strides = [1, 1]} : vector<16x96xbf16> to vector<16x32xbf16>
    %105 = arith.extf %104 : vector<16x32xbf16> to vector<16x32xf32>
    %106 = vector.extract_strided_slice %103 {offsets = [0, 0], sizes = [16, 32], strides = [1, 1]} : vector<16x64xf32> to vector<16x32xf32>
    %107 = arith.addf %105, %106 : vector<16x32xf32>
    %108 = arith.negf %107 : vector<16x32xf32>
    %109 = math.exp %108 : vector<16x32xf32>
    %cst_33 = arith.constant 1.000000e+00 : f32
    %110 = vector.broadcast %cst_33 : f32 to vector<16x32xf32>
    %111 = arith.addf %110, %109 : vector<16x32xf32>
    %112 = arith.divf %110, %111 : vector<16x32xf32>
    %113 = vector.extract_strided_slice %101 {offsets = [0, 32], sizes = [16, 32], strides = [1, 1]} : vector<16x96xbf16> to vector<16x32xbf16>
    %114 = arith.extf %113 : vector<16x32xbf16> to vector<16x32xf32>
    %115 = vector.extract_strided_slice %103 {offsets = [0, 32], sizes = [16, 32], strides = [1, 1]} : vector<16x64xf32> to vector<16x32xf32>
    %116 = arith.addf %114, %115 : vector<16x32xf32>
    %117 = arith.negf %116 : vector<16x32xf32>
    %118 = math.exp %117 : vector<16x32xf32>
    %cst_34 = arith.constant 1.000000e+00 : f32
    %119 = vector.broadcast %cst_34 : f32 to vector<16x32xf32>
    %120 = arith.addf %119, %118 : vector<16x32xf32>
    %121 = arith.divf %119, %120 : vector<16x32xf32>
    %cst_35 = arith.constant dense<0.000000e+00> : vector<16x32xf32>
    %122 = tpu.matmul %102, %4, %cst_35 {dimension_numbers = #tpu.dot_dimension_numbers<[1], [0], [0], [1], [0, 0, 1, 1], [], []>} : vector<16x32xbf16>, vector<32x32xbf16>, vector<16x32xf32> -> vector<16x32xf32>
    %123 = vector.extract_strided_slice %101 {offsets = [0, 64], sizes = [16, 32], strides = [1, 1]} : vector<16x96xbf16> to vector<16x32xbf16>
    %124 = arith.extf %123 : vector<16x32xbf16> to vector<16x32xf32>
    %125 = vector.broadcast %5 : vector<1x32xf32> to vector<16x32xf32>
    %126 = arith.addf %122, %125 : vector<16x32xf32>
    %127 = arith.mulf %112, %126 : vector<16x32xf32>
    %128 = arith.addf %124, %127 : vector<16x32xf32>
    %129 = math.tanh %128 : vector<16x32xf32>
    %cst_36 = arith.constant 1.000000e+00 : f32
    %130 = vector.broadcast %cst_36 : f32 to vector<16x32xf32>
    %131 = arith.subf %130, %121 : vector<16x32xf32>
    %132 = arith.mulf %131, %129 : vector<16x32xf32>
    %133 = arith.mulf %121, %88 : vector<16x32xf32>
    %134 = arith.addf %132, %133 : vector<16x32xf32>
    %135 = arith.index_cast %c2_i32 : i32 to index
    %c0_37 = arith.constant 0 : index
    %c0_38 = arith.constant 0 : index
    %136 = vector.load %arg3[%135, %c0_37, %c0_38] : memref<24x16x32xbf16, #tpu.memory_space<vmem>>, vector<1x16x32xbf16>
    %137 = vector.shape_cast %136 : vector<1x16x32xbf16> to vector<16x32xbf16>
    %138 = arith.extf %137 : vector<16x32xbf16> to vector<16x32xf32>
    %139 = arith.addf %134, %138 : vector<16x32xf32>
    %140 = arith.truncf %139 : vector<16x32xf32> to vector<16x32xbf16>
    %141 = arith.index_cast %c2_i32 : i32 to index
    %c0_39 = arith.constant 0 : index
    %c0_40 = arith.constant 0 : index
    %142 = vector.load %arg7[%141, %c0_39, %c0_40] : memref<24x16x32xbf16, #tpu.memory_space<vmem>>, vector<1x16x32xbf16>
    %143 = vector.shape_cast %142 : vector<1x16x32xbf16> to vector<16x32xbf16>
    %144 = vector.shape_cast %140 : vector<16x32xbf16> to vector<1x16x32xbf16>
    tpu.vector_store %arg7[%141, %c0_39, %c0_40], %144 {strides = array<i32>} : memref<24x16x32xbf16, #tpu.memory_space<vmem>>, vector<1x16x32xbf16>,
    %c3_i32 = arith.constant 3 : i32
    %145 = arith.index_cast %c3_i32 : i32 to index
    %c0_41 = arith.constant 0 : index
    %c0_42 = arith.constant 0 : index
    %146 = vector.load %arg2[%145, %c0_41, %c0_42] : memref<24x16x96xbf16, #tpu.memory_space<vmem>>, vector<1x16x96xbf16>
    %147 = vector.shape_cast %146 : vector<1x16x96xbf16> to vector<16x96xbf16>
    %148 = arith.truncf %134 : vector<16x32xf32> to vector<16x32xbf16>
    %cst_43 = arith.constant dense<0.000000e+00> : vector<16x64xf32>
    %149 = tpu.matmul %148, %3, %cst_43 {dimension_numbers = #tpu.dot_dimension_numbers<[1], [0], [0], [1], [0, 0, 1, 1], [], []>} : vector<16x32xbf16>, vector<32x64xbf16>, vector<16x64xf32> -> vector<16x64xf32>
    %150 = vector.extract_strided_slice %147 {offsets = [0, 0], sizes = [16, 32], strides = [1, 1]} : vector<16x96xbf16> to vector<16x32xbf16>
    %151 = arith.extf %150 : vector<16x32xbf16> to vector<16x32xf32>
    %152 = vector.extract_strided_slice %149 {offsets = [0, 0], sizes = [16, 32], strides = [1, 1]} : vector<16x64xf32> to vector<16x32xf32>
    %153 = arith.addf %151, %152 : vector<16x32xf32>
    %154 = arith.negf %153 : vector<16x32xf32>
    %155 = math.exp %154 : vector<16x32xf32>
    %cst_44 = arith.constant 1.000000e+00 : f32
    %156 = vector.broadcast %cst_44 : f32 to vector<16x32xf32>
    %157 = arith.addf %156, %155 : vector<16x32xf32>
    %158 = arith.divf %156, %157 : vector<16x32xf32>
    %159 = vector.extract_strided_slice %147 {offsets = [0, 32], sizes = [16, 32], strides = [1, 1]} : vector<16x96xbf16> to vector<16x32xbf16>
    %160 = arith.extf %159 : vector<16x32xbf16> to vector<16x32xf32>
    %161 = vector.extract_strided_slice %149 {offsets = [0, 32], sizes = [16, 32], strides = [1, 1]} : vector<16x64xf32> to vector<16x32xf32>
    %162 = arith.addf %160, %161 : vector<16x32xf32>
    %163 = arith.negf %162 : vector<16x32xf32>
    %164 = math.exp %163 : vector<16x32xf32>
    %cst_45 = arith.constant 1.000000e+00 : f32
    %165 = vector.broadcast %cst_45 : f32 to vector<16x32xf32>
    %166 = arith.addf %165, %164 : vector<16x32xf32>
    %167 = arith.divf %165, %166 : vector<16x32xf32>
    %cst_46 = arith.constant dense<0.000000e+00> : vector<16x32xf32>
    %168 = tpu.matmul %148, %4, %cst_46 {dimension_numbers = #tpu.dot_dimension_numbers<[1], [0], [0], [1], [0, 0, 1, 1], [], []>} : vector<16x32xbf16>, vector<32x32xbf16>, vector<16x32xf32> -> vector<16x32xf32>
    %169 = vector.extract_strided_slice %147 {offsets = [0, 64], sizes = [16, 32], strides = [1, 1]} : vector<16x96xbf16> to vector<16x32xbf16>
    %170 = arith.extf %169 : vector<16x32xbf16> to vector<16x32xf32>
    %171 = vector.broadcast %5 : vector<1x32xf32> to vector<16x32xf32>
    %172 = arith.addf %168, %171 : vector<16x32xf32>
    %173 = arith.mulf %158, %172 : vector<16x32xf32>
    %174 = arith.addf %170, %173 : vector<16x32xf32>
    %175 = math.tanh %174 : vector<16x32xf32>
    %cst_47 = arith.constant 1.000000e+00 : f32
    %176 = vector.broadcast %cst_47 : f32 to vector<16x32xf32>
    %177 = arith.subf %176, %167 : vector<16x32xf32>
    %178 = arith.mulf %177, %175 : vector<16x32xf32>
    %179 = arith.mulf %167, %134 : vector<16x32xf32>
    %180 = arith.addf %178, %179 : vector<16x32xf32>
    %181 = arith.index_cast %c3_i32 : i32 to index
    %c0_48 = arith.constant 0 : index
    %c0_49 = arith.constant 0 : index
    %182 = vector.load %arg3[%181, %c0_48, %c0_49] : memref<24x16x32xbf16, #tpu.memory_space<vmem>>, vector<1x16x32xbf16>
    %183 = vector.shape_cast %182 : vector<1x16x32xbf16> to vector<16x32xbf16>
    %184 = arith.extf %183 : vector<16x32xbf16> to vector<16x32xf32>
    %185 = arith.addf %180, %184 : vector<16x32xf32>
    %186 = arith.truncf %185 : vector<16x32xf32> to vector<16x32xbf16>
    %187 = arith.index_cast %c3_i32 : i32 to index
    %c0_50 = arith.constant 0 : index
    %c0_51 = arith.constant 0 : index
    %188 = vector.load %arg7[%187, %c0_50, %c0_51] : memref<24x16x32xbf16, #tpu.memory_space<vmem>>, vector<1x16x32xbf16>
    %189 = vector.shape_cast %188 : vector<1x16x32xbf16> to vector<16x32xbf16>
    %190 = vector.shape_cast %186 : vector<16x32xbf16> to vector<1x16x32xbf16>
    tpu.vector_store %arg7[%187, %c0_50, %c0_51], %190 {strides = array<i32>} : memref<24x16x32xbf16, #tpu.memory_space<vmem>>, vector<1x16x32xbf16>,
    %c4_i32 = arith.constant 4 : i32
    %191 = arith.index_cast %c4_i32 : i32 to index
    %c0_52 = arith.constant 0 : index
    %c0_53 = arith.constant 0 : index
    %192 = vector.load %arg2[%191, %c0_52, %c0_53] : memref<24x16x96xbf16, #tpu.memory_space<vmem>>, vector<1x16x96xbf16>
    %193 = vector.shape_cast %192 : vector<1x16x96xbf16> to vector<16x96xbf16>
    %194 = arith.truncf %180 : vector<16x32xf32> to vector<16x32xbf16>
    %cst_54 = arith.constant dense<0.000000e+00> : vector<16x64xf32>
    %195 = tpu.matmul %194, %3, %cst_54 {dimension_numbers = #tpu.dot_dimension_numbers<[1], [0], [0], [1], [0, 0, 1, 1], [], []>} : vector<16x32xbf16>, vector<32x64xbf16>, vector<16x64xf32> -> vector<16x64xf32>
    %196 = vector.extract_strided_slice %193 {offsets = [0, 0], sizes = [16, 32], strides = [1, 1]} : vector<16x96xbf16> to vector<16x32xbf16>
    %197 = arith.extf %196 : vector<16x32xbf16> to vector<16x32xf32>
    %198 = vector.extract_strided_slice %195 {offsets = [0, 0], sizes = [16, 32], strides = [1, 1]} : vector<16x64xf32> to vector<16x32xf32>
    %199 = arith.addf %197, %198 : vector<16x32xf32>
    %200 = arith.negf %199 : vector<16x32xf32>
    %201 = math.exp %200 : vector<16x32xf32>
    %cst_55 = arith.constant 1.000000e+00 : f32
    %202 = vector.broadcast %cst_55 : f32 to vector<16x32xf32>
    %203 = arith.addf %202, %201 : vector<16x32xf32>
    %204 = arith.divf %202, %203 : vector<16x32xf32>
    %205 = vector.extract_strided_slice %193 {offsets = [0, 32], sizes = [16, 32], strides = [1, 1]} : vector<16x96xbf16> to vector<16x32xbf16>
    %206 = arith.extf %205 : vector<16x32xbf16> to vector<16x32xf32>
    %207 = vector.extract_strided_slice %195 {offsets = [0, 32], sizes = [16, 32], strides = [1, 1]} : vector<16x64xf32> to vector<16x32xf32>
    %208 = arith.addf %206, %207 : vector<16x32xf32>
    %209 = arith.negf %208 : vector<16x32xf32>
    %210 = math.exp %209 : vector<16x32xf32>
    %cst_56 = arith.constant 1.000000e+00 : f32
    %211 = vector.broadcast %cst_56 : f32 to vector<16x32xf32>
    %212 = arith.addf %211, %210 : vector<16x32xf32>
    %213 = arith.divf %211, %212 : vector<16x32xf32>
    %cst_57 = arith.constant dense<0.000000e+00> : vector<16x32xf32>
    %214 = tpu.matmul %194, %4, %cst_57 {dimension_numbers = #tpu.dot_dimension_numbers<[1], [0], [0], [1], [0, 0, 1, 1], [], []>} : vector<16x32xbf16>, vector<32x32xbf16>, vector<16x32xf32> -> vector<16x32xf32>
    %215 = vector.extract_strided_slice %193 {offsets = [0, 64], sizes = [16, 32], strides = [1, 1]} : vector<16x96xbf16> to vector<16x32xbf16>
    %216 = arith.extf %215 : vector<16x32xbf16> to vector<16x32xf32>
    %217 = vector.broadcast %5 : vector<1x32xf32> to vector<16x32xf32>
    %218 = arith.addf %214, %217 : vector<16x32xf32>
    %219 = arith.mulf %204, %218 : vector<16x32xf32>
    %220 = arith.addf %216, %219 : vector<16x32xf32>
    %221 = math.tanh %220 : vector<16x32xf32>
    %cst_58 = arith.constant 1.000000e+00 : f32
    %222 = vector.broadcast %cst_58 : f32 to vector<16x32xf32>
    %223 = arith.subf %222, %213 : vector<16x32xf32>
    %224 = arith.mulf %223, %221 : vector<16x32xf32>
    %225 = arith.mulf %213, %180 : vector<16x32xf32>
    %226 = arith.addf %224, %225 : vector<16x32xf32>
    %227 = arith.index_cast %c4_i32 : i32 to index
    %c0_59 = arith.constant 0 : index
    %c0_60 = arith.constant 0 : index
    %228 = vector.load %arg3[%227, %c0_59, %c0_60] : memref<24x16x32xbf16, #tpu.memory_space<vmem>>, vector<1x16x32xbf16>
    %229 = vector.shape_cast %228 : vector<1x16x32xbf16> to vector<16x32xbf16>
    %230 = arith.extf %229 : vector<16x32xbf16> to vector<16x32xf32>
    %231 = arith.addf %226, %230 : vector<16x32xf32>
    %232 = arith.truncf %231 : vector<16x32xf32> to vector<16x32xbf16>
    %233 = arith.index_cast %c4_i32 : i32 to index
    %c0_61 = arith.constant 0 : index
    %c0_62 = arith.constant 0 : index
    %234 = vector.load %arg7[%233, %c0_61, %c0_62] : memref<24x16x32xbf16, #tpu.memory_space<vmem>>, vector<1x16x32xbf16>
    %235 = vector.shape_cast %234 : vector<1x16x32xbf16> to vector<16x32xbf16>
    %236 = vector.shape_cast %232 : vector<16x32xbf16> to vector<1x16x32xbf16>
    tpu.vector_store %arg7[%233, %c0_61, %c0_62], %236 {strides = array<i32>} : memref<24x16x32xbf16, #tpu.memory_space<vmem>>, vector<1x16x32xbf16>,
    %c5_i32 = arith.constant 5 : i32
    %237 = arith.index_cast %c5_i32 : i32 to index
    %c0_63 = arith.constant 0 : index
    %c0_64 = arith.constant 0 : index
    %238 = vector.load %arg2[%237, %c0_63, %c0_64] : memref<24x16x96xbf16, #tpu.memory_space<vmem>>, vector<1x16x96xbf16>
    %239 = vector.shape_cast %238 : vector<1x16x96xbf16> to vector<16x96xbf16>
    %240 = arith.truncf %226 : vector<16x32xf32> to vector<16x32xbf16>
    %cst_65 = arith.constant dense<0.000000e+00> : vector<16x64xf32>
    %241 = tpu.matmul %240, %3, %cst_65 {dimension_numbers = #tpu.dot_dimension_numbers<[1], [0], [0], [1], [0, 0, 1, 1], [], []>} : vector<16x32xbf16>, vector<32x64xbf16>, vector<16x64xf32> -> vector<16x64xf32>
    %242 = vector.extract_strided_slice %239 {offsets = [0, 0], sizes = [16, 32], strides = [1, 1]} : vector<16x96xbf16> to vector<16x32xbf16>
    %243 = arith.extf %242 : vector<16x32xbf16> to vector<16x32xf32>
    %244 = vector.extract_strided_slice %241 {offsets = [0, 0], sizes = [16, 32], strides = [1, 1]} : vector<16x64xf32> to vector<16x32xf32>
    %245 = arith.addf %243, %244 : vector<16x32xf32>
    %246 = arith.negf %245 : vector<16x32xf32>
    %247 = math.exp %246 : vector<16x32xf32>
    %cst_66 = arith.constant 1.000000e+00 : f32
    %248 = vector.broadcast %cst_66 : f32 to vector<16x32xf32>
    %249 = arith.addf %248, %247 : vector<16x32xf32>
    %250 = arith.divf %248, %249 : vector<16x32xf32>
    %251 = vector.extract_strided_slice %239 {offsets = [0, 32], sizes = [16, 32], strides = [1, 1]} : vector<16x96xbf16> to vector<16x32xbf16>
    %252 = arith.extf %251 : vector<16x32xbf16> to vector<16x32xf32>
    %253 = vector.extract_strided_slice %241 {offsets = [0, 32], sizes = [16, 32], strides = [1, 1]} : vector<16x64xf32> to vector<16x32xf32>
    %254 = arith.addf %252, %253 : vector<16x32xf32>
    %255 = arith.negf %254 : vector<16x32xf32>
    %256 = math.exp %255 : vector<16x32xf32>
    %cst_67 = arith.constant 1.000000e+00 : f32
    %257 = vector.broadcast %cst_67 : f32 to vector<16x32xf32>
    %258 = arith.addf %257, %256 : vector<16x32xf32>
    %259 = arith.divf %257, %258 : vector<16x32xf32>
    %cst_68 = arith.constant dense<0.000000e+00> : vector<16x32xf32>
    %260 = tpu.matmul %240, %4, %cst_68 {dimension_numbers = #tpu.dot_dimension_numbers<[1], [0], [0], [1], [0, 0, 1, 1], [], []>} : vector<16x32xbf16>, vector<32x32xbf16>, vector<16x32xf32> -> vector<16x32xf32>
    %261 = vector.extract_strided_slice %239 {offsets = [0, 64], sizes = [16, 32], strides = [1, 1]} : vector<16x96xbf16> to vector<16x32xbf16>
    %262 = arith.extf %261 : vector<16x32xbf16> to vector<16x32xf32>
    %263 = vector.broadcast %5 : vector<1x32xf32> to vector<16x32xf32>
    %264 = arith.addf %260, %263 : vector<16x32xf32>
    %265 = arith.mulf %250, %264 : vector<16x32xf32>
    %266 = arith.addf %262, %265 : vector<16x32xf32>
    %267 = math.tanh %266 : vector<16x32xf32>
    %cst_69 = arith.constant 1.000000e+00 : f32
    %268 = vector.broadcast %cst_69 : f32 to vector<16x32xf32>
    %269 = arith.subf %268, %259 : vector<16x32xf32>
    %270 = arith.mulf %269, %267 : vector<16x32xf32>
    %271 = arith.mulf %259, %226 : vector<16x32xf32>
    %272 = arith.addf %270, %271 : vector<16x32xf32>
    %273 = arith.index_cast %c5_i32 : i32 to index
    %c0_70 = arith.constant 0 : index
    %c0_71 = arith.constant 0 : index
    %274 = vector.load %arg3[%273, %c0_70, %c0_71] : memref<24x16x32xbf16, #tpu.memory_space<vmem>>, vector<1x16x32xbf16>
    %275 = vector.shape_cast %274 : vector<1x16x32xbf16> to vector<16x32xbf16>
    %276 = arith.extf %275 : vector<16x32xbf16> to vector<16x32xf32>
    %277 = arith.addf %272, %276 : vector<16x32xf32>
    %278 = arith.truncf %277 : vector<16x32xf32> to vector<16x32xbf16>
    %279 = arith.index_cast %c5_i32 : i32 to index
    %c0_72 = arith.constant 0 : index
    %c0_73 = arith.constant 0 : index
    %280 = vector.load %arg7[%279, %c0_72, %c0_73] : memref<24x16x32xbf16, #tpu.memory_space<vmem>>, vector<1x16x32xbf16>
    %281 = vector.shape_cast %280 : vector<1x16x32xbf16> to vector<16x32xbf16>
    %282 = vector.shape_cast %278 : vector<16x32xbf16> to vector<1x16x32xbf16>
    tpu.vector_store %arg7[%279, %c0_72, %c0_73], %282 {strides = array<i32>} : memref<24x16x32xbf16, #tpu.memory_space<vmem>>, vector<1x16x32xbf16>,
    %c6_i32 = arith.constant 6 : i32
    %283 = arith.index_cast %c6_i32 : i32 to index
    %c0_74 = arith.constant 0 : index
    %c0_75 = arith.constant 0 : index
    %284 = vector.load %arg2[%283, %c0_74, %c0_75] : memref<24x16x96xbf16, #tpu.memory_space<vmem>>, vector<1x16x96xbf16>
    %285 = vector.shape_cast %284 : vector<1x16x96xbf16> to vector<16x96xbf16>
    %286 = arith.truncf %272 : vector<16x32xf32> to vector<16x32xbf16>
    %cst_76 = arith.constant dense<0.000000e+00> : vector<16x64xf32>
    %287 = tpu.matmul %286, %3, %cst_76 {dimension_numbers = #tpu.dot_dimension_numbers<[1], [0], [0], [1], [0, 0, 1, 1], [], []>} : vector<16x32xbf16>, vector<32x64xbf16>, vector<16x64xf32> -> vector<16x64xf32>
    %288 = vector.extract_strided_slice %285 {offsets = [0, 0], sizes = [16, 32], strides = [1, 1]} : vector<16x96xbf16> to vector<16x32xbf16>
    %289 = arith.extf %288 : vector<16x32xbf16> to vector<16x32xf32>
    %290 = vector.extract_strided_slice %287 {offsets = [0, 0], sizes = [16, 32], strides = [1, 1]} : vector<16x64xf32> to vector<16x32xf32>
    %291 = arith.addf %289, %290 : vector<16x32xf32>
    %292 = arith.negf %291 : vector<16x32xf32>
    %293 = math.exp %292 : vector<16x32xf32>
    %cst_77 = arith.constant 1.000000e+00 : f32
    %294 = vector.broadcast %cst_77 : f32 to vector<16x32xf32>
    %295 = arith.addf %294, %293 : vector<16x32xf32>
    %296 = arith.divf %294, %295 : vector<16x32xf32>
    %297 = vector.extract_strided_slice %285 {offsets = [0, 32], sizes = [16, 32], strides = [1, 1]} : vector<16x96xbf16> to vector<16x32xbf16>
    %298 = arith.extf %297 : vector<16x32xbf16> to vector<16x32xf32>
    %299 = vector.extract_strided_slice %287 {offsets = [0, 32], sizes = [16, 32], strides = [1, 1]} : vector<16x64xf32> to vector<16x32xf32>
    %300 = arith.addf %298, %299 : vector<16x32xf32>
    %301 = arith.negf %300 : vector<16x32xf32>
    %302 = math.exp %301 : vector<16x32xf32>
    %cst_78 = arith.constant 1.000000e+00 : f32
    %303 = vector.broadcast %cst_78 : f32 to vector<16x32xf32>
    %304 = arith.addf %303, %302 : vector<16x32xf32>
    %305 = arith.divf %303, %304 : vector<16x32xf32>
    %cst_79 = arith.constant dense<0.000000e+00> : vector<16x32xf32>
    %306 = tpu.matmul %286, %4, %cst_79 {dimension_numbers = #tpu.dot_dimension_numbers<[1], [0], [0], [1], [0, 0, 1, 1], [], []>} : vector<16x32xbf16>, vector<32x32xbf16>, vector<16x32xf32> -> vector<16x32xf32>
    %307 = vector.extract_strided_slice %285 {offsets = [0, 64], sizes = [16, 32], strides = [1, 1]} : vector<16x96xbf16> to vector<16x32xbf16>
    %308 = arith.extf %307 : vector<16x32xbf16> to vector<16x32xf32>
    %309 = vector.broadcast %5 : vector<1x32xf32> to vector<16x32xf32>
    %310 = arith.addf %306, %309 : vector<16x32xf32>
    %311 = arith.mulf %296, %310 : vector<16x32xf32>
    %312 = arith.addf %308, %311 : vector<16x32xf32>
    %313 = math.tanh %312 : vector<16x32xf32>
    %cst_80 = arith.constant 1.000000e+00 : f32
    %314 = vector.broadcast %cst_80 : f32 to vector<16x32xf32>
    %315 = arith.subf %314, %305 : vector<16x32xf32>
    %316 = arith.mulf %315, %313 : vector<16x32xf32>
    %317 = arith.mulf %305, %272 : vector<16x32xf32>
    %318 = arith.addf %316, %317 : vector<16x32xf32>
    %319 = arith.index_cast %c6_i32 : i32 to index
    %c0_81 = arith.constant 0 : index
    %c0_82 = arith.constant 0 : index
    %320 = vector.load %arg3[%319, %c0_81, %c0_82] : memref<24x16x32xbf16, #tpu.memory_space<vmem>>, vector<1x16x32xbf16>
    %321 = vector.shape_cast %320 : vector<1x16x32xbf16> to vector<16x32xbf16>
    %322 = arith.extf %321 : vector<16x32xbf16> to vector<16x32xf32>
    %323 = arith.addf %318, %322 : vector<16x32xf32>
    %324 = arith.truncf %323 : vector<16x32xf32> to vector<16x32xbf16>
    %325 = arith.index_cast %c6_i32 : i32 to index
    %c0_83 = arith.constant 0 : index
    %c0_84 = arith.constant 0 : index
    %326 = vector.load %arg7[%325, %c0_83, %c0_84] : memref<24x16x32xbf16, #tpu.memory_space<vmem>>, vector<1x16x32xbf16>
    %327 = vector.shape_cast %326 : vector<1x16x32xbf16> to vector<16x32xbf16>
    %328 = vector.shape_cast %324 : vector<16x32xbf16> to vector<1x16x32xbf16>
    tpu.vector_store %arg7[%325, %c0_83, %c0_84], %328 {strides = array<i32>} : memref<24x16x32xbf16, #tpu.memory_space<vmem>>, vector<1x16x32xbf16>,
    %c7_i32 = arith.constant 7 : i32
    %329 = arith.index_cast %c7_i32 : i32 to index
    %c0_85 = arith.constant 0 : index
    %c0_86 = arith.constant 0 : index
    %330 = vector.load %arg2[%329, %c0_85, %c0_86] : memref<24x16x96xbf16, #tpu.memory_space<vmem>>, vector<1x16x96xbf16>
    %331 = vector.shape_cast %330 : vector<1x16x96xbf16> to vector<16x96xbf16>
    %332 = arith.truncf %318 : vector<16x32xf32> to vector<16x32xbf16>
    %cst_87 = arith.constant dense<0.000000e+00> : vector<16x64xf32>
    %333 = tpu.matmul %332, %3, %cst_87 {dimension_numbers = #tpu.dot_dimension_numbers<[1], [0], [0], [1], [0, 0, 1, 1], [], []>} : vector<16x32xbf16>, vector<32x64xbf16>, vector<16x64xf32> -> vector<16x64xf32>
    %334 = vector.extract_strided_slice %331 {offsets = [0, 0], sizes = [16, 32], strides = [1, 1]} : vector<16x96xbf16> to vector<16x32xbf16>
    %335 = arith.extf %334 : vector<16x32xbf16> to vector<16x32xf32>
    %336 = vector.extract_strided_slice %333 {offsets = [0, 0], sizes = [16, 32], strides = [1, 1]} : vector<16x64xf32> to vector<16x32xf32>
    %337 = arith.addf %335, %336 : vector<16x32xf32>
    %338 = arith.negf %337 : vector<16x32xf32>
    %339 = math.exp %338 : vector<16x32xf32>
    %cst_88 = arith.constant 1.000000e+00 : f32
    %340 = vector.broadcast %cst_88 : f32 to vector<16x32xf32>
    %341 = arith.addf %340, %339 : vector<16x32xf32>
    %342 = arith.divf %340, %341 : vector<16x32xf32>
    %343 = vector.extract_strided_slice %331 {offsets = [0, 32], sizes = [16, 32], strides = [1, 1]} : vector<16x96xbf16> to vector<16x32xbf16>
    %344 = arith.extf %343 : vector<16x32xbf16> to vector<16x32xf32>
    %345 = vector.extract_strided_slice %333 {offsets = [0, 32], sizes = [16, 32], strides = [1, 1]} : vector<16x64xf32> to vector<16x32xf32>
    %346 = arith.addf %344, %345 : vector<16x32xf32>
    %347 = arith.negf %346 : vector<16x32xf32>
    %348 = math.exp %347 : vector<16x32xf32>
    %cst_89 = arith.constant 1.000000e+00 : f32
    %349 = vector.broadcast %cst_89 : f32 to vector<16x32xf32>
    %350 = arith.addf %349, %348 : vector<16x32xf32>
    %351 = arith.divf %349, %350 : vector<16x32xf32>
    %cst_90 = arith.constant dense<0.000000e+00> : vector<16x32xf32>
    %352 = tpu.matmul %332, %4, %cst_90 {dimension_numbers = #tpu.dot_dimension_numbers<[1], [0], [0], [1], [0, 0, 1, 1], [], []>} : vector<16x32xbf16>, vector<32x32xbf16>, vector<16x32xf32> -> vector<16x32xf32>
    %353 = vector.extract_strided_slice %331 {offsets = [0, 64], sizes = [16, 32], strides = [1, 1]} : vector<16x96xbf16> to vector<16x32xbf16>
    %354 = arith.extf %353 : vector<16x32xbf16> to vector<16x32xf32>
    %355 = vector.broadcast %5 : vector<1x32xf32> to vector<16x32xf32>
    %356 = arith.addf %352, %355 : vector<16x32xf32>
    %357 = arith.mulf %342, %356 : vector<16x32xf32>
    %358 = arith.addf %354, %357 : vector<16x32xf32>
    %359 = math.tanh %358 : vector<16x32xf32>
    %cst_91 = arith.constant 1.000000e+00 : f32
    %360 = vector.broadcast %cst_91 : f32 to vector<16x32xf32>
    %361 = arith.subf %360, %351 : vector<16x32xf32>
    %362 = arith.mulf %361, %359 : vector<16x32xf32>
    %363 = arith.mulf %351, %318 : vector<16x32xf32>
    %364 = arith.addf %362, %363 : vector<16x32xf32>
    %365 = arith.index_cast %c7_i32 : i32 to index
    %c0_92 = arith.constant 0 : index
    %c0_93 = arith.constant 0 : index
    %366 = vector.load %arg3[%365, %c0_92, %c0_93] : memref<24x16x32xbf16, #tpu.memory_space<vmem>>, vector<1x16x32xbf16>
    %367 = vector.shape_cast %366 : vector<1x16x32xbf16> to vector<16x32xbf16>
    %368 = arith.extf %367 : vector<16x32xbf16> to vector<16x32xf32>
    %369 = arith.addf %364, %368 : vector<16x32xf32>
    %370 = arith.truncf %369 : vector<16x32xf32> to vector<16x32xbf16>
    %371 = arith.index_cast %c7_i32 : i32 to index
    %c0_94 = arith.constant 0 : index
    %c0_95 = arith.constant 0 : index
    %372 = vector.load %arg7[%371, %c0_94, %c0_95] : memref<24x16x32xbf16, #tpu.memory_space<vmem>>, vector<1x16x32xbf16>
    %373 = vector.shape_cast %372 : vector<1x16x32xbf16> to vector<16x32xbf16>
    %374 = vector.shape_cast %370 : vector<16x32xbf16> to vector<1x16x32xbf16>
    tpu.vector_store %arg7[%371, %c0_94, %c0_95], %374 {strides = array<i32>} : memref<24x16x32xbf16, #tpu.memory_space<vmem>>, vector<1x16x32xbf16>,
    %c8_i32 = arith.constant 8 : i32
    %375 = arith.index_cast %c8_i32 : i32 to index
    %c0_96 = arith.constant 0 : index
    %c0_97 = arith.constant 0 : index
    %376 = vector.load %arg2[%375, %c0_96, %c0_97] : memref<24x16x96xbf16, #tpu.memory_space<vmem>>, vector<1x16x96xbf16>
    %377 = vector.shape_cast %376 : vector<1x16x96xbf16> to vector<16x96xbf16>
    %378 = arith.truncf %364 : vector<16x32xf32> to vector<16x32xbf16>
    %cst_98 = arith.constant dense<0.000000e+00> : vector<16x64xf32>
    %379 = tpu.matmul %378, %3, %cst_98 {dimension_numbers = #tpu.dot_dimension_numbers<[1], [0], [0], [1], [0, 0, 1, 1], [], []>} : vector<16x32xbf16>, vector<32x64xbf16>, vector<16x64xf32> -> vector<16x64xf32>
    %380 = vector.extract_strided_slice %377 {offsets = [0, 0], sizes = [16, 32], strides = [1, 1]} : vector<16x96xbf16> to vector<16x32xbf16>
    %381 = arith.extf %380 : vector<16x32xbf16> to vector<16x32xf32>
    %382 = vector.extract_strided_slice %379 {offsets = [0, 0], sizes = [16, 32], strides = [1, 1]} : vector<16x64xf32> to vector<16x32xf32>
    %383 = arith.addf %381, %382 : vector<16x32xf32>
    %384 = arith.negf %383 : vector<16x32xf32>
    %385 = math.exp %384 : vector<16x32xf32>
    %cst_99 = arith.constant 1.000000e+00 : f32
    %386 = vector.broadcast %cst_99 : f32 to vector<16x32xf32>
    %387 = arith.addf %386, %385 : vector<16x32xf32>
    %388 = arith.divf %386, %387 : vector<16x32xf32>
    %389 = vector.extract_strided_slice %377 {offsets = [0, 32], sizes = [16, 32], strides = [1, 1]} : vector<16x96xbf16> to vector<16x32xbf16>
    %390 = arith.extf %389 : vector<16x32xbf16> to vector<16x32xf32>
    %391 = vector.extract_strided_slice %379 {offsets = [0, 32], sizes = [16, 32], strides = [1, 1]} : vector<16x64xf32> to vector<16x32xf32>
    %392 = arith.addf %390, %391 : vector<16x32xf32>
    %393 = arith.negf %392 : vector<16x32xf32>
    %394 = math.exp %393 : vector<16x32xf32>
    %cst_100 = arith.constant 1.000000e+00 : f32
    %395 = vector.broadcast %cst_100 : f32 to vector<16x32xf32>
    %396 = arith.addf %395, %394 : vector<16x32xf32>
    %397 = arith.divf %395, %396 : vector<16x32xf32>
    %cst_101 = arith.constant dense<0.000000e+00> : vector<16x32xf32>
    %398 = tpu.matmul %378, %4, %cst_101 {dimension_numbers = #tpu.dot_dimension_numbers<[1], [0], [0], [1], [0, 0, 1, 1], [], []>} : vector<16x32xbf16>, vector<32x32xbf16>, vector<16x32xf32> -> vector<16x32xf32>
    %399 = vector.extract_strided_slice %377 {offsets = [0, 64], sizes = [16, 32], strides = [1, 1]} : vector<16x96xbf16> to vector<16x32xbf16>
    %400 = arith.extf %399 : vector<16x32xbf16> to vector<16x32xf32>
    %401 = vector.broadcast %5 : vector<1x32xf32> to vector<16x32xf32>
    %402 = arith.addf %398, %401 : vector<16x32xf32>
    %403 = arith.mulf %388, %402 : vector<16x32xf32>
    %404 = arith.addf %400, %403 : vector<16x32xf32>
    %405 = math.tanh %404 : vector<16x32xf32>
    %cst_102 = arith.constant 1.000000e+00 : f32
    %406 = vector.broadcast %cst_102 : f32 to vector<16x32xf32>
    %407 = arith.subf %406, %397 : vector<16x32xf32>
    %408 = arith.mulf %407, %405 : vector<16x32xf32>
    %409 = arith.mulf %397, %364 : vector<16x32xf32>
    %410 = arith.addf %408, %409 : vector<16x32xf32>
    %411 = arith.index_cast %c8_i32 : i32 to index
    %c0_103 = arith.constant 0 : index
    %c0_104 = arith.constant 0 : index
    %412 = vector.load %arg3[%411, %c0_103, %c0_104] : memref<24x16x32xbf16, #tpu.memory_space<vmem>>, vector<1x16x32xbf16>
    %413 = vector.shape_cast %412 : vector<1x16x32xbf16> to vector<16x32xbf16>
    %414 = arith.extf %413 : vector<16x32xbf16> to vector<16x32xf32>
    %415 = arith.addf %410, %414 : vector<16x32xf32>
    %416 = arith.truncf %415 : vector<16x32xf32> to vector<16x32xbf16>
    %417 = arith.index_cast %c8_i32 : i32 to index
    %c0_105 = arith.constant 0 : index
    %c0_106 = arith.constant 0 : index
    %418 = vector.load %arg7[%417, %c0_105, %c0_106] : memref<24x16x32xbf16, #tpu.memory_space<vmem>>, vector<1x16x32xbf16>
    %419 = vector.shape_cast %418 : vector<1x16x32xbf16> to vector<16x32xbf16>
    %420 = vector.shape_cast %416 : vector<16x32xbf16> to vector<1x16x32xbf16>
    tpu.vector_store %arg7[%417, %c0_105, %c0_106], %420 {strides = array<i32>} : memref<24x16x32xbf16, #tpu.memory_space<vmem>>, vector<1x16x32xbf16>,
    %c9_i32 = arith.constant 9 : i32
    %421 = arith.index_cast %c9_i32 : i32 to index
    %c0_107 = arith.constant 0 : index
    %c0_108 = arith.constant 0 : index
    %422 = vector.load %arg2[%421, %c0_107, %c0_108] : memref<24x16x96xbf16, #tpu.memory_space<vmem>>, vector<1x16x96xbf16>
    %423 = vector.shape_cast %422 : vector<1x16x96xbf16> to vector<16x96xbf16>
    %424 = arith.truncf %410 : vector<16x32xf32> to vector<16x32xbf16>
    %cst_109 = arith.constant dense<0.000000e+00> : vector<16x64xf32>
    %425 = tpu.matmul %424, %3, %cst_109 {dimension_numbers = #tpu.dot_dimension_numbers<[1], [0], [0], [1], [0, 0, 1, 1], [], []>} : vector<16x32xbf16>, vector<32x64xbf16>, vector<16x64xf32> -> vector<16x64xf32>
    %426 = vector.extract_strided_slice %423 {offsets = [0, 0], sizes = [16, 32], strides = [1, 1]} : vector<16x96xbf16> to vector<16x32xbf16>
    %427 = arith.extf %426 : vector<16x32xbf16> to vector<16x32xf32>
    %428 = vector.extract_strided_slice %425 {offsets = [0, 0], sizes = [16, 32], strides = [1, 1]} : vector<16x64xf32> to vector<16x32xf32>
    %429 = arith.addf %427, %428 : vector<16x32xf32>
    %430 = arith.negf %429 : vector<16x32xf32>
    %431 = math.exp %430 : vector<16x32xf32>
    %cst_110 = arith.constant 1.000000e+00 : f32
    %432 = vector.broadcast %cst_110 : f32 to vector<16x32xf32>
    %433 = arith.addf %432, %431 : vector<16x32xf32>
    %434 = arith.divf %432, %433 : vector<16x32xf32>
    %435 = vector.extract_strided_slice %423 {offsets = [0, 32], sizes = [16, 32], strides = [1, 1]} : vector<16x96xbf16> to vector<16x32xbf16>
    %436 = arith.extf %435 : vector<16x32xbf16> to vector<16x32xf32>
    %437 = vector.extract_strided_slice %425 {offsets = [0, 32], sizes = [16, 32], strides = [1, 1]} : vector<16x64xf32> to vector<16x32xf32>
    %438 = arith.addf %436, %437 : vector<16x32xf32>
    %439 = arith.negf %438 : vector<16x32xf32>
    %440 = math.exp %439 : vector<16x32xf32>
    %cst_111 = arith.constant 1.000000e+00 : f32
    %441 = vector.broadcast %cst_111 : f32 to vector<16x32xf32>
    %442 = arith.addf %441, %440 : vector<16x32xf32>
    %443 = arith.divf %441, %442 : vector<16x32xf32>
    %cst_112 = arith.constant dense<0.000000e+00> : vector<16x32xf32>
    %444 = tpu.matmul %424, %4, %cst_112 {dimension_numbers = #tpu.dot_dimension_numbers<[1], [0], [0], [1], [0, 0, 1, 1], [], []>} : vector<16x32xbf16>, vector<32x32xbf16>, vector<16x32xf32> -> vector<16x32xf32>
    %445 = vector.extract_strided_slice %423 {offsets = [0, 64], sizes = [16, 32], strides = [1, 1]} : vector<16x96xbf16> to vector<16x32xbf16>
    %446 = arith.extf %445 : vector<16x32xbf16> to vector<16x32xf32>
    %447 = vector.broadcast %5 : vector<1x32xf32> to vector<16x32xf32>
    %448 = arith.addf %444, %447 : vector<16x32xf32>
    %449 = arith.mulf %434, %448 : vector<16x32xf32>
    %450 = arith.addf %446, %449 : vector<16x32xf32>
    %451 = math.tanh %450 : vector<16x32xf32>
    %cst_113 = arith.constant 1.000000e+00 : f32
    %452 = vector.broadcast %cst_113 : f32 to vector<16x32xf32>
    %453 = arith.subf %452, %443 : vector<16x32xf32>
    %454 = arith.mulf %453, %451 : vector<16x32xf32>
    %455 = arith.mulf %443, %410 : vector<16x32xf32>
    %456 = arith.addf %454, %455 : vector<16x32xf32>
    %457 = arith.index_cast %c9_i32 : i32 to index
    %c0_114 = arith.constant 0 : index
    %c0_115 = arith.constant 0 : index
    %458 = vector.load %arg3[%457, %c0_114, %c0_115] : memref<24x16x32xbf16, #tpu.memory_space<vmem>>, vector<1x16x32xbf16>
    %459 = vector.shape_cast %458 : vector<1x16x32xbf16> to vector<16x32xbf16>
    %460 = arith.extf %459 : vector<16x32xbf16> to vector<16x32xf32>
    %461 = arith.addf %456, %460 : vector<16x32xf32>
    %462 = arith.truncf %461 : vector<16x32xf32> to vector<16x32xbf16>
    %463 = arith.index_cast %c9_i32 : i32 to index
    %c0_116 = arith.constant 0 : index
    %c0_117 = arith.constant 0 : index
    %464 = vector.load %arg7[%463, %c0_116, %c0_117] : memref<24x16x32xbf16, #tpu.memory_space<vmem>>, vector<1x16x32xbf16>
    %465 = vector.shape_cast %464 : vector<1x16x32xbf16> to vector<16x32xbf16>
    %466 = vector.shape_cast %462 : vector<16x32xbf16> to vector<1x16x32xbf16>
    tpu.vector_store %arg7[%463, %c0_116, %c0_117], %466 {strides = array<i32>} : memref<24x16x32xbf16, #tpu.memory_space<vmem>>, vector<1x16x32xbf16>,
    %c10_i32 = arith.constant 10 : i32
    %467 = arith.index_cast %c10_i32 : i32 to index
    %c0_118 = arith.constant 0 : index
    %c0_119 = arith.constant 0 : index
    %468 = vector.load %arg2[%467, %c0_118, %c0_119] : memref<24x16x96xbf16, #tpu.memory_space<vmem>>, vector<1x16x96xbf16>
    %469 = vector.shape_cast %468 : vector<1x16x96xbf16> to vector<16x96xbf16>
    %470 = arith.truncf %456 : vector<16x32xf32> to vector<16x32xbf16>
    %cst_120 = arith.constant dense<0.000000e+00> : vector<16x64xf32>
    %471 = tpu.matmul %470, %3, %cst_120 {dimension_numbers = #tpu.dot_dimension_numbers<[1], [0], [0], [1], [0, 0, 1, 1], [], []>} : vector<16x32xbf16>, vector<32x64xbf16>, vector<16x64xf32> -> vector<16x64xf32>
    %472 = vector.extract_strided_slice %469 {offsets = [0, 0], sizes = [16, 32], strides = [1, 1]} : vector<16x96xbf16> to vector<16x32xbf16>
    %473 = arith.extf %472 : vector<16x32xbf16> to vector<16x32xf32>
    %474 = vector.extract_strided_slice %471 {offsets = [0, 0], sizes = [16, 32], strides = [1, 1]} : vector<16x64xf32> to vector<16x32xf32>
    %475 = arith.addf %473, %474 : vector<16x32xf32>
    %476 = arith.negf %475 : vector<16x32xf32>
    %477 = math.exp %476 : vector<16x32xf32>
    %cst_121 = arith.constant 1.000000e+00 : f32
    %478 = vector.broadcast %cst_121 : f32 to vector<16x32xf32>
    %479 = arith.addf %478, %477 : vector<16x32xf32>
    %480 = arith.divf %478, %479 : vector<16x32xf32>
    %481 = vector.extract_strided_slice %469 {offsets = [0, 32], sizes = [16, 32], strides = [1, 1]} : vector<16x96xbf16> to vector<16x32xbf16>
    %482 = arith.extf %481 : vector<16x32xbf16> to vector<16x32xf32>
    %483 = vector.extract_strided_slice %471 {offsets = [0, 32], sizes = [16, 32], strides = [1, 1]} : vector<16x64xf32> to vector<16x32xf32>
    %484 = arith.addf %482, %483 : vector<16x32xf32>
    %485 = arith.negf %484 : vector<16x32xf32>
    %486 = math.exp %485 : vector<16x32xf32>
    %cst_122 = arith.constant 1.000000e+00 : f32
    %487 = vector.broadcast %cst_122 : f32 to vector<16x32xf32>
    %488 = arith.addf %487, %486 : vector<16x32xf32>
    %489 = arith.divf %487, %488 : vector<16x32xf32>
    %cst_123 = arith.constant dense<0.000000e+00> : vector<16x32xf32>
    %490 = tpu.matmul %470, %4, %cst_123 {dimension_numbers = #tpu.dot_dimension_numbers<[1], [0], [0], [1], [0, 0, 1, 1], [], []>} : vector<16x32xbf16>, vector<32x32xbf16>, vector<16x32xf32> -> vector<16x32xf32>
    %491 = vector.extract_strided_slice %469 {offsets = [0, 64], sizes = [16, 32], strides = [1, 1]} : vector<16x96xbf16> to vector<16x32xbf16>
    %492 = arith.extf %491 : vector<16x32xbf16> to vector<16x32xf32>
    %493 = vector.broadcast %5 : vector<1x32xf32> to vector<16x32xf32>
    %494 = arith.addf %490, %493 : vector<16x32xf32>
    %495 = arith.mulf %480, %494 : vector<16x32xf32>
    %496 = arith.addf %492, %495 : vector<16x32xf32>
    %497 = math.tanh %496 : vector<16x32xf32>
    %cst_124 = arith.constant 1.000000e+00 : f32
    %498 = vector.broadcast %cst_124 : f32 to vector<16x32xf32>
    %499 = arith.subf %498, %489 : vector<16x32xf32>
    %500 = arith.mulf %499, %497 : vector<16x32xf32>
    %501 = arith.mulf %489, %456 : vector<16x32xf32>
    %502 = arith.addf %500, %501 : vector<16x32xf32>
    %503 = arith.index_cast %c10_i32 : i32 to index
    %c0_125 = arith.constant 0 : index
    %c0_126 = arith.constant 0 : index
    %504 = vector.load %arg3[%503, %c0_125, %c0_126] : memref<24x16x32xbf16, #tpu.memory_space<vmem>>, vector<1x16x32xbf16>
    %505 = vector.shape_cast %504 : vector<1x16x32xbf16> to vector<16x32xbf16>
    %506 = arith.extf %505 : vector<16x32xbf16> to vector<16x32xf32>
    %507 = arith.addf %502, %506 : vector<16x32xf32>
    %508 = arith.truncf %507 : vector<16x32xf32> to vector<16x32xbf16>
    %509 = arith.index_cast %c10_i32 : i32 to index
    %c0_127 = arith.constant 0 : index
    %c0_128 = arith.constant 0 : index
    %510 = vector.load %arg7[%509, %c0_127, %c0_128] : memref<24x16x32xbf16, #tpu.memory_space<vmem>>, vector<1x16x32xbf16>
    %511 = vector.shape_cast %510 : vector<1x16x32xbf16> to vector<16x32xbf16>
    %512 = vector.shape_cast %508 : vector<16x32xbf16> to vector<1x16x32xbf16>
    tpu.vector_store %arg7[%509, %c0_127, %c0_128], %512 {strides = array<i32>} : memref<24x16x32xbf16, #tpu.memory_space<vmem>>, vector<1x16x32xbf16>,
    %c11_i32 = arith.constant 11 : i32
    %513 = arith.index_cast %c11_i32 : i32 to index
    %c0_129 = arith.constant 0 : index
    %c0_130 = arith.constant 0 : index
    %514 = vector.load %arg2[%513, %c0_129, %c0_130] : memref<24x16x96xbf16, #tpu.memory_space<vmem>>, vector<1x16x96xbf16>
    %515 = vector.shape_cast %514 : vector<1x16x96xbf16> to vector<16x96xbf16>
    %516 = arith.truncf %502 : vector<16x32xf32> to vector<16x32xbf16>
    %cst_131 = arith.constant dense<0.000000e+00> : vector<16x64xf32>
    %517 = tpu.matmul %516, %3, %cst_131 {dimension_numbers = #tpu.dot_dimension_numbers<[1], [0], [0], [1], [0, 0, 1, 1], [], []>} : vector<16x32xbf16>, vector<32x64xbf16>, vector<16x64xf32> -> vector<16x64xf32>
    %518 = vector.extract_strided_slice %515 {offsets = [0, 0], sizes = [16, 32], strides = [1, 1]} : vector<16x96xbf16> to vector<16x32xbf16>
    %519 = arith.extf %518 : vector<16x32xbf16> to vector<16x32xf32>
    %520 = vector.extract_strided_slice %517 {offsets = [0, 0], sizes = [16, 32], strides = [1, 1]} : vector<16x64xf32> to vector<16x32xf32>
    %521 = arith.addf %519, %520 : vector<16x32xf32>
    %522 = arith.negf %521 : vector<16x32xf32>
    %523 = math.exp %522 : vector<16x32xf32>
    %cst_132 = arith.constant 1.000000e+00 : f32
    %524 = vector.broadcast %cst_132 : f32 to vector<16x32xf32>
    %525 = arith.addf %524, %523 : vector<16x32xf32>
    %526 = arith.divf %524, %525 : vector<16x32xf32>
    %527 = vector.extract_strided_slice %515 {offsets = [0, 32], sizes = [16, 32], strides = [1, 1]} : vector<16x96xbf16> to vector<16x32xbf16>
    %528 = arith.extf %527 : vector<16x32xbf16> to vector<16x32xf32>
    %529 = vector.extract_strided_slice %517 {offsets = [0, 32], sizes = [16, 32], strides = [1, 1]} : vector<16x64xf32> to vector<16x32xf32>
    %530 = arith.addf %528, %529 : vector<16x32xf32>
    %531 = arith.negf %530 : vector<16x32xf32>
    %532 = math.exp %531 : vector<16x32xf32>
    %cst_133 = arith.constant 1.000000e+00 : f32
    %533 = vector.broadcast %cst_133 : f32 to vector<16x32xf32>
    %534 = arith.addf %533, %532 : vector<16x32xf32>
    %535 = arith.divf %533, %534 : vector<16x32xf32>
    %cst_134 = arith.constant dense<0.000000e+00> : vector<16x32xf32>
    %536 = tpu.matmul %516, %4, %cst_134 {dimension_numbers = #tpu.dot_dimension_numbers<[1], [0], [0], [1], [0, 0, 1, 1], [], []>} : vector<16x32xbf16>, vector<32x32xbf16>, vector<16x32xf32> -> vector<16x32xf32>
    %537 = vector.extract_strided_slice %515 {offsets = [0, 64], sizes = [16, 32], strides = [1, 1]} : vector<16x96xbf16> to vector<16x32xbf16>
    %538 = arith.extf %537 : vector<16x32xbf16> to vector<16x32xf32>
    %539 = vector.broadcast %5 : vector<1x32xf32> to vector<16x32xf32>
    %540 = arith.addf %536, %539 : vector<16x32xf32>
    %541 = arith.mulf %526, %540 : vector<16x32xf32>
    %542 = arith.addf %538, %541 : vector<16x32xf32>
    %543 = math.tanh %542 : vector<16x32xf32>
    %cst_135 = arith.constant 1.000000e+00 : f32
    %544 = vector.broadcast %cst_135 : f32 to vector<16x32xf32>
    %545 = arith.subf %544, %535 : vector<16x32xf32>
    %546 = arith.mulf %545, %543 : vector<16x32xf32>
    %547 = arith.mulf %535, %502 : vector<16x32xf32>
    %548 = arith.addf %546, %547 : vector<16x32xf32>
    %549 = arith.index_cast %c11_i32 : i32 to index
    %c0_136 = arith.constant 0 : index
    %c0_137 = arith.constant 0 : index
    %550 = vector.load %arg3[%549, %c0_136, %c0_137] : memref<24x16x32xbf16, #tpu.memory_space<vmem>>, vector<1x16x32xbf16>
    %551 = vector.shape_cast %550 : vector<1x16x32xbf16> to vector<16x32xbf16>
    %552 = arith.extf %551 : vector<16x32xbf16> to vector<16x32xf32>
    %553 = arith.addf %548, %552 : vector<16x32xf32>
    %554 = arith.truncf %553 : vector<16x32xf32> to vector<16x32xbf16>
    %555 = arith.index_cast %c11_i32 : i32 to index
    %c0_138 = arith.constant 0 : index
    %c0_139 = arith.constant 0 : index
    %556 = vector.load %arg7[%555, %c0_138, %c0_139] : memref<24x16x32xbf16, #tpu.memory_space<vmem>>, vector<1x16x32xbf16>
    %557 = vector.shape_cast %556 : vector<1x16x32xbf16> to vector<16x32xbf16>
    %558 = vector.shape_cast %554 : vector<16x32xbf16> to vector<1x16x32xbf16>
    tpu.vector_store %arg7[%555, %c0_138, %c0_139], %558 {strides = array<i32>} : memref<24x16x32xbf16, #tpu.memory_space<vmem>>, vector<1x16x32xbf16>,
    %c12_i32 = arith.constant 12 : i32
    %559 = arith.index_cast %c12_i32 : i32 to index
    %c0_140 = arith.constant 0 : index
    %c0_141 = arith.constant 0 : index
    %560 = vector.load %arg2[%559, %c0_140, %c0_141] : memref<24x16x96xbf16, #tpu.memory_space<vmem>>, vector<1x16x96xbf16>
    %561 = vector.shape_cast %560 : vector<1x16x96xbf16> to vector<16x96xbf16>
    %562 = arith.truncf %548 : vector<16x32xf32> to vector<16x32xbf16>
    %cst_142 = arith.constant dense<0.000000e+00> : vector<16x64xf32>
    %563 = tpu.matmul %562, %3, %cst_142 {dimension_numbers = #tpu.dot_dimension_numbers<[1], [0], [0], [1], [0, 0, 1, 1], [], []>} : vector<16x32xbf16>, vector<32x64xbf16>, vector<16x64xf32> -> vector<16x64xf32>
    %564 = vector.extract_strided_slice %561 {offsets = [0, 0], sizes = [16, 32], strides = [1, 1]} : vector<16x96xbf16> to vector<16x32xbf16>
    %565 = arith.extf %564 : vector<16x32xbf16> to vector<16x32xf32>
    %566 = vector.extract_strided_slice %563 {offsets = [0, 0], sizes = [16, 32], strides = [1, 1]} : vector<16x64xf32> to vector<16x32xf32>
    %567 = arith.addf %565, %566 : vector<16x32xf32>
    %568 = arith.negf %567 : vector<16x32xf32>
    %569 = math.exp %568 : vector<16x32xf32>
    %cst_143 = arith.constant 1.000000e+00 : f32
    %570 = vector.broadcast %cst_143 : f32 to vector<16x32xf32>
    %571 = arith.addf %570, %569 : vector<16x32xf32>
    %572 = arith.divf %570, %571 : vector<16x32xf32>
    %573 = vector.extract_strided_slice %561 {offsets = [0, 32], sizes = [16, 32], strides = [1, 1]} : vector<16x96xbf16> to vector<16x32xbf16>
    %574 = arith.extf %573 : vector<16x32xbf16> to vector<16x32xf32>
    %575 = vector.extract_strided_slice %563 {offsets = [0, 32], sizes = [16, 32], strides = [1, 1]} : vector<16x64xf32> to vector<16x32xf32>
    %576 = arith.addf %574, %575 : vector<16x32xf32>
    %577 = arith.negf %576 : vector<16x32xf32>
    %578 = math.exp %577 : vector<16x32xf32>
    %cst_144 = arith.constant 1.000000e+00 : f32
    %579 = vector.broadcast %cst_144 : f32 to vector<16x32xf32>
    %580 = arith.addf %579, %578 : vector<16x32xf32>
    %581 = arith.divf %579, %580 : vector<16x32xf32>
    %cst_145 = arith.constant dense<0.000000e+00> : vector<16x32xf32>
    %582 = tpu.matmul %562, %4, %cst_145 {dimension_numbers = #tpu.dot_dimension_numbers<[1], [0], [0], [1], [0, 0, 1, 1], [], []>} : vector<16x32xbf16>, vector<32x32xbf16>, vector<16x32xf32> -> vector<16x32xf32>
    %583 = vector.extract_strided_slice %561 {offsets = [0, 64], sizes = [16, 32], strides = [1, 1]} : vector<16x96xbf16> to vector<16x32xbf16>
    %584 = arith.extf %583 : vector<16x32xbf16> to vector<16x32xf32>
    %585 = vector.broadcast %5 : vector<1x32xf32> to vector<16x32xf32>
    %586 = arith.addf %582, %585 : vector<16x32xf32>
    %587 = arith.mulf %572, %586 : vector<16x32xf32>
    %588 = arith.addf %584, %587 : vector<16x32xf32>
    %589 = math.tanh %588 : vector<16x32xf32>
    %cst_146 = arith.constant 1.000000e+00 : f32
    %590 = vector.broadcast %cst_146 : f32 to vector<16x32xf32>
    %591 = arith.subf %590, %581 : vector<16x32xf32>
    %592 = arith.mulf %591, %589 : vector<16x32xf32>
    %593 = arith.mulf %581, %548 : vector<16x32xf32>
    %594 = arith.addf %592, %593 : vector<16x32xf32>
    %595 = arith.index_cast %c12_i32 : i32 to index
    %c0_147 = arith.constant 0 : index
    %c0_148 = arith.constant 0 : index
    %596 = vector.load %arg3[%595, %c0_147, %c0_148] : memref<24x16x32xbf16, #tpu.memory_space<vmem>>, vector<1x16x32xbf16>
    %597 = vector.shape_cast %596 : vector<1x16x32xbf16> to vector<16x32xbf16>
    %598 = arith.extf %597 : vector<16x32xbf16> to vector<16x32xf32>
    %599 = arith.addf %594, %598 : vector<16x32xf32>
    %600 = arith.truncf %599 : vector<16x32xf32> to vector<16x32xbf16>
    %601 = arith.index_cast %c12_i32 : i32 to index
    %c0_149 = arith.constant 0 : index
    %c0_150 = arith.constant 0 : index
    %602 = vector.load %arg7[%601, %c0_149, %c0_150] : memref<24x16x32xbf16, #tpu.memory_space<vmem>>, vector<1x16x32xbf16>
    %603 = vector.shape_cast %602 : vector<1x16x32xbf16> to vector<16x32xbf16>
    %604 = vector.shape_cast %600 : vector<16x32xbf16> to vector<1x16x32xbf16>
    tpu.vector_store %arg7[%601, %c0_149, %c0_150], %604 {strides = array<i32>} : memref<24x16x32xbf16, #tpu.memory_space<vmem>>, vector<1x16x32xbf16>,
    %c13_i32 = arith.constant 13 : i32
    %605 = arith.index_cast %c13_i32 : i32 to index
    %c0_151 = arith.constant 0 : index
    %c0_152 = arith.constant 0 : index
    %606 = vector.load %arg2[%605, %c0_151, %c0_152] : memref<24x16x96xbf16, #tpu.memory_space<vmem>>, vector<1x16x96xbf16>
    %607 = vector.shape_cast %606 : vector<1x16x96xbf16> to vector<16x96xbf16>
    %608 = arith.truncf %594 : vector<16x32xf32> to vector<16x32xbf16>
    %cst_153 = arith.constant dense<0.000000e+00> : vector<16x64xf32>
    %609 = tpu.matmul %608, %3, %cst_153 {dimension_numbers = #tpu.dot_dimension_numbers<[1], [0], [0], [1], [0, 0, 1, 1], [], []>} : vector<16x32xbf16>, vector<32x64xbf16>, vector<16x64xf32> -> vector<16x64xf32>
    %610 = vector.extract_strided_slice %607 {offsets = [0, 0], sizes = [16, 32], strides = [1, 1]} : vector<16x96xbf16> to vector<16x32xbf16>
    %611 = arith.extf %610 : vector<16x32xbf16> to vector<16x32xf32>
    %612 = vector.extract_strided_slice %609 {offsets = [0, 0], sizes = [16, 32], strides = [1, 1]} : vector<16x64xf32> to vector<16x32xf32>
    %613 = arith.addf %611, %612 : vector<16x32xf32>
    %614 = arith.negf %613 : vector<16x32xf32>
    %615 = math.exp %614 : vector<16x32xf32>
    %cst_154 = arith.constant 1.000000e+00 : f32
    %616 = vector.broadcast %cst_154 : f32 to vector<16x32xf32>
    %617 = arith.addf %616, %615 : vector<16x32xf32>
    %618 = arith.divf %616, %617 : vector<16x32xf32>
    %619 = vector.extract_strided_slice %607 {offsets = [0, 32], sizes = [16, 32], strides = [1, 1]} : vector<16x96xbf16> to vector<16x32xbf16>
    %620 = arith.extf %619 : vector<16x32xbf16> to vector<16x32xf32>
    %621 = vector.extract_strided_slice %609 {offsets = [0, 32], sizes = [16, 32], strides = [1, 1]} : vector<16x64xf32> to vector<16x32xf32>
    %622 = arith.addf %620, %621 : vector<16x32xf32>
    %623 = arith.negf %622 : vector<16x32xf32>
    %624 = math.exp %623 : vector<16x32xf32>
    %cst_155 = arith.constant 1.000000e+00 : f32
    %625 = vector.broadcast %cst_155 : f32 to vector<16x32xf32>
    %626 = arith.addf %625, %624 : vector<16x32xf32>
    %627 = arith.divf %625, %626 : vector<16x32xf32>
    %cst_156 = arith.constant dense<0.000000e+00> : vector<16x32xf32>
    %628 = tpu.matmul %608, %4, %cst_156 {dimension_numbers = #tpu.dot_dimension_numbers<[1], [0], [0], [1], [0, 0, 1, 1], [], []>} : vector<16x32xbf16>, vector<32x32xbf16>, vector<16x32xf32> -> vector<16x32xf32>
    %629 = vector.extract_strided_slice %607 {offsets = [0, 64], sizes = [16, 32], strides = [1, 1]} : vector<16x96xbf16> to vector<16x32xbf16>
    %630 = arith.extf %629 : vector<16x32xbf16> to vector<16x32xf32>
    %631 = vector.broadcast %5 : vector<1x32xf32> to vector<16x32xf32>
    %632 = arith.addf %628, %631 : vector<16x32xf32>
    %633 = arith.mulf %618, %632 : vector<16x32xf32>
    %634 = arith.addf %630, %633 : vector<16x32xf32>
    %635 = math.tanh %634 : vector<16x32xf32>
    %cst_157 = arith.constant 1.000000e+00 : f32
    %636 = vector.broadcast %cst_157 : f32 to vector<16x32xf32>
    %637 = arith.subf %636, %627 : vector<16x32xf32>
    %638 = arith.mulf %637, %635 : vector<16x32xf32>
    %639 = arith.mulf %627, %594 : vector<16x32xf32>
    %640 = arith.addf %638, %639 : vector<16x32xf32>
    %641 = arith.index_cast %c13_i32 : i32 to index
    %c0_158 = arith.constant 0 : index
    %c0_159 = arith.constant 0 : index
    %642 = vector.load %arg3[%641, %c0_158, %c0_159] : memref<24x16x32xbf16, #tpu.memory_space<vmem>>, vector<1x16x32xbf16>
    %643 = vector.shape_cast %642 : vector<1x16x32xbf16> to vector<16x32xbf16>
    %644 = arith.extf %643 : vector<16x32xbf16> to vector<16x32xf32>
    %645 = arith.addf %640, %644 : vector<16x32xf32>
    %646 = arith.truncf %645 : vector<16x32xf32> to vector<16x32xbf16>
    %647 = arith.index_cast %c13_i32 : i32 to index
    %c0_160 = arith.constant 0 : index
    %c0_161 = arith.constant 0 : index
    %648 = vector.load %arg7[%647, %c0_160, %c0_161] : memref<24x16x32xbf16, #tpu.memory_space<vmem>>, vector<1x16x32xbf16>
    %649 = vector.shape_cast %648 : vector<1x16x32xbf16> to vector<16x32xbf16>
    %650 = vector.shape_cast %646 : vector<16x32xbf16> to vector<1x16x32xbf16>
    tpu.vector_store %arg7[%647, %c0_160, %c0_161], %650 {strides = array<i32>} : memref<24x16x32xbf16, #tpu.memory_space<vmem>>, vector<1x16x32xbf16>,
    %c14_i32 = arith.constant 14 : i32
    %651 = arith.index_cast %c14_i32 : i32 to index
    %c0_162 = arith.constant 0 : index
    %c0_163 = arith.constant 0 : index
    %652 = vector.load %arg2[%651, %c0_162, %c0_163] : memref<24x16x96xbf16, #tpu.memory_space<vmem>>, vector<1x16x96xbf16>
    %653 = vector.shape_cast %652 : vector<1x16x96xbf16> to vector<16x96xbf16>
    %654 = arith.truncf %640 : vector<16x32xf32> to vector<16x32xbf16>
    %cst_164 = arith.constant dense<0.000000e+00> : vector<16x64xf32>
    %655 = tpu.matmul %654, %3, %cst_164 {dimension_numbers = #tpu.dot_dimension_numbers<[1], [0], [0], [1], [0, 0, 1, 1], [], []>} : vector<16x32xbf16>, vector<32x64xbf16>, vector<16x64xf32> -> vector<16x64xf32>
    %656 = vector.extract_strided_slice %653 {offsets = [0, 0], sizes = [16, 32], strides = [1, 1]} : vector<16x96xbf16> to vector<16x32xbf16>
    %657 = arith.extf %656 : vector<16x32xbf16> to vector<16x32xf32>
    %658 = vector.extract_strided_slice %655 {offsets = [0, 0], sizes = [16, 32], strides = [1, 1]} : vector<16x64xf32> to vector<16x32xf32>
    %659 = arith.addf %657, %658 : vector<16x32xf32>
    %660 = arith.negf %659 : vector<16x32xf32>
    %661 = math.exp %660 : vector<16x32xf32>
    %cst_165 = arith.constant 1.000000e+00 : f32
    %662 = vector.broadcast %cst_165 : f32 to vector<16x32xf32>
    %663 = arith.addf %662, %661 : vector<16x32xf32>
    %664 = arith.divf %662, %663 : vector<16x32xf32>
    %665 = vector.extract_strided_slice %653 {offsets = [0, 32], sizes = [16, 32], strides = [1, 1]} : vector<16x96xbf16> to vector<16x32xbf16>
    %666 = arith.extf %665 : vector<16x32xbf16> to vector<16x32xf32>
    %667 = vector.extract_strided_slice %655 {offsets = [0, 32], sizes = [16, 32], strides = [1, 1]} : vector<16x64xf32> to vector<16x32xf32>
    %668 = arith.addf %666, %667 : vector<16x32xf32>
    %669 = arith.negf %668 : vector<16x32xf32>
    %670 = math.exp %669 : vector<16x32xf32>
    %cst_166 = arith.constant 1.000000e+00 : f32
    %671 = vector.broadcast %cst_166 : f32 to vector<16x32xf32>
    %672 = arith.addf %671, %670 : vector<16x32xf32>
    %673 = arith.divf %671, %672 : vector<16x32xf32>
    %cst_167 = arith.constant dense<0.000000e+00> : vector<16x32xf32>
    %674 = tpu.matmul %654, %4, %cst_167 {dimension_numbers = #tpu.dot_dimension_numbers<[1], [0], [0], [1], [0, 0, 1, 1], [], []>} : vector<16x32xbf16>, vector<32x32xbf16>, vector<16x32xf32> -> vector<16x32xf32>
    %675 = vector.extract_strided_slice %653 {offsets = [0, 64], sizes = [16, 32], strides = [1, 1]} : vector<16x96xbf16> to vector<16x32xbf16>
    %676 = arith.extf %675 : vector<16x32xbf16> to vector<16x32xf32>
    %677 = vector.broadcast %5 : vector<1x32xf32> to vector<16x32xf32>
    %678 = arith.addf %674, %677 : vector<16x32xf32>
    %679 = arith.mulf %664, %678 : vector<16x32xf32>
    %680 = arith.addf %676, %679 : vector<16x32xf32>
    %681 = math.tanh %680 : vector<16x32xf32>
    %cst_168 = arith.constant 1.000000e+00 : f32
    %682 = vector.broadcast %cst_168 : f32 to vector<16x32xf32>
    %683 = arith.subf %682, %673 : vector<16x32xf32>
    %684 = arith.mulf %683, %681 : vector<16x32xf32>
    %685 = arith.mulf %673, %640 : vector<16x32xf32>
    %686 = arith.addf %684, %685 : vector<16x32xf32>
    %687 = arith.index_cast %c14_i32 : i32 to index
    %c0_169 = arith.constant 0 : index
    %c0_170 = arith.constant 0 : index
    %688 = vector.load %arg3[%687, %c0_169, %c0_170] : memref<24x16x32xbf16, #tpu.memory_space<vmem>>, vector<1x16x32xbf16>
    %689 = vector.shape_cast %688 : vector<1x16x32xbf16> to vector<16x32xbf16>
    %690 = arith.extf %689 : vector<16x32xbf16> to vector<16x32xf32>
    %691 = arith.addf %686, %690 : vector<16x32xf32>
    %692 = arith.truncf %691 : vector<16x32xf32> to vector<16x32xbf16>
    %693 = arith.index_cast %c14_i32 : i32 to index
    %c0_171 = arith.constant 0 : index
    %c0_172 = arith.constant 0 : index
    %694 = vector.load %arg7[%693, %c0_171, %c0_172] : memref<24x16x32xbf16, #tpu.memory_space<vmem>>, vector<1x16x32xbf16>
    %695 = vector.shape_cast %694 : vector<1x16x32xbf16> to vector<16x32xbf16>
    %696 = vector.shape_cast %692 : vector<16x32xbf16> to vector<1x16x32xbf16>
    tpu.vector_store %arg7[%693, %c0_171, %c0_172], %696 {strides = array<i32>} : memref<24x16x32xbf16, #tpu.memory_space<vmem>>, vector<1x16x32xbf16>,
    %c15_i32 = arith.constant 15 : i32
    %697 = arith.index_cast %c15_i32 : i32 to index
    %c0_173 = arith.constant 0 : index
    %c0_174 = arith.constant 0 : index
    %698 = vector.load %arg2[%697, %c0_173, %c0_174] : memref<24x16x96xbf16, #tpu.memory_space<vmem>>, vector<1x16x96xbf16>
    %699 = vector.shape_cast %698 : vector<1x16x96xbf16> to vector<16x96xbf16>
    %700 = arith.truncf %686 : vector<16x32xf32> to vector<16x32xbf16>
    %cst_175 = arith.constant dense<0.000000e+00> : vector<16x64xf32>
    %701 = tpu.matmul %700, %3, %cst_175 {dimension_numbers = #tpu.dot_dimension_numbers<[1], [0], [0], [1], [0, 0, 1, 1], [], []>} : vector<16x32xbf16>, vector<32x64xbf16>, vector<16x64xf32> -> vector<16x64xf32>
    %702 = vector.extract_strided_slice %699 {offsets = [0, 0], sizes = [16, 32], strides = [1, 1]} : vector<16x96xbf16> to vector<16x32xbf16>
    %703 = arith.extf %702 : vector<16x32xbf16> to vector<16x32xf32>
    %704 = vector.extract_strided_slice %701 {offsets = [0, 0], sizes = [16, 32], strides = [1, 1]} : vector<16x64xf32> to vector<16x32xf32>
    %705 = arith.addf %703, %704 : vector<16x32xf32>
    %706 = arith.negf %705 : vector<16x32xf32>
    %707 = math.exp %706 : vector<16x32xf32>
    %cst_176 = arith.constant 1.000000e+00 : f32
    %708 = vector.broadcast %cst_176 : f32 to vector<16x32xf32>
    %709 = arith.addf %708, %707 : vector<16x32xf32>
    %710 = arith.divf %708, %709 : vector<16x32xf32>
    %711 = vector.extract_strided_slice %699 {offsets = [0, 32], sizes = [16, 32], strides = [1, 1]} : vector<16x96xbf16> to vector<16x32xbf16>
    %712 = arith.extf %711 : vector<16x32xbf16> to vector<16x32xf32>
    %713 = vector.extract_strided_slice %701 {offsets = [0, 32], sizes = [16, 32], strides = [1, 1]} : vector<16x64xf32> to vector<16x32xf32>
    %714 = arith.addf %712, %713 : vector<16x32xf32>
    %715 = arith.negf %714 : vector<16x32xf32>
    %716 = math.exp %715 : vector<16x32xf32>
    %cst_177 = arith.constant 1.000000e+00 : f32
    %717 = vector.broadcast %cst_177 : f32 to vector<16x32xf32>
    %718 = arith.addf %717, %716 : vector<16x32xf32>
    %719 = arith.divf %717, %718 : vector<16x32xf32>
    %cst_178 = arith.constant dense<0.000000e+00> : vector<16x32xf32>
    %720 = tpu.matmul %700, %4, %cst_178 {dimension_numbers = #tpu.dot_dimension_numbers<[1], [0], [0], [1], [0, 0, 1, 1], [], []>} : vector<16x32xbf16>, vector<32x32xbf16>, vector<16x32xf32> -> vector<16x32xf32>
    %721 = vector.extract_strided_slice %699 {offsets = [0, 64], sizes = [16, 32], strides = [1, 1]} : vector<16x96xbf16> to vector<16x32xbf16>
    %722 = arith.extf %721 : vector<16x32xbf16> to vector<16x32xf32>
    %723 = vector.broadcast %5 : vector<1x32xf32> to vector<16x32xf32>
    %724 = arith.addf %720, %723 : vector<16x32xf32>
    %725 = arith.mulf %710, %724 : vector<16x32xf32>
    %726 = arith.addf %722, %725 : vector<16x32xf32>
    %727 = math.tanh %726 : vector<16x32xf32>
    %cst_179 = arith.constant 1.000000e+00 : f32
    %728 = vector.broadcast %cst_179 : f32 to vector<16x32xf32>
    %729 = arith.subf %728, %719 : vector<16x32xf32>
    %730 = arith.mulf %729, %727 : vector<16x32xf32>
    %731 = arith.mulf %719, %686 : vector<16x32xf32>
    %732 = arith.addf %730, %731 : vector<16x32xf32>
    %733 = arith.index_cast %c15_i32 : i32 to index
    %c0_180 = arith.constant 0 : index
    %c0_181 = arith.constant 0 : index
    %734 = vector.load %arg3[%733, %c0_180, %c0_181] : memref<24x16x32xbf16, #tpu.memory_space<vmem>>, vector<1x16x32xbf16>
    %735 = vector.shape_cast %734 : vector<1x16x32xbf16> to vector<16x32xbf16>
    %736 = arith.extf %735 : vector<16x32xbf16> to vector<16x32xf32>
    %737 = arith.addf %732, %736 : vector<16x32xf32>
    %738 = arith.truncf %737 : vector<16x32xf32> to vector<16x32xbf16>
    %739 = arith.index_cast %c15_i32 : i32 to index
    %c0_182 = arith.constant 0 : index
    %c0_183 = arith.constant 0 : index
    %740 = vector.load %arg7[%739, %c0_182, %c0_183] : memref<24x16x32xbf16, #tpu.memory_space<vmem>>, vector<1x16x32xbf16>
    %741 = vector.shape_cast %740 : vector<1x16x32xbf16> to vector<16x32xbf16>
    %742 = vector.shape_cast %738 : vector<16x32xbf16> to vector<1x16x32xbf16>
    tpu.vector_store %arg7[%739, %c0_182, %c0_183], %742 {strides = array<i32>} : memref<24x16x32xbf16, #tpu.memory_space<vmem>>, vector<1x16x32xbf16>,
    %c16_i32 = arith.constant 16 : i32
    %743 = arith.index_cast %c16_i32 : i32 to index
    %c0_184 = arith.constant 0 : index
    %c0_185 = arith.constant 0 : index
    %744 = vector.load %arg2[%743, %c0_184, %c0_185] : memref<24x16x96xbf16, #tpu.memory_space<vmem>>, vector<1x16x96xbf16>
    %745 = vector.shape_cast %744 : vector<1x16x96xbf16> to vector<16x96xbf16>
    %746 = arith.truncf %732 : vector<16x32xf32> to vector<16x32xbf16>
    %cst_186 = arith.constant dense<0.000000e+00> : vector<16x64xf32>
    %747 = tpu.matmul %746, %3, %cst_186 {dimension_numbers = #tpu.dot_dimension_numbers<[1], [0], [0], [1], [0, 0, 1, 1], [], []>} : vector<16x32xbf16>, vector<32x64xbf16>, vector<16x64xf32> -> vector<16x64xf32>
    %748 = vector.extract_strided_slice %745 {offsets = [0, 0], sizes = [16, 32], strides = [1, 1]} : vector<16x96xbf16> to vector<16x32xbf16>
    %749 = arith.extf %748 : vector<16x32xbf16> to vector<16x32xf32>
    %750 = vector.extract_strided_slice %747 {offsets = [0, 0], sizes = [16, 32], strides = [1, 1]} : vector<16x64xf32> to vector<16x32xf32>
    %751 = arith.addf %749, %750 : vector<16x32xf32>
    %752 = arith.negf %751 : vector<16x32xf32>
    %753 = math.exp %752 : vector<16x32xf32>
    %cst_187 = arith.constant 1.000000e+00 : f32
    %754 = vector.broadcast %cst_187 : f32 to vector<16x32xf32>
    %755 = arith.addf %754, %753 : vector<16x32xf32>
    %756 = arith.divf %754, %755 : vector<16x32xf32>
    %757 = vector.extract_strided_slice %745 {offsets = [0, 32], sizes = [16, 32], strides = [1, 1]} : vector<16x96xbf16> to vector<16x32xbf16>
    %758 = arith.extf %757 : vector<16x32xbf16> to vector<16x32xf32>
    %759 = vector.extract_strided_slice %747 {offsets = [0, 32], sizes = [16, 32], strides = [1, 1]} : vector<16x64xf32> to vector<16x32xf32>
    %760 = arith.addf %758, %759 : vector<16x32xf32>
    %761 = arith.negf %760 : vector<16x32xf32>
    %762 = math.exp %761 : vector<16x32xf32>
    %cst_188 = arith.constant 1.000000e+00 : f32
    %763 = vector.broadcast %cst_188 : f32 to vector<16x32xf32>
    %764 = arith.addf %763, %762 : vector<16x32xf32>
    %765 = arith.divf %763, %764 : vector<16x32xf32>
    %cst_189 = arith.constant dense<0.000000e+00> : vector<16x32xf32>
    %766 = tpu.matmul %746, %4, %cst_189 {dimension_numbers = #tpu.dot_dimension_numbers<[1], [0], [0], [1], [0, 0, 1, 1], [], []>} : vector<16x32xbf16>, vector<32x32xbf16>, vector<16x32xf32> -> vector<16x32xf32>
    %767 = vector.extract_strided_slice %745 {offsets = [0, 64], sizes = [16, 32], strides = [1, 1]} : vector<16x96xbf16> to vector<16x32xbf16>
    %768 = arith.extf %767 : vector<16x32xbf16> to vector<16x32xf32>
    %769 = vector.broadcast %5 : vector<1x32xf32> to vector<16x32xf32>
    %770 = arith.addf %766, %769 : vector<16x32xf32>
    %771 = arith.mulf %756, %770 : vector<16x32xf32>
    %772 = arith.addf %768, %771 : vector<16x32xf32>
    %773 = math.tanh %772 : vector<16x32xf32>
    %cst_190 = arith.constant 1.000000e+00 : f32
    %774 = vector.broadcast %cst_190 : f32 to vector<16x32xf32>
    %775 = arith.subf %774, %765 : vector<16x32xf32>
    %776 = arith.mulf %775, %773 : vector<16x32xf32>
    %777 = arith.mulf %765, %732 : vector<16x32xf32>
    %778 = arith.addf %776, %777 : vector<16x32xf32>
    %779 = arith.index_cast %c16_i32 : i32 to index
    %c0_191 = arith.constant 0 : index
    %c0_192 = arith.constant 0 : index
    %780 = vector.load %arg3[%779, %c0_191, %c0_192] : memref<24x16x32xbf16, #tpu.memory_space<vmem>>, vector<1x16x32xbf16>
    %781 = vector.shape_cast %780 : vector<1x16x32xbf16> to vector<16x32xbf16>
    %782 = arith.extf %781 : vector<16x32xbf16> to vector<16x32xf32>
    %783 = arith.addf %778, %782 : vector<16x32xf32>
    %784 = arith.truncf %783 : vector<16x32xf32> to vector<16x32xbf16>
    %785 = arith.index_cast %c16_i32 : i32 to index
    %c0_193 = arith.constant 0 : index
    %c0_194 = arith.constant 0 : index
    %786 = vector.load %arg7[%785, %c0_193, %c0_194] : memref<24x16x32xbf16, #tpu.memory_space<vmem>>, vector<1x16x32xbf16>
    %787 = vector.shape_cast %786 : vector<1x16x32xbf16> to vector<16x32xbf16>
    %788 = vector.shape_cast %784 : vector<16x32xbf16> to vector<1x16x32xbf16>
    tpu.vector_store %arg7[%785, %c0_193, %c0_194], %788 {strides = array<i32>} : memref<24x16x32xbf16, #tpu.memory_space<vmem>>, vector<1x16x32xbf16>,
    %c17_i32 = arith.constant 17 : i32
    %789 = arith.index_cast %c17_i32 : i32 to index
    %c0_195 = arith.constant 0 : index
    %c0_196 = arith.constant 0 : index
    %790 = vector.load %arg2[%789, %c0_195, %c0_196] : memref<24x16x96xbf16, #tpu.memory_space<vmem>>, vector<1x16x96xbf16>
    %791 = vector.shape_cast %790 : vector<1x16x96xbf16> to vector<16x96xbf16>
    %792 = arith.truncf %778 : vector<16x32xf32> to vector<16x32xbf16>
    %cst_197 = arith.constant dense<0.000000e+00> : vector<16x64xf32>
    %793 = tpu.matmul %792, %3, %cst_197 {dimension_numbers = #tpu.dot_dimension_numbers<[1], [0], [0], [1], [0, 0, 1, 1], [], []>} : vector<16x32xbf16>, vector<32x64xbf16>, vector<16x64xf32> -> vector<16x64xf32>
    %794 = vector.extract_strided_slice %791 {offsets = [0, 0], sizes = [16, 32], strides = [1, 1]} : vector<16x96xbf16> to vector<16x32xbf16>
    %795 = arith.extf %794 : vector<16x32xbf16> to vector<16x32xf32>
    %796 = vector.extract_strided_slice %793 {offsets = [0, 0], sizes = [16, 32], strides = [1, 1]} : vector<16x64xf32> to vector<16x32xf32>
    %797 = arith.addf %795, %796 : vector<16x32xf32>
    %798 = arith.negf %797 : vector<16x32xf32>
    %799 = math.exp %798 : vector<16x32xf32>
    %cst_198 = arith.constant 1.000000e+00 : f32
    %800 = vector.broadcast %cst_198 : f32 to vector<16x32xf32>
    %801 = arith.addf %800, %799 : vector<16x32xf32>
    %802 = arith.divf %800, %801 : vector<16x32xf32>
    %803 = vector.extract_strided_slice %791 {offsets = [0, 32], sizes = [16, 32], strides = [1, 1]} : vector<16x96xbf16> to vector<16x32xbf16>
    %804 = arith.extf %803 : vector<16x32xbf16> to vector<16x32xf32>
    %805 = vector.extract_strided_slice %793 {offsets = [0, 32], sizes = [16, 32], strides = [1, 1]} : vector<16x64xf32> to vector<16x32xf32>
    %806 = arith.addf %804, %805 : vector<16x32xf32>
    %807 = arith.negf %806 : vector<16x32xf32>
    %808 = math.exp %807 : vector<16x32xf32>
    %cst_199 = arith.constant 1.000000e+00 : f32
    %809 = vector.broadcast %cst_199 : f32 to vector<16x32xf32>
    %810 = arith.addf %809, %808 : vector<16x32xf32>
    %811 = arith.divf %809, %810 : vector<16x32xf32>
    %cst_200 = arith.constant dense<0.000000e+00> : vector<16x32xf32>
    %812 = tpu.matmul %792, %4, %cst_200 {dimension_numbers = #tpu.dot_dimension_numbers<[1], [0], [0], [1], [0, 0, 1, 1], [], []>} : vector<16x32xbf16>, vector<32x32xbf16>, vector<16x32xf32> -> vector<16x32xf32>
    %813 = vector.extract_strided_slice %791 {offsets = [0, 64], sizes = [16, 32], strides = [1, 1]} : vector<16x96xbf16> to vector<16x32xbf16>
    %814 = arith.extf %813 : vector<16x32xbf16> to vector<16x32xf32>
    %815 = vector.broadcast %5 : vector<1x32xf32> to vector<16x32xf32>
    %816 = arith.addf %812, %815 : vector<16x32xf32>
    %817 = arith.mulf %802, %816 : vector<16x32xf32>
    %818 = arith.addf %814, %817 : vector<16x32xf32>
    %819 = math.tanh %818 : vector<16x32xf32>
    %cst_201 = arith.constant 1.000000e+00 : f32
    %820 = vector.broadcast %cst_201 : f32 to vector<16x32xf32>
    %821 = arith.subf %820, %811 : vector<16x32xf32>
    %822 = arith.mulf %821, %819 : vector<16x32xf32>
    %823 = arith.mulf %811, %778 : vector<16x32xf32>
    %824 = arith.addf %822, %823 : vector<16x32xf32>
    %825 = arith.index_cast %c17_i32 : i32 to index
    %c0_202 = arith.constant 0 : index
    %c0_203 = arith.constant 0 : index
    %826 = vector.load %arg3[%825, %c0_202, %c0_203] : memref<24x16x32xbf16, #tpu.memory_space<vmem>>, vector<1x16x32xbf16>
    %827 = vector.shape_cast %826 : vector<1x16x32xbf16> to vector<16x32xbf16>
    %828 = arith.extf %827 : vector<16x32xbf16> to vector<16x32xf32>
    %829 = arith.addf %824, %828 : vector<16x32xf32>
    %830 = arith.truncf %829 : vector<16x32xf32> to vector<16x32xbf16>
    %831 = arith.index_cast %c17_i32 : i32 to index
    %c0_204 = arith.constant 0 : index
    %c0_205 = arith.constant 0 : index
    %832 = vector.load %arg7[%831, %c0_204, %c0_205] : memref<24x16x32xbf16, #tpu.memory_space<vmem>>, vector<1x16x32xbf16>
    %833 = vector.shape_cast %832 : vector<1x16x32xbf16> to vector<16x32xbf16>
    %834 = vector.shape_cast %830 : vector<16x32xbf16> to vector<1x16x32xbf16>
    tpu.vector_store %arg7[%831, %c0_204, %c0_205], %834 {strides = array<i32>} : memref<24x16x32xbf16, #tpu.memory_space<vmem>>, vector<1x16x32xbf16>,
    %c18_i32 = arith.constant 18 : i32
    %835 = arith.index_cast %c18_i32 : i32 to index
    %c0_206 = arith.constant 0 : index
    %c0_207 = arith.constant 0 : index
    %836 = vector.load %arg2[%835, %c0_206, %c0_207] : memref<24x16x96xbf16, #tpu.memory_space<vmem>>, vector<1x16x96xbf16>
    %837 = vector.shape_cast %836 : vector<1x16x96xbf16> to vector<16x96xbf16>
    %838 = arith.truncf %824 : vector<16x32xf32> to vector<16x32xbf16>
    %cst_208 = arith.constant dense<0.000000e+00> : vector<16x64xf32>
    %839 = tpu.matmul %838, %3, %cst_208 {dimension_numbers = #tpu.dot_dimension_numbers<[1], [0], [0], [1], [0, 0, 1, 1], [], []>} : vector<16x32xbf16>, vector<32x64xbf16>, vector<16x64xf32> -> vector<16x64xf32>
    %840 = vector.extract_strided_slice %837 {offsets = [0, 0], sizes = [16, 32], strides = [1, 1]} : vector<16x96xbf16> to vector<16x32xbf16>
    %841 = arith.extf %840 : vector<16x32xbf16> to vector<16x32xf32>
    %842 = vector.extract_strided_slice %839 {offsets = [0, 0], sizes = [16, 32], strides = [1, 1]} : vector<16x64xf32> to vector<16x32xf32>
    %843 = arith.addf %841, %842 : vector<16x32xf32>
    %844 = arith.negf %843 : vector<16x32xf32>
    %845 = math.exp %844 : vector<16x32xf32>
    %cst_209 = arith.constant 1.000000e+00 : f32
    %846 = vector.broadcast %cst_209 : f32 to vector<16x32xf32>
    %847 = arith.addf %846, %845 : vector<16x32xf32>
    %848 = arith.divf %846, %847 : vector<16x32xf32>
    %849 = vector.extract_strided_slice %837 {offsets = [0, 32], sizes = [16, 32], strides = [1, 1]} : vector<16x96xbf16> to vector<16x32xbf16>
    %850 = arith.extf %849 : vector<16x32xbf16> to vector<16x32xf32>
    %851 = vector.extract_strided_slice %839 {offsets = [0, 32], sizes = [16, 32], strides = [1, 1]} : vector<16x64xf32> to vector<16x32xf32>
    %852 = arith.addf %850, %851 : vector<16x32xf32>
    %853 = arith.negf %852 : vector<16x32xf32>
    %854 = math.exp %853 : vector<16x32xf32>
    %cst_210 = arith.constant 1.000000e+00 : f32
    %855 = vector.broadcast %cst_210 : f32 to vector<16x32xf32>
    %856 = arith.addf %855, %854 : vector<16x32xf32>
    %857 = arith.divf %855, %856 : vector<16x32xf32>
    %cst_211 = arith.constant dense<0.000000e+00> : vector<16x32xf32>
    %858 = tpu.matmul %838, %4, %cst_211 {dimension_numbers = #tpu.dot_dimension_numbers<[1], [0], [0], [1], [0, 0, 1, 1], [], []>} : vector<16x32xbf16>, vector<32x32xbf16>, vector<16x32xf32> -> vector<16x32xf32>
    %859 = vector.extract_strided_slice %837 {offsets = [0, 64], sizes = [16, 32], strides = [1, 1]} : vector<16x96xbf16> to vector<16x32xbf16>
    %860 = arith.extf %859 : vector<16x32xbf16> to vector<16x32xf32>
    %861 = vector.broadcast %5 : vector<1x32xf32> to vector<16x32xf32>
    %862 = arith.addf %858, %861 : vector<16x32xf32>
    %863 = arith.mulf %848, %862 : vector<16x32xf32>
    %864 = arith.addf %860, %863 : vector<16x32xf32>
    %865 = math.tanh %864 : vector<16x32xf32>
    %cst_212 = arith.constant 1.000000e+00 : f32
    %866 = vector.broadcast %cst_212 : f32 to vector<16x32xf32>
    %867 = arith.subf %866, %857 : vector<16x32xf32>
    %868 = arith.mulf %867, %865 : vector<16x32xf32>
    %869 = arith.mulf %857, %824 : vector<16x32xf32>
    %870 = arith.addf %868, %869 : vector<16x32xf32>
    %871 = arith.index_cast %c18_i32 : i32 to index
    %c0_213 = arith.constant 0 : index
    %c0_214 = arith.constant 0 : index
    %872 = vector.load %arg3[%871, %c0_213, %c0_214] : memref<24x16x32xbf16, #tpu.memory_space<vmem>>, vector<1x16x32xbf16>
    %873 = vector.shape_cast %872 : vector<1x16x32xbf16> to vector<16x32xbf16>
    %874 = arith.extf %873 : vector<16x32xbf16> to vector<16x32xf32>
    %875 = arith.addf %870, %874 : vector<16x32xf32>
    %876 = arith.truncf %875 : vector<16x32xf32> to vector<16x32xbf16>
    %877 = arith.index_cast %c18_i32 : i32 to index
    %c0_215 = arith.constant 0 : index
    %c0_216 = arith.constant 0 : index
    %878 = vector.load %arg7[%877, %c0_215, %c0_216] : memref<24x16x32xbf16, #tpu.memory_space<vmem>>, vector<1x16x32xbf16>
    %879 = vector.shape_cast %878 : vector<1x16x32xbf16> to vector<16x32xbf16>
    %880 = vector.shape_cast %876 : vector<16x32xbf16> to vector<1x16x32xbf16>
    tpu.vector_store %arg7[%877, %c0_215, %c0_216], %880 {strides = array<i32>} : memref<24x16x32xbf16, #tpu.memory_space<vmem>>, vector<1x16x32xbf16>,
    %c19_i32 = arith.constant 19 : i32
    %881 = arith.index_cast %c19_i32 : i32 to index
    %c0_217 = arith.constant 0 : index
    %c0_218 = arith.constant 0 : index
    %882 = vector.load %arg2[%881, %c0_217, %c0_218] : memref<24x16x96xbf16, #tpu.memory_space<vmem>>, vector<1x16x96xbf16>
    %883 = vector.shape_cast %882 : vector<1x16x96xbf16> to vector<16x96xbf16>
    %884 = arith.truncf %870 : vector<16x32xf32> to vector<16x32xbf16>
    %cst_219 = arith.constant dense<0.000000e+00> : vector<16x64xf32>
    %885 = tpu.matmul %884, %3, %cst_219 {dimension_numbers = #tpu.dot_dimension_numbers<[1], [0], [0], [1], [0, 0, 1, 1], [], []>} : vector<16x32xbf16>, vector<32x64xbf16>, vector<16x64xf32> -> vector<16x64xf32>
    %886 = vector.extract_strided_slice %883 {offsets = [0, 0], sizes = [16, 32], strides = [1, 1]} : vector<16x96xbf16> to vector<16x32xbf16>
    %887 = arith.extf %886 : vector<16x32xbf16> to vector<16x32xf32>
    %888 = vector.extract_strided_slice %885 {offsets = [0, 0], sizes = [16, 32], strides = [1, 1]} : vector<16x64xf32> to vector<16x32xf32>
    %889 = arith.addf %887, %888 : vector<16x32xf32>
    %890 = arith.negf %889 : vector<16x32xf32>
    %891 = math.exp %890 : vector<16x32xf32>
    %cst_220 = arith.constant 1.000000e+00 : f32
    %892 = vector.broadcast %cst_220 : f32 to vector<16x32xf32>
    %893 = arith.addf %892, %891 : vector<16x32xf32>
    %894 = arith.divf %892, %893 : vector<16x32xf32>
    %895 = vector.extract_strided_slice %883 {offsets = [0, 32], sizes = [16, 32], strides = [1, 1]} : vector<16x96xbf16> to vector<16x32xbf16>
    %896 = arith.extf %895 : vector<16x32xbf16> to vector<16x32xf32>
    %897 = vector.extract_strided_slice %885 {offsets = [0, 32], sizes = [16, 32], strides = [1, 1]} : vector<16x64xf32> to vector<16x32xf32>
    %898 = arith.addf %896, %897 : vector<16x32xf32>
    %899 = arith.negf %898 : vector<16x32xf32>
    %900 = math.exp %899 : vector<16x32xf32>
    %cst_221 = arith.constant 1.000000e+00 : f32
    %901 = vector.broadcast %cst_221 : f32 to vector<16x32xf32>
    %902 = arith.addf %901, %900 : vector<16x32xf32>
    %903 = arith.divf %901, %902 : vector<16x32xf32>
    %cst_222 = arith.constant dense<0.000000e+00> : vector<16x32xf32>
    %904 = tpu.matmul %884, %4, %cst_222 {dimension_numbers = #tpu.dot_dimension_numbers<[1], [0], [0], [1], [0, 0, 1, 1], [], []>} : vector<16x32xbf16>, vector<32x32xbf16>, vector<16x32xf32> -> vector<16x32xf32>
    %905 = vector.extract_strided_slice %883 {offsets = [0, 64], sizes = [16, 32], strides = [1, 1]} : vector<16x96xbf16> to vector<16x32xbf16>
    %906 = arith.extf %905 : vector<16x32xbf16> to vector<16x32xf32>
    %907 = vector.broadcast %5 : vector<1x32xf32> to vector<16x32xf32>
    %908 = arith.addf %904, %907 : vector<16x32xf32>
    %909 = arith.mulf %894, %908 : vector<16x32xf32>
    %910 = arith.addf %906, %909 : vector<16x32xf32>
    %911 = math.tanh %910 : vector<16x32xf32>
    %cst_223 = arith.constant 1.000000e+00 : f32
    %912 = vector.broadcast %cst_223 : f32 to vector<16x32xf32>
    %913 = arith.subf %912, %903 : vector<16x32xf32>
    %914 = arith.mulf %913, %911 : vector<16x32xf32>
    %915 = arith.mulf %903, %870 : vector<16x32xf32>
    %916 = arith.addf %914, %915 : vector<16x32xf32>
    %917 = arith.index_cast %c19_i32 : i32 to index
    %c0_224 = arith.constant 0 : index
    %c0_225 = arith.constant 0 : index
    %918 = vector.load %arg3[%917, %c0_224, %c0_225] : memref<24x16x32xbf16, #tpu.memory_space<vmem>>, vector<1x16x32xbf16>
    %919 = vector.shape_cast %918 : vector<1x16x32xbf16> to vector<16x32xbf16>
    %920 = arith.extf %919 : vector<16x32xbf16> to vector<16x32xf32>
    %921 = arith.addf %916, %920 : vector<16x32xf32>
    %922 = arith.truncf %921 : vector<16x32xf32> to vector<16x32xbf16>
    %923 = arith.index_cast %c19_i32 : i32 to index
    %c0_226 = arith.constant 0 : index
    %c0_227 = arith.constant 0 : index
    %924 = vector.load %arg7[%923, %c0_226, %c0_227] : memref<24x16x32xbf16, #tpu.memory_space<vmem>>, vector<1x16x32xbf16>
    %925 = vector.shape_cast %924 : vector<1x16x32xbf16> to vector<16x32xbf16>
    %926 = vector.shape_cast %922 : vector<16x32xbf16> to vector<1x16x32xbf16>
    tpu.vector_store %arg7[%923, %c0_226, %c0_227], %926 {strides = array<i32>} : memref<24x16x32xbf16, #tpu.memory_space<vmem>>, vector<1x16x32xbf16>,
    %c20_i32 = arith.constant 20 : i32
    %927 = arith.index_cast %c20_i32 : i32 to index
    %c0_228 = arith.constant 0 : index
    %c0_229 = arith.constant 0 : index
    %928 = vector.load %arg2[%927, %c0_228, %c0_229] : memref<24x16x96xbf16, #tpu.memory_space<vmem>>, vector<1x16x96xbf16>
    %929 = vector.shape_cast %928 : vector<1x16x96xbf16> to vector<16x96xbf16>
    %930 = arith.truncf %916 : vector<16x32xf32> to vector<16x32xbf16>
    %cst_230 = arith.constant dense<0.000000e+00> : vector<16x64xf32>
    %931 = tpu.matmul %930, %3, %cst_230 {dimension_numbers = #tpu.dot_dimension_numbers<[1], [0], [0], [1], [0, 0, 1, 1], [], []>} : vector<16x32xbf16>, vector<32x64xbf16>, vector<16x64xf32> -> vector<16x64xf32>
    %932 = vector.extract_strided_slice %929 {offsets = [0, 0], sizes = [16, 32], strides = [1, 1]} : vector<16x96xbf16> to vector<16x32xbf16>
    %933 = arith.extf %932 : vector<16x32xbf16> to vector<16x32xf32>
    %934 = vector.extract_strided_slice %931 {offsets = [0, 0], sizes = [16, 32], strides = [1, 1]} : vector<16x64xf32> to vector<16x32xf32>
    %935 = arith.addf %933, %934 : vector<16x32xf32>
    %936 = arith.negf %935 : vector<16x32xf32>
    %937 = math.exp %936 : vector<16x32xf32>
    %cst_231 = arith.constant 1.000000e+00 : f32
    %938 = vector.broadcast %cst_231 : f32 to vector<16x32xf32>
    %939 = arith.addf %938, %937 : vector<16x32xf32>
    %940 = arith.divf %938, %939 : vector<16x32xf32>
    %941 = vector.extract_strided_slice %929 {offsets = [0, 32], sizes = [16, 32], strides = [1, 1]} : vector<16x96xbf16> to vector<16x32xbf16>
    %942 = arith.extf %941 : vector<16x32xbf16> to vector<16x32xf32>
    %943 = vector.extract_strided_slice %931 {offsets = [0, 32], sizes = [16, 32], strides = [1, 1]} : vector<16x64xf32> to vector<16x32xf32>
    %944 = arith.addf %942, %943 : vector<16x32xf32>
    %945 = arith.negf %944 : vector<16x32xf32>
    %946 = math.exp %945 : vector<16x32xf32>
    %cst_232 = arith.constant 1.000000e+00 : f32
    %947 = vector.broadcast %cst_232 : f32 to vector<16x32xf32>
    %948 = arith.addf %947, %946 : vector<16x32xf32>
    %949 = arith.divf %947, %948 : vector<16x32xf32>
    %cst_233 = arith.constant dense<0.000000e+00> : vector<16x32xf32>
    %950 = tpu.matmul %930, %4, %cst_233 {dimension_numbers = #tpu.dot_dimension_numbers<[1], [0], [0], [1], [0, 0, 1, 1], [], []>} : vector<16x32xbf16>, vector<32x32xbf16>, vector<16x32xf32> -> vector<16x32xf32>
    %951 = vector.extract_strided_slice %929 {offsets = [0, 64], sizes = [16, 32], strides = [1, 1]} : vector<16x96xbf16> to vector<16x32xbf16>
    %952 = arith.extf %951 : vector<16x32xbf16> to vector<16x32xf32>
    %953 = vector.broadcast %5 : vector<1x32xf32> to vector<16x32xf32>
    %954 = arith.addf %950, %953 : vector<16x32xf32>
    %955 = arith.mulf %940, %954 : vector<16x32xf32>
    %956 = arith.addf %952, %955 : vector<16x32xf32>
    %957 = math.tanh %956 : vector<16x32xf32>
    %cst_234 = arith.constant 1.000000e+00 : f32
    %958 = vector.broadcast %cst_234 : f32 to vector<16x32xf32>
    %959 = arith.subf %958, %949 : vector<16x32xf32>
    %960 = arith.mulf %959, %957 : vector<16x32xf32>
    %961 = arith.mulf %949, %916 : vector<16x32xf32>
    %962 = arith.addf %960, %961 : vector<16x32xf32>
    %963 = arith.index_cast %c20_i32 : i32 to index
    %c0_235 = arith.constant 0 : index
    %c0_236 = arith.constant 0 : index
    %964 = vector.load %arg3[%963, %c0_235, %c0_236] : memref<24x16x32xbf16, #tpu.memory_space<vmem>>, vector<1x16x32xbf16>
    %965 = vector.shape_cast %964 : vector<1x16x32xbf16> to vector<16x32xbf16>
    %966 = arith.extf %965 : vector<16x32xbf16> to vector<16x32xf32>
    %967 = arith.addf %962, %966 : vector<16x32xf32>
    %968 = arith.truncf %967 : vector<16x32xf32> to vector<16x32xbf16>
    %969 = arith.index_cast %c20_i32 : i32 to index
    %c0_237 = arith.constant 0 : index
    %c0_238 = arith.constant 0 : index
    %970 = vector.load %arg7[%969, %c0_237, %c0_238] : memref<24x16x32xbf16, #tpu.memory_space<vmem>>, vector<1x16x32xbf16>
    %971 = vector.shape_cast %970 : vector<1x16x32xbf16> to vector<16x32xbf16>
    %972 = vector.shape_cast %968 : vector<16x32xbf16> to vector<1x16x32xbf16>
    tpu.vector_store %arg7[%969, %c0_237, %c0_238], %972 {strides = array<i32>} : memref<24x16x32xbf16, #tpu.memory_space<vmem>>, vector<1x16x32xbf16>,
    %c21_i32 = arith.constant 21 : i32
    %973 = arith.index_cast %c21_i32 : i32 to index
    %c0_239 = arith.constant 0 : index
    %c0_240 = arith.constant 0 : index
    %974 = vector.load %arg2[%973, %c0_239, %c0_240] : memref<24x16x96xbf16, #tpu.memory_space<vmem>>, vector<1x16x96xbf16>
    %975 = vector.shape_cast %974 : vector<1x16x96xbf16> to vector<16x96xbf16>
    %976 = arith.truncf %962 : vector<16x32xf32> to vector<16x32xbf16>
    %cst_241 = arith.constant dense<0.000000e+00> : vector<16x64xf32>
    %977 = tpu.matmul %976, %3, %cst_241 {dimension_numbers = #tpu.dot_dimension_numbers<[1], [0], [0], [1], [0, 0, 1, 1], [], []>} : vector<16x32xbf16>, vector<32x64xbf16>, vector<16x64xf32> -> vector<16x64xf32>
    %978 = vector.extract_strided_slice %975 {offsets = [0, 0], sizes = [16, 32], strides = [1, 1]} : vector<16x96xbf16> to vector<16x32xbf16>
    %979 = arith.extf %978 : vector<16x32xbf16> to vector<16x32xf32>
    %980 = vector.extract_strided_slice %977 {offsets = [0, 0], sizes = [16, 32], strides = [1, 1]} : vector<16x64xf32> to vector<16x32xf32>
    %981 = arith.addf %979, %980 : vector<16x32xf32>
    %982 = arith.negf %981 : vector<16x32xf32>
    %983 = math.exp %982 : vector<16x32xf32>
    %cst_242 = arith.constant 1.000000e+00 : f32
    %984 = vector.broadcast %cst_242 : f32 to vector<16x32xf32>
    %985 = arith.addf %984, %983 : vector<16x32xf32>
    %986 = arith.divf %984, %985 : vector<16x32xf32>
    %987 = vector.extract_strided_slice %975 {offsets = [0, 32], sizes = [16, 32], strides = [1, 1]} : vector<16x96xbf16> to vector<16x32xbf16>
    %988 = arith.extf %987 : vector<16x32xbf16> to vector<16x32xf32>
    %989 = vector.extract_strided_slice %977 {offsets = [0, 32], sizes = [16, 32], strides = [1, 1]} : vector<16x64xf32> to vector<16x32xf32>
    %990 = arith.addf %988, %989 : vector<16x32xf32>
    %991 = arith.negf %990 : vector<16x32xf32>
    %992 = math.exp %991 : vector<16x32xf32>
    %cst_243 = arith.constant 1.000000e+00 : f32
    %993 = vector.broadcast %cst_243 : f32 to vector<16x32xf32>
    %994 = arith.addf %993, %992 : vector<16x32xf32>
    %995 = arith.divf %993, %994 : vector<16x32xf32>
    %cst_244 = arith.constant dense<0.000000e+00> : vector<16x32xf32>
    %996 = tpu.matmul %976, %4, %cst_244 {dimension_numbers = #tpu.dot_dimension_numbers<[1], [0], [0], [1], [0, 0, 1, 1], [], []>} : vector<16x32xbf16>, vector<32x32xbf16>, vector<16x32xf32> -> vector<16x32xf32>
    %997 = vector.extract_strided_slice %975 {offsets = [0, 64], sizes = [16, 32], strides = [1, 1]} : vector<16x96xbf16> to vector<16x32xbf16>
    %998 = arith.extf %997 : vector<16x32xbf16> to vector<16x32xf32>
    %999 = vector.broadcast %5 : vector<1x32xf32> to vector<16x32xf32>
    %1000 = arith.addf %996, %999 : vector<16x32xf32>
    %1001 = arith.mulf %986, %1000 : vector<16x32xf32>
    %1002 = arith.addf %998, %1001 : vector<16x32xf32>
    %1003 = math.tanh %1002 : vector<16x32xf32>
    %cst_245 = arith.constant 1.000000e+00 : f32
    %1004 = vector.broadcast %cst_245 : f32 to vector<16x32xf32>
    %1005 = arith.subf %1004, %995 : vector<16x32xf32>
    %1006 = arith.mulf %1005, %1003 : vector<16x32xf32>
    %1007 = arith.mulf %995, %962 : vector<16x32xf32>
    %1008 = arith.addf %1006, %1007 : vector<16x32xf32>
    %1009 = arith.index_cast %c21_i32 : i32 to index
    %c0_246 = arith.constant 0 : index
    %c0_247 = arith.constant 0 : index
    %1010 = vector.load %arg3[%1009, %c0_246, %c0_247] : memref<24x16x32xbf16, #tpu.memory_space<vmem>>, vector<1x16x32xbf16>
    %1011 = vector.shape_cast %1010 : vector<1x16x32xbf16> to vector<16x32xbf16>
    %1012 = arith.extf %1011 : vector<16x32xbf16> to vector<16x32xf32>
    %1013 = arith.addf %1008, %1012 : vector<16x32xf32>
    %1014 = arith.truncf %1013 : vector<16x32xf32> to vector<16x32xbf16>
    %1015 = arith.index_cast %c21_i32 : i32 to index
    %c0_248 = arith.constant 0 : index
    %c0_249 = arith.constant 0 : index
    %1016 = vector.load %arg7[%1015, %c0_248, %c0_249] : memref<24x16x32xbf16, #tpu.memory_space<vmem>>, vector<1x16x32xbf16>
    %1017 = vector.shape_cast %1016 : vector<1x16x32xbf16> to vector<16x32xbf16>
    %1018 = vector.shape_cast %1014 : vector<16x32xbf16> to vector<1x16x32xbf16>
    tpu.vector_store %arg7[%1015, %c0_248, %c0_249], %1018 {strides = array<i32>} : memref<24x16x32xbf16, #tpu.memory_space<vmem>>, vector<1x16x32xbf16>,
    %c22_i32 = arith.constant 22 : i32
    %1019 = arith.index_cast %c22_i32 : i32 to index
    %c0_250 = arith.constant 0 : index
    %c0_251 = arith.constant 0 : index
    %1020 = vector.load %arg2[%1019, %c0_250, %c0_251] : memref<24x16x96xbf16, #tpu.memory_space<vmem>>, vector<1x16x96xbf16>
    %1021 = vector.shape_cast %1020 : vector<1x16x96xbf16> to vector<16x96xbf16>
    %1022 = arith.truncf %1008 : vector<16x32xf32> to vector<16x32xbf16>
    %cst_252 = arith.constant dense<0.000000e+00> : vector<16x64xf32>
    %1023 = tpu.matmul %1022, %3, %cst_252 {dimension_numbers = #tpu.dot_dimension_numbers<[1], [0], [0], [1], [0, 0, 1, 1], [], []>} : vector<16x32xbf16>, vector<32x64xbf16>, vector<16x64xf32> -> vector<16x64xf32>
    %1024 = vector.extract_strided_slice %1021 {offsets = [0, 0], sizes = [16, 32], strides = [1, 1]} : vector<16x96xbf16> to vector<16x32xbf16>
    %1025 = arith.extf %1024 : vector<16x32xbf16> to vector<16x32xf32>
    %1026 = vector.extract_strided_slice %1023 {offsets = [0, 0], sizes = [16, 32], strides = [1, 1]} : vector<16x64xf32> to vector<16x32xf32>
    %1027 = arith.addf %1025, %1026 : vector<16x32xf32>
    %1028 = arith.negf %1027 : vector<16x32xf32>
    %1029 = math.exp %1028 : vector<16x32xf32>
    %cst_253 = arith.constant 1.000000e+00 : f32
    %1030 = vector.broadcast %cst_253 : f32 to vector<16x32xf32>
    %1031 = arith.addf %1030, %1029 : vector<16x32xf32>
    %1032 = arith.divf %1030, %1031 : vector<16x32xf32>
    %1033 = vector.extract_strided_slice %1021 {offsets = [0, 32], sizes = [16, 32], strides = [1, 1]} : vector<16x96xbf16> to vector<16x32xbf16>
    %1034 = arith.extf %1033 : vector<16x32xbf16> to vector<16x32xf32>
    %1035 = vector.extract_strided_slice %1023 {offsets = [0, 32], sizes = [16, 32], strides = [1, 1]} : vector<16x64xf32> to vector<16x32xf32>
    %1036 = arith.addf %1034, %1035 : vector<16x32xf32>
    %1037 = arith.negf %1036 : vector<16x32xf32>
    %1038 = math.exp %1037 : vector<16x32xf32>
    %cst_254 = arith.constant 1.000000e+00 : f32
    %1039 = vector.broadcast %cst_254 : f32 to vector<16x32xf32>
    %1040 = arith.addf %1039, %1038 : vector<16x32xf32>
    %1041 = arith.divf %1039, %1040 : vector<16x32xf32>
    %cst_255 = arith.constant dense<0.000000e+00> : vector<16x32xf32>
    %1042 = tpu.matmul %1022, %4, %cst_255 {dimension_numbers = #tpu.dot_dimension_numbers<[1], [0], [0], [1], [0, 0, 1, 1], [], []>} : vector<16x32xbf16>, vector<32x32xbf16>, vector<16x32xf32> -> vector<16x32xf32>
    %1043 = vector.extract_strided_slice %1021 {offsets = [0, 64], sizes = [16, 32], strides = [1, 1]} : vector<16x96xbf16> to vector<16x32xbf16>
    %1044 = arith.extf %1043 : vector<16x32xbf16> to vector<16x32xf32>
    %1045 = vector.broadcast %5 : vector<1x32xf32> to vector<16x32xf32>
    %1046 = arith.addf %1042, %1045 : vector<16x32xf32>
    %1047 = arith.mulf %1032, %1046 : vector<16x32xf32>
    %1048 = arith.addf %1044, %1047 : vector<16x32xf32>
    %1049 = math.tanh %1048 : vector<16x32xf32>
    %cst_256 = arith.constant 1.000000e+00 : f32
    %1050 = vector.broadcast %cst_256 : f32 to vector<16x32xf32>
    %1051 = arith.subf %1050, %1041 : vector<16x32xf32>
    %1052 = arith.mulf %1051, %1049 : vector<16x32xf32>
    %1053 = arith.mulf %1041, %1008 : vector<16x32xf32>
    %1054 = arith.addf %1052, %1053 : vector<16x32xf32>
    %1055 = arith.index_cast %c22_i32 : i32 to index
    %c0_257 = arith.constant 0 : index
    %c0_258 = arith.constant 0 : index
    %1056 = vector.load %arg3[%1055, %c0_257, %c0_258] : memref<24x16x32xbf16, #tpu.memory_space<vmem>>, vector<1x16x32xbf16>
    %1057 = vector.shape_cast %1056 : vector<1x16x32xbf16> to vector<16x32xbf16>
    %1058 = arith.extf %1057 : vector<16x32xbf16> to vector<16x32xf32>
    %1059 = arith.addf %1054, %1058 : vector<16x32xf32>
    %1060 = arith.truncf %1059 : vector<16x32xf32> to vector<16x32xbf16>
    %1061 = arith.index_cast %c22_i32 : i32 to index
    %c0_259 = arith.constant 0 : index
    %c0_260 = arith.constant 0 : index
    %1062 = vector.load %arg7[%1061, %c0_259, %c0_260] : memref<24x16x32xbf16, #tpu.memory_space<vmem>>, vector<1x16x32xbf16>
    %1063 = vector.shape_cast %1062 : vector<1x16x32xbf16> to vector<16x32xbf16>
    %1064 = vector.shape_cast %1060 : vector<16x32xbf16> to vector<1x16x32xbf16>
    tpu.vector_store %arg7[%1061, %c0_259, %c0_260], %1064 {strides = array<i32>} : memref<24x16x32xbf16, #tpu.memory_space<vmem>>, vector<1x16x32xbf16>,
    %c23_i32 = arith.constant 23 : i32
    %1065 = arith.index_cast %c23_i32 : i32 to index
    %c0_261 = arith.constant 0 : index
    %c0_262 = arith.constant 0 : index
    %1066 = vector.load %arg2[%1065, %c0_261, %c0_262] : memref<24x16x96xbf16, #tpu.memory_space<vmem>>, vector<1x16x96xbf16>
    %1067 = vector.shape_cast %1066 : vector<1x16x96xbf16> to vector<16x96xbf16>
    %1068 = arith.truncf %1054 : vector<16x32xf32> to vector<16x32xbf16>
    %cst_263 = arith.constant dense<0.000000e+00> : vector<16x64xf32>
    %1069 = tpu.matmul %1068, %3, %cst_263 {dimension_numbers = #tpu.dot_dimension_numbers<[1], [0], [0], [1], [0, 0, 1, 1], [], []>} : vector<16x32xbf16>, vector<32x64xbf16>, vector<16x64xf32> -> vector<16x64xf32>
    %1070 = vector.extract_strided_slice %1067 {offsets = [0, 0], sizes = [16, 32], strides = [1, 1]} : vector<16x96xbf16> to vector<16x32xbf16>
    %1071 = arith.extf %1070 : vector<16x32xbf16> to vector<16x32xf32>
    %1072 = vector.extract_strided_slice %1069 {offsets = [0, 0], sizes = [16, 32], strides = [1, 1]} : vector<16x64xf32> to vector<16x32xf32>
    %1073 = arith.addf %1071, %1072 : vector<16x32xf32>
    %1074 = arith.negf %1073 : vector<16x32xf32>
    %1075 = math.exp %1074 : vector<16x32xf32>
    %cst_264 = arith.constant 1.000000e+00 : f32
    %1076 = vector.broadcast %cst_264 : f32 to vector<16x32xf32>
    %1077 = arith.addf %1076, %1075 : vector<16x32xf32>
    %1078 = arith.divf %1076, %1077 : vector<16x32xf32>
    %1079 = vector.extract_strided_slice %1067 {offsets = [0, 32], sizes = [16, 32], strides = [1, 1]} : vector<16x96xbf16> to vector<16x32xbf16>
    %1080 = arith.extf %1079 : vector<16x32xbf16> to vector<16x32xf32>
    %1081 = vector.extract_strided_slice %1069 {offsets = [0, 32], sizes = [16, 32], strides = [1, 1]} : vector<16x64xf32> to vector<16x32xf32>
    %1082 = arith.addf %1080, %1081 : vector<16x32xf32>
    %1083 = arith.negf %1082 : vector<16x32xf32>
    %1084 = math.exp %1083 : vector<16x32xf32>
    %cst_265 = arith.constant 1.000000e+00 : f32
    %1085 = vector.broadcast %cst_265 : f32 to vector<16x32xf32>
    %1086 = arith.addf %1085, %1084 : vector<16x32xf32>
    %1087 = arith.divf %1085, %1086 : vector<16x32xf32>
    %cst_266 = arith.constant dense<0.000000e+00> : vector<16x32xf32>
    %1088 = tpu.matmul %1068, %4, %cst_266 {dimension_numbers = #tpu.dot_dimension_numbers<[1], [0], [0], [1], [0, 0, 1, 1], [], []>} : vector<16x32xbf16>, vector<32x32xbf16>, vector<16x32xf32> -> vector<16x32xf32>
    %1089 = vector.extract_strided_slice %1067 {offsets = [0, 64], sizes = [16, 32], strides = [1, 1]} : vector<16x96xbf16> to vector<16x32xbf16>
    %1090 = arith.extf %1089 : vector<16x32xbf16> to vector<16x32xf32>
    %1091 = vector.broadcast %5 : vector<1x32xf32> to vector<16x32xf32>
    %1092 = arith.addf %1088, %1091 : vector<16x32xf32>
    %1093 = arith.mulf %1078, %1092 : vector<16x32xf32>
    %1094 = arith.addf %1090, %1093 : vector<16x32xf32>
    %1095 = math.tanh %1094 : vector<16x32xf32>
    %cst_267 = arith.constant 1.000000e+00 : f32
    %1096 = vector.broadcast %cst_267 : f32 to vector<16x32xf32>
    %1097 = arith.subf %1096, %1087 : vector<16x32xf32>
    %1098 = arith.mulf %1097, %1095 : vector<16x32xf32>
    %1099 = arith.mulf %1087, %1054 : vector<16x32xf32>
    %1100 = arith.addf %1098, %1099 : vector<16x32xf32>
    %1101 = arith.index_cast %c23_i32 : i32 to index
    %c0_268 = arith.constant 0 : index
    %c0_269 = arith.constant 0 : index
    %1102 = vector.load %arg3[%1101, %c0_268, %c0_269] : memref<24x16x32xbf16, #tpu.memory_space<vmem>>, vector<1x16x32xbf16>
    %1103 = vector.shape_cast %1102 : vector<1x16x32xbf16> to vector<16x32xbf16>
    %1104 = arith.extf %1103 : vector<16x32xbf16> to vector<16x32xf32>
    %1105 = arith.addf %1100, %1104 : vector<16x32xf32>
    %1106 = arith.truncf %1105 : vector<16x32xf32> to vector<16x32xbf16>
    %1107 = arith.index_cast %c23_i32 : i32 to index
    %c0_270 = arith.constant 0 : index
    %c0_271 = arith.constant 0 : index
    %1108 = vector.load %arg7[%1107, %c0_270, %c0_271] : memref<24x16x32xbf16, #tpu.memory_space<vmem>>, vector<1x16x32xbf16>
    %1109 = vector.shape_cast %1108 : vector<1x16x32xbf16> to vector<16x32xbf16>
    %1110 = vector.shape_cast %1106 : vector<16x32xbf16> to vector<1x16x32xbf16>
    tpu.vector_store %arg7[%1107, %c0_270, %c0_271], %1110 {strides = array<i32>} : memref<24x16x32xbf16, #tpu.memory_space<vmem>>, vector<1x16x32xbf16>,
    %c24_i32 = arith.constant 24 : i32
    %c0_272 = arith.constant 0 : index
    %c0_273 = arith.constant 0 : index
    %1111 = vector.load %arg8[%c0_272, %c0_273] : memref<16x32xf32, #tpu.memory_space<vmem>>, vector<16x32xf32>
    tpu.vector_store %arg8[%c0_272, %c0_273], %1100 {strides = array<i32>} : memref<16x32xf32, #tpu.memory_space<vmem>>, vector<16x32xf32>,
    return
  }
  func.func @transform_0(%arg0: i32, %arg1: i32) -> (i32, i32, i32) {
    %c0_i32 = arith.constant 0 : i32
    %c0_i32_0 = arith.constant 0 : i32
    return %arg1, %arg0, %c0_i32 : i32, i32, i32
  }
  func.func @transform_1(%arg0: i32, %arg1: i32) -> (i32, i32, i32) {
    %c0_i32 = arith.constant 0 : i32
    %c0_i32_0 = arith.constant 0 : i32
    return %arg1, %arg0, %c0_i32 : i32, i32, i32
  }
  func.func @transform_2(%arg0: i32, %arg1: i32) -> (i32, i32) {
    %c0_i32 = arith.constant 0 : i32
    %c0_i32_0 = arith.constant 0 : i32
    %c0_i32_1 = arith.constant 0 : i32
    return %c0_i32, %c0_i32_0 : i32, i32
  }
  func.func @transform_3(%arg0: i32, %arg1: i32) -> (i32, i32) {
    %c0_i32 = arith.constant 0 : i32
    %c0_i32_0 = arith.constant 0 : i32
    %c0_i32_1 = arith.constant 0 : i32
    return %c0_i32, %c0_i32_0 : i32, i32
  }
  func.func @transform_4(%arg0: i32, %arg1: i32) -> (i32, i32) {
    %c0_i32 = arith.constant 0 : i32
    %c0_i32_0 = arith.constant 0 : i32
    %c0_i32_1 = arith.constant 0 : i32
    return %c0_i32, %c0_i32_0 : i32, i32
  }
  func.func @transform_5(%arg0: i32, %arg1: i32) -> (i32, i32, i32) {
    %c0_i32 = arith.constant 0 : i32
    %c0_i32_0 = arith.constant 0 : i32
    return %arg1, %arg0, %c0_i32 : i32, i32, i32
  }
}

module attributes {stable_mosaic.version = 11 : i64} {
  func.func @_linear_kernel(%arg0: i32, %arg1: memref<48x32xbf16, #tpu.memory_space<vmem>>, %arg2: memref<32x64xbf16, #tpu.memory_space<vmem>>, %arg3: memref<1x64xf32, #tpu.memory_space<vmem>>, %arg4: memref<48x64xf32, #tpu.memory_space<vmem>>) attributes {dimension_semantics = [#tpu.dimension_semantics<parallel>], iteration_bounds = array<i64: 1>, scalar_prefetch = 0 : i64, scratch_operands = 0 : i64, tpu.core_type = #tpu.core_type<tc>, window_params = [{transform_indices = @transform_0, window_bounds = array<i64: 48, 32>}, {pipeline_mode = #tpu.pipeline_mode<synchronous>, transform_indices = @transform_1, window_bounds = array<i64: 32, 64>}, {pipeline_mode = #tpu.pipeline_mode<synchronous>, transform_indices = @transform_2, window_bounds = array<i64: 1, 64>}, {transform_indices = @transform_3, window_bounds = array<i64: 48, 64>}]} {
    %c0 = arith.constant 0 : index
    %c0_0 = arith.constant 0 : index
    %0 = vector.load %arg1[%c0, %c0_0] : memref<48x32xbf16, #tpu.memory_space<vmem>>, vector<48x32xbf16>
    %c0_1 = arith.constant 0 : index
    %c0_2 = arith.constant 0 : index
    %1 = vector.load %arg2[%c0_1, %c0_2] : memref<32x64xbf16, #tpu.memory_space<vmem>>, vector<32x64xbf16>
    %cst = arith.constant dense<0.000000e+00> : vector<48x64xf32>
    %2 = tpu.matmul %0, %1, %cst {dimension_numbers = #tpu.dot_dimension_numbers<[1], [0], [0], [1], [0, 0, 1, 1], [], []>} : vector<48x32xbf16>, vector<32x64xbf16>, vector<48x64xf32> -> vector<48x64xf32>
    %c0_3 = arith.constant 0 : index
    %c0_4 = arith.constant 0 : index
    %3 = vector.load %arg3[%c0_3, %c0_4] : memref<1x64xf32, #tpu.memory_space<vmem>>, vector<1x64xf32>
    %4 = vector.broadcast %3 : vector<1x64xf32> to vector<48x64xf32>
    %5 = arith.addf %2, %4 : vector<48x64xf32>
    %c0_5 = arith.constant 0 : index
    %c0_6 = arith.constant 0 : index
    %6 = vector.load %arg4[%c0_5, %c0_6] : memref<48x64xf32, #tpu.memory_space<vmem>>, vector<48x64xf32>
    tpu.vector_store %arg4[%c0_5, %c0_6], %5 {strides = array<i32>} : memref<48x64xf32, #tpu.memory_space<vmem>>, vector<48x64xf32>,
    return
  }
  func.func @transform_0(%arg0: i32) -> (i32, i32) {
    %c0_i32 = arith.constant 0 : i32
    %c0_i32_0 = arith.constant 0 : i32
    return %arg0, %c0_i32 : i32, i32
  }
  func.func @transform_1(%arg0: i32) -> (i32, i32) {
    %c0_i32 = arith.constant 0 : i32
    %c0_i32_0 = arith.constant 0 : i32
    %c0_i32_1 = arith.constant 0 : i32
    return %c0_i32, %c0_i32_0 : i32, i32
  }
  func.func @transform_2(%arg0: i32) -> (i32, i32) {
    %c0_i32 = arith.constant 0 : i32
    %c0_i32_0 = arith.constant 0 : i32
    %c0_i32_1 = arith.constant 0 : i32
    return %c0_i32, %c0_i32_0 : i32, i32
  }
  func.func @transform_3(%arg0: i32) -> (i32, i32) {
    %c0_i32 = arith.constant 0 : i32
    %c0_i32_0 = arith.constant 0 : i32
    return %arg0, %c0_i32 : i32, i32
  }
}

</mosaic_0001>

<bundles_post_ra>
// kernel: wave_rnn_forward.19
= control target key start
LH: loop header
LB: loop body
LE: loop exit
PB: predicated region body
PF: predicated region fallthrough
CT: control target
= control target key end

     0   :  { %vm61_vm0 = vcmask 125952   ;;  %s139_s0 = inlined_call_operand.vmem [shape: bf16[16,16], index: 0, kind: input, shape index: {}]   ;;  %s140_s1 = inlined_call_operand.vmem [shape: f32[1,16], index: 1, kind: input, shape index: {}]   ;;  %s141_s2 = inlined_call_operand.vmem [shape: f32[1,16], index: 2, kind: input, shape index: {}]   ;;  %s142_s3 = inlined_call_operand.vmem [shape: bf16[16,16], index: 3, kind: input, shape index: {}]   ;;  %s143_s4 = inlined_call_operand.vmem [shape: f32[1,16], index: 4, kind: input, shape index: {}]   ;;  %s144_s5 = inlined_call_operand.vmem [shape: f32[1,16], index: 5, kind: input, shape index: {}]   ;;  %s145_s6 = inlined_call_operand.vmem [shape: bf16[16,16], index: 6, kind: output, shape index: {}]  }
   0x1   :  { %v69_v0 = vld [vmem:[%s139_s0] sm:$0xff]  }
   0x2   :  { %v76_v1 = vld [vmem:[%s140_s1] ss:$0 sm:$0xff]  ;;  %v70_v2 = vunpack.c.l.bf16 %v69_v0  ;;  %v71_v5 = vunpack.c.h.bf16 %v69_v0 }
   0x3   :  { %v77_v3 = vld [vmem:[%s141_s2] ss:$0 sm:$0xff] }
   0x4   :  { %v73_v4 = vld [vmem:[%s142_s3] sm:$0xff]   ;;  %v31_v9 = vmul.f32 %v76_v1, %v70_v2  ;;  %v32_v11 = vmul.f32 %v76_v1, %v71_v5 }
   0x5   :  { %v74_v6 = vunpack.c.l.bf16 %v73_v4  ;;  %v78_v7 = vld [vmem:[%s143_s4] ss:$0 sm:$0xff]  ;;  %v75_v8 = vunpack.c.h.bf16 %v73_v4 }
   0x6   :  { %v79_v10 = vld [vmem:[%s144_s5] ss:$0 sm:$0xff]  ;;  %v37_v14 = vadd.f32 %v77_v3, %v31_v9  ;;  %v38_v16 = vadd.f32 %v77_v3, %v32_v11 }
   0x7   :  { %v47_v12 = vmul.f32 %v78_v7, %v74_v6  ;;  %v48_v13 = vmul.f32 %v78_v7, %v75_v8 }
   0x9   :  { %v53_v15 = vadd.f32 %v79_v10, %v47_v12  ;;  %v54_v17 = vadd.f32 %v79_v10, %v48_v13 }
   0xb   :  { %v55_v18 = vmax.f32 %v53_v15, 0.0  ;;  %v56_v19 = vmax.f32 %v54_v17, 0.0 }
   0xd   :  { %v57_v20 = vadd.f32 %v55_v18, %v37_v14  ;;  %v58_v21 = vadd.f32 %v56_v19, %v38_v16 }
   0xf   :  { %v59_v22 = vpack.c.bf16 %v57_v20, %v57_v20  ;;  %v60_v23 = vpack.c.bf16 %v58_v21, %v58_v21 }
  0x11   :  { %62 = vst.msk [vmem:[%s145_s6] sm:$0xf] %vm61_vm0, %v59_v22 }
  0x12   :  { %63 = vst.msk [vmem:[%s145_s6 + $0x4] sm:$0xf] %vm61_vm0, %v60_v23 }

// kernel: wave_rnn_forward.16
= control target key start
LH: loop header
LB: loop body
LE: loop exit
PB: predicated region body
PF: predicated region fallthrough
CT: control target
= control target key end

     0   :  { %vm53_vm0 = vcmask 1043456   ;;  %vm49_vm1 = vcmask 326656   ;;  %vm80_vm2 = vcmask 122880   ;;  %v156_v7 = vmov 0.0   ;;  %s230_s1 = inlined_call_operand.vmem [shape: bf16[40,16], index: 1, kind: input, shape index: {}]   ;;  %s231_s2 = inlined_call_operand.vmem [shape: f32[1,16], index: 2, kind: input, shape index: {}]   ;;  %s232_s0 = inlined_call_operand.vmem [shape: bf16[16,40], index: 0, kind: input, shape index: {}]   ;;  %s233_s4 = inlined_call_operand.vmem [shape: f32[1,16], index: 4, kind: output, shape index: {1}]   ;;  %s234_s5 = inlined_call_operand.vmem [shape: f32[1,16], index: 5, kind: output, shape index: {2}]   ;;  %s235_s3 = inlined_call_operand.vmem [shape: bf16[16,16], index: 3, kind: output, shape index: {0}]  }
   0x1   :  { %v24_v0 = vld [vmem:[%s230_s1 + $0x10] sm:$0xf]  ;;  %v153_v4 = vld [vmem:[%s230_s1 + $0x8] sm:$0xff]  ;;  %v152_v5 = vld [vmem:[%s230_s1] sm:$0xff]  ;;  %81 = vst.msk [vmem:[%s233_s4] sm:$0x1] %vm80_vm2, %v156_v7  ;;  %v83_v8 = vlaneseq }
   0x2   :  { %v43_v1 = vunpack.c.l.b16 %v24_v0  ;;  %v151_v6 = vld [vmem:[%s232_s0] sm:$0xff]  ;;  %82 = vst.msk [vmem:[%s234_s5] sm:$0x1] %vm80_vm2, %v156_v7  ;;  %vm73_vm3 = vcmask 125952   ;;  %vm99_vm5 = vcmask 130048  }
   0x3   :  { %v155_v9 = vld [vmem:[%s231_s2] ss:$0 sm:$0xff]  ;;  %v84_v11 = vshrl.u32 %v83_v8, 7 }
   0x4   :  { %v46_v2 = vpack.c.b16 %v43_v1, %v43_v1 }
   0x5   :  { %v85_v14 = vadd.s32 8, %v84_v11 }
   0x6   :  { %v55_v3 = vsel %vm53_vm0, %v46_v2, 0 }
   0x7   :  { %62 = vmatpush.bf16.msra.mxu0 %v55_v3  ;;  %vm91_vm4 = vcmp.lt.s32.totalorder %v85_v14, 12 }
   0x8   :  { %v98_v36 = vld [vmem:[%s233_s4] sm:$0x1] }
   0x9   :  { %v112_v39 = vld [vmem:[%s234_s5] sm:$0x1] }
   0xb   :  { %63 = vmatpush.bf16.msra.mxu0 %v153_v4 }
   0xf   :  { %64 = vmatpush.bf16.msra.mxu0 %v152_v5 }
  0x12   :  { %150 = vmatmul.msk.bf16.vlgmr.msra.gmra.mxu0 %vm49_vm1, %v151_v6 }
  0x8f   :  { %v66_v10 = vpop.f32.mrf.mxu0 }
  0x90   :  { %v67_v12 = vadd.f32 %v155_v9, %v66_v10 }
  0x92   :  { %v71_v13 = vpack.c.bf16 %v67_v12, %v67_v12  ;;  %v113_v17 = vmul.f32 %v67_v12, %v67_v12  ;;  %v100_v20 = vsel %vm99_vm5, %v67_v12, 0.0 }
  0x94   :  { %74 = vst.msk [vmem:[%s235_s3] sm:$0xf] %vm73_vm3, %v71_v13  ;;  %v115_v24 = vsel %vm99_vm5, %v113_v17, 0.0 }
  0x97   :  { %v68_v15 = vpop.f32.mrf.mxu0 }
  0x98   :  { %v69_v16 = vadd.f32 %v155_v9, %v68_v15 }
  0x9a   :  { %v72_v18 = vpack.c.bf16 %v69_v16, %v69_v16  ;;  %v97_v19 = vsel %vm91_vm4, %v69_v16, 0.0 }
  0x9b   :  { %v101_v21 = vsel %vm99_vm5, %v97_v19, 0.0  ;;  %v114_v22 = vmul.f32 %v97_v19, %v97_v19 }
  0x9c   :  { %75 = vst.msk [vmem:[%s235_s3 + $0x4] sm:$0xf] %vm73_vm3, %v72_v18  ;;  %v102_v23 = vadd.f32 %v101_v21, %v100_v20 }
  0x9d   :  { %v116_v25 = vsel %vm99_vm5, %v114_v22, 0.0 }
  0x9e   :  { %v103_v26 = vrot.slane %v102_v23, 4  ;;  %v117_v27 = vadd.f32 %v116_v25, %v115_v24 }
  0xa0   :  { %v104_v28 = vadd.f32 %v103_v26, %v102_v23  ;;  %v118_v29 = vrot.slane %v117_v27, 4 }
  0xa2   :  { %v105_v30 = vrot.slane %v104_v28, 2  ;;  %v119_v31 = vadd.f32 %v118_v29, %v117_v27 }
  0xa4   :  { %v106_v32 = vadd.f32 %v105_v30, %v104_v28  ;;  %v120_v33 = vrot.slane %v119_v31, 2 }
  0xa6   :  { %v107_v34 = vrot.slane %v106_v32, 1  ;;  %v121_v35 = vadd.f32 %v120_v33, %v119_v31 }
  0xa8   :  { %v108_v37 = vadd.f32 %v107_v34, %v106_v32  ;;  %v122_v38 = vrot.slane %v121_v35, 1 }
  0xaa   :  { %v109_v40 = vadd.f32 %v108_v37, %v98_v36  ;;  %v123_v41 = vadd.f32 %v122_v38, %v121_v35 }
  0xac   :  { %111 = vst.msk [vmem:[%s233_s4] sm:$0x1] %vm80_vm2, %v109_v40  ;;  %v124_v42 = vadd.f32 %v123_v41, %v112_v39 }
  0xae   :  { %125 = vst.msk [vmem:[%s234_s5] sm:$0x1] %vm80_vm2, %v124_v42 }

// kernel: wave_rnn_forward.20
= control target key start
LH: loop header
LB: loop body
LE: loop exit
PB: predicated region body
PF: predicated region fallthrough
CT: control target
= control target key end

     0   :  { %vm37_vm0 = vcmask 130048   ;;  %vm64_vm1 = vcmask 122880   ;;  %v134_v2 = vmov 0.0   ;;  %v67_v3 = vlaneseq  ;;  %s207_s1 = inlined_call_operand.vmem [shape: bf16[16,16], index: 1, kind: input, shape index: {}]   ;;  %s208_s0 = inlined_call_operand.vmem [shape: bf16[16,16], index: 0, kind: input, shape index: {}]   ;;  %s209_s2 = inlined_call_operand.vmem [shape: f32[1,16], index: 2, kind: input, shape index: {}]   ;;  %s210_s4 = inlined_call_operand.vmem [shape: f32[1,16], index: 4, kind: output, shape index: {1}]   ;;  %s211_s5 = inlined_call_operand.vmem [shape: f32[1,16], index: 5, kind: output, shape index: {2}]   ;;  %s212_s3 = inlined_call_operand.vmem [shape: bf16[16,16], index: 3, kind: output, shape index: {0}]  }
   0x1   :  { %v131_v0 = vld [vmem:[%s207_s1] sm:$0xff]  ;;  %65 = vst.msk [vmem:[%s210_s4] sm:$0x1] %vm64_vm1, %v134_v2  ;;  %vm57_vm2 = vcmask 125952  }
   0x2   :  { %v130_v1 = vld [vmem:[%s208_s0] sm:$0xff]  ;;  %48 = vmatpush.bf16.msra.mxu0 %v131_v0  ;;  %66 = vst.msk [vmem:[%s211_s5] sm:$0x1] %vm64_vm1, %v134_v2  ;;  %v68_v6 = vshrl.u32 %v67_v3, 7 }
   0x3   :  { %v133_v4 = vld [vmem:[%s209_s2] ss:$0 sm:$0xff] }
   0x4   :  { %v69_v9 = vadd.s32 8, %v68_v6 }
   0x5   :  { %129 = vmatmul.msk.bf16.vlgmr.msra.gmra.mxu0 %vm37_vm0, %v130_v1 }
   0x6   :  { %vm75_vm3 = vcmp.lt.s32.totalorder %v69_v9, 12 }
   0x8   :  { %v82_v31 = vld [vmem:[%s210_s4] sm:$0x1] }
   0x9   :  { %v95_v34 = vld [vmem:[%s211_s5] sm:$0x1] }
  0x82   :  { %v50_v5 = vpop.f32.mrf.mxu0 }
  0x83   :  { %v51_v7 = vadd.f32 %v133_v4, %v50_v5 }
  0x85   :  { %v55_v8 = vpack.c.bf16 %v51_v7, %v51_v7  ;;  %v96_v12 = vmul.f32 %v51_v7, %v51_v7  ;;  %v83_v15 = vsel %vm37_vm0, %v51_v7, 0.0 }
  0x87   :  { %58 = vst.msk [vmem:[%s212_s3] sm:$0xf] %vm57_vm2, %v55_v8  ;;  %v98_v19 = vsel %vm37_vm0, %v96_v12, 0.0 }
  0x8a   :  { %v52_v10 = vpop.f32.mrf.mxu0 }
  0x8b   :  { %v53_v11 = vadd.f32 %v133_v4, %v52_v10 }
  0x8d   :  { %v56_v13 = vpack.c.bf16 %v53_v11, %v53_v11  ;;  %v81_v14 = vsel %vm75_vm3, %v53_v11, 0.0 }
  0x8e   :  { %v84_v16 = vsel %vm37_vm0, %v81_v14, 0.0  ;;  %v97_v17 = vmul.f32 %v81_v14, %v81_v14 }
  0x8f   :  { %59 = vst.msk [vmem:[%s212_s3 + $0x4] sm:$0xf] %vm57_vm2, %v56_v13  ;;  %v85_v18 = vadd.f32 %v84_v16, %v83_v15 }
  0x90   :  { %v99_v20 = vsel %vm37_vm0, %v97_v17, 0.0 }
  0x91   :  { %v86_v21 = vrot.slane %v85_v18, 4  ;;  %v100_v22 = vadd.f32 %v99_v20, %v98_v19 }
  0x93   :  { %v87_v23 = vadd.f32 %v86_v21, %v85_v18  ;;  %v101_v24 = vrot.slane %v100_v22, 4 }
  0x95   :  { %v88_v25 = vrot.slane %v87_v23, 2  ;;  %v102_v26 = vadd.f32 %v101_v24, %v100_v22 }
  0x97   :  { %v89_v27 = vadd.f32 %v88_v25, %v87_v23  ;;  %v103_v28 = vrot.slane %v102_v26, 2 }
  0x99   :  { %v90_v29 = vrot.slane %v89_v27, 1  ;;  %v104_v30 = vadd.f32 %v103_v28, %v102_v26 }
  0x9b   :  { %v91_v32 = vadd.f32 %v90_v29, %v89_v27  ;;  %v105_v33 = vrot.slane %v104_v30, 1 }
  0x9d   :  { %v92_v35 = vadd.f32 %v91_v32, %v82_v31  ;;  %v106_v36 = vadd.f32 %v105_v33, %v104_v30 }
  0x9f   :  { %94 = vst.msk [vmem:[%s210_s4] sm:$0x1] %vm64_vm1, %v92_v35  ;;  %v107_v37 = vadd.f32 %v106_v36, %v95_v34 }
  0xa1   :  { %108 = vst.msk [vmem:[%s211_s5] sm:$0x1] %vm64_vm1, %v107_v37 }

// kernel: wave_rnn_forward.17
= control target key start
LH: loop header
LB: loop body
LE: loop exit
PB: predicated region body
PF: predicated region fallthrough
CT: control target
= control target key end

     0   :  { %vm55_vm0 = vcmask 130048   ;;  %vm82_vm1 = vcmask 122880   ;;  %v153_v13 = vmov 0.0   ;;  %v85_v14 = vlaneseq  ;;  %s242_s3 = inlined_call_operand.vmem [shape: bf16[16,16], index: 3, kind: input, shape index: {}]   ;;  %s243_s0 = inlined_call_operand.vmem [shape: bf16[16,16], index: 0, kind: input, shape index: {}]   ;;  %s244_s1 = inlined_call_operand.vmem [shape: f32[1,16], index: 1, kind: input, shape index: {}]   ;;  %s245_s2 = inlined_call_operand.vmem [shape: f32[1,16], index: 2, kind: input, shape index: {}]   ;;  %s246_s4 = inlined_call_operand.vmem [shape: f32[1,16], index: 4, kind: input, shape index: {}]   ;;  %s247_s6 = inlined_call_operand.vmem [shape: f32[1,16], index: 6, kind: output, shape index: {1}]   ;;  %s248_s7 = inlined_call_operand.vmem [shape: f32[1,16], index: 7, kind: output, shape index: {2}]   ;;  %s249_s5 = inlined_call_operand.vmem [shape: bf16[16,16], index: 5, kind: output, shape index: {0}]  }
   0x1   :  { %v144_v0 = vld [vmem:[%s242_s3] sm:$0xff]  ;;  %83 = vst.msk [vmem:[%s247_s6] sm:$0x1] %vm82_vm1, %v153_v13  ;;  %vm75_vm2 = vcmask 125952  }
   0x2   :  { %v146_v1 = vld [vmem:[%s243_s0] sm:$0xff]   ;;  %66 = vmatpush.bf16.msra.mxu0 %v144_v0  ;;  %84 = vst.msk [vmem:[%s248_s7] sm:$0x1] %vm82_vm1, %v153_v13  ;;  %v86_v17 = vshrl.u32 %v85_v14, 7 }
   0x3   :  { %v147_v2 = vunpack.c.l.bf16 %v146_v1  ;;  %v148_v3 = vunpack.c.h.bf16 %v146_v1  ;;  %v150_v4 = vld [vmem:[%s244_s1] ss:$0 sm:$0xff] }
   0x4   :  { %v151_v5 = vld [vmem:[%s245_s2] ss:$0 sm:$0xff]  ;;  %v87_v20 = vadd.s32 8, %v86_v17 }
   0x5   :  { %v32_v6 = vmul.f32 %v150_v4, %v147_v2  ;;  %v33_v7 = vmul.f32 %v150_v4, %v148_v3  ;;  %v152_v15 = vld [vmem:[%s246_s4] ss:$0 sm:$0xff] }
   0x6   :  { %vm93_vm3 = vcmp.lt.s32.totalorder %v87_v20, 12 }
   0x7   :  { %v38_v8 = vadd.f32 %v151_v5, %v32_v6  ;;  %v39_v9 = vadd.f32 %v151_v5, %v33_v7 }
   0x8   :  { %v100_v42 = vld [vmem:[%s247_s6] sm:$0x1] }
   0x9   :  { %v40_v10 = vmax.f32 %v38_v8, 0.0  ;;  %v41_v11 = vmax.f32 %v39_v9, 0.0  ;;  %v113_v45 = vld [vmem:[%s248_s7] sm:$0x1] }
   0xb   :  { %v42_v12 = vpack.c.bf16 %v41_v11, %v40_v10 }
   0xd   :  { %143 = vmatmul.msk.bf16.vlgmr.msra.gmra.mxu0 %vm55_vm0, %v42_v12 }
  0x8a   :  { %v68_v16 = vpop.f32.mrf.mxu0 }
  0x8b   :  { %v69_v18 = vadd.f32 %v152_v15, %v68_v16 }
  0x8d   :  { %v73_v19 = vpack.c.bf16 %v69_v18, %v69_v18  ;;  %v114_v23 = vmul.f32 %v69_v18, %v69_v18  ;;  %v101_v26 = vsel %vm55_vm0, %v69_v18, 0.0 }
  0x8f   :  { %76 = vst.msk [vmem:[%s249_s5] sm:$0xf] %vm75_vm2, %v73_v19  ;;  %v116_v30 = vsel %vm55_vm0, %v114_v23, 0.0 }
  0x92   :  { %v70_v21 = vpop.f32.mrf.mxu0 }
  0x93   :  { %v71_v22 = vadd.f32 %v152_v15, %v70_v21 }
  0x95   :  { %v74_v24 = vpack.c.bf16 %v71_v22, %v71_v22  ;;  %v99_v25 = vsel %vm93_vm3, %v71_v22, 0.0 }
  0x96   :  { %v102_v27 = vsel %vm55_vm0, %v99_v25, 0.0  ;;  %v115_v28 = vmul.f32 %v99_v25, %v99_v25 }
  0x97   :  { %77 = vst.msk [vmem:[%s249_s5 + $0x4] sm:$0xf] %vm75_vm2, %v74_v24  ;;  %v103_v29 = vadd.f32 %v102_v27, %v101_v26 }
  0x98   :  { %v117_v31 = vsel %vm55_vm0, %v115_v28, 0.0 }
  0x99   :  { %v104_v32 = vrot.slane %v103_v29, 4  ;;  %v118_v33 = vadd.f32 %v117_v31, %v116_v30 }
  0x9b   :  { %v105_v34 = vadd.f32 %v104_v32, %v103_v29  ;;  %v119_v35 = vrot.slane %v118_v33, 4 }
  0x9d   :  { %v106_v36 = vrot.slane %v105_v34, 2  ;;  %v120_v37 = vadd.f32 %v119_v35, %v118_v33 }
  0x9f   :  { %v107_v38 = vadd.f32 %v106_v36, %v105_v34  ;;  %v121_v39 = vrot.slane %v120_v37, 2 }
  0xa1   :  { %v108_v40 = vrot.slane %v107_v38, 1  ;;  %v122_v41 = vadd.f32 %v121_v39, %v120_v37 }
  0xa3   :  { %v109_v43 = vadd.f32 %v108_v40, %v107_v38  ;;  %v123_v44 = vrot.slane %v122_v41, 1 }
  0xa5   :  { %v110_v46 = vadd.f32 %v109_v43, %v100_v42  ;;  %v124_v47 = vadd.f32 %v123_v44, %v122_v41 }
  0xa7   :  { %112 = vst.msk [vmem:[%s247_s6] sm:$0x1] %vm82_vm1, %v110_v46  ;;  %v125_v48 = vadd.f32 %v124_v47, %v113_v45 }
  0xa9   :  { %126 = vst.msk [vmem:[%s248_s7] sm:$0x1] %vm82_vm1, %v125_v48 }

// kernel: wave_rnn_forward.23
= control target key start
LH: loop header
LB: loop body
LE: loop exit
PB: predicated region body
PF: predicated region fallthrough
CT: control target
= control target key end

     0   :  { %vm34_vm0 = vcmask 130048   ;;  %vm54_vm1 = vcmask 125952   ;;  %s108_s1 = inlined_call_operand.vmem [shape: bf16[16,16], index: 1, kind: input, shape index: {}]   ;;  %s109_s0 = inlined_call_operand.vmem [shape: bf16[16,16], index: 0, kind: input, shape index: {}]   ;;  %s110_s2 = inlined_call_operand.vmem [shape: f32[1,16], index: 2, kind: input, shape index: {}]   ;;  %s111_s3 = inlined_call_operand.vmem [shape: bf16[16,16], index: 3, kind: output, shape index: {}]  }
   0x1   :  { %v71_v0 = vld [vmem:[%s108_s1] sm:$0xff] }
   0x2   :  { %v70_v1 = vld [vmem:[%s109_s0] sm:$0xff]  ;;  %45 = vmatpush.bf16.msra.mxu0 %v71_v0 }
   0x3   :  { %v72_v2 = vld [vmem:[%s110_s2] ss:$0 sm:$0xff] }
   0x5   :  { %69 = vmatmul.msk.bf16.vlgmr.msra.gmra.mxu0 %vm34_vm0, %v70_v1 }
  0x82   :  { %v47_v3 = vpop.f32.mrf.mxu0 }
  0x83   :  { %v48_v4 = vadd.f32 %v72_v2, %v47_v3 }
  0x85   :  { %v52_v5 = vpack.c.bf16 %v48_v4, %v48_v4 }
  0x87   :  { %55 = vst.msk [vmem:[%s111_s3] sm:$0xf] %vm54_vm1, %v52_v5 }
  0x8a   :  { %v49_v6 = vpop.f32.mrf.mxu0 }
  0x8b   :  { %v50_v7 = vadd.f32 %v72_v2, %v49_v6 }
  0x8d   :  { %v53_v8 = vpack.c.bf16 %v50_v7, %v50_v7 }
  0x8f   :  { %56 = vst.msk [vmem:[%s111_s3 + $0x4] sm:$0xf] %vm54_vm1, %v53_v8 }

// kernel: wave_rnn_forward.22
= control target key start
LH: loop header
LB: loop body
LE: loop exit
PB: predicated region body
PF: predicated region fallthrough
CT: control target
= control target key end

     0   :  { %vm41_vm0 = vcmask 125952   ;;  %s101_s0 = inlined_call_operand.vmem [shape: bf16[16,16], index: 0, kind: input, shape index: {}]   ;;  %s102_s1 = inlined_call_operand.vmem [shape: f32[1,16], index: 1, kind: input, shape index: {}]   ;;  %s103_s2 = inlined_call_operand.vmem [shape: f32[1,16], index: 2, kind: input, shape index: {}]   ;;  %s104_s3 = inlined_call_operand.vmem [shape: bf16[16,16], index: 3, kind: input, shape index: {}]   ;;  %s105_s4 = inlined_call_operand.vmem [shape: bf16[16,16], index: 4, kind: output, shape index: {}]  }
   0x1   :  { %v49_v0 = vld [vmem:[%s101_s0] sm:$0xff]  }
   0x2   :  { %v56_v1 = vld [vmem:[%s102_s1] ss:$0 sm:$0xff]  ;;  %v50_v2 = vunpack.c.l.bf16 %v49_v0  ;;  %v51_v5 = vunpack.c.h.bf16 %v49_v0 }
   0x3   :  { %v57_v3 = vld [vmem:[%s103_s2] ss:$0 sm:$0xff] }
   0x4   :  { %v53_v4 = vld [vmem:[%s104_s3] sm:$0xff]   ;;  %v25_v6 = vmul.f32 %v56_v1, %v50_v2  ;;  %v26_v8 = vmul.f32 %v56_v1, %v51_v5 }
   0x5   :  { %v54_v7 = vunpack.c.l.bf16 %v53_v4  ;;  %v55_v9 = vunpack.c.h.bf16 %v53_v4 }
   0x6   :  { %v31_v10 = vadd.f32 %v57_v3, %v25_v6  ;;  %v32_v11 = vadd.f32 %v57_v3, %v26_v8 }
   0x8   :  { %v37_v12 = vadd.f32 %v54_v7, %v31_v10  ;;  %v38_v13 = vadd.f32 %v55_v9, %v32_v11 }
   0xa   :  { %v39_v14 = vpack.c.bf16 %v37_v12, %v37_v12  ;;  %v40_v15 = vpack.c.bf16 %v38_v13, %v38_v13 }
   0xc   :  { %42 = vst.msk [vmem:[%s105_s4] sm:$0xf] %vm41_vm0, %v39_v14 }
   0xd   :  { %43 = vst.msk [vmem:[%s105_s4 + $0x4] sm:$0xf] %vm41_vm0, %v40_v15 }

// kernel: wave_rnn_forward.24
= control target key start
LH: loop header
LB: loop body
LE: loop exit
PB: predicated region body
PF: predicated region fallthrough
CT: control target
= control target key end

     0   :  { %vm48_vm0 = vcmask 130048   ;;  %vm88_vm1 = vcmask 257024   ;;  %s184_s1 = inlined_call_operand.vmem [shape: bf16[16,32], index: 1, kind: input, shape index: {}]   ;;  %s185_s0 = inlined_call_operand.vmem [shape: bf16[48,16], index: 0, kind: input, shape index: {}]   ;;  %s186_s2 = inlined_call_operand.vmem [shape: f32[1,32], index: 2, kind: input, shape index: {}]   ;;  %s187_s3 = inlined_call_operand.vmem [shape: bf16[48,32], index: 3, kind: output, shape index: {}]  }
   0x1   :  { %v121_v0 = vld [vmem:[%s184_s1] sm:$0xff]  ;;  %v119_v2 = vld [vmem:[%s185_s0 + $0x8] sm:$0xff]  ;;  %v120_v3 = vld [vmem:[%s185_s0 + $0x10] sm:$0xff] }
   0x2   :  { %v118_v1 = vld [vmem:[%s185_s0] sm:$0xff]  ;;  %65 = vmatpush.bf16.msra.mxu0 %v121_v0  ;;  %122 = vmatpush.bf16.msra.mxu1 %v121_v0 }
   0x3   :  { %123 = vmatpush.bf16.msra.mxu2 %v121_v0  ;;  %v124_v4 = vld [vmem:[%s186_s2] ss:$0 sm:$0xff] }
   0x5   :  { %115 = vmatmul.msk.bf16.vlgmr.msra.gmra.mxu0 %vm48_vm0, %v118_v1  ;;  %116 = vmatmul.msk.bf16.vlgmr.msra.gmra.mxu1 %vm48_vm0, %v119_v2 }
   0x6   :  { %117 = vmatmul.msk.bf16.vlgmr.msra.gmra.mxu2 %vm48_vm0, %v120_v3 }
  0x82   :  { %v67_v5 = vpop.f32.mrf.mxu0  ;;  %v72_v6 = vpop.f32.mrf.mxu1 }
  0x83   :  { %v68_v7 = vadd.f32 %v124_v4, %v67_v5  ;;  %v73_v8 = vadd.f32 %v124_v4, %v72_v6 }
  0x85   :  { %v82_v9 = vpack.c.bf16 %v68_v7, %v68_v7  ;;  %v84_v10 = vpack.c.bf16 %v73_v8, %v73_v8 }
  0x87   :  { %89 = vst.msk [vmem:[%s187_s3] sm:$0xf] %vm88_vm1, %v82_v9 }
  0x88   :  { %91 = vst.msk [vmem:[%s187_s3 + $0x8] sm:$0xf] %vm88_vm1, %v84_v10 }
  0x89   :  { %v77_v11 = vpop.f32.mrf.mxu2 }
  0x8a   :  { %v78_v12 = vadd.f32 %v124_v4, %v77_v11  ;;  %v69_v13 = vpop.f32.mrf.mxu0  ;;  %v74_v14 = vpop.f32.mrf.mxu1 }
  0x8b   :  { %v70_v15 = vadd.f32 %v124_v4, %v69_v13  ;;  %v75_v16 = vadd.f32 %v124_v4, %v74_v14 }
  0x8c   :  { %v86_v17 = vpack.c.bf16 %v78_v12, %v78_v12 }
  0x8d   :  { %v83_v18 = vpack.c.bf16 %v70_v15, %v70_v15  ;;  %v85_v19 = vpack.c.bf16 %v75_v16, %v75_v16 }
  0x8e   :  { %93 = vst.msk [vmem:[%s187_s3 + $0x10] sm:$0xf] %vm88_vm1, %v86_v17 }
  0x8f   :  { %90 = vst.msk [vmem:[%s187_s3 + $0x4] sm:$0xf] %vm88_vm1, %v83_v18 }
  0x90   :  { %92 = vst.msk [vmem:[%s187_s3 + $0xc] sm:$0xf] %vm88_vm1, %v85_v19 }
  0x91   :  { %v79_v20 = vpop.f32.mrf.mxu2 }
  0x92   :  { %v80_v21 = vadd.f32 %v124_v4, %v79_v20 }
  0x94   :  { %v87_v22 = vpack.c.bf16 %v80_v21, %v80_v21 }
  0x96   :  { %94 = vst.msk [vmem:[%s187_s3 + $0x14] sm:$0xf] %vm88_vm1, %v87_v22 }

// kernel: wave_rnn_forward.25
= control target key start
LH: loop header
LB: loop body
LE: loop exit
PB: predicated region body
PF: predicated region fallthrough
CT: control target
= control target key end

     0   :  { %vm56_vm0 = vcmask 261120   ;;  %vm96_vm1 = vcmask 781312   ;;  %s202_s1 = inlined_call_operand.vmem [shape: bf16[32,96], index: 1, kind: input, shape index: {}]   ;;  %s203_s2 = inlined_call_operand.vmem [shape: f32[1,96], index: 2, kind: input, shape index: {}]   ;;  %s204_s0 = inlined_call_operand.vmem [shape: bf16[48,32], index: 0, kind: input, shape index: {}]   ;;  %s205_s3 = inlined_call_operand.vmem [shape: bf16[48,96], index: 3, kind: output, shape index: {}]  }
   0x1   :  { %v134_v0 = vld [vmem:[%s202_s1 + $0x8] sm:$0xff]  ;;  %v133_v1 = vld [vmem:[%s202_s1] sm:$0xff]  ;;  %v132_v4 = vld [vmem:[%s204_s0 + $0x10] sm:$0xff] }
   0x2   :  { %72 = vmatpush.bf16.msra.mxu0 %v134_v0  ;;  %135 = vmatpush.bf16.msra.mxu1 %v134_v0  ;;  %v130_v2 = vld [vmem:[%s204_s0] sm:$0xff]  ;;  %v131_v3 = vld [vmem:[%s204_s0 + $0x8] sm:$0xff] }
   0x3   :  { %136 = vmatpush.bf16.msra.mxu2 %v134_v0  ;;  %v139_v5 = vld [vmem:[%s203_s2] ss:$0 sm:$0xff] }
   0x6   :  { %73 = vmatpush.bf16.msra.mxu0 %v133_v1  ;;  %137 = vmatpush.bf16.msra.mxu1 %v133_v1 }
   0x7   :  { %138 = vmatpush.bf16.msra.mxu2 %v133_v1 }
   0x9   :  { %127 = vmatmul.msk.bf16.vlgmr.msra.gmra.mxu0 %vm56_vm0, %v130_v2  ;;  %128 = vmatmul.msk.bf16.vlgmr.msra.gmra.mxu1 %vm56_vm0, %v131_v3 }
   0xa   :  { %129 = vmatmul.msk.bf16.vlgmr.msra.gmra.mxu2 %vm56_vm0, %v132_v4 }
  0x86   :  { %v75_v6 = vpop.f32.mrf.mxu0  ;;  %v80_v7 = vpop.f32.mrf.mxu1 }
  0x87   :  { %v76_v8 = vadd.f32 %v139_v5, %v75_v6  ;;  %v81_v9 = vadd.f32 %v139_v5, %v80_v7 }
  0x89   :  { %v90_v10 = vpack.c.bf16 %v76_v8, %v76_v8  ;;  %v92_v11 = vpack.c.bf16 %v81_v9, %v81_v9 }
  0x8b   :  { %97 = vst.msk [vmem:[%s205_s3] sm:$0xf] %vm96_vm1, %v90_v10 }
  0x8c   :  { %99 = vst.msk [vmem:[%s205_s3 + $0x8] sm:$0xf] %vm96_vm1, %v92_v11 }
  0x8d   :  { %v85_v12 = vpop.f32.mrf.mxu2 }
  0x8e   :  { %v86_v13 = vadd.f32 %v139_v5, %v85_v12  ;;  %v77_v14 = vpop.f32.mrf.mxu0  ;;  %v82_v15 = vpop.f32.mrf.mxu1 }
  0x8f   :  { %v78_v16 = vadd.f32 %v139_v5, %v77_v14  ;;  %v83_v17 = vadd.f32 %v139_v5, %v82_v15 }
  0x90   :  { %v94_v18 = vpack.c.bf16 %v86_v13, %v86_v13 }
  0x91   :  { %v91_v19 = vpack.c.bf16 %v78_v16, %v78_v16  ;;  %v93_v20 = vpack.c.bf16 %v83_v17, %v83_v17 }
  0x92   :  { %101 = vst.msk [vmem:[%s205_s3 + $0x10] sm:$0xf] %vm96_vm1, %v94_v18 }
  0x93   :  { %98 = vst.msk [vmem:[%s205_s3 + $0x4] sm:$0xf] %vm96_vm1, %v91_v19 }
  0x94   :  { %100 = vst.msk [vmem:[%s205_s3 + $0xc] sm:$0xf] %vm96_vm1, %v93_v20 }
  0x95   :  { %v87_v21 = vpop.f32.mrf.mxu2 }
  0x96   :  { %v88_v22 = vadd.f32 %v139_v5, %v87_v21 }
  0x98   :  { %v95_v23 = vpack.c.bf16 %v88_v22, %v88_v22 }
  0x9a   :  { %102 = vst.msk [vmem:[%s205_s3 + $0x14] sm:$0xf] %vm96_vm1, %v95_v23 }

// kernel: wave_rnn_forward.27
= control target key start
LH: loop header
LB: loop body
LE: loop exit
PB: predicated region body
PF: predicated region fallthrough
CT: control target
= control target key end

     0   :  { %vm70_vm0 = vcmask 1041408   ;;  %vm60_vm1 = vcmask 293888   ;;  %vm104_vm2 = vcmask 781312   ;;  %s215_s1 = inlined_call_operand.vmem [shape: bf16[36,96], index: 1, kind: input, shape index: {}]   ;;  %s216_s2 = inlined_call_operand.vmem [shape: f32[1,96], index: 2, kind: input, shape index: {}]   ;;  %s217_s0 = inlined_call_operand.vmem [shape: bf16[48,36], index: 0, kind: input, shape index: {}]   ;;  %s218_s3 = inlined_call_operand.vmem [shape: bf16[48,96], index: 3, kind: output, shape index: {}]  }
   0x1   :  { %v25_v0 = vld [vmem:[%s215_s1 + $0x10] sm:$0x3]  ;;  %v142_v4 = vld [vmem:[%s215_s1 + $0x8] sm:$0xff]  ;;  %v141_v5 = vld [vmem:[%s215_s1] sm:$0xff] }
   0x2   :  { %v54_v1 = vunpack.c.l.b16 %v25_v0  ;;  %v138_v6 = vld [vmem:[%s217_s0] sm:$0xff]  ;;  %v139_v7 = vld [vmem:[%s217_s0 + $0x8] sm:$0xff]  ;;  %v140_v8 = vld [vmem:[%s217_s0 + $0x10] sm:$0xff] }
   0x3   :  { %v149_v9 = vld [vmem:[%s216_s2] ss:$0 sm:$0xff] }
   0x4   :  { %v57_v2 = vpack.c.b16 %v54_v1, %v54_v1 }
   0x6   :  { %v72_v3 = vsel %vm70_vm0, %v57_v2, 0 }
   0x7   :  { %79 = vmatpush.bf16.msra.mxu0 %v72_v3  ;;  %143 = vmatpush.bf16.msra.mxu1 %v72_v3 }
   0x8   :  { %144 = vmatpush.bf16.msra.mxu2 %v72_v3 }
   0xb   :  { %80 = vmatpush.bf16.msra.mxu0 %v142_v4  ;;  %145 = vmatpush.bf16.msra.mxu1 %v142_v4 }
   0xc   :  { %146 = vmatpush.bf16.msra.mxu2 %v142_v4 }
   0xf   :  { %81 = vmatpush.bf16.msra.mxu0 %v141_v5  ;;  %147 = vmatpush.bf16.msra.mxu1 %v141_v5 }
  0x10   :  { %148 = vmatpush.bf16.msra.mxu2 %v141_v5 }
  0x12   :  { %135 = vmatmul.msk.bf16.vlgmr.msra.gmra.mxu0 %vm60_vm1, %v138_v6  ;;  %136 = vmatmul.msk.bf16.vlgmr.msra.gmra.mxu1 %vm60_vm1, %v139_v7 }
  0x13   :  { %137 = vmatmul.msk.bf16.vlgmr.msra.gmra.mxu2 %vm60_vm1, %v140_v8 }
  0x8f   :  { %v83_v10 = vpop.f32.mrf.mxu0  ;;  %v88_v11 = vpop.f32.mrf.mxu1 }
  0x90   :  { %v84_v12 = vadd.f32 %v149_v9, %v83_v10  ;;  %v89_v13 = vadd.f32 %v149_v9, %v88_v11 }
  0x92   :  { %v98_v14 = vpack.c.bf16 %v84_v12, %v84_v12  ;;  %v100_v15 = vpack.c.bf16 %v89_v13, %v89_v13 }
  0x94   :  { %105 = vst.msk [vmem:[%s218_s3] sm:$0xf] %vm104_vm2, %v98_v14 }
  0x95   :  { %107 = vst.msk [vmem:[%s218_s3 + $0x8] sm:$0xf] %vm104_vm2, %v100_v15 }
  0x96   :  { %v93_v16 = vpop.f32.mrf.mxu2 }
  0x97   :  { %v94_v17 = vadd.f32 %v149_v9, %v93_v16  ;;  %v85_v18 = vpop.f32.mrf.mxu0  ;;  %v90_v19 = vpop.f32.mrf.mxu1 }
  0x98   :  { %v86_v20 = vadd.f32 %v149_v9, %v85_v18  ;;  %v91_v21 = vadd.f32 %v149_v9, %v90_v19 }
  0x99   :  { %v102_v22 = vpack.c.bf16 %v94_v17, %v94_v17 }
  0x9a   :  { %v99_v23 = vpack.c.bf16 %v86_v20, %v86_v20  ;;  %v101_v24 = vpack.c.bf16 %v91_v21, %v91_v21 }
  0x9b   :  { %109 = vst.msk [vmem:[%s218_s3 + $0x10] sm:$0xf] %vm104_vm2, %v102_v22 }
  0x9c   :  { %106 = vst.msk [vmem:[%s218_s3 + $0x4] sm:$0xf] %vm104_vm2, %v99_v23 }
  0x9d   :  { %108 = vst.msk [vmem:[%s218_s3 + $0xc] sm:$0xf] %vm104_vm2, %v101_v24 }
  0x9e   :  { %v95_v25 = vpop.f32.mrf.mxu2 }
  0x9f   :  { %v96_v26 = vadd.f32 %v149_v9, %v95_v25 }
  0xa1   :  { %v103_v27 = vpack.c.bf16 %v96_v26, %v96_v26 }
  0xa3   :  { %110 = vst.msk [vmem:[%s218_s3 + $0x14] sm:$0xf] %vm104_vm2, %v103_v27 }

// kernel: wave_rnn_forward.29
= control target key start
LH: loop header
LB: loop body
LE: loop exit
PB: predicated region body
PF: predicated region fallthrough
CT: control target
= control target key end

     0   :  { %vm70_vm0 = vcmask 1041408   ;;  %vm60_vm1 = vcmask 293888   ;;  %vm110_vm2 = vcmask 257024   ;;  %s221_s1 = inlined_call_operand.vmem [shape: bf16[36,32], index: 1, kind: input, shape index: {}]   ;;  %s222_s2 = inlined_call_operand.vmem [shape: f32[1,32], index: 2, kind: input, shape index: {}]   ;;  %s223_s0 = inlined_call_operand.vmem [shape: bf16[48,36], index: 0, kind: input, shape index: {}]   ;;  %s224_s3 = inlined_call_operand.vmem [shape: bf16[48,32], index: 3, kind: output, shape index: {}]  }
   0x1   :  { %v25_v0 = vld [vmem:[%s221_s1 + $0x10] sm:$0x3]  ;;  %v148_v4 = vld [vmem:[%s221_s1 + $0x8] sm:$0xff]  ;;  %v147_v5 = vld [vmem:[%s221_s1] sm:$0xff] }
   0x2   :  { %v54_v1 = vunpack.c.l.b16 %v25_v0  ;;  %v144_v6 = vld [vmem:[%s223_s0] sm:$0xff]  ;;  %v145_v7 = vld [vmem:[%s223_s0 + $0x8] sm:$0xff]  ;;  %v146_v8 = vld [vmem:[%s223_s0 + $0x10] sm:$0xff] }
   0x3   :  { %v155_v9 = vld [vmem:[%s222_s2] ss:$0 sm:$0xff] }
   0x4   :  { %v57_v2 = vpack.c.b16 %v54_v1, %v54_v1 }
   0x6   :  { %v72_v3 = vsel %vm70_vm0, %v57_v2, 0 }
   0x7   :  { %79 = vmatpush.bf16.msra.mxu0 %v72_v3  ;;  %149 = vmatpush.bf16.msra.mxu1 %v72_v3 }
   0x8   :  { %150 = vmatpush.bf16.msra.mxu2 %v72_v3 }
   0xb   :  { %80 = vmatpush.bf16.msra.mxu0 %v148_v4  ;;  %151 = vmatpush.bf16.msra.mxu1 %v148_v4 }
   0xc   :  { %152 = vmatpush.bf16.msra.mxu2 %v148_v4 }
   0xf   :  { %81 = vmatpush.bf16.msra.mxu0 %v147_v5  ;;  %153 = vmatpush.bf16.msra.mxu1 %v147_v5 }
  0x10   :  { %154 = vmatpush.bf16.msra.mxu2 %v147_v5 }
  0x12   :  { %141 = vmatmul.msk.bf16.vlgmr.msra.gmra.mxu0 %vm60_vm1, %v144_v6  ;;  %142 = vmatmul.msk.bf16.vlgmr.msra.gmra.mxu1 %vm60_vm1, %v145_v7 }
  0x13   :  { %143 = vmatmul.msk.bf16.vlgmr.msra.gmra.mxu2 %vm60_vm1, %v146_v8 }
  0x8f   :  { %v83_v10 = vpop.f32.mrf.mxu0  ;;  %v88_v11 = vpop.f32.mrf.mxu1 }
  0x90   :  { %v84_v12 = vadd.f32 %v155_v9, %v83_v10  ;;  %v89_v13 = vadd.f32 %v155_v9, %v88_v11 }
  0x92   :  { %v98_v14 = vmax.f32 %v84_v12, 0.0  ;;  %v100_v15 = vmax.f32 %v89_v13, 0.0 }
  0x94   :  { %v104_v16 = vpack.c.bf16 %v98_v14, %v98_v14  ;;  %v106_v17 = vpack.c.bf16 %v100_v15, %v100_v15 }
  0x96   :  { %111 = vst.msk [vmem:[%s224_s3] sm:$0xf] %vm110_vm2, %v104_v16  ;;  %v93_v18 = vpop.f32.mrf.mxu2 }
  0x97   :  { %113 = vst.msk [vmem:[%s224_s3 + $0x8] sm:$0xf] %vm110_vm2, %v106_v17  ;;  %v94_v19 = vadd.f32 %v155_v9, %v93_v18  ;;  %v85_v20 = vpop.f32.mrf.mxu0  ;;  %v90_v21 = vpop.f32.mrf.mxu1 }
  0x98   :  { %v86_v22 = vadd.f32 %v155_v9, %v85_v20  ;;  %v91_v23 = vadd.f32 %v155_v9, %v90_v21 }
  0x99   :  { %v102_v24 = vmax.f32 %v94_v19, 0.0 }
  0x9a   :  { %v99_v25 = vmax.f32 %v86_v22, 0.0  ;;  %v101_v26 = vmax.f32 %v91_v23, 0.0 }
  0x9b   :  { %v108_v27 = vpack.c.bf16 %v102_v24, %v102_v24 }
  0x9c   :  { %v105_v28 = vpack.c.bf16 %v99_v25, %v99_v25  ;;  %v107_v29 = vpack.c.bf16 %v101_v26, %v101_v26 }
  0x9d   :  { %115 = vst.msk [vmem:[%s224_s3 + $0x10] sm:$0xf] %vm110_vm2, %v108_v27 }
  0x9e   :  { %112 = vst.msk [vmem:[%s224_s3 + $0x4] sm:$0xf] %vm110_vm2, %v105_v28  ;;  %v95_v30 = vpop.f32.mrf.mxu2 }
  0x9f   :  { %114 = vst.msk [vmem:[%s224_s3 + $0xc] sm:$0xf] %vm110_vm2, %v107_v29  ;;  %v96_v31 = vadd.f32 %v155_v9, %v95_v30 }
  0xa1   :  { %v103_v32 = vmax.f32 %v96_v31, 0.0 }
  0xa3   :  { %v109_v33 = vpack.c.bf16 %v103_v32, %v103_v32 }
  0xa5   :  { %116 = vst.msk [vmem:[%s224_s3 + $0x14] sm:$0xf] %vm110_vm2, %v109_v33 }

// kernel: wave_rnn_forward.31
= control target key start
LH: loop header
LB: loop body
LE: loop exit
PB: predicated region body
PF: predicated region fallthrough
CT: control target
= control target key end

     0   :  { %vm56_vm0 = vcmask 261120   ;;  %vm90_vm1 = vcmask 523264   ;;  %s196_s1 = inlined_call_operand.vmem [shape: bf16[32,64], index: 1, kind: input, shape index: {}]   ;;  %s197_s2 = inlined_call_operand.vmem [shape: f32[1,64], index: 2, kind: input, shape index: {}]   ;;  %s198_s0 = inlined_call_operand.vmem [shape: bf16[48,32], index: 0, kind: input, shape index: {}]   ;;  %s199_s3 = inlined_call_operand.vmem [shape: f32[48,64], index: 3, kind: output, shape index: {}]  }
   0x1   :  { %v128_v0 = vld [vmem:[%s196_s1 + $0x8] sm:$0xff]  ;;  %v127_v1 = vld [vmem:[%s196_s1] sm:$0xff]  ;;  %v126_v4 = vld [vmem:[%s198_s0 + $0x10] sm:$0xff] }
   0x2   :  { %72 = vmatpush.bf16.msra.mxu0 %v128_v0  ;;  %129 = vmatpush.bf16.msra.mxu1 %v128_v0  ;;  %v124_v2 = vld [vmem:[%s198_s0] sm:$0xff]  ;;  %v125_v3 = vld [vmem:[%s198_s0 + $0x8] sm:$0xff] }
   0x3   :  { %130 = vmatpush.bf16.msra.mxu2 %v128_v0  ;;  %v133_v5 = vld [vmem:[%s197_s2] ss:$0 sm:$0xff] }
   0x6   :  { %73 = vmatpush.bf16.msra.mxu0 %v127_v1  ;;  %131 = vmatpush.bf16.msra.mxu1 %v127_v1 }
   0x7   :  { %132 = vmatpush.bf16.msra.mxu2 %v127_v1 }
   0x9   :  { %121 = vmatmul.msk.bf16.vlgmr.msra.gmra.mxu0 %vm56_vm0, %v124_v2  ;;  %122 = vmatmul.msk.bf16.vlgmr.msra.gmra.mxu1 %vm56_vm0, %v125_v3 }
   0xa   :  { %123 = vmatmul.msk.bf16.vlgmr.msra.gmra.mxu2 %vm56_vm0, %v126_v4 }
  0x86   :  { %v75_v6 = vpop.f32.mrf.mxu0  ;;  %v80_v7 = vpop.f32.mrf.mxu1 }
  0x87   :  { %v76_v8 = vadd.f32 %v133_v5, %v75_v6  ;;  %v81_v9 = vadd.f32 %v133_v5, %v80_v7 }
  0x89   :  { %91 = vst.msk [vmem:[%s199_s3] sm:$0xff] %vm90_vm1, %v76_v8 }
  0x8a   :  { %93 = vst.msk [vmem:[%s199_s3 + $0x10] sm:$0xff] %vm90_vm1, %v81_v9 }
  0x8d   :  { %v85_v10 = vpop.f32.mrf.mxu2 }
  0x8e   :  { %v86_v11 = vadd.f32 %v133_v5, %v85_v10  ;;  %v77_v12 = vpop.f32.mrf.mxu0  ;;  %v82_v13 = vpop.f32.mrf.mxu1 }
  0x8f   :  { %v78_v14 = vadd.f32 %v133_v5, %v77_v12  ;;  %v83_v15 = vadd.f32 %v133_v5, %v82_v13 }
  0x90   :  { %95 = vst.msk [vmem:[%s199_s3 + $0x20] sm:$0xff] %vm90_vm1, %v86_v11 }
  0x91   :  { %92 = vst.msk [vmem:[%s199_s3 + $0x8] sm:$0xff] %vm90_vm1, %v78_v14 }
  0x92   :  { %94 = vst.msk [vmem:[%s199_s3 + $0x18] sm:$0xff] %vm90_vm1, %v83_v15 }
  0x95   :  { %v87_v16 = vpop.f32.mrf.mxu2 }
  0x96   :  { %v88_v17 = vadd.f32 %v133_v5, %v87_v16 }
  0x98   :  { %96 = vst.msk [vmem:[%s199_s3 + $0x28] sm:$0xff] %vm90_vm1, %v88_v17 }

// kernel: wave_rnn_forward.26
= control target key start
LH: loop header
LB: loop body
LE: loop exit
PB: predicated region body
PF: predicated region fallthrough
CT: control target
= control target key end

     0   :  { %vm25_vm0 = vcmask 261120   ;;  %v4313_v1 = vmov 0.0   ;;  %s4314_s26 = smov 32   ;;  %s4315_s6 = smov 64   ;;  %s5422_s2 = inlined_call_operand.vmem [shape: bf16[32,64], index: 2, kind: input, shape index: {}]   ;;  %s5423_s3 = inlined_call_operand.vmem [shape: bf16[32,32], index: 3, kind: input, shape index: {}]   ;;  %s5424_s4 = inlined_call_operand.vmem [shape: f32[1,32], index: 4, kind: input, shape index: {}]   ;;  %s5425_s0 = inlined_call_operand.vmem [shape: bf16[24,16,96], index: 0, kind: input, shape index: {}]   ;;  %s5426_s1 = inlined_call_operand.vmem [shape: bf16[24,16,32], index: 1, kind: input, shape index: {}]   ;;  %s5427_s5 = inlined_call_operand.vmem [shape: bf16[24,16,32], index: 5, kind: output, shape index: {}]  }
   0x1   :  { %v4350_v0 = vld [vmem:[%s5422_s2 + $0x8] sm:$0xff]  ;;  %26 = vst.msk [vmem:[#allocation2] sm:$0xff] %vm25_vm0, %v4313_v1  ;;  %v4363_v3 = vld [vmem:[%s5422_s2] sm:$0xff]  ;;  %s4316_s7 = smov 96  }
   0x2   :  { %v4356_v2 = vld [vmem:[%s5423_s3 + $0x8] sm:$0xff]  ;;  %27 = vst.msk [vmem:[#allocation2 + $0x8] sm:$0xff] %vm25_vm0, %v4313_v1  ;;  %64 = vmatpush.bf16.msra.mxu0 %v4350_v0  ;;  %v4369_v4 = vld [vmem:[%s5423_s3] sm:$0xff]  ;;  %224 = vmatpush.bf16.msra.mxu2 %v4350_v0 }
   0x3   :  { %135 = vmatpush.bf16.msra.mxu1 %v4356_v2  ;;  %280 = vmatpush.bf16.msra.mxu3 %v4356_v2  ;;  %v3651_v8 = vld [vmem:[%s5425_s0] sm:$0xff]  }
   0x4   :  { %v3652_v9 = vunpack.c.l.bf16 %v3651_v8  ;;  %v3653_v13 = vunpack.c.h.bf16 %v3651_v8  ;;  %v4399_v23 = vld [vmem:[%s5424_s4] ss:$0 sm:$0xff]  ;;  %v3842_v8 = vld [vmem:[%s5425_s0 + $0x8] sm:$0xff]  }
   0x6   :  { %65 = vmatpush.bf16.msra.mxu0 %v4363_v3  ;;  %225 = vmatpush.bf16.msra.mxu2 %v4363_v3 }
   0x7   :  { %136 = vmatpush.bf16.msra.mxu1 %v4369_v4  ;;  %281 = vmatpush.bf16.msra.mxu3 %v4369_v4 }
   0x8   :  { %v37_v5 = vld [vmem:[#allocation2] sm:$0xff] }
   0x9   :  { %v38_v6 = vld [vmem:[#allocation2 + $0x8] sm:$0xff]  ;;  %171 = vrot.lane.b32.xlu2 %v37_v5, %s4314_s26 }
   0xa   :  { %362 = vmatpush.bf16.msrb.mxu0 %v4350_v0  ;;  %v41_v7 = vpack.c.bf16 %v38_v6, %v37_v5  ;;  %500 = vmatpush.bf16.msrb.mxu2 %v4350_v0 }
   0xb   :  { %418 = vmatpush.bf16.msrb.mxu1 %v4356_v2  ;;  %556 = vmatpush.bf16.msrb.mxu3 %v4356_v2 }
   0xc   :  { %3404 = vmatmul.msk.bf16.vlgmr.msra.gmra.mxu0 %vm25_vm0, %v41_v7  ;;  %3415 = vmatmul.msk.bf16.vlgmr.msra.gmra.mxu1 %vm25_vm0, %v41_v7 }
   0xe   :  { %363 = vmatpush.bf16.msrb.mxu0 %v4363_v3  ;;  %501 = vmatpush.bf16.msrb.mxu2 %v4363_v3 }
   0xf   :  { %419 = vmatpush.bf16.msrb.mxu1 %v4369_v4  ;;  %557 = vmatpush.bf16.msrb.mxu3 %v4369_v4 }
  0x11   :  { %173 = vrot.lane.b32.xlu2 %v38_v6, %s4314_s26 }
  0x12   :  { %638 = vmatpush.bf16.msra.mxu0 %v4350_v0 }
  0x13   :  { %694 = vmatpush.bf16.msra.mxu1 %v4356_v2 }
  0x16   :  { %639 = vmatpush.bf16.msra.mxu0 %v4363_v3 }
  0x17   :  { %695 = vmatpush.bf16.msra.mxu1 %v4369_v4 }
  0x63   :  { %v172_v54 = vpop.permute.xlu2 %171 }
  0x6b   :  { %v174_v57 = vpop.permute.xlu2 %173 }
  0x89   :  { %v67_v10 = vpop.f32.mrf.mxu0  ;;  %v138_v25 = vpop.f32.mrf.mxu1 }
  0x8a   :  { %v74_v11 = vadd.f32 %v3652_v9, %v67_v10  ;;  %v139_v29 = vadd.f32 %v4399_v23, %v138_v25 }
  0x8c   :  { %v3405_v12 = vmul.f32 -1.442695, %v74_v11 }
  0x8e   :  { %4013 = vpow2.f32 %v3405_v12 }
  0x91   :  { %v69_v14 = vpop.f32.mrf.mxu0  ;;  %v140_v41 = vpop.f32.mrf.mxu1 }
  0x92   :  { %v75_v15 = vadd.f32 %v3653_v13, %v69_v14  ;;  %v141_v45 = vadd.f32 %v4399_v23, %v140_v41 }
  0x94   :  { %v4014_v16 = vpop.eup %4013  ;;  %v3406_v17 = vmul.f32 -1.442695, %v75_v15 }
  0x95   :  { %v82_v18 = vadd.f32 1.0, %v4014_v16 }
  0x96   :  { %4015 = vpow2.f32 %v3406_v17 }
  0x97   :  { %4017 = vrcp.f32 %v82_v18  ;;  %v95_v26 = vand.u32 2147483648, %v82_v18  ;;  %v93_v28 = vand.u32 2147483647, %v82_v18  ;;  %vm89_vm2 = vweird.f32 %v82_v18 }
  0x99   :  { %v96_v32 = vor.u32 1.1754944e-38, %v95_v26  ;;  %vm94_vm4 = vcmp.eq.f32.partialorder %v93_v28, 8.507059e+37 }
  0x9c   :  { %v4016_v19 = vpop.eup %4015 }
  0x9d   :  { %v4018_v20 = vpop.eup %4017  ;;  %v83_v21 = vadd.f32 1.0, %v4016_v19 }
  0x9e   :  { %v85_v22 = vmul.f32 %v4018_v20, %v82_v18  ;;  %vm90_vm1 = vweird.f32 %v4018_v20 }
  0x9f   :  { %4019 = vrcp.f32 %v83_v21  ;;  %vm91_vm3 = vmor %vm89_vm2, %vm90_vm1  ;;  %v110_v38 = vand.u32 2147483648, %v83_v21  ;;  %v108_v40 = vand.u32 2147483647, %v83_v21  ;;  %vm104_vm6 = vweird.f32 %v83_v21 }
  0xa0   :  { %v86_v24 = vsub.f32 1.0, %v85_v22 }
  0xa1   :  { %v111_v43 = vor.u32 1.1754944e-38, %v110_v38  ;;  %vm109_vm8 = vcmp.eq.f32.partialorder %v108_v40, 8.507059e+37 }
  0xa2   :  { %v87_v27 = vmul.f32 %v4018_v20, %v86_v24 }
  0xa4   :  { %v88_v30 = vadd.f32 %v4018_v20, %v87_v27 }
  0xa5   :  { %v4020_v31 = vpop.eup %4019 }
  0xa6   :  { %v100_v33 = vmul.f32 %v4020_v31, %v83_v21  ;;  %v92_v34 = vsel %vm91_vm3, %v4018_v20, %v88_v30  ;;  %vm105_vm5 = vweird.f32 %v4020_v31 }
  0xa7   :  { %v97_v35 = vsel %vm94_vm4, %v96_v32, %v92_v34  ;;  %vm106_vm7 = vmor %vm104_vm6, %vm105_vm5 }
  0xa8   :  { %v101_v36 = vsub.f32 1.0, %v100_v33  ;;  %v143_v37 = vmul.f32 %v139_v29, %v97_v35  ;;  %v157_v56 = vsub.f32 1.0, %v97_v35  ;;  %v177_v61 = vmul.f32 %v172_v54, %v97_v35 }
  0xaa   :  { %v102_v39 = vmul.f32 %v4020_v31, %v101_v36  ;;  %147 = vrot.lane.b32.xlu0 %v143_v37, %s4315_s6 }
  0xac   :  { %v103_v42 = vadd.f32 %v4020_v31, %v102_v39 }
  0xae   :  { %v107_v44 = vsel %vm106_vm7, %v4020_v31, %v103_v42 }
  0xaf   :  { %v112_v46 = vsel %vm109_vm8, %v111_v43, %v107_v44 }
  0xb0   :  { %v144_v47 = vmul.f32 %v141_v45, %v112_v46  ;;  %v158_v59 = vsub.f32 1.0, %v112_v46  ;;  %v178_v62 = vmul.f32 %v174_v57, %v112_v46 }
  0xb2   :  { %149 = vrot.lane.b32.xlu0 %v144_v47, %s4315_s6 }
 0x11c   :  { %v148_v48 = vpop.permute.xlu0 %147 }
 0x11d   :  { %v153_v49 = vadd.f32 %v3652_v9, %v148_v48  ;;  %v3660_v9 = vunpack.c.l.bf16 %v3842_v8 }
 0x11f   :  { %4021 = vtanh.f32 %v153_v49 }
 0x124   :  { %v150_v50 = vpop.permute.xlu0 %149 }
 0x125   :  { %v4022_v51 = vpop.eup %4021  ;;  %v154_v52 = vadd.f32 %v3653_v13, %v150_v50  ;;  %v3661_v13 = vunpack.c.h.bf16 %v3842_v8  ;;  %v3844_v8 = vld [vmem:[%s5425_s0 + $0x10] sm:$0xff]  }
 0x126   :  { %161 = vrot.lane.b32.xlu1 %v4022_v51, %s4316_s7 }
 0x127   :  { %4023 = vtanh.f32 %v154_v52 }
 0x12d   :  { %v4024_v53 = vpop.eup %4023 }
 0x12e   :  { %163 = vrot.lane.b32.xlu1 %v4024_v53, %s4316_s7 }
 0x198   :  { %v162_v55 = vpop.permute.xlu1 %161 }
 0x199   :  { %v167_v58 = vmul.f32 %v162_v55, %v157_v56 }
 0x19b   :  { %v4407_v1 = vadd.f32 %v177_v61, %v167_v58 }
 0x1a0   :  { %v164_v60 = vpop.permute.xlu1 %163 }
 0x1a1   :  { %v168_v63 = vmul.f32 %v164_v60, %v158_v59 }
 0x1a3   :  { %v4409_v5 = vadd.f32 %v178_v62, %v168_v63 }
 0x1a5   :  { %v211_v6 = vpack.c.bf16 %v4409_v5, %v4407_v1 }
 0x1a7   :  { %213 = vrot.lane.b32.xlu0 %v211_v6, %s4316_s7 }
 0x219   :  { %v214_v7 = vpop.permute.xlu0 %213 }
 0x21a   :  { %3418 = vmatmul.msk.bf16.vlgmr.msra.gmra.mxu2 %vm25_vm0, %v214_v7  ;;  %3421 = vmatmul.msk.bf16.vlgmr.msra.gmra.mxu3 %vm25_vm0, %v214_v7 }
 0x21b   :  { %776 = vmatpush.bf16.msra.mxu2 %v4350_v0  ;;  %832 = vmatpush.bf16.msra.mxu3 %v4356_v2 }
 0x21f   :  { %777 = vmatpush.bf16.msra.mxu2 %v4363_v3  ;;  %833 = vmatpush.bf16.msra.mxu3 %v4369_v4 }
 0x29d   :  { %v227_v10 = vpop.f32.mrf.mxu2  ;;  %v283_v26 = vpop.f32.mrf.mxu3 }
 0x29e   :  { %v234_v11 = vadd.f32 %v3660_v9, %v227_v10  ;;  %v284_v33 = vadd.f32 %v4399_v23, %v283_v26 }
 0x2a0   :  { %v3419_v12 = vmul.f32 -1.442695, %v234_v11 }
 0x2a2   :  { %4025 = vpow2.f32 %v3419_v12 }
 0x2a5   :  { %v229_v14 = vpop.f32.mrf.mxu2  ;;  %v285_v41 = vpop.f32.mrf.mxu3 }
 0x2a6   :  { %v235_v15 = vadd.f32 %v3661_v13, %v229_v14  ;;  %v286_v45 = vadd.f32 %v4399_v23, %v285_v41 }
 0x2a8   :  { %v4026_v16 = vpop.eup %4025  ;;  %v3420_v17 = vmul.f32 -1.442695, %v235_v15 }
 0x2a9   :  { %v242_v18 = vadd.f32 1.0, %v4026_v16 }
 0x2aa   :  { %4027 = vpow2.f32 %v3420_v17 }
 0x2ab   :  { %4029 = vrcp.f32 %v242_v18  ;;  %v255_v25 = vand.u32 2147483648, %v242_v18  ;;  %v253_v28 = vand.u32 2147483647, %v242_v18  ;;  %vm249_vm10 = vweird.f32 %v242_v18 }
 0x2ad   :  { %v256_v31 = vor.u32 1.1754944e-38, %v255_v25  ;;  %vm254_vm12 = vcmp.eq.f32.partialorder %v253_v28, 8.507059e+37 }
 0x2b0   :  { %v4028_v19 = vpop.eup %4027 }
 0x2b1   :  { %v4030_v20 = vpop.eup %4029  ;;  %v243_v21 = vadd.f32 1.0, %v4028_v19 }
 0x2b2   :  { %v245_v22 = vmul.f32 %v4030_v20, %v242_v18  ;;  %vm250_vm9 = vweird.f32 %v4030_v20 }
 0x2b3   :  { %4031 = vrcp.f32 %v243_v21  ;;  %vm251_vm11 = vmor %vm249_vm10, %vm250_vm9  ;;  %v270_v38 = vand.u32 2147483648, %v243_v21  ;;  %v268_v40 = vand.u32 2147483647, %v243_v21  ;;  %vm264_vm14 = vweird.f32 %v243_v21 }
 0x2b4   :  { %v246_v24 = vsub.f32 1.0, %v245_v22 }
 0x2b5   :  { %v271_v43 = vor.u32 1.1754944e-38, %v270_v38  ;;  %vm269_vm1 = vcmp.eq.f32.partialorder %v268_v40, 8.507059e+37 }
 0x2b6   :  { %v247_v27 = vmul.f32 %v4030_v20, %v246_v24 }
 0x2b8   :  { %v248_v29 = vadd.f32 %v4030_v20, %v247_v27 }
 0x2b9   :  { %v4032_v30 = vpop.eup %4031 }
 0x2ba   :  { %v252_v32 = vsel %vm251_vm11, %v4030_v20, %v248_v29  ;;  %v260_v34 = vmul.f32 %v4032_v30, %v243_v21  ;;  %vm265_vm13 = vweird.f32 %v4032_v30 }
 0x2bb   :  { %v257_v35 = vsel %vm254_vm12, %v256_v31, %v252_v32  ;;  %vm266_vm15 = vmor %vm264_vm14, %vm265_vm13 }
 0x2bc   :  { %v288_v36 = vmul.f32 %v284_v33, %v257_v35  ;;  %v261_v37 = vsub.f32 1.0, %v260_v34  ;;  %v302_v57 = vsub.f32 1.0, %v257_v35  ;;  %v314_v60 = vmul.f32 %v257_v35, %v4407_v1 }
 0x2be   :  { %v262_v39 = vmul.f32 %v4032_v30, %v261_v37  ;;  %292 = vrot.lane.b32.xlu1 %v288_v36, %s4315_s6 }
 0x2c0   :  { %v263_v42 = vadd.f32 %v4032_v30, %v262_v39 }
 0x2c2   :  { %v267_v44 = vsel %vm266_vm15, %v4032_v30, %v263_v42 }
 0x2c3   :  { %v272_v46 = vsel %vm269_vm1, %v271_v43, %v267_v44 }
 0x2c4   :  { %v289_v47 = vmul.f32 %v286_v45, %v272_v46  ;;  %v303_v55 = vsub.f32 1.0, %v272_v46  ;;  %v315_v59 = vmul.f32 %v272_v46, %v4409_v5 }
 0x2c6   :  { %294 = vrot.lane.b32.xlu2 %v289_v47, %s4315_s6 }
 0x320   :  { %v295_v48 = vpop.permute.xlu2 %294 }
 0x321   :  { %v299_v49 = vadd.f32 %v3661_v13, %v295_v48  ;;  %v3669_v13 = vunpack.c.h.bf16 %v3844_v8 }
 0x323   :  { %4033 = vtanh.f32 %v299_v49 }
 0x329   :  { %v4034_v50 = vpop.eup %4033 }
 0x32a   :  { %308 = vrot.lane.b32.xlu1 %v4034_v50, %s4316_s7 }
 0x330   :  { %v293_v51 = vpop.permute.xlu1 %292 }
 0x331   :  { %v298_v52 = vadd.f32 %v3660_v9, %v293_v51  ;;  %v3668_v9 = vunpack.c.l.bf16 %v3844_v8 }
 0x333   :  { %4035 = vtanh.f32 %v298_v52 }
 0x339   :  { %v4036_v53 = vpop.eup %4035 }
 0x33a   :  { %306 = vrot.lane.b32.xlu0 %v4036_v53, %s4316_s7 }
 0x39c   :  { %v309_v54 = vpop.permute.xlu1 %308 }
 0x39d   :  { %v313_v56 = vmul.f32 %v309_v54, %v303_v55 }
 0x39f   :  { %v4431_v62 = vadd.f32 %v315_v59, %v313_v56 }
 0x3ac   :  { %v307_v58 = vpop.permute.xlu0 %306 }
 0x3ad   :  { %v312_v61 = vmul.f32 %v307_v58, %v302_v57 }
 0x3af   :  { %v4433_v63 = vadd.f32 %v314_v60, %v312_v61 }
 0x3b1   :  { %v349_v6 = vpack.c.bf16 %v4431_v62, %v4433_v63 }
 0x3b3   :  { %351 = vrot.lane.b32.xlu2 %v349_v6, %s4316_s7 }
 0x40d   :  { %v352_v7 = vpop.permute.xlu2 %351 }
 0x40e   :  { %3428 = vmatmul.msk.bf16.vlgmr.msrb.gmra.mxu0 %vm25_vm0, %v352_v7  ;;  %3431 = vmatmul.msk.bf16.vlgmr.msrb.gmra.mxu1 %vm25_vm0, %v352_v7 }
 0x40f   :  { %914 = vmatpush.bf16.msrb.mxu0 %v4350_v0  ;;  %970 = vmatpush.bf16.msrb.mxu1 %v4356_v2 }
 0x413   :  { %915 = vmatpush.bf16.msrb.mxu0 %v4363_v3  ;;  %971 = vmatpush.bf16.msrb.mxu1 %v4369_v4 }
 0x48b   :  { %v365_v10 = vpop.f32.mrf.mxu0  ;;  %v421_v26 = vpop.f32.mrf.mxu1 }
 0x48c   :  { %v372_v11 = vadd.f32 %v3668_v9, %v365_v10  ;;  %v422_v33 = vadd.f32 %v4399_v23, %v421_v26  ;;  %v3846_v10 = vld [vmem:[%s5425_s0 + $0x18] sm:$0xff]  }
 0x48e   :  { %v3429_v12 = vmul.f32 -1.442695, %v372_v11  ;;  %v3676_v11 = vunpack.c.l.bf16 %v3846_v10 }
 0x490   :  { %4037 = vpow2.f32 %v3429_v12 }
 0x493   :  { %v367_v14 = vpop.f32.mrf.mxu0  ;;  %v423_v41 = vpop.f32.mrf.mxu1 }
 0x494   :  { %v373_v15 = vadd.f32 %v3669_v13, %v367_v14  ;;  %v424_v45 = vadd.f32 %v4399_v23, %v423_v41 }
 0x496   :  { %v4038_v16 = vpop.eup %4037  ;;  %v3430_v17 = vmul.f32 -1.442695, %v373_v15  ;;  %v3677_v15 = vunpack.c.h.bf16 %v3846_v10 }
 0x497   :  { %v380_v18 = vadd.f32 1.0, %v4038_v16 }
 0x498   :  { %4039 = vpow2.f32 %v3430_v17 }
 0x499   :  { %4041 = vrcp.f32 %v380_v18  ;;  %v393_v25 = vand.u32 2147483648, %v380_v18  ;;  %v391_v28 = vand.u32 2147483647, %v380_v18  ;;  %vm387_vm3 = vweird.f32 %v380_v18 }
 0x49b   :  { %v394_v31 = vor.u32 1.1754944e-38, %v393_v25  ;;  %vm392_vm5 = vcmp.eq.f32.partialorder %v391_v28, 8.507059e+37 }
 0x49e   :  { %v4040_v19 = vpop.eup %4039 }
 0x49f   :  { %v4042_v20 = vpop.eup %4041  ;;  %v381_v21 = vadd.f32 1.0, %v4040_v19 }
 0x4a0   :  { %v383_v22 = vmul.f32 %v4042_v20, %v380_v18  ;;  %vm388_vm2 = vweird.f32 %v4042_v20 }
 0x4a1   :  { %4043 = vrcp.f32 %v381_v21  ;;  %vm389_vm4 = vmor %vm387_vm3, %vm388_vm2  ;;  %v408_v38 = vand.u32 2147483648, %v381_v21  ;;  %v406_v40 = vand.u32 2147483647, %v381_v21  ;;  %vm402_vm7 = vweird.f32 %v381_v21 }
 0x4a2   :  { %v384_v24 = vsub.f32 1.0, %v383_v22 }
 0x4a3   :  { %v409_v43 = vor.u32 1.1754944e-38, %v408_v38  ;;  %vm407_vm9 = vcmp.eq.f32.partialorder %v406_v40, 8.507059e+37 }
 0x4a4   :  { %v385_v27 = vmul.f32 %v4042_v20, %v384_v24 }
 0x4a6   :  { %v386_v29 = vadd.f32 %v4042_v20, %v385_v27 }
 0x4a7   :  { %v4044_v30 = vpop.eup %4043 }
 0x4a8   :  { %v390_v32 = vsel %vm389_vm4, %v4042_v20, %v386_v29  ;;  %v398_v34 = vmul.f32 %v4044_v30, %v381_v21  ;;  %vm403_vm6 = vweird.f32 %v4044_v30 }
 0x4a9   :  { %v395_v35 = vsel %vm392_vm5, %v394_v31, %v390_v32  ;;  %vm404_vm8 = vmor %vm402_vm7, %vm403_vm6 }
 0x4aa   :  { %v426_v36 = vmul.f32 %v422_v33, %v395_v35  ;;  %v399_v37 = vsub.f32 1.0, %v398_v34  ;;  %v440_v55 = vsub.f32 1.0, %v395_v35  ;;  %v452_v59 = vmul.f32 %v395_v35, %v4433_v63 }
 0x4ac   :  { %v400_v39 = vmul.f32 %v4044_v30, %v399_v37  ;;  %430 = vrot.lane.b32.xlu0 %v426_v36, %s4315_s6 }
 0x4ae   :  { %v401_v42 = vadd.f32 %v4044_v30, %v400_v39 }
 0x4b0   :  { %v405_v44 = vsel %vm404_vm8, %v4044_v30, %v401_v42 }
 0x4b1   :  { %v410_v46 = vsel %vm407_vm9, %v409_v43, %v405_v44 }
 0x4b2   :  { %v427_v47 = vmul.f32 %v424_v45, %v410_v46  ;;  %v441_v57 = vsub.f32 1.0, %v410_v46  ;;  %v453_v60 = vmul.f32 %v410_v46, %v4431_v62 }
 0x4b4   :  { %432 = vrot.lane.b32.xlu1 %v427_v47, %s4315_s6 }
 0x51e   :  { %v431_v48 = vpop.permute.xlu0 %430 }
 0x51f   :  { %v436_v49 = vadd.f32 %v3668_v9, %v431_v48 }
 0x521   :  { %4045 = vtanh.f32 %v436_v49 }
 0x526   :  { %v433_v50 = vpop.permute.xlu1 %432 }
 0x527   :  { %v4046_v51 = vpop.eup %4045  ;;  %v437_v52 = vadd.f32 %v3669_v13, %v433_v50 }
 0x528   :  { %444 = vrot.lane.b32.xlu2 %v4046_v51, %s4316_s7 }
 0x529   :  { %4047 = vtanh.f32 %v437_v52 }
 0x52f   :  { %v4048_v53 = vpop.eup %4047 }
 0x530   :  { %446 = vrot.lane.b32.xlu0 %v4048_v53, %s4316_s7 }
 0x582   :  { %v445_v54 = vpop.permute.xlu2 %444 }
 0x583   :  { %v450_v56 = vmul.f32 %v445_v54, %v440_v55 }
 0x585   :  { %v4455_v6 = vadd.f32 %v452_v59, %v450_v56 }
 0x5a2   :  { %v447_v58 = vpop.permute.xlu0 %446 }
 0x5a3   :  { %v451_v61 = vmul.f32 %v447_v58, %v441_v57 }
 0x5a5   :  { %v4457_v7 = vadd.f32 %v453_v60, %v451_v61 }
 0x5a7   :  { %v487_v8 = vpack.c.bf16 %v4457_v7, %v4455_v6 }
 0x5a9   :  { %489 = vrot.lane.b32.xlu1 %v487_v8, %s4316_s7 }
 0x61b   :  { %v490_v9 = vpop.permute.xlu1 %489 }
 0x61c   :  { %3438 = vmatmul.msk.bf16.vlgmr.msrb.gmra.mxu2 %vm25_vm0, %v490_v9  ;;  %3441 = vmatmul.msk.bf16.vlgmr.msrb.gmra.mxu3 %vm25_vm0, %v490_v9 }
 0x61d   :  { %1052 = vmatpush.bf16.msrb.mxu2 %v4350_v0  ;;  %1108 = vmatpush.bf16.msrb.mxu3 %v4356_v2 }
 0x621   :  { %1053 = vmatpush.bf16.msrb.mxu2 %v4363_v3  ;;  %1109 = vmatpush.bf16.msrb.mxu3 %v4369_v4 }
 0x69f   :  { %v503_v12 = vpop.f32.mrf.mxu2  ;;  %v559_v28 = vpop.f32.mrf.mxu3 }
 0x6a0   :  { %v510_v13 = vadd.f32 %v3676_v11, %v503_v12  ;;  %v560_v35 = vadd.f32 %v4399_v23, %v559_v28 }
 0x6a2   :  { %v3439_v14 = vmul.f32 -1.442695, %v510_v13 }
 0x6a4   :  { %4049 = vpow2.f32 %v3439_v14  ;;  %v3848_v14 = vld [vmem:[%s5425_s0 + $0x20] sm:$0xff]  }
 0x6a7   :  { %v505_v16 = vpop.f32.mrf.mxu2  ;;  %v561_v43 = vpop.f32.mrf.mxu3 }
 0x6a8   :  { %v511_v17 = vadd.f32 %v3677_v15, %v505_v16  ;;  %v562_v47 = vadd.f32 %v4399_v23, %v561_v43 }
 0x6aa   :  { %v4050_v18 = vpop.eup %4049  ;;  %v3440_v19 = vmul.f32 -1.442695, %v511_v17 }
 0x6ab   :  { %v518_v20 = vadd.f32 1.0, %v4050_v18 }
 0x6ac   :  { %4051 = vpow2.f32 %v3440_v19  ;;  %v3685_v19 = vunpack.c.h.bf16 %v3848_v14 }
 0x6ad   :  { %4053 = vrcp.f32 %v518_v20  ;;  %v531_v27 = vand.u32 2147483648, %v518_v20  ;;  %v529_v30 = vand.u32 2147483647, %v518_v20  ;;  %vm525_vm11 = vweird.f32 %v518_v20 }
 0x6af   :  { %v532_v33 = vor.u32 1.1754944e-38, %v531_v27  ;;  %vm530_vm13 = vcmp.eq.f32.partialorder %v529_v30, 8.507059e+37 }
 0x6b2   :  { %v4052_v21 = vpop.eup %4051 }
 0x6b3   :  { %v4054_v22 = vpop.eup %4053  ;;  %v519_v24 = vadd.f32 1.0, %v4052_v21 }
 0x6b4   :  { %v521_v25 = vmul.f32 %v4054_v22, %v518_v20  ;;  %vm526_vm10 = vweird.f32 %v4054_v22 }
 0x6b5   :  { %4055 = vrcp.f32 %v519_v24  ;;  %vm527_vm12 = vmor %vm525_vm11, %vm526_vm10  ;;  %v546_v40 = vand.u32 2147483648, %v519_v24  ;;  %v544_v42 = vand.u32 2147483647, %v519_v24  ;;  %vm540_vm15 = vweird.f32 %v519_v24 }
 0x6b6   :  { %v522_v26 = vsub.f32 1.0, %v521_v25 }
 0x6b7   :  { %v547_v45 = vor.u32 1.1754944e-38, %v546_v40  ;;  %vm545_vm2 = vcmp.eq.f32.partialorder %v544_v42, 8.507059e+37 }
 0x6b8   :  { %v523_v29 = vmul.f32 %v4054_v22, %v522_v26 }
 0x6ba   :  { %v524_v31 = vadd.f32 %v4054_v22, %v523_v29 }
 0x6bb   :  { %v4056_v32 = vpop.eup %4055 }
 0x6bc   :  { %v528_v34 = vsel %vm527_vm12, %v4054_v22, %v524_v31  ;;  %v536_v36 = vmul.f32 %v4056_v32, %v519_v24  ;;  %vm541_vm14 = vweird.f32 %v4056_v32 }
 0x6bd   :  { %v533_v37 = vsel %vm530_vm13, %v532_v33, %v528_v34  ;;  %vm542_vm1 = vmor %vm540_vm15, %vm541_vm14 }
 0x6be   :  { %v564_v38 = vmul.f32 %v560_v35, %v533_v37  ;;  %v537_v39 = vsub.f32 1.0, %v536_v36  ;;  %v578_v57 = vsub.f32 1.0, %v533_v37  ;;  %v590_v61 = vmul.f32 %v533_v37, %v4455_v6 }
 0x6c0   :  { %v538_v41 = vmul.f32 %v4056_v32, %v537_v39  ;;  %568 = vrot.lane.b32.xlu2 %v564_v38, %s4315_s6 }
 0x6c2   :  { %v539_v44 = vadd.f32 %v4056_v32, %v538_v41 }
 0x6c4   :  { %v543_v46 = vsel %vm542_vm1, %v4056_v32, %v539_v44 }
 0x6c5   :  { %v548_v48 = vsel %vm545_vm2, %v547_v45, %v543_v46 }
 0x6c6   :  { %v565_v49 = vmul.f32 %v562_v47, %v548_v48  ;;  %v579_v59 = vsub.f32 1.0, %v548_v48  ;;  %v591_v8 = vmul.f32 %v548_v48, %v4457_v7 }
 0x6c8   :  { %570 = vrot.lane.b32.xlu0 %v565_v49, %s4315_s6 }
 0x71a   :  { %v569_v50 = vpop.permute.xlu2 %568 }
 0x71b   :  { %v574_v51 = vadd.f32 %v3676_v11, %v569_v50 }
 0x71d   :  { %4057 = vtanh.f32 %v574_v51 }
 0x723   :  { %v4058_v52 = vpop.eup %4057 }
 0x724   :  { %582 = vrot.lane.b32.xlu1 %v4058_v52, %s4316_s7 }
 0x73a   :  { %v571_v53 = vpop.permute.xlu0 %570 }
 0x73b   :  { %v575_v54 = vadd.f32 %v3677_v15, %v571_v53  ;;  %v3684_v15 = vunpack.c.l.bf16 %v3848_v14 }
 0x73d   :  { %4059 = vtanh.f32 %v575_v54 }
 0x743   :  { %v4060_v55 = vpop.eup %4059 }
 0x744   :  { %584 = vrot.lane.b32.xlu2 %v4060_v55, %s4316_s7 }
 0x796   :  { %v583_v56 = vpop.permute.xlu1 %582 }
 0x797   :  { %v588_v58 = vmul.f32 %v583_v56, %v578_v57 }
 0x799   :  { %v4479_v10 = vadd.f32 %v590_v61, %v588_v58 }
 0x79e   :  { %v585_v60 = vpop.permute.xlu2 %584 }
 0x79f   :  { %v589_v9 = vmul.f32 %v585_v60, %v579_v59 }
 0x7a1   :  { %v4481_v11 = vadd.f32 %v591_v8, %v589_v9 }
 0x7a3   :  { %v625_v12 = vpack.c.bf16 %v4481_v11, %v4479_v10 }
 0x7a5   :  { %627 = vrot.lane.b32.xlu0 %v625_v12, %s4316_s7 }
 0x817   :  { %v628_v13 = vpop.permute.xlu0 %627 }
 0x818   :  { %3448 = vmatmul.msk.bf16.vlgmr.msra.gmra.mxu0 %vm25_vm0, %v628_v13  ;;  %3451 = vmatmul.msk.bf16.vlgmr.msra.gmra.mxu1 %vm25_vm0, %v628_v13 }
 0x819   :  { %1190 = vmatpush.bf16.msra.mxu0 %v4350_v0  ;;  %1246 = vmatpush.bf16.msra.mxu1 %v4356_v2 }
 0x81d   :  { %1191 = vmatpush.bf16.msra.mxu0 %v4363_v3  ;;  %1247 = vmatpush.bf16.msra.mxu1 %v4369_v4 }
 0x895   :  { %v641_v16 = vpop.f32.mrf.mxu0  ;;  %v697_v32 = vpop.f32.mrf.mxu1 }
 0x896   :  { %v648_v17 = vadd.f32 %v3684_v15, %v641_v16  ;;  %v698_v39 = vadd.f32 %v4399_v23, %v697_v32 }
 0x898   :  { %v3449_v18 = vmul.f32 -1.442695, %v648_v17 }
 0x89a   :  { %4061 = vpow2.f32 %v3449_v18 }
 0x89d   :  { %v643_v20 = vpop.f32.mrf.mxu0  ;;  %v699_v47 = vpop.f32.mrf.mxu1 }
 0x89e   :  { %v649_v21 = vadd.f32 %v3685_v19, %v643_v20  ;;  %v700_v51 = vadd.f32 %v4399_v23, %v699_v47  ;;  %v3850_v20 = vld [vmem:[%s5425_s0 + $0x28] sm:$0xff]  }
 0x8a0   :  { %v4062_v22 = vpop.eup %4061  ;;  %v3450_v24 = vmul.f32 -1.442695, %v649_v21  ;;  %v3692_v21 = vunpack.c.l.bf16 %v3850_v20 }
 0x8a1   :  { %v656_v25 = vadd.f32 1.0, %v4062_v22 }
 0x8a2   :  { %4063 = vpow2.f32 %v3450_v24 }
 0x8a3   :  { %4065 = vrcp.f32 %v656_v25  ;;  %v669_v31 = vand.u32 2147483648, %v656_v25  ;;  %v667_v34 = vand.u32 2147483647, %v656_v25  ;;  %vm663_vm4 = vweird.f32 %v656_v25 }
 0x8a5   :  { %v670_v37 = vor.u32 1.1754944e-38, %v669_v31  ;;  %vm668_vm6 = vcmp.eq.f32.partialorder %v667_v34, 8.507059e+37 }
 0x8a8   :  { %v4064_v26 = vpop.eup %4063 }
 0x8a9   :  { %v4066_v27 = vpop.eup %4065  ;;  %v657_v28 = vadd.f32 1.0, %v4064_v26  ;;  %v3693_v26 = vunpack.c.h.bf16 %v3850_v20 }
 0x8aa   :  { %v659_v29 = vmul.f32 %v4066_v27, %v656_v25  ;;  %vm664_vm3 = vweird.f32 %v4066_v27 }
 0x8ab   :  { %4067 = vrcp.f32 %v657_v28  ;;  %vm665_vm5 = vmor %vm663_vm4, %vm664_vm3  ;;  %v684_v44 = vand.u32 2147483648, %v657_v28  ;;  %v682_v46 = vand.u32 2147483647, %v657_v28  ;;  %vm678_vm8 = vweird.f32 %v657_v28 }
 0x8ac   :  { %v660_v30 = vsub.f32 1.0, %v659_v29 }
 0x8ad   :  { %v685_v49 = vor.u32 1.1754944e-38, %v684_v44  ;;  %vm683_vm10 = vcmp.eq.f32.partialorder %v682_v46, 8.507059e+37 }
 0x8ae   :  { %v661_v33 = vmul.f32 %v4066_v27, %v660_v30 }
 0x8b0   :  { %v662_v35 = vadd.f32 %v4066_v27, %v661_v33 }
 0x8b1   :  { %v4068_v36 = vpop.eup %4067 }
 0x8b2   :  { %v666_v38 = vsel %vm665_vm5, %v4066_v27, %v662_v35  ;;  %v674_v40 = vmul.f32 %v4068_v36, %v657_v28  ;;  %vm679_vm7 = vweird.f32 %v4068_v36 }
 0x8b3   :  { %v671_v41 = vsel %vm668_vm6, %v670_v37, %v666_v38  ;;  %vm680_vm9 = vmor %vm678_vm8, %vm679_vm7 }
 0x8b4   :  { %v702_v42 = vmul.f32 %v698_v39, %v671_v41  ;;  %v675_v43 = vsub.f32 1.0, %v674_v40  ;;  %v716_v9 = vsub.f32 1.0, %v671_v41  ;;  %v728_v14 = vmul.f32 %v671_v41, %v4479_v10 }
 0x8b6   :  { %v676_v45 = vmul.f32 %v4068_v36, %v675_v43  ;;  %706 = vrot.lane.b32.xlu1 %v702_v42, %s4315_s6 }
 0x8b8   :  { %v677_v48 = vadd.f32 %v4068_v36, %v676_v45 }
 0x8ba   :  { %v681_v50 = vsel %vm680_vm9, %v4068_v36, %v677_v48 }
 0x8bb   :  { %v686_v52 = vsel %vm683_vm10, %v685_v49, %v681_v50 }
 0x8bc   :  { %v703_v53 = vmul.f32 %v700_v51, %v686_v52  ;;  %v717_v61 = vsub.f32 1.0, %v686_v52  ;;  %v729_v13 = vmul.f32 %v686_v52, %v4481_v11 }
 0x8be   :  { %708 = vrot.lane.b32.xlu2 %v703_v53, %s4315_s6 }
 0x918   :  { %v709_v54 = vpop.permute.xlu2 %708 }
 0x919   :  { %v713_v55 = vadd.f32 %v3685_v19, %v709_v54 }
 0x91b   :  { %4069 = vtanh.f32 %v713_v55 }
 0x921   :  { %v4070_v56 = vpop.eup %4069 }
 0x922   :  { %722 = vrot.lane.b32.xlu1 %v4070_v56, %s4316_s7 }
 0x928   :  { %v707_v57 = vpop.permute.xlu1 %706 }
 0x929   :  { %v712_v58 = vadd.f32 %v3684_v15, %v707_v57 }
 0x92b   :  { %4071 = vtanh.f32 %v712_v58 }
 0x931   :  { %v4072_v59 = vpop.eup %4071 }
 0x932   :  { %720 = vrot.lane.b32.xlu0 %v4072_v59, %s4316_s7 }
 0x994   :  { %v723_v60 = vpop.permute.xlu1 %722 }
 0x995   :  { %v727_v8 = vmul.f32 %v723_v60, %v717_v61 }
 0x997   :  { %v4503_v17 = vadd.f32 %v729_v13, %v727_v8 }
 0x9a4   :  { %v721_v12 = vpop.permute.xlu0 %720 }
 0x9a5   :  { %v726_v16 = vmul.f32 %v721_v12, %v716_v9 }
 0x9a7   :  { %v4505_v18 = vadd.f32 %v728_v14, %v726_v16 }
 0x9a9   :  { %v763_v15 = vpack.c.bf16 %v4503_v17, %v4505_v18 }
 0x9ab   :  { %765 = vrot.lane.b32.xlu2 %v763_v15, %s4316_s7 }
 0xa05   :  { %v766_v19 = vpop.permute.xlu2 %765 }
 0xa06   :  { %3458 = vmatmul.msk.bf16.vlgmr.msra.gmra.mxu2 %vm25_vm0, %v766_v19  ;;  %3461 = vmatmul.msk.bf16.vlgmr.msra.gmra.mxu3 %vm25_vm0, %v766_v19 }
 0xa07   :  { %1328 = vmatpush.bf16.msra.mxu2 %v4350_v0  ;;  %1384 = vmatpush.bf16.msra.mxu3 %v4356_v2 }
 0xa0b   :  { %1329 = vmatpush.bf16.msra.mxu2 %v4363_v3  ;;  %1385 = vmatpush.bf16.msra.mxu3 %v4369_v4 }
 0xa89   :  { %v779_v22 = vpop.f32.mrf.mxu2  ;;  %v835_v34 = vpop.f32.mrf.mxu3 }
 0xa8a   :  { %v786_v24 = vadd.f32 %v3692_v21, %v779_v22  ;;  %v836_v41 = vadd.f32 %v4399_v23, %v835_v34 }
 0xa8c   :  { %v3459_v25 = vmul.f32 -1.442695, %v786_v24 }
 0xa8e   :  { %4073 = vpow2.f32 %v3459_v25  ;;  %v4539_v25 = vld [vmem:[%s5422_s2 + $0x8] sm:$0xff] }
 0xa91   :  { %v781_v27 = vpop.f32.mrf.mxu2  ;;  %v837_v49 = vpop.f32.mrf.mxu3 }
 0xa92   :  { %v787_v28 = vadd.f32 %v3693_v26, %v781_v27  ;;  %v838_v53 = vadd.f32 %v4399_v23, %v837_v49  ;;  %v4551_v27 = vld [vmem:[%s5422_s2] sm:$0xff] }
 0xa94   :  { %v4074_v29 = vpop.eup %4073  ;;  %v3460_v0 = vmul.f32 -1.442695, %v787_v28  ;;  %v4557_v28 = vld [vmem:[%s5423_s3] sm:$0xff] }
 0xa95   :  { %v794_v30 = vadd.f32 1.0, %v4074_v29  ;;  %v3852_v29 = vld [vmem:[%s5425_s0 + $0x30] sm:$0xff]  }
 0xa96   :  { %4075 = vpow2.f32 %v3460_v0  ;;  %v3700_v0 = vunpack.c.l.bf16 %v3852_v29 }
 0xa97   :  { %4077 = vrcp.f32 %v794_v30  ;;  %v807_v33 = vand.u32 2147483648, %v794_v30  ;;  %v805_v36 = vand.u32 2147483647, %v794_v30  ;;  %vm801_vm12 = vweird.f32 %v794_v30 }
 0xa99   :  { %v808_v39 = vor.u32 1.1754944e-38, %v807_v33  ;;  %vm806_vm14 = vcmp.eq.f32.partialorder %v805_v36, 8.507059e+37 }
 0xa9c   :  { %v4076_v2 = vpop.eup %4075 }
 0xa9d   :  { %v4078_v3 = vpop.eup %4077  ;;  %v795_v4 = vadd.f32 1.0, %v4076_v2 }
 0xa9e   :  { %v797_v31 = vmul.f32 %v4078_v3, %v794_v30  ;;  %vm802_vm11 = vweird.f32 %v4078_v3 }
 0xa9f   :  { %4079 = vrcp.f32 %v795_v4  ;;  %vm803_vm13 = vmor %vm801_vm12, %vm802_vm11  ;;  %v822_v46 = vand.u32 2147483648, %v795_v4  ;;  %v820_v48 = vand.u32 2147483647, %v795_v4  ;;  %vm816_vm1 = vweird.f32 %v795_v4 }
 0xaa0   :  { %v798_v32 = vsub.f32 1.0, %v797_v31 }
 0xaa1   :  { %v823_v51 = vor.u32 1.1754944e-38, %v822_v46  ;;  %vm821_vm3 = vcmp.eq.f32.partialorder %v820_v48, 8.507059e+37 }
 0xaa2   :  { %v799_v35 = vmul.f32 %v4078_v3, %v798_v32 }
 0xaa4   :  { %v800_v37 = vadd.f32 %v4078_v3, %v799_v35 }
 0xaa5   :  { %v4080_v38 = vpop.eup %4079 }
 0xaa6   :  { %v804_v40 = vsel %vm803_vm13, %v4078_v3, %v800_v37  ;;  %v812_v42 = vmul.f32 %v4080_v38, %v795_v4  ;;  %vm817_vm15 = vweird.f32 %v4080_v38  ;;  %v3701_v4 = vunpack.c.h.bf16 %v3852_v29 }
 0xaa7   :  { %v809_v43 = vsel %vm806_vm14, %v808_v39, %v804_v40  ;;  %vm818_vm2 = vmor %vm816_vm1, %vm817_vm15 }
 0xaa8   :  { %v840_v44 = vmul.f32 %v836_v41, %v809_v43  ;;  %v813_v45 = vsub.f32 1.0, %v812_v42  ;;  %v854_v9 = vsub.f32 1.0, %v809_v43  ;;  %v866_v16 = vmul.f32 %v809_v43, %v4505_v18 }
 0xaaa   :  { %v814_v47 = vmul.f32 %v4080_v38, %v813_v45  ;;  %844 = vrot.lane.b32.xlu0 %v840_v44, %s4315_s6 }
 0xaac   :  { %v815_v50 = vadd.f32 %v4080_v38, %v814_v47 }
 0xaae   :  { %v819_v52 = vsel %vm818_vm2, %v4080_v38, %v815_v50 }
 0xaaf   :  { %v824_v54 = vsel %vm821_vm3, %v823_v51, %v819_v52 }
 0xab0   :  { %v841_v55 = vmul.f32 %v838_v53, %v824_v54  ;;  %v855_v13 = vsub.f32 1.0, %v824_v54  ;;  %v867_v15 = vmul.f32 %v824_v54, %v4503_v17 }
 0xab2   :  { %846 = vrot.lane.b32.xlu1 %v841_v55, %s4315_s6 }
 0xb1c   :  { %v845_v56 = vpop.permute.xlu0 %844 }
 0xb1d   :  { %v850_v57 = vadd.f32 %v3692_v21, %v845_v56 }
 0xb1f   :  { %4081 = vtanh.f32 %v850_v57 }
 0xb24   :  { %v847_v58 = vpop.permute.xlu1 %846 }
 0xb25   :  { %v4082_v59 = vpop.eup %4081  ;;  %v851_v60 = vadd.f32 %v3693_v26, %v847_v58  ;;  %v4545_v26 = vld [vmem:[%s5423_s3 + $0x8] sm:$0xff] }
 0xb26   :  { %858 = vrot.lane.b32.xlu2 %v4082_v59, %s4316_s7 }
 0xb27   :  { %4083 = vtanh.f32 %v851_v60 }
 0xb2d   :  { %v4084_v61 = vpop.eup %4083 }
 0xb2e   :  { %860 = vrot.lane.b32.xlu0 %v4084_v61, %s4316_s7 }
 0xb80   :  { %v859_v8 = vpop.permute.xlu2 %858 }
 0xb81   :  { %v864_v12 = vmul.f32 %v859_v8, %v854_v9 }
 0xb83   :  { %v4527_v20 = vadd.f32 %v866_v16, %v864_v12 }
 0xba0   :  { %v861_v14 = vpop.permute.xlu0 %860 }
 0xba1   :  { %v865_v19 = vmul.f32 %v861_v14, %v855_v13 }
 0xba3   :  { %v4529_v21 = vadd.f32 %v867_v15, %v865_v19 }
 0xba5   :  { %v901_v22 = vpack.c.bf16 %v4529_v21, %v4527_v20 }
 0xba7   :  { %903 = vrot.lane.b32.xlu1 %v901_v22, %s4316_s7 }
 0xc19   :  { %v904_v24 = vpop.permute.xlu1 %903 }
 0xc1a   :  { %3468 = vmatmul.msk.bf16.vlgmr.msrb.gmra.mxu0 %vm25_vm0, %v904_v24  ;;  %3471 = vmatmul.msk.bf16.vlgmr.msrb.gmra.mxu1 %vm25_vm0, %v904_v24 }
 0xc1b   :  { %1466 = vmatpush.bf16.msrb.mxu0 %v4539_v25  ;;  %1522 = vmatpush.bf16.msrb.mxu1 %v4545_v26 }
 0xc1f   :  { %1467 = vmatpush.bf16.msrb.mxu0 %v4551_v27  ;;  %1523 = vmatpush.bf16.msrb.mxu1 %v4557_v28 }
 0xc97   :  { %v917_v30 = vpop.f32.mrf.mxu0  ;;  %v973_v42 = vpop.f32.mrf.mxu1 }
 0xc98   :  { %v924_v2 = vadd.f32 %v3700_v0, %v917_v30  ;;  %v974_v49 = vadd.f32 %v4399_v23, %v973_v42  ;;  %v4568_v23 = vld [vmem:[%s5424_s4] ss:$0 sm:$0xff] }
 0xc9a   :  { %v3469_v3 = vmul.f32 -1.442695, %v924_v2 }
 0xc9c   :  { %4085 = vpow2.f32 %v3469_v3 }
 0xc9f   :  { %v919_v31 = vpop.f32.mrf.mxu0  ;;  %v975_v57 = vpop.f32.mrf.mxu1 }
 0xca0   :  { %v925_v32 = vadd.f32 %v3701_v4, %v919_v31  ;;  %v976_v61 = vadd.f32 %v4568_v23, %v975_v57 }
 0xca2   :  { %v4086_v33 = vpop.eup %4085  ;;  %v3470_v34 = vmul.f32 -1.442695, %v925_v32 }
 0xca3   :  { %v932_v35 = vadd.f32 1.0, %v4086_v33 }
 0xca4   :  { %4087 = vpow2.f32 %v3470_v34 }
 0xca5   :  { %4089 = vrcp.f32 %v932_v35  ;;  %v945_v41 = vand.u32 2147483648, %v932_v35  ;;  %v943_v44 = vand.u32 2147483647, %v932_v35  ;;  %vm939_vm5 = vweird.f32 %v932_v35 }
 0xca7   :  { %v946_v47 = vor.u32 1.1754944e-38, %v945_v41  ;;  %vm944_vm7 = vcmp.eq.f32.partialorder %v943_v44, 8.507059e+37 }
 0xcaa   :  { %v4088_v36 = vpop.eup %4087 }
 0xcab   :  { %v4090_v37 = vpop.eup %4089  ;;  %v933_v38 = vadd.f32 1.0, %v4088_v36 }
 0xcac   :  { %v935_v39 = vmul.f32 %v4090_v37, %v932_v35  ;;  %vm940_vm4 = vweird.f32 %v4090_v37  ;;  %v3854_v35 = vld [vmem:[%s5425_s0 + $0x38] sm:$0xff]  }
 0xcad   :  { %4091 = vrcp.f32 %v933_v38  ;;  %vm941_vm6 = vmor %vm939_vm5, %vm940_vm4  ;;  %v960_v54 = vand.u32 2147483648, %v933_v38  ;;  %v958_v56 = vand.u32 2147483647, %v933_v38  ;;  %vm954_vm9 = vweird.f32 %v933_v38 }
 0xcae   :  { %v936_v40 = vsub.f32 1.0, %v935_v39  ;;  %v3708_v36 = vunpack.c.l.bf16 %v3854_v35 }
 0xcaf   :  { %v961_v59 = vor.u32 1.1754944e-38, %v960_v54  ;;  %vm959_vm11 = vcmp.eq.f32.partialorder %v958_v56, 8.507059e+37 }
 0xcb0   :  { %v937_v43 = vmul.f32 %v4090_v37, %v936_v40  ;;  %v3709_v40 = vunpack.c.h.bf16 %v3854_v35 }
 0xcb2   :  { %v938_v45 = vadd.f32 %v4090_v37, %v937_v43 }
 0xcb3   :  { %v4092_v46 = vpop.eup %4091 }
 0xcb4   :  { %v942_v48 = vsel %vm941_vm6, %v4090_v37, %v938_v45  ;;  %v950_v50 = vmul.f32 %v4092_v46, %v933_v38  ;;  %vm955_vm8 = vweird.f32 %v4092_v46 }
 0xcb5   :  { %v947_v51 = vsel %vm944_vm7, %v946_v47, %v942_v48  ;;  %vm956_vm10 = vmor %vm954_vm9, %vm955_vm8 }
 0xcb6   :  { %v978_v52 = vmul.f32 %v974_v49, %v947_v51  ;;  %v951_v53 = vsub.f32 1.0, %v950_v50  ;;  %v992_v24 = vsub.f32 1.0, %v947_v51  ;;  %v1004_v3 = vmul.f32 %v947_v51, %v4527_v20 }
 0xcb8   :  { %v952_v55 = vmul.f32 %v4092_v46, %v951_v53  ;;  %982 = vrot.lane.b32.xlu2 %v978_v52, %s4315_s6 }
 0xcba   :  { %v953_v58 = vadd.f32 %v4092_v46, %v952_v55 }
 0xcbc   :  { %v957_v60 = vsel %vm956_vm10, %v4092_v46, %v953_v58 }
 0xcbd   :  { %v962_v8 = vsel %vm959_vm11, %v961_v59, %v957_v60 }
 0xcbe   :  { %v979_v9 = vmul.f32 %v976_v61, %v962_v8  ;;  %v993_v30 = vsub.f32 1.0, %v962_v8  ;;  %v1005_v31 = vmul.f32 %v962_v8, %v4529_v21 }
 0xcc0   :  { %984 = vrot.lane.b32.xlu0 %v979_v9, %s4315_s6 }
 0xd12   :  { %v983_v12 = vpop.permute.xlu2 %982 }
 0xd13   :  { %v988_v13 = vadd.f32 %v3700_v0, %v983_v12 }
 0xd15   :  { %4093 = vtanh.f32 %v988_v13 }
 0xd1b   :  { %v4094_v14 = vpop.eup %4093 }
 0xd1c   :  { %996 = vrot.lane.b32.xlu1 %v4094_v14, %s4316_s7 }
 0xd32   :  { %v985_v16 = vpop.permute.xlu0 %984 }
 0xd33   :  { %v989_v15 = vadd.f32 %v3701_v4, %v985_v16 }
 0xd35   :  { %4095 = vtanh.f32 %v989_v15 }
 0xd3b   :  { %v4096_v19 = vpop.eup %4095 }
 0xd3c   :  { %998 = vrot.lane.b32.xlu2 %v4096_v19, %s4316_s7 }
 0xd8e   :  { %v997_v22 = vpop.permute.xlu1 %996 }
 0xd8f   :  { %v1002_v29 = vmul.f32 %v997_v22, %v992_v24 }
 0xd91   :  { %v4576_v32 = vadd.f32 %v1004_v3, %v1002_v29 }
 0xd96   :  { %v999_v2 = vpop.permute.xlu2 %998 }
 0xd97   :  { %v1003_v0 = vmul.f32 %v999_v2, %v993_v30 }
 0xd99   :  { %v4578_v33 = vadd.f32 %v1005_v31, %v1003_v0 }
 0xd9b   :  { %v1039_v4 = vpack.c.bf16 %v4578_v33, %v4576_v32 }
 0xd9d   :  { %1041 = vrot.lane.b32.xlu0 %v1039_v4, %s4316_s7 }
 0xe0f   :  { %v1042_v34 = vpop.permute.xlu0 %1041 }
 0xe10   :  { %3478 = vmatmul.msk.bf16.vlgmr.msrb.gmra.mxu2 %vm25_vm0, %v1042_v34  ;;  %3481 = vmatmul.msk.bf16.vlgmr.msrb.gmra.mxu3 %vm25_vm0, %v1042_v34 }
 0xe11   :  { %1604 = vmatpush.bf16.msrb.mxu2 %v4539_v25  ;;  %1660 = vmatpush.bf16.msrb.mxu3 %v4545_v26 }
 0xe15   :  { %1605 = vmatpush.bf16.msrb.mxu2 %v4551_v27  ;;  %1661 = vmatpush.bf16.msrb.mxu3 %v4557_v28 }
 0xe93   :  { %v1055_v37 = vpop.f32.mrf.mxu2  ;;  %v1111_v52 = vpop.f32.mrf.mxu3 }
 0xe94   :  { %v1062_v38 = vadd.f32 %v3708_v36, %v1055_v37  ;;  %v1112_v59 = vadd.f32 %v4568_v23, %v1111_v52 }
 0xe96   :  { %v3479_v39 = vmul.f32 -1.442695, %v1062_v38 }
 0xe98   :  { %4097 = vpow2.f32 %v3479_v39 }
 0xe9b   :  { %v1057_v41 = vpop.f32.mrf.mxu2  ;;  %v1113_v16 = vpop.f32.mrf.mxu3 }
 0xe9c   :  { %v1063_v42 = vadd.f32 %v3709_v40, %v1057_v41  ;;  %v1114_v24 = vadd.f32 %v4568_v23, %v1113_v16 }
 0xe9e   :  { %v4098_v43 = vpop.eup %4097  ;;  %v3480_v44 = vmul.f32 -1.442695, %v1063_v42 }
 0xe9f   :  { %v1070_v45 = vadd.f32 1.0, %v4098_v43 }
 0xea0   :  { %4099 = vpow2.f32 %v3480_v44 }
 0xea1   :  { %4101 = vrcp.f32 %v1070_v45  ;;  %v1083_v51 = vand.u32 2147483648, %v1070_v45  ;;  %v1081_v54 = vand.u32 2147483647, %v1070_v45  ;;  %vm1077_vm13 = vweird.f32 %v1070_v45 }
 0xea3   :  { %v1084_v57 = vor.u32 1.1754944e-38, %v1083_v51  ;;  %vm1082_vm15 = vcmp.eq.f32.partialorder %v1081_v54, 8.507059e+37 }
 0xea6   :  { %v4100_v46 = vpop.eup %4099 }
 0xea7   :  { %v4102_v47 = vpop.eup %4101  ;;  %v1071_v48 = vadd.f32 1.0, %v4100_v46 }
 0xea8   :  { %v1073_v49 = vmul.f32 %v4102_v47, %v1070_v45  ;;  %vm1078_vm12 = vweird.f32 %v4102_v47 }
 0xea9   :  { %4103 = vrcp.f32 %v1071_v48  ;;  %vm1079_vm14 = vmor %vm1077_vm13, %vm1078_vm12  ;;  %v1098_v12 = vand.u32 2147483648, %v1071_v48  ;;  %v1096_v14 = vand.u32 2147483647, %v1071_v48  ;;  %vm1092_vm2 = vweird.f32 %v1071_v48 }
 0xeaa   :  { %v1074_v50 = vsub.f32 1.0, %v1073_v49 }
 0xeab   :  { %v1099_v19 = vor.u32 1.1754944e-38, %v1098_v12  ;;  %vm1097_vm4 = vcmp.eq.f32.partialorder %v1096_v14, 8.507059e+37 }
 0xeac   :  { %v1075_v53 = vmul.f32 %v4102_v47, %v1074_v50 }
 0xeae   :  { %v1076_v55 = vadd.f32 %v4102_v47, %v1075_v53 }
 0xeaf   :  { %v4104_v56 = vpop.eup %4103 }
 0xeb0   :  { %v1080_v58 = vsel %vm1079_vm14, %v4102_v47, %v1076_v55  ;;  %v1088_v60 = vmul.f32 %v4104_v56, %v1071_v48  ;;  %vm1093_vm1 = vweird.f32 %v4104_v56  ;;  %v3856_v47 = vld [vmem:[%s5425_s0 + $0x40] sm:$0xff]  }
 0xeb1   :  { %v1085_v61 = vsel %vm1082_vm15, %v1084_v57, %v1080_v58  ;;  %vm1094_vm3 = vmor %vm1092_vm2, %vm1093_vm1  ;;  %v3716_v48 = vunpack.c.l.bf16 %v3856_v47  ;;  %v3717_v52 = vunpack.c.h.bf16 %v3856_v47 }
 0xeb2   :  { %v1116_v8 = vmul.f32 %v1112_v59, %v1085_v61  ;;  %v1089_v9 = vsub.f32 1.0, %v1088_v60  ;;  %v1130_v39 = vsub.f32 1.0, %v1085_v61  ;;  %v1142_v43 = vmul.f32 %v1085_v61, %v4576_v32 }
 0xeb4   :  { %v1090_v13 = vmul.f32 %v4104_v56, %v1089_v9  ;;  %1120 = vrot.lane.b32.xlu1 %v1116_v8, %s4315_s6 }
 0xeb6   :  { %v1091_v15 = vadd.f32 %v4104_v56, %v1090_v13 }
 0xeb8   :  { %v1095_v22 = vsel %vm1094_vm3, %v4104_v56, %v1091_v15 }
 0xeb9   :  { %v1100_v29 = vsel %vm1097_vm4, %v1099_v19, %v1095_v22 }
 0xeba   :  { %v1117_v30 = vmul.f32 %v1114_v24, %v1100_v29  ;;  %v1131_v37 = vsub.f32 1.0, %v1100_v29  ;;  %v1143_v42 = vmul.f32 %v1100_v29, %v4578_v33 }
 0xebc   :  { %1122 = vrot.lane.b32.xlu2 %v1117_v30, %s4315_s6 }
 0xf16   :  { %v1123_v2 = vpop.permute.xlu2 %1122 }
 0xf17   :  { %v1127_v3 = vadd.f32 %v3709_v40, %v1123_v2 }
 0xf19   :  { %4105 = vtanh.f32 %v1127_v3 }
 0xf1f   :  { %v4106_v31 = vpop.eup %4105 }
 0xf20   :  { %1136 = vrot.lane.b32.xlu1 %v4106_v31, %s4316_s7 }
 0xf26   :  { %v1121_v0 = vpop.permute.xlu1 %1120 }
 0xf27   :  { %v1126_v4 = vadd.f32 %v3708_v36, %v1121_v0 }
 0xf29   :  { %4107 = vtanh.f32 %v1126_v4 }
 0xf2f   :  { %v4108_v34 = vpop.eup %4107 }
 0xf30   :  { %1134 = vrot.lane.b32.xlu0 %v4108_v34, %s4316_s7 }
 0xf92   :  { %v1137_v35 = vpop.permute.xlu1 %1136 }
 0xf93   :  { %v1141_v38 = vmul.f32 %v1137_v35, %v1131_v37 }
 0xf95   :  { %v4600_v44 = vadd.f32 %v1143_v42, %v1141_v38 }
 0xfa2   :  { %v1135_v41 = vpop.permute.xlu0 %1134 }
 0xfa3   :  { %v1140_v40 = vmul.f32 %v1135_v41, %v1130_v39 }
 0xfa5   :  { %v4602_v45 = vadd.f32 %v1142_v43, %v1140_v40 }
 0xfa7   :  { %v1177_v36 = vpack.c.bf16 %v4600_v44, %v4602_v45 }
 0xfa9   :  { %1179 = vrot.lane.b32.xlu2 %v1177_v36, %s4316_s7 }
0x1003   :  { %v1180_v46 = vpop.permute.xlu2 %1179 }
0x1004   :  { %3488 = vmatmul.msk.bf16.vlgmr.msra.gmra.mxu0 %vm25_vm0, %v1180_v46  ;;  %3491 = vmatmul.msk.bf16.vlgmr.msra.gmra.mxu1 %vm25_vm0, %v1180_v46 }
0x1005   :  { %1742 = vmatpush.bf16.msra.mxu0 %v4539_v25  ;;  %1798 = vmatpush.bf16.msra.mxu1 %v4545_v26 }
0x1009   :  { %1743 = vmatpush.bf16.msra.mxu0 %v4551_v27  ;;  %1799 = vmatpush.bf16.msra.mxu1 %v4557_v28 }
0x1081   :  { %v1193_v49 = vpop.f32.mrf.mxu0  ;;  %v1249_v12 = vpop.f32.mrf.mxu1 }
0x1082   :  { %v1200_v50 = vadd.f32 %v3716_v48, %v1193_v49  ;;  %v1250_v24 = vadd.f32 %v4568_v23, %v1249_v12 }
0x1084   :  { %v3489_v51 = vmul.f32 -1.442695, %v1200_v50 }
0x1086   :  { %4109 = vpow2.f32 %v3489_v51 }
0x1089   :  { %v1195_v53 = vpop.f32.mrf.mxu0  ;;  %v1251_v34 = vpop.f32.mrf.mxu1 }
0x108a   :  { %v1201_v54 = vadd.f32 %v3717_v52, %v1195_v53  ;;  %v1252_v39 = vadd.f32 %v4568_v23, %v1251_v34 }
0x108c   :  { %v4110_v55 = vpop.eup %4109  ;;  %v3490_v56 = vmul.f32 -1.442695, %v1201_v54 }
0x108d   :  { %v1208_v57 = vadd.f32 1.0, %v4110_v55 }
0x108e   :  { %4111 = vpow2.f32 %v3490_v56 }
0x108f   :  { %4113 = vrcp.f32 %v1208_v57  ;;  %v1221_v9 = vand.u32 2147483648, %v1208_v57  ;;  %v1219_v14 = vand.u32 2147483647, %v1208_v57  ;;  %vm1215_vm6 = vweird.f32 %v1208_v57 }
0x1091   :  { %v1222_v19 = vor.u32 1.1754944e-38, %v1221_v9  ;;  %vm1220_vm8 = vcmp.eq.f32.partialorder %v1219_v14, 8.507059e+37 }
0x1094   :  { %v4112_v58 = vpop.eup %4111 }
0x1095   :  { %v4114_v59 = vpop.eup %4113  ;;  %v1209_v60 = vadd.f32 1.0, %v4112_v58 }
0x1096   :  { %v1211_v61 = vmul.f32 %v4114_v59, %v1208_v57  ;;  %vm1216_vm5 = vweird.f32 %v4114_v59 }
0x1097   :  { %4115 = vrcp.f32 %v1209_v60  ;;  %vm1217_vm7 = vmor %vm1215_vm6, %vm1216_vm5  ;;  %v1236_v31 = vand.u32 2147483648, %v1209_v60  ;;  %v1234_v4 = vand.u32 2147483647, %v1209_v60  ;;  %vm1230_vm10 = vweird.f32 %v1209_v60 }
0x1098   :  { %v1212_v8 = vsub.f32 1.0, %v1211_v61  ;;  %v3858_v61 = vld [vmem:[%s5425_s0 + $0x48] sm:$0xff]  }
0x1099   :  { %v1237_v37 = vor.u32 1.1754944e-38, %v1236_v31  ;;  %vm1235_vm12 = vcmp.eq.f32.partialorder %v1234_v4, 8.507059e+37  ;;  %v3725_v14 = vunpack.c.h.bf16 %v3858_v61 }
0x109a   :  { %v1213_v13 = vmul.f32 %v4114_v59, %v1212_v8  ;;  %v3724_v8 = vunpack.c.l.bf16 %v3858_v61 }
0x109c   :  { %v1214_v16 = vadd.f32 %v4114_v59, %v1213_v13 }
0x109d   :  { %v4116_v15 = vpop.eup %4115 }
0x109e   :  { %v1218_v22 = vsel %vm1217_vm7, %v4114_v59, %v1214_v16  ;;  %v1226_v29 = vmul.f32 %v4116_v15, %v1209_v60  ;;  %vm1231_vm9 = vweird.f32 %v4116_v15 }
0x109f   :  { %v1223_v30 = vsel %vm1220_vm8, %v1222_v19, %v1218_v22  ;;  %vm1232_vm11 = vmor %vm1230_vm10, %vm1231_vm9 }
0x10a0   :  { %v1254_v2 = vmul.f32 %v1250_v24, %v1223_v30  ;;  %v1227_v3 = vsub.f32 1.0, %v1226_v29  ;;  %v1268_v51 = vsub.f32 1.0, %v1223_v30  ;;  %v1280_v56 = vmul.f32 %v1223_v30, %v4602_v45 }
0x10a2   :  { %v1228_v0 = vmul.f32 %v4116_v15, %v1227_v3  ;;  %1258 = vrot.lane.b32.xlu0 %v1254_v2, %s4315_s6 }
0x10a4   :  { %v1229_v35 = vadd.f32 %v4116_v15, %v1228_v0 }
0x10a6   :  { %v1233_v38 = vsel %vm1232_vm11, %v4116_v15, %v1229_v35 }
0x10a7   :  { %v1238_v41 = vsel %vm1235_vm12, %v1237_v37, %v1233_v38 }
0x10a8   :  { %v1255_v42 = vmul.f32 %v1252_v39, %v1238_v41  ;;  %v1269_v54 = vsub.f32 1.0, %v1238_v41  ;;  %v1281_v57 = vmul.f32 %v1238_v41, %v4600_v44 }
0x10aa   :  { %1260 = vrot.lane.b32.xlu1 %v1255_v42, %s4315_s6 }
0x1114   :  { %v1259_v43 = vpop.permute.xlu0 %1258 }
0x1115   :  { %v1264_v40 = vadd.f32 %v3716_v48, %v1259_v43 }
0x1117   :  { %4117 = vtanh.f32 %v1264_v40 }
0x111c   :  { %v1261_v36 = vpop.permute.xlu1 %1260 }
0x111d   :  { %v4118_v46 = vpop.eup %4117  ;;  %v1265_v47 = vadd.f32 %v3717_v52, %v1261_v36 }
0x111e   :  { %1272 = vrot.lane.b32.xlu2 %v4118_v46, %s4316_s7 }
0x111f   :  { %4119 = vtanh.f32 %v1265_v47 }
0x1125   :  { %v4120_v49 = vpop.eup %4119 }
0x1126   :  { %1274 = vrot.lane.b32.xlu0 %v4120_v49, %s4316_s7 }
0x1178   :  { %v1273_v50 = vpop.permute.xlu2 %1272 }
0x1179   :  { %v1278_v53 = vmul.f32 %v1273_v50, %v1268_v51 }
0x117b   :  { %v4624_v58 = vadd.f32 %v1280_v56, %v1278_v53 }
0x1198   :  { %v1275_v55 = vpop.permute.xlu0 %1274 }
0x1199   :  { %v1279_v48 = vmul.f32 %v1275_v55, %v1269_v54 }
0x119b   :  { %v4626_v59 = vadd.f32 %v1281_v57, %v1279_v48 }
0x119d   :  { %v1315_v52 = vpack.c.bf16 %v4626_v59, %v4624_v58 }
0x119f   :  { %1317 = vrot.lane.b32.xlu1 %v1315_v52, %s4316_s7 }
0x1211   :  { %v1318_v60 = vpop.permute.xlu1 %1317 }
0x1212   :  { %3498 = vmatmul.msk.bf16.vlgmr.msra.gmra.mxu2 %vm25_vm0, %v1318_v60  ;;  %3501 = vmatmul.msk.bf16.vlgmr.msra.gmra.mxu3 %vm25_vm0, %v1318_v60 }
0x1213   :  { %1880 = vmatpush.bf16.msra.mxu2 %v4539_v25  ;;  %1936 = vmatpush.bf16.msra.mxu3 %v4545_v26 }
0x1217   :  { %1881 = vmatpush.bf16.msra.mxu2 %v4551_v27  ;;  %1937 = vmatpush.bf16.msra.mxu3 %v4557_v28 }
0x1295   :  { %v1331_v9 = vpop.f32.mrf.mxu2  ;;  %v1387_v4 = vpop.f32.mrf.mxu3 }
0x1296   :  { %v1338_v12 = vadd.f32 %v3724_v8, %v1331_v9  ;;  %v1388_v42 = vadd.f32 %v4568_v23, %v1387_v4 }
0x1298   :  { %v3499_v13 = vmul.f32 -1.442695, %v1338_v12 }
0x129a   :  { %4121 = vpow2.f32 %v3499_v13 }
0x129d   :  { %v1333_v16 = vpop.f32.mrf.mxu2  ;;  %v1389_v51 = vpop.f32.mrf.mxu3 }
0x129e   :  { %v1339_v15 = vadd.f32 %v3725_v14, %v1333_v16  ;;  %v1390_v56 = vadd.f32 %v4568_v23, %v1389_v51 }
0x12a0   :  { %v4122_v19 = vpop.eup %4121  ;;  %v3500_v22 = vmul.f32 -1.442695, %v1339_v15 }
0x12a1   :  { %v1346_v24 = vadd.f32 1.0, %v4122_v19 }
0x12a2   :  { %4123 = vpow2.f32 %v3500_v22 }
0x12a3   :  { %4125 = vrcp.f32 %v1346_v24  ;;  %v1359_v0 = vand.u32 2147483648, %v1346_v24  ;;  %v1357_v35 = vand.u32 2147483647, %v1346_v24  ;;  %vm1353_vm14 = vweird.f32 %v1346_v24 }
0x12a5   :  { %v1360_v39 = vor.u32 1.1754944e-38, %v1359_v0  ;;  %vm1358_vm1 = vcmp.eq.f32.partialorder %v1357_v35, 8.507059e+37  ;;  %v3860_v0 = vld [vmem:[%s5425_s0 + $0x50] sm:$0xff]  }
0x12a6   :  { %v3732_v4 = vunpack.c.l.bf16 %v3860_v0 }
0x12a8   :  { %v4124_v29 = vpop.eup %4123 }
0x12a9   :  { %v4126_v30 = vpop.eup %4125  ;;  %v1347_v2 = vadd.f32 1.0, %v4124_v29 }
0x12aa   :  { %v1349_v3 = vmul.f32 %v4126_v30, %v1346_v24  ;;  %vm1354_vm13 = vweird.f32 %v4126_v30 }
0x12ab   :  { %4127 = vrcp.f32 %v1347_v2  ;;  %vm1355_vm15 = vmor %vm1353_vm14, %vm1354_vm13  ;;  %v1374_v47 = vand.u32 2147483648, %v1347_v2  ;;  %v1372_v50 = vand.u32 2147483647, %v1347_v2  ;;  %vm1368_vm3 = vweird.f32 %v1347_v2 }
0x12ac   :  { %v1350_v31 = vsub.f32 1.0, %v1349_v3 }
0x12ad   :  { %v1375_v54 = vor.u32 1.1754944e-38, %v1374_v47  ;;  %vm1373_vm5 = vcmp.eq.f32.partialorder %v1372_v50, 8.507059e+37 }
0x12ae   :  { %v1351_v34 = vmul.f32 %v4126_v30, %v1350_v31 }
0x12b0   :  { %v1352_v37 = vadd.f32 %v4126_v30, %v1351_v34 }
0x12b1   :  { %v4128_v38 = vpop.eup %4127 }
0x12b2   :  { %v1356_v41 = vsel %vm1355_vm15, %v4126_v30, %v1352_v37  ;;  %v1364_v43 = vmul.f32 %v4128_v38, %v1347_v2  ;;  %vm1369_vm2 = vweird.f32 %v4128_v38 }
0x12b3   :  { %v1361_v40 = vsel %vm1358_vm1, %v1360_v39, %v1356_v41  ;;  %vm1370_vm4 = vmor %vm1368_vm3, %vm1369_vm2 }
0x12b4   :  { %v1392_v36 = vmul.f32 %v1388_v42, %v1361_v40  ;;  %v1365_v46 = vsub.f32 1.0, %v1364_v43  ;;  %v1406_v15 = vsub.f32 1.0, %v1361_v40  ;;  %v1418_v29 = vmul.f32 %v1361_v40, %v4624_v58 }
0x12b6   :  { %v1366_v49 = vmul.f32 %v4128_v38, %v1365_v46  ;;  %1396 = vrot.lane.b32.xlu2 %v1392_v36, %s4315_s6 }
0x12b8   :  { %v1367_v53 = vadd.f32 %v4128_v38, %v1366_v49 }
0x12ba   :  { %v1371_v55 = vsel %vm1370_vm4, %v4128_v38, %v1367_v53  ;;  %v3733_v38 = vunpack.c.h.bf16 %v3860_v0 }
0x12bb   :  { %v1376_v57 = vsel %vm1373_vm5, %v1375_v54, %v1371_v55 }
0x12bc   :  { %v1393_v48 = vmul.f32 %v1390_v56, %v1376_v57  ;;  %v1407_v22 = vsub.f32 1.0, %v1376_v57  ;;  %v1419_v30 = vmul.f32 %v1376_v57, %v4626_v59 }
0x12be   :  { %1398 = vrot.lane.b32.xlu0 %v1393_v48, %s4315_s6 }
0x1310   :  { %v1397_v52 = vpop.permute.xlu2 %1396 }
0x1311   :  { %v1402_v60 = vadd.f32 %v3724_v8, %v1397_v52 }
0x1313   :  { %4129 = vtanh.f32 %v1402_v60 }
0x1319   :  { %v4130_v61 = vpop.eup %4129 }
0x131a   :  { %1410 = vrot.lane.b32.xlu1 %v4130_v61, %s4316_s7 }
0x1330   :  { %v1399_v9 = vpop.permute.xlu0 %1398 }
0x1331   :  { %v1403_v12 = vadd.f32 %v3725_v14, %v1399_v9 }
0x1333   :  { %4131 = vtanh.f32 %v1403_v12 }
0x1339   :  { %v4132_v13 = vpop.eup %4131 }
0x133a   :  { %1412 = vrot.lane.b32.xlu2 %v4132_v13, %s4316_s7 }
0x138c   :  { %v1411_v16 = vpop.permute.xlu1 %1410 }
0x138d   :  { %v1416_v19 = vmul.f32 %v1411_v16, %v1406_v15 }
0x138f   :  { %v4648_v2 = vadd.f32 %v1418_v29, %v1416_v19 }
0x1394   :  { %v1413_v24 = vpop.permute.xlu2 %1412 }
0x1395   :  { %v1417_v8 = vmul.f32 %v1413_v24, %v1407_v22 }
0x1397   :  { %v4650_v3 = vadd.f32 %v1419_v30, %v1417_v8 }
0x1399   :  { %v1453_v14 = vpack.c.bf16 %v4650_v3, %v4648_v2 }
0x139b   :  { %1455 = vrot.lane.b32.xlu0 %v1453_v14, %s4316_s7 }
0x140d   :  { %v1456_v31 = vpop.permute.xlu0 %1455 }
0x140e   :  { %3508 = vmatmul.msk.bf16.vlgmr.msrb.gmra.mxu0 %vm25_vm0, %v1456_v31  ;;  %3511 = vmatmul.msk.bf16.vlgmr.msrb.gmra.mxu1 %vm25_vm0, %v1456_v31 }
0x140f   :  { %2018 = vmatpush.bf16.msrb.mxu0 %v4539_v25  ;;  %2074 = vmatpush.bf16.msrb.mxu1 %v4545_v26 }
0x1413   :  { %2019 = vmatpush.bf16.msrb.mxu0 %v4551_v27  ;;  %2075 = vmatpush.bf16.msrb.mxu1 %v4557_v28 }
0x148b   :  { %v1469_v34 = vpop.f32.mrf.mxu0  ;;  %v1525_v53 = vpop.f32.mrf.mxu1 }
0x148c   :  { %v1476_v35 = vadd.f32 %v3732_v4, %v1469_v34  ;;  %v1526_v60 = vadd.f32 %v4568_v23, %v1525_v53 }
0x148e   :  { %v3509_v37 = vmul.f32 -1.442695, %v1476_v35 }
0x1490   :  { %4133 = vpow2.f32 %v3509_v37 }
0x1493   :  { %v1471_v39 = vpop.f32.mrf.mxu0  ;;  %v1527_v22 = vpop.f32.mrf.mxu1 }
0x1494   :  { %v1477_v41 = vadd.f32 %v3733_v38, %v1471_v39  ;;  %v1528_v8 = vadd.f32 %v4568_v23, %v1527_v22 }
0x1496   :  { %v4134_v42 = vpop.eup %4133  ;;  %v3510_v43 = vmul.f32 -1.442695, %v1477_v41 }
0x1497   :  { %v1484_v40 = vadd.f32 1.0, %v4134_v42 }
0x1498   :  { %4135 = vpow2.f32 %v3510_v43 }
0x1499   :  { %4137 = vrcp.f32 %v1484_v40  ;;  %v1497_v51 = vand.u32 2147483648, %v1484_v40  ;;  %v1495_v55 = vand.u32 2147483647, %v1484_v40  ;;  %vm1491_vm7 = vweird.f32 %v1484_v40 }
0x149b   :  { %v1498_v48 = vor.u32 1.1754944e-38, %v1497_v51  ;;  %vm1496_vm9 = vcmp.eq.f32.partialorder %v1495_v55, 8.507059e+37 }
0x149e   :  { %v4136_v36 = vpop.eup %4135 }
0x149f   :  { %v4138_v46 = vpop.eup %4137  ;;  %v1485_v47 = vadd.f32 1.0, %v4136_v36 }
0x14a0   :  { %v1487_v49 = vmul.f32 %v4138_v46, %v1484_v40  ;;  %vm1492_vm6 = vweird.f32 %v4138_v46 }
0x14a1   :  { %4139 = vrcp.f32 %v1485_v47  ;;  %vm1493_vm8 = vmor %vm1491_vm7, %vm1492_vm6  ;;  %v1512_v16 = vand.u32 2147483648, %v1485_v47  ;;  %v1510_v19 = vand.u32 2147483647, %v1485_v47  ;;  %vm1506_vm11 = vweird.f32 %v1485_v47 }
0x14a2   :  { %v1488_v50 = vsub.f32 1.0, %v1487_v49 }
0x14a3   :  { %v1513_v29 = vor.u32 1.1754944e-38, %v1512_v16  ;;  %vm1511_vm13 = vcmp.eq.f32.partialorder %v1510_v19, 8.507059e+37 }
0x14a4   :  { %v1489_v54 = vmul.f32 %v4138_v46, %v1488_v50 }
0x14a6   :  { %v1490_v56 = vadd.f32 %v4138_v46, %v1489_v54  ;;  %v3862_v54 = vld [vmem:[%s5425_s0 + $0x58] sm:$0xff]  }
0x14a7   :  { %v4140_v57 = vpop.eup %4139  ;;  %v3740_v55 = vunpack.c.l.bf16 %v3862_v54 }
0x14a8   :  { %v1494_v52 = vsel %vm1493_vm8, %v4138_v46, %v1490_v56  ;;  %v1502_v61 = vmul.f32 %v4140_v57, %v1485_v47  ;;  %vm1507_vm10 = vweird.f32 %v4140_v57 }
0x14a9   :  { %v1499_v9 = vsel %vm1496_vm9, %v1498_v48, %v1494_v52  ;;  %vm1508_vm12 = vmor %vm1506_vm11, %vm1507_vm10  ;;  %v3741_v52 = vunpack.c.h.bf16 %v3862_v54 }
0x14aa   :  { %v1530_v12 = vmul.f32 %v1526_v60, %v1499_v9  ;;  %v1503_v13 = vsub.f32 1.0, %v1502_v61  ;;  %v1544_v36 = vsub.f32 1.0, %v1499_v9  ;;  %v1556_v49 = vmul.f32 %v1499_v9, %v4648_v2 }
0x14ac   :  { %v1504_v15 = vmul.f32 %v4140_v57, %v1503_v13  ;;  %1534 = vrot.lane.b32.xlu1 %v1530_v12, %s4315_s6 }
0x14ae   :  { %v1505_v24 = vadd.f32 %v4140_v57, %v1504_v15 }
0x14b0   :  { %v1509_v30 = vsel %vm1508_vm12, %v4140_v57, %v1505_v24 }
0x14b1   :  { %v1514_v14 = vsel %vm1511_vm13, %v1513_v29, %v1509_v30 }
0x14b2   :  { %v1531_v31 = vmul.f32 %v1528_v8, %v1514_v14  ;;  %v1545_v43 = vsub.f32 1.0, %v1514_v14  ;;  %v1557_v47 = vmul.f32 %v1514_v14, %v4650_v3 }
0x14b4   :  { %1536 = vrot.lane.b32.xlu2 %v1531_v31, %s4315_s6 }
0x150e   :  { %v1537_v0 = vpop.permute.xlu2 %1536 }
0x150f   :  { %v1541_v34 = vadd.f32 %v3733_v38, %v1537_v0 }
0x1511   :  { %4141 = vtanh.f32 %v1541_v34 }
0x1517   :  { %v4142_v35 = vpop.eup %4141 }
0x1518   :  { %1550 = vrot.lane.b32.xlu1 %v4142_v35, %s4316_s7 }
0x151e   :  { %v1535_v37 = vpop.permute.xlu1 %1534 }
0x151f   :  { %v1540_v39 = vadd.f32 %v3732_v4, %v1535_v37 }
0x1521   :  { %4143 = vtanh.f32 %v1540_v39 }
0x1527   :  { %v4144_v41 = vpop.eup %4143 }
0x1528   :  { %1548 = vrot.lane.b32.xlu0 %v4144_v41, %s4316_s7 }
0x158a   :  { %v1551_v42 = vpop.permute.xlu1 %1550 }
0x158b   :  { %v1555_v40 = vmul.f32 %v1551_v42, %v1545_v43 }
0x158d   :  { %v4672_v50 = vadd.f32 %v1557_v47, %v1555_v40 }
0x159a   :  { %v1549_v46 = vpop.permute.xlu0 %1548 }
0x159b   :  { %v1554_v38 = vmul.f32 %v1549_v46, %v1544_v36 }
0x159d   :  { %v4674_v51 = vadd.f32 %v1556_v49, %v1554_v38 }
0x159f   :  { %v1591_v4 = vpack.c.bf16 %v4672_v50, %v4674_v51 }
0x15a1   :  { %1593 = vrot.lane.b32.xlu2 %v1591_v4, %s4316_s7 }
0x15fb   :  { %v1594_v53 = vpop.permute.xlu2 %1593 }
0x15fc   :  { %3518 = vmatmul.msk.bf16.vlgmr.msrb.gmra.mxu2 %vm25_vm0, %v1594_v53  ;;  %3521 = vmatmul.msk.bf16.vlgmr.msrb.gmra.mxu3 %vm25_vm0, %v1594_v53 }
0x15fd   :  { %2156 = vmatpush.bf16.msrb.mxu2 %v4539_v25  ;;  %2212 = vmatpush.bf16.msrb.mxu3 %v4545_v26 }
0x1601   :  { %2157 = vmatpush.bf16.msrb.mxu2 %v4551_v27  ;;  %2213 = vmatpush.bf16.msrb.mxu3 %v4557_v28 }
0x167f   :  { %v1607_v56 = vpop.f32.mrf.mxu2  ;;  %v1663_v30 = vpop.f32.mrf.mxu3 }
0x1680   :  { %v1614_v57 = vadd.f32 %v3740_v55, %v1607_v56  ;;  %v1664_v37 = vadd.f32 %v4568_v23, %v1663_v30 }
0x1682   :  { %v3519_v48 = vmul.f32 -1.442695, %v1614_v57 }
0x1684   :  { %4145 = vpow2.f32 %v3519_v48 }
0x1687   :  { %v1609_v60 = vpop.f32.mrf.mxu2  ;;  %v1665_v47 = vpop.f32.mrf.mxu3 }
0x1688   :  { %v1615_v61 = vadd.f32 %v3741_v52, %v1609_v60  ;;  %v1666_v53 = vadd.f32 %v4568_v23, %v1665_v47 }
0x168a   :  { %v4146_v9 = vpop.eup %4145  ;;  %v3520_v12 = vmul.f32 -1.442695, %v1615_v61 }
0x168b   :  { %v1622_v13 = vadd.f32 1.0, %v4146_v9 }
0x168c   :  { %4147 = vpow2.f32 %v3520_v12 }
0x168d   :  { %4149 = vrcp.f32 %v1622_v13  ;;  %v1635_v29 = vand.u32 2147483648, %v1622_v13  ;;  %v1633_v14 = vand.u32 2147483647, %v1622_v13  ;;  %vm1629_vm15 = vweird.f32 %v1622_v13 }
0x168f   :  { %v1636_v34 = vor.u32 1.1754944e-38, %v1635_v29  ;;  %vm1634_vm2 = vcmp.eq.f32.partialorder %v1633_v14, 8.507059e+37 }
0x1692   :  { %v4148_v16 = vpop.eup %4147 }
0x1693   :  { %v4150_v15 = vpop.eup %4149  ;;  %v1623_v19 = vadd.f32 1.0, %v4148_v16 }
0x1694   :  { %v1625_v22 = vmul.f32 %v4150_v15, %v1622_v13  ;;  %vm1630_vm14 = vweird.f32 %v4150_v15 }
0x1695   :  { %4151 = vrcp.f32 %v1623_v19  ;;  %vm1631_vm1 = vmor %vm1629_vm15, %vm1630_vm14  ;;  %v1650_v40 = vand.u32 2147483648, %v1623_v19  ;;  %v1648_v46 = vand.u32 2147483647, %v1623_v19  ;;  %vm1644_vm4 = vweird.f32 %v1623_v19 }
0x1696   :  { %v1626_v24 = vsub.f32 1.0, %v1625_v22 }
0x1697   :  { %v1651_v38 = vor.u32 1.1754944e-38, %v1650_v40  ;;  %vm1649_vm6 = vcmp.eq.f32.partialorder %v1648_v46, 8.507059e+37 }
0x1698   :  { %v1627_v8 = vmul.f32 %v4150_v15, %v1626_v24 }
0x169a   :  { %v1628_v31 = vadd.f32 %v4150_v15, %v1627_v8 }
0x169b   :  { %v4152_v0 = vpop.eup %4151 }
0x169c   :  { %v1632_v35 = vsel %vm1631_vm1, %v4150_v15, %v1628_v31  ;;  %v1640_v39 = vmul.f32 %v4152_v0, %v1623_v19  ;;  %vm1645_vm3 = vweird.f32 %v4152_v0  ;;  %v3864_v31 = vld [vmem:[%s5425_s0 + $0x60] sm:$0xff]  }
0x169d   :  { %v1637_v41 = vsel %vm1634_vm2, %v1636_v34, %v1632_v35  ;;  %vm1646_vm5 = vmor %vm1644_vm4, %vm1645_vm3 }
0x169e   :  { %v1668_v42 = vmul.f32 %v1664_v37, %v1637_v41  ;;  %v1641_v43 = vsub.f32 1.0, %v1640_v39  ;;  %v1682_v16 = vsub.f32 1.0, %v1637_v41  ;;  %v1694_v24 = vmul.f32 %v1637_v41, %v4674_v51 }
0x169f   :  { %v3749_v39 = vunpack.c.h.bf16 %v3864_v31 }
0x16a0   :  { %v1642_v36 = vmul.f32 %v4152_v0, %v1641_v43  ;;  %1672 = vrot.lane.b32.xlu0 %v1668_v42, %s4315_s6 }
0x16a2   :  { %v1643_v49 = vadd.f32 %v4152_v0, %v1642_v36 }
0x16a4   :  { %v1647_v4 = vsel %vm1646_vm5, %v4152_v0, %v1643_v49  ;;  %v3748_v0 = vunpack.c.l.bf16 %v3864_v31 }
0x16a5   :  { %v1652_v54 = vsel %vm1649_vm6, %v1651_v38, %v1647_v4 }
0x16a6   :  { %v1669_v56 = vmul.f32 %v1666_v53, %v1652_v54  ;;  %v1683_v19 = vsub.f32 1.0, %v1652_v54  ;;  %v1695_v29 = vmul.f32 %v1652_v54, %v4672_v50 }
0x16a8   :  { %1674 = vrot.lane.b32.xlu1 %v1669_v56, %s4315_s6 }
0x1712   :  { %v1673_v57 = vpop.permute.xlu0 %1672 }
0x1713   :  { %v1678_v48 = vadd.f32 %v3740_v55, %v1673_v57 }
0x1715   :  { %4153 = vtanh.f32 %v1678_v48 }
0x171a   :  { %v1675_v60 = vpop.permute.xlu1 %1674 }
0x171b   :  { %v4154_v61 = vpop.eup %4153  ;;  %v1679_v9 = vadd.f32 %v3741_v52, %v1675_v60 }
0x171c   :  { %1686 = vrot.lane.b32.xlu2 %v4154_v61, %s4316_s7 }
0x171d   :  { %4155 = vtanh.f32 %v1679_v9 }
0x1723   :  { %v4156_v12 = vpop.eup %4155 }
0x1724   :  { %1688 = vrot.lane.b32.xlu0 %v4156_v12, %s4316_s7 }
0x1776   :  { %v1687_v13 = vpop.permute.xlu2 %1686 }
0x1777   :  { %v1692_v15 = vmul.f32 %v1687_v13, %v1682_v16 }
0x1779   :  { %v4696_v30 = vadd.f32 %v1694_v24, %v1692_v15 }
0x1796   :  { %v1689_v22 = vpop.permute.xlu0 %1688 }
0x1797   :  { %v1693_v55 = vmul.f32 %v1689_v22, %v1683_v19 }
0x1799   :  { %v4698_v8 = vadd.f32 %v1695_v29, %v1693_v55 }
0x179b   :  { %v1729_v52 = vpack.c.bf16 %v4698_v8, %v4696_v30 }
0x179d   :  { %1731 = vrot.lane.b32.xlu1 %v1729_v52, %s4316_s7 }
0x180f   :  { %v1732_v14 = vpop.permute.xlu1 %1731 }
0x1810   :  { %3528 = vmatmul.msk.bf16.vlgmr.msra.gmra.mxu0 %vm25_vm0, %v1732_v14  ;;  %3531 = vmatmul.msk.bf16.vlgmr.msra.gmra.mxu1 %vm25_vm0, %v1732_v14 }
0x1811   :  { %2294 = vmatpush.bf16.msra.mxu0 %v4539_v25  ;;  %2350 = vmatpush.bf16.msra.mxu1 %v4545_v26 }
0x1815   :  { %2295 = vmatpush.bf16.msra.mxu0 %v4551_v27  ;;  %2351 = vmatpush.bf16.msra.mxu1 %v4557_v28 }
0x188d   :  { %v1745_v34 = vpop.f32.mrf.mxu0  ;;  %v1801_v49 = vpop.f32.mrf.mxu1 }
0x188e   :  { %v1752_v35 = vadd.f32 %v3748_v0, %v1745_v34  ;;  %v1802_v48 = vadd.f32 %v4568_v23, %v1801_v49  ;;  %v4732_v49 = vld [vmem:[%s5422_s2 + $0x8] sm:$0xff] }
0x1890   :  { %v3529_v37 = vmul.f32 -1.442695, %v1752_v35 }
0x1892   :  { %4157 = vpow2.f32 %v3529_v37 }
0x1895   :  { %v1747_v41 = vpop.f32.mrf.mxu0  ;;  %v1803_v19 = vpop.f32.mrf.mxu1 }
0x1896   :  { %v1753_v42 = vadd.f32 %v3749_v39, %v1747_v41  ;;  %v1804_v55 = vadd.f32 %v4568_v23, %v1803_v19 }
0x1898   :  { %v4158_v43 = vpop.eup %4157  ;;  %v3530_v25 = vmul.f32 -1.442695, %v1753_v42 }
0x1899   :  { %v1760_v40 = vadd.f32 1.0, %v4158_v43 }
0x189a   :  { %4159 = vpow2.f32 %v3530_v25 }
0x189b   :  { %4161 = vrcp.f32 %v1760_v40  ;;  %v1773_v47 = vand.u32 2147483648, %v1760_v40  ;;  %v1771_v4 = vand.u32 2147483647, %v1760_v40  ;;  %vm1767_vm8 = vweird.f32 %v1760_v40 }
0x189d   :  { %v1774_v56 = vor.u32 1.1754944e-38, %v1773_v47  ;;  %vm1772_vm10 = vcmp.eq.f32.partialorder %v1771_v4, 8.507059e+37  ;;  %v4744_v4 = vld [vmem:[%s5422_s2] sm:$0xff] }
0x18a0   :  { %v4160_v26 = vpop.eup %4159 }
0x18a1   :  { %v4162_v27 = vpop.eup %4161  ;;  %v1761_v28 = vadd.f32 1.0, %v4160_v26 }
0x18a2   :  { %v1763_v36 = vmul.f32 %v4162_v27, %v1760_v40  ;;  %vm1768_vm7 = vweird.f32 %v4162_v27 }
0x18a3   :  { %4163 = vrcp.f32 %v1761_v28  ;;  %vm1769_vm9 = vmor %vm1767_vm8, %vm1768_vm7  ;;  %v1788_v13 = vand.u32 2147483648, %v1761_v28  ;;  %v1786_v15 = vand.u32 2147483647, %v1761_v28  ;;  %vm1782_vm12 = vweird.f32 %v1761_v28 }
0x18a4   :  { %v1764_v46 = vsub.f32 1.0, %v1763_v36 }
0x18a5   :  { %v1789_v24 = vor.u32 1.1754944e-38, %v1788_v13  ;;  %vm1787_vm14 = vcmp.eq.f32.partialorder %v1786_v15, 8.507059e+37 }
0x18a6   :  { %v1765_v38 = vmul.f32 %v4162_v27, %v1764_v46 }
0x18a8   :  { %v1766_v53 = vadd.f32 %v4162_v27, %v1765_v38  ;;  %v4738_v38 = vld [vmem:[%s5423_s3 + $0x8] sm:$0xff] }
0x18a9   :  { %v4164_v54 = vpop.eup %4163 }
0x18aa   :  { %v1770_v57 = vsel %vm1769_vm9, %v4162_v27, %v1766_v53  ;;  %v1778_v60 = vmul.f32 %v4164_v54, %v1761_v28  ;;  %vm1783_vm11 = vweird.f32 %v4164_v54  ;;  %v4750_v53 = vld [vmem:[%s5423_s3] sm:$0xff] }
0x18ab   :  { %v1775_v61 = vsel %vm1772_vm10, %v1774_v56, %v1770_v57  ;;  %vm1784_vm13 = vmor %vm1782_vm12, %vm1783_vm11 }
0x18ac   :  { %v1806_v9 = vmul.f32 %v1802_v48, %v1775_v61  ;;  %v1779_v12 = vsub.f32 1.0, %v1778_v60  ;;  %v1820_v25 = vsub.f32 1.0, %v1775_v61  ;;  %v1832_v27 = vmul.f32 %v1775_v61, %v4696_v30 }
0x18ae   :  { %v1780_v16 = vmul.f32 %v4164_v54, %v1779_v12  ;;  %1810 = vrot.lane.b32.xlu2 %v1806_v9, %s4315_s6 }
0x18b0   :  { %v1781_v22 = vadd.f32 %v4164_v54, %v1780_v16 }
0x18b2   :  { %v1785_v29 = vsel %vm1784_vm13, %v4164_v54, %v1781_v22  ;;  %v3866_v54 = vld [vmem:[%s5425_s0 + $0x68] sm:$0xff]  }
0x18b3   :  { %v1790_v52 = vsel %vm1787_vm14, %v1789_v24, %v1785_v29  ;;  %v3756_v56 = vunpack.c.l.bf16 %v3866_v54  ;;  %v3757_v61 = vunpack.c.h.bf16 %v3866_v54 }
0x18b4   :  { %v1807_v14 = vmul.f32 %v1804_v55, %v1790_v52  ;;  %v1821_v23 = vsub.f32 1.0, %v1790_v52  ;;  %v1833_v28 = vmul.f32 %v1790_v52, %v4698_v8 }
0x18b6   :  { %1812 = vrot.lane.b32.xlu0 %v1807_v14, %s4315_s6 }
0x1908   :  { %v1811_v31 = vpop.permute.xlu2 %1810 }
0x1909   :  { %v1816_v34 = vadd.f32 %v3748_v0, %v1811_v31 }
0x190b   :  { %4165 = vtanh.f32 %v1816_v34 }
0x1911   :  { %v4166_v35 = vpop.eup %4165 }
0x1912   :  { %1824 = vrot.lane.b32.xlu1 %v4166_v35, %s4316_s7 }
0x1928   :  { %v1813_v37 = vpop.permute.xlu0 %1812 }
0x1929   :  { %v1817_v41 = vadd.f32 %v3749_v39, %v1813_v37 }
0x192b   :  { %4167 = vtanh.f32 %v1817_v41 }
0x1931   :  { %v4168_v42 = vpop.eup %4167 }
0x1932   :  { %1826 = vrot.lane.b32.xlu2 %v4168_v42, %s4316_s7 }
0x1984   :  { %v1825_v43 = vpop.permute.xlu1 %1824 }
0x1985   :  { %v1830_v40 = vmul.f32 %v1825_v43, %v1820_v25  ;;  %v4759_v43 = vld [vmem:[%s5424_s4] ss:$0 sm:$0xff] }
0x1987   :  { %v4720_v36 = vadd.f32 %v1832_v27, %v1830_v40 }
0x198c   :  { %v1827_v26 = vpop.permute.xlu2 %1826 }
0x198d   :  { %v1831_v0 = vmul.f32 %v1827_v26, %v1821_v23 }
0x198f   :  { %v4722_v46 = vadd.f32 %v1833_v28, %v1831_v0 }
0x1991   :  { %v1867_v39 = vpack.c.bf16 %v4722_v46, %v4720_v36 }
0x1993   :  { %1869 = vrot.lane.b32.xlu0 %v1867_v39, %s4316_s7 }
0x1a05   :  { %v1870_v47 = vpop.permute.xlu0 %1869 }
0x1a06   :  { %3538 = vmatmul.msk.bf16.vlgmr.msra.gmra.mxu2 %vm25_vm0, %v1870_v47  ;;  %3541 = vmatmul.msk.bf16.vlgmr.msra.gmra.mxu3 %vm25_vm0, %v1870_v47 }
0x1a07   :  { %2432 = vmatpush.bf16.msra.mxu2 %v4732_v49  ;;  %2488 = vmatpush.bf16.msra.mxu3 %v4738_v38 }
0x1a0b   :  { %2433 = vmatpush.bf16.msra.mxu2 %v4744_v4  ;;  %2489 = vmatpush.bf16.msra.mxu3 %v4750_v53 }
0x1a89   :  { %v1883_v57 = vpop.f32.mrf.mxu2  ;;  %v1939_v14 = vpop.f32.mrf.mxu3 }
0x1a8a   :  { %v1890_v48 = vadd.f32 %v3756_v56, %v1883_v57  ;;  %v1940_v25 = vadd.f32 %v4759_v43, %v1939_v14 }
0x1a8c   :  { %v3539_v60 = vmul.f32 -1.442695, %v1890_v48 }
0x1a8e   :  { %4169 = vpow2.f32 %v3539_v60 }
0x1a91   :  { %v1885_v9 = vpop.f32.mrf.mxu2  ;;  %v1941_v47 = vpop.f32.mrf.mxu3 }
0x1a92   :  { %v1891_v12 = vadd.f32 %v3757_v61, %v1885_v9  ;;  %v1942_v60 = vadd.f32 %v4759_v43, %v1941_v47 }
0x1a94   :  { %v4170_v13 = vpop.eup %4169  ;;  %v3540_v16 = vmul.f32 -1.442695, %v1891_v12 }
0x1a95   :  { %v1898_v15 = vadd.f32 1.0, %v4170_v13 }
0x1a96   :  { %4171 = vpow2.f32 %v3540_v16 }
0x1a97   :  { %4173 = vrcp.f32 %v1898_v15  ;;  %v1911_v52 = vand.u32 2147483648, %v1898_v15  ;;  %v1909_v34 = vand.u32 2147483647, %v1898_v15  ;;  %vm1905_vm1 = vweird.f32 %v1898_v15 }
0x1a99   :  { %v1912_v41 = vor.u32 1.1754944e-38, %v1911_v52  ;;  %vm1910_vm3 = vcmp.eq.f32.partialorder %v1909_v34, 8.507059e+37 }
0x1a9c   :  { %v4172_v19 = vpop.eup %4171 }
0x1a9d   :  { %v4174_v22 = vpop.eup %4173  ;;  %v1899_v24 = vadd.f32 1.0, %v4172_v19 }
0x1a9e   :  { %v1901_v29 = vmul.f32 %v4174_v22, %v1898_v15  ;;  %vm1906_vm15 = vweird.f32 %v4174_v22 }
0x1a9f   :  { %4175 = vrcp.f32 %v1899_v24  ;;  %vm1907_vm2 = vmor %vm1905_vm1, %vm1906_vm15  ;;  %v1926_v28 = vand.u32 2147483648, %v1899_v24  ;;  %v1924_v39 = vand.u32 2147483647, %v1899_v24  ;;  %vm1920_vm5 = vweird.f32 %v1899_v24 }
0x1aa0   :  { %v1902_v55 = vsub.f32 1.0, %v1901_v29 }
0x1aa1   :  { %v1927_v57 = vor.u32 1.1754944e-38, %v1926_v28  ;;  %vm1925_vm7 = vcmp.eq.f32.partialorder %v1924_v39, 8.507059e+37 }
0x1aa2   :  { %v1903_v31 = vmul.f32 %v4174_v22, %v1902_v55 }
0x1aa4   :  { %v1904_v35 = vadd.f32 %v4174_v22, %v1903_v31 }
0x1aa5   :  { %v4176_v37 = vpop.eup %4175 }
0x1aa6   :  { %v1908_v42 = vsel %vm1907_vm2, %v4174_v22, %v1904_v35  ;;  %v1916_v40 = vmul.f32 %v4176_v37, %v1899_v24  ;;  %vm1921_vm4 = vweird.f32 %v4176_v37 }
0x1aa7   :  { %v1913_v23 = vsel %vm1910_vm3, %v1912_v41, %v1908_v42  ;;  %vm1922_vm6 = vmor %vm1920_vm5, %vm1921_vm4 }
0x1aa8   :  { %v1944_v26 = vmul.f32 %v1940_v25, %v1913_v23  ;;  %v1917_v27 = vsub.f32 1.0, %v1916_v40  ;;  %v1958_v14 = vsub.f32 1.0, %v1913_v23  ;;  %v1970_v35 = vmul.f32 %v1913_v23, %v4720_v36  ;;  %v3868_v25 = vld [vmem:[%s5425_s0 + $0x70] sm:$0xff]  }
0x1aa9   :  { %v3764_v40 = vunpack.c.l.bf16 %v3868_v25  ;;  %v3765_v28 = vunpack.c.h.bf16 %v3868_v25 }
0x1aaa   :  { %v1918_v0 = vmul.f32 %v4176_v37, %v1917_v27  ;;  %1948 = vrot.lane.b32.xlu1 %v1944_v26, %s4315_s6 }
0x1aac   :  { %v1919_v54 = vadd.f32 %v4176_v37, %v1918_v0 }
0x1aae   :  { %v1923_v48 = vsel %vm1922_vm6, %v4176_v37, %v1919_v54 }
0x1aaf   :  { %v1928_v9 = vsel %vm1925_vm7, %v1927_v57, %v1923_v48 }
0x1ab0   :  { %v1945_v12 = vmul.f32 %v1942_v60, %v1928_v9  ;;  %v1959_v55 = vsub.f32 1.0, %v1928_v9  ;;  %v1971_v34 = vmul.f32 %v1928_v9, %v4722_v46 }
0x1ab2   :  { %1950 = vrot.lane.b32.xlu2 %v1945_v12, %s4315_s6 }
0x1b0c   :  { %v1951_v13 = vpop.permute.xlu2 %1950 }
0x1b0d   :  { %v1955_v16 = vadd.f32 %v3757_v61, %v1951_v13 }
0x1b0f   :  { %4177 = vtanh.f32 %v1955_v16 }
0x1b15   :  { %v4178_v15 = vpop.eup %4177 }
0x1b16   :  { %1964 = vrot.lane.b32.xlu1 %v4178_v15, %s4316_s7 }
0x1b1c   :  { %v1949_v19 = vpop.permute.xlu1 %1948 }
0x1b1d   :  { %v1954_v22 = vadd.f32 %v3756_v56, %v1949_v19 }
0x1b1f   :  { %4179 = vtanh.f32 %v1954_v22 }
0x1b25   :  { %v4180_v24 = vpop.eup %4179 }
0x1b26   :  { %1962 = vrot.lane.b32.xlu0 %v4180_v24, %s4316_s7 }
0x1b88   :  { %v1965_v29 = vpop.permute.xlu1 %1964 }
0x1b89   :  { %v1969_v52 = vmul.f32 %v1965_v29, %v1959_v55 }
0x1b8b   :  { %v4769_v37 = vadd.f32 %v1971_v34, %v1969_v52 }
0x1b98   :  { %v1963_v31 = vpop.permute.xlu0 %1962 }
0x1b99   :  { %v1968_v61 = vmul.f32 %v1963_v31, %v1958_v14 }
0x1b9b   :  { %v4771_v41 = vadd.f32 %v1970_v35, %v1968_v61 }
0x1b9d   :  { %v2005_v56 = vpack.c.bf16 %v4769_v37, %v4771_v41 }
0x1b9f   :  { %2007 = vrot.lane.b32.xlu2 %v2005_v56, %s4316_s7 }
0x1bf9   :  { %v2008_v42 = vpop.permute.xlu2 %2007 }
0x1bfa   :  { %3548 = vmatmul.msk.bf16.vlgmr.msrb.gmra.mxu0 %vm25_vm0, %v2008_v42  ;;  %3551 = vmatmul.msk.bf16.vlgmr.msrb.gmra.mxu1 %vm25_vm0, %v2008_v42 }
0x1bfb   :  { %2570 = vmatpush.bf16.msrb.mxu0 %v4732_v49  ;;  %2626 = vmatpush.bf16.msrb.mxu1 %v4738_v38 }
0x1bff   :  { %2571 = vmatpush.bf16.msrb.mxu0 %v4744_v4  ;;  %2627 = vmatpush.bf16.msrb.mxu1 %v4750_v53 }
0x1c77   :  { %v2021_v23 = vpop.f32.mrf.mxu0  ;;  %v2077_v15 = vpop.f32.mrf.mxu1 }
0x1c78   :  { %v2028_v26 = vadd.f32 %v3764_v40, %v2021_v23  ;;  %v2078_v14 = vadd.f32 %v4759_v43, %v2077_v15 }
0x1c7a   :  { %v3549_v27 = vmul.f32 -1.442695, %v2028_v26 }
0x1c7c   :  { %4181 = vpow2.f32 %v3549_v27 }
0x1c7f   :  { %v2023_v0 = vpop.f32.mrf.mxu0  ;;  %v2079_v23 = vpop.f32.mrf.mxu1 }
0x1c80   :  { %v2029_v39 = vadd.f32 %v3765_v28, %v2023_v0 }
0x1c82   :  { %v4182_v47 = vpop.eup %4181  ;;  %v3550_v54 = vmul.f32 -1.442695, %v2029_v39  ;;  %v2080_v39 = vadd.f32 %v4759_v43, %v2079_v23 }
0x1c83   :  { %v2036_v57 = vadd.f32 1.0, %v4182_v47 }
0x1c84   :  { %4183 = vpow2.f32 %v3550_v54 }
0x1c85   :  { %4185 = vrcp.f32 %v2036_v57  ;;  %v2049_v16 = vand.u32 2147483648, %v2036_v57  ;;  %v2047_v22 = vand.u32 2147483647, %v2036_v57  ;;  %vm2043_vm9 = vweird.f32 %v2036_v57 }
0x1c87   :  { %v2050_v55 = vor.u32 1.1754944e-38, %v2049_v16  ;;  %vm2048_vm11 = vcmp.eq.f32.partialorder %v2047_v22, 8.507059e+37 }
0x1c8a   :  { %v4184_v48 = vpop.eup %4183 }
0x1c8b   :  { %v4186_v60 = vpop.eup %4185  ;;  %v2037_v9 = vadd.f32 1.0, %v4184_v48 }
0x1c8c   :  { %v2039_v12 = vmul.f32 %v4186_v60, %v2036_v57  ;;  %vm2044_vm8 = vweird.f32 %v4186_v60 }
0x1c8d   :  { %4187 = vrcp.f32 %v2037_v9  ;;  %vm2045_vm10 = vmor %vm2043_vm9, %vm2044_vm8  ;;  %v2064_v56 = vand.u32 2147483648, %v2037_v9  ;;  %v2062_v25 = vand.u32 2147483647, %v2037_v9  ;;  %vm2058_vm13 = vweird.f32 %v2037_v9 }
0x1c8e   :  { %v2040_v13 = vsub.f32 1.0, %v2039_v12 }
0x1c8f   :  { %v2065_v27 = vor.u32 1.1754944e-38, %v2064_v56  ;;  %vm2063_vm15 = vcmp.eq.f32.partialorder %v2062_v25, 8.507059e+37 }
0x1c90   :  { %v2041_v19 = vmul.f32 %v4186_v60, %v2040_v13 }
0x1c92   :  { %v2042_v24 = vadd.f32 %v4186_v60, %v2041_v19 }
0x1c93   :  { %v4188_v29 = vpop.eup %4187 }
0x1c94   :  { %v2046_v52 = vsel %vm2045_vm10, %v4186_v60, %v2042_v24  ;;  %v2054_v31 = vmul.f32 %v4188_v29, %v2037_v9  ;;  %vm2059_vm12 = vweird.f32 %v4188_v29 }
0x1c95   :  { %v2051_v34 = vsel %vm2048_vm11, %v2050_v55, %v2046_v52  ;;  %vm2060_vm14 = vmor %vm2058_vm13, %vm2059_vm12 }
0x1c96   :  { %v2082_v35 = vmul.f32 %v2078_v14, %v2051_v34  ;;  %v2055_v61 = vsub.f32 1.0, %v2054_v31  ;;  %v2096_v15 = vsub.f32 1.0, %v2051_v34 }
0x1c98   :  { %v2056_v42 = vmul.f32 %v4188_v29, %v2055_v61  ;;  %2086 = vrot.lane.b32.xlu0 %v2082_v35, %s4315_s6 }
0x1c9a   :  { %v2057_v26 = vadd.f32 %v4188_v29, %v2056_v42 }
0x1c9c   :  { %v2061_v0 = vsel %vm2060_vm14, %v4188_v29, %v2057_v26  ;;  %v2108_v29 = vmul.f32 %v2051_v34, %v4771_v41  ;;  %v3870_v34 = vld [vmem:[%s5425_s0 + $0x78] sm:$0xff]  }
0x1c9d   :  { %v2066_v47 = vsel %vm2063_vm15, %v2065_v27, %v2061_v0  ;;  %v3772_v35 = vunpack.c.l.bf16 %v3870_v34  ;;  %v3773_v25 = vunpack.c.h.bf16 %v3870_v34 }
0x1c9e   :  { %v2083_v54 = vmul.f32 %v2080_v39, %v2066_v47  ;;  %v2097_v22 = vsub.f32 1.0, %v2066_v47  ;;  %v2109_v55 = vmul.f32 %v2066_v47, %v4769_v37 }
0x1ca0   :  { %2088 = vrot.lane.b32.xlu1 %v2083_v54, %s4315_s6 }
0x1d0a   :  { %v2087_v57 = vpop.permute.xlu0 %2086 }
0x1d0b   :  { %v2092_v48 = vadd.f32 %v3764_v40, %v2087_v57 }
0x1d0d   :  { %4189 = vtanh.f32 %v2092_v48 }
0x1d12   :  { %v2089_v60 = vpop.permute.xlu1 %2088 }
0x1d13   :  { %v4190_v12 = vpop.eup %4189  ;;  %v2093_v13 = vadd.f32 %v3765_v28, %v2089_v60 }
0x1d14   :  { %2100 = vrot.lane.b32.xlu2 %v4190_v12, %s4316_s7 }
0x1d15   :  { %4191 = vtanh.f32 %v2093_v13 }
0x1d1b   :  { %v4192_v9 = vpop.eup %4191 }
0x1d1c   :  { %2102 = vrot.lane.b32.xlu0 %v4192_v9, %s4316_s7 }
0x1d6e   :  { %v2101_v16 = vpop.permute.xlu2 %2100 }
0x1d6f   :  { %v2106_v19 = vmul.f32 %v2101_v16, %v2096_v15 }
0x1d71   :  { %v4793_v52 = vadd.f32 %v2108_v29, %v2106_v19 }
0x1d8e   :  { %v2103_v24 = vpop.permute.xlu0 %2102 }
0x1d8f   :  { %v2107_v40 = vmul.f32 %v2103_v24, %v2097_v22 }
0x1d91   :  { %v4795_v14 = vadd.f32 %v2109_v55, %v2107_v40 }
0x1d93   :  { %v2143_v28 = vpack.c.bf16 %v4795_v14, %v4793_v52 }
0x1d95   :  { %2145 = vrot.lane.b32.xlu1 %v2143_v28, %s4316_s7 }
0x1e07   :  { %v2146_v31 = vpop.permute.xlu1 %2145 }
0x1e08   :  { %3558 = vmatmul.msk.bf16.vlgmr.msrb.gmra.mxu2 %vm25_vm0, %v2146_v31  ;;  %3561 = vmatmul.msk.bf16.vlgmr.msrb.gmra.mxu3 %vm25_vm0, %v2146_v31 }
0x1e09   :  { %2708 = vmatpush.bf16.msrb.mxu2 %v4732_v49  ;;  %2764 = vmatpush.bf16.msrb.mxu3 %v4738_v38 }
0x1e0d   :  { %2709 = vmatpush.bf16.msrb.mxu2 %v4744_v4  ;;  %2765 = vmatpush.bf16.msrb.mxu3 %v4750_v53 }
0x1e8b   :  { %v2159_v61 = vpop.f32.mrf.mxu2  ;;  %v2215_v13 = vpop.f32.mrf.mxu3 }
0x1e8c   :  { %v2166_v56 = vadd.f32 %v3772_v35, %v2159_v61  ;;  %v2216_v29 = vadd.f32 %v4759_v43, %v2215_v13 }
0x1e8e   :  { %v3559_v42 = vmul.f32 -1.442695, %v2166_v56 }
0x1e90   :  { %4193 = vpow2.f32 %v3559_v42 }
0x1e93   :  { %v2161_v23 = vpop.f32.mrf.mxu2  ;;  %v2217_v42 = vpop.f32.mrf.mxu3 }
0x1e94   :  { %v2167_v26 = vadd.f32 %v3773_v25, %v2161_v23 }
0x1e96   :  { %v4194_v27 = vpop.eup %4193  ;;  %v3560_v0 = vmul.f32 -1.442695, %v2167_v26 }
0x1e97   :  { %v2174_v39 = vadd.f32 1.0, %v4194_v27 }
0x1e98   :  { %4195 = vpow2.f32 %v3560_v0  ;;  %v2218_v0 = vadd.f32 %v4759_v43, %v2217_v42 }
0x1e99   :  { %4197 = vrcp.f32 %v2174_v39  ;;  %v2187_v12 = vand.u32 2147483648, %v2174_v39  ;;  %v2185_v16 = vand.u32 2147483647, %v2174_v39  ;;  %vm2181_vm2 = vweird.f32 %v2174_v39 }
0x1e9b   :  { %v2188_v22 = vor.u32 1.1754944e-38, %v2187_v12  ;;  %vm2186_vm4 = vcmp.eq.f32.partialorder %v2185_v16, 8.507059e+37 }
0x1e9e   :  { %v4196_v47 = vpop.eup %4195 }
0x1e9f   :  { %v4198_v54 = vpop.eup %4197  ;;  %v2175_v57 = vadd.f32 1.0, %v4196_v47 }
0x1ea0   :  { %v2177_v48 = vmul.f32 %v4198_v54, %v2174_v39  ;;  %vm2182_vm1 = vweird.f32 %v4198_v54 }
0x1ea1   :  { %4199 = vrcp.f32 %v2175_v57  ;;  %vm2183_vm3 = vmor %vm2181_vm2, %vm2182_vm1  ;;  %v2202_v34 = vand.u32 2147483648, %v2175_v57  ;;  %v2200_v56 = vand.u32 2147483647, %v2175_v57  ;;  %vm2196_vm6 = vweird.f32 %v2175_v57 }
0x1ea2   :  { %v2178_v60 = vsub.f32 1.0, %v2177_v48 }
0x1ea3   :  { %v2203_v26 = vor.u32 1.1754944e-38, %v2202_v34  ;;  %vm2201_vm8 = vcmp.eq.f32.partialorder %v2200_v56, 8.507059e+37 }
0x1ea4   :  { %v2179_v9 = vmul.f32 %v4198_v54, %v2178_v60 }
0x1ea6   :  { %v2180_v15 = vadd.f32 %v4198_v54, %v2179_v9 }
0x1ea7   :  { %v4200_v19 = vpop.eup %4199 }
0x1ea8   :  { %v2184_v24 = vsel %vm2183_vm3, %v4198_v54, %v2180_v15  ;;  %v2192_v55 = vmul.f32 %v4200_v19, %v2175_v57  ;;  %vm2197_vm5 = vweird.f32 %v4200_v19 }
0x1ea9   :  { %v2189_v40 = vsel %vm2186_vm4, %v2188_v22, %v2184_v24  ;;  %vm2198_vm7 = vmor %vm2196_vm6, %vm2197_vm5 }
0x1eaa   :  { %v2220_v28 = vmul.f32 %v2216_v29, %v2189_v40  ;;  %v2193_v31 = vsub.f32 1.0, %v2192_v55  ;;  %v2234_v16 = vsub.f32 1.0, %v2189_v40  ;;  %v2246_v24 = vmul.f32 %v2189_v40, %v4793_v52  ;;  %v3872_v40 = vld [vmem:[%s5425_s0 + $0x80] sm:$0xff]  }
0x1eab   :  { %v3780_v34 = vunpack.c.l.bf16 %v3872_v40 }
0x1eac   :  { %v2194_v61 = vmul.f32 %v4200_v19, %v2193_v31  ;;  %2224 = vrot.lane.b32.xlu2 %v2220_v28, %s4315_s6 }
0x1eae   :  { %v2195_v23 = vadd.f32 %v4200_v19, %v2194_v61 }
0x1eb0   :  { %v2199_v27 = vsel %vm2198_vm7, %v4200_v19, %v2195_v23  ;;  %v3781_v23 = vunpack.c.h.bf16 %v3872_v40 }
0x1eb1   :  { %v2204_v39 = vsel %vm2201_vm8, %v2203_v26, %v2199_v27 }
0x1eb2   :  { %v2221_v47 = vmul.f32 %v2218_v0, %v2204_v39  ;;  %v2235_v19 = vsub.f32 1.0, %v2204_v39  ;;  %v2247_v29 = vmul.f32 %v2204_v39, %v4795_v14 }
0x1eb4   :  { %2226 = vrot.lane.b32.xlu0 %v2221_v47, %s4315_s6 }
0x1f06   :  { %v2225_v54 = vpop.permute.xlu2 %2224 }
0x1f07   :  { %v2230_v48 = vadd.f32 %v3772_v35, %v2225_v54 }
0x1f09   :  { %4201 = vtanh.f32 %v2230_v48 }
0x1f0f   :  { %v4202_v60 = vpop.eup %4201 }
0x1f10   :  { %2238 = vrot.lane.b32.xlu1 %v4202_v60, %s4316_s7 }
0x1f26   :  { %v2227_v12 = vpop.permute.xlu0 %2226 }
0x1f27   :  { %v2231_v13 = vadd.f32 %v3773_v25, %v2227_v12 }
0x1f29   :  { %4203 = vtanh.f32 %v2231_v13 }
0x1f2f   :  { %v4204_v57 = vpop.eup %4203 }
0x1f30   :  { %2240 = vrot.lane.b32.xlu2 %v4204_v57, %s4316_s7 }
0x1f82   :  { %v2239_v9 = vpop.permute.xlu1 %2238 }
0x1f83   :  { %v2244_v15 = vmul.f32 %v2239_v9, %v2234_v16 }
0x1f85   :  { %v4817_v55 = vadd.f32 %v2246_v24, %v2244_v15 }
0x1f8a   :  { %v2241_v22 = vpop.permute.xlu2 %2240 }
0x1f8b   :  { %v2245_v35 = vmul.f32 %v2241_v22, %v2235_v19 }
0x1f8d   :  { %v4819_v28 = vadd.f32 %v2247_v29, %v2245_v35 }
0x1f8f   :  { %v2281_v25 = vpack.c.bf16 %v4819_v28, %v4817_v55 }
0x1f91   :  { %2283 = vrot.lane.b32.xlu0 %v2281_v25, %s4316_s7 }
0x2003   :  { %v2284_v31 = vpop.permute.xlu0 %2283 }
0x2004   :  { %3568 = vmatmul.msk.bf16.vlgmr.msra.gmra.mxu0 %vm25_vm0, %v2284_v31  ;;  %3571 = vmatmul.msk.bf16.vlgmr.msra.gmra.mxu1 %vm25_vm0, %v2284_v31 }
0x2005   :  { %2846 = vmatpush.bf16.msra.mxu0 %v4732_v49  ;;  %2902 = vmatpush.bf16.msra.mxu1 %v4738_v38 }
0x2009   :  { %2847 = vmatpush.bf16.msra.mxu0 %v4744_v4  ;;  %2903 = vmatpush.bf16.msra.mxu1 %v4750_v53 }
0x2081   :  { %v2297_v61 = vpop.f32.mrf.mxu0  ;;  %v2353_v9 = vpop.f32.mrf.mxu1 }
0x2082   :  { %v2304_v56 = vadd.f32 %v3780_v34, %v2297_v61  ;;  %v2354_v35 = vadd.f32 %v4759_v43, %v2353_v9 }
0x2084   :  { %v3569_v42 = vmul.f32 -1.442695, %v2304_v56 }
0x2086   :  { %4205 = vpow2.f32 %v3569_v42 }
0x2089   :  { %v2299_v26 = vpop.f32.mrf.mxu0 }
0x208a   :  { %v2305_v27 = vadd.f32 %v3781_v23, %v2299_v26 }
0x208c   :  { %v4206_v0 = vpop.eup %4205  ;;  %v3570_v39 = vmul.f32 -1.442695, %v2305_v27  ;;  %v2355_v27 = vpop.f32.mrf.mxu1 }
0x208d   :  { %v2312_v47 = vadd.f32 1.0, %v4206_v0 }
0x208e   :  { %4207 = vpow2.f32 %v3570_v39 }
0x208f   :  { %4209 = vrcp.f32 %v2312_v47  ;;  %v2325_v57 = vand.u32 2147483648, %v2312_v47  ;;  %v2323_v15 = vand.u32 2147483647, %v2312_v47  ;;  %vm2319_vm10 = vweird.f32 %v2312_v47 }
0x2091   :  { %v2326_v24 = vor.u32 1.1754944e-38, %v2325_v57  ;;  %vm2324_vm12 = vcmp.eq.f32.partialorder %v2323_v15, 8.507059e+37 }
0x2094   :  { %v4208_v54 = vpop.eup %4207 }
0x2095   :  { %v4210_v48 = vpop.eup %4209  ;;  %v2313_v60 = vadd.f32 1.0, %v4208_v54  ;;  %v2356_v54 = vadd.f32 %v4759_v43, %v2355_v27 }
0x2096   :  { %v2315_v12 = vmul.f32 %v4210_v48, %v2312_v47  ;;  %vm2320_vm9 = vweird.f32 %v4210_v48 }
0x2097   :  { %4211 = vrcp.f32 %v2313_v60  ;;  %vm2321_vm11 = vmor %vm2319_vm10, %vm2320_vm9  ;;  %v2340_v56 = vand.u32 2147483648, %v2313_v60  ;;  %v2338_v26 = vand.u32 2147483647, %v2313_v60  ;;  %vm2334_vm14 = vweird.f32 %v2313_v60 }
0x2098   :  { %v2316_v13 = vsub.f32 1.0, %v2315_v12 }
0x2099   :  { %v2341_v39 = vor.u32 1.1754944e-38, %v2340_v56  ;;  %vm2339_vm1 = vcmp.eq.f32.partialorder %v2338_v26, 8.507059e+37 }
0x209a   :  { %v2317_v16 = vmul.f32 %v4210_v48, %v2316_v13 }
0x209c   :  { %v2318_v19 = vadd.f32 %v4210_v48, %v2317_v16 }
0x209d   :  { %v4212_v22 = vpop.eup %4211 }
0x209e   :  { %v2322_v29 = vsel %vm2321_vm11, %v4210_v48, %v2318_v19  ;;  %v2330_v25 = vmul.f32 %v4212_v22, %v2313_v60  ;;  %vm2335_vm13 = vweird.f32 %v4212_v22 }
0x209f   :  { %v2327_v31 = vsel %vm2324_vm12, %v2326_v24, %v2322_v29  ;;  %vm2336_vm15 = vmor %vm2334_vm14, %vm2335_vm13 }
0x20a0   :  { %v2358_v40 = vmul.f32 %v2354_v35, %v2327_v31  ;;  %v2331_v61 = vsub.f32 1.0, %v2330_v25  ;;  %v2372_v29 = vsub.f32 1.0, %v2327_v31 }
0x20a2   :  { %v2332_v42 = vmul.f32 %v4212_v22, %v2331_v61  ;;  %2362 = vrot.lane.b32.xlu1 %v2358_v40, %s4315_s6  ;;  %v2384_v40 = vmul.f32 %v2327_v31, %v4817_v55  ;;  %v3874_v31 = vld [vmem:[%s5425_s0 + $0x88] sm:$0xff]  }
0x20a3   :  { %v3788_v26 = vunpack.c.l.bf16 %v3874_v31 }
0x20a4   :  { %v2333_v0 = vadd.f32 %v4212_v22, %v2332_v42 }
0x20a6   :  { %v2337_v47 = vsel %vm2336_vm15, %v4212_v22, %v2333_v0 }
0x20a7   :  { %v2342_v48 = vsel %vm2339_vm1, %v2341_v39, %v2337_v47  ;;  %v3789_v47 = vunpack.c.h.bf16 %v3874_v31 }
0x20a8   :  { %v2359_v12 = vmul.f32 %v2356_v54, %v2342_v48  ;;  %v2373_v22 = vsub.f32 1.0, %v2342_v48  ;;  %v2385_v25 = vmul.f32 %v2342_v48, %v4819_v28 }
0x20aa   :  { %2364 = vrot.lane.b32.xlu2 %v2359_v12, %s4315_s6 }
0x2104   :  { %v2365_v13 = vpop.permute.xlu2 %2364 }
0x2105   :  { %v2369_v57 = vadd.f32 %v3781_v23, %v2365_v13 }
0x2107   :  { %4213 = vtanh.f32 %v2369_v57 }
0x210d   :  { %v4214_v9 = vpop.eup %4213 }
0x210e   :  { %2378 = vrot.lane.b32.xlu1 %v4214_v9, %s4316_s7 }
0x2114   :  { %v2363_v16 = vpop.permute.xlu1 %2362 }
0x2115   :  { %v2368_v15 = vadd.f32 %v3780_v34, %v2363_v16 }
0x2117   :  { %4215 = vtanh.f32 %v2368_v15 }
0x211d   :  { %v4216_v60 = vpop.eup %4215 }
0x211e   :  { %2376 = vrot.lane.b32.xlu0 %v4216_v60, %s4316_s7 }
0x2180   :  { %v2379_v19 = vpop.permute.xlu1 %2378 }
0x2181   :  { %v2383_v24 = vmul.f32 %v2379_v19, %v2373_v22 }
0x2183   :  { %v4841_v61 = vadd.f32 %v2385_v25, %v2383_v24 }
0x2190   :  { %v2377_v35 = vpop.permute.xlu0 %2376 }
0x2191   :  { %v2382_v23 = vmul.f32 %v2377_v35, %v2372_v29 }
0x2193   :  { %v4843_v56 = vadd.f32 %v2384_v40, %v2382_v23 }
0x2195   :  { %v2419_v34 = vpack.c.bf16 %v4841_v61, %v4843_v56 }
0x2197   :  { %2421 = vrot.lane.b32.xlu2 %v2419_v34, %s4316_s7 }
0x21f1   :  { %v2422_v42 = vpop.permute.xlu2 %2421 }
0x21f2   :  { %3578 = vmatmul.msk.bf16.vlgmr.msra.gmra.mxu2 %vm25_vm0, %v2422_v42  ;;  %3581 = vmatmul.msk.bf16.vlgmr.msra.gmra.mxu3 %vm25_vm0, %v2422_v42 }
0x21f3   :  { %2984 = vmatpush.bf16.msra.mxu2 %v4732_v49  ;;  %3040 = vmatpush.bf16.msra.mxu3 %v4738_v38 }
0x21f7   :  { %2985 = vmatpush.bf16.msra.mxu2 %v4744_v4  ;;  %3041 = vmatpush.bf16.msra.mxu3 %v4750_v53 }
0x2275   :  { %v2435_v27 = vpop.f32.mrf.mxu2  ;;  %v2491_v24 = vpop.f32.mrf.mxu3 }
0x2276   :  { %v2442_v0 = vadd.f32 %v3788_v26, %v2435_v27  ;;  %v2492_v42 = vadd.f32 %v4759_v43, %v2491_v24 }
0x2278   :  { %v3579_v39 = vmul.f32 -1.442695, %v2442_v0 }
0x227a   :  { %4217 = vpow2.f32 %v3579_v39 }
0x227d   :  { %v2437_v54 = vpop.f32.mrf.mxu2 }
0x227e   :  { %v2443_v48 = vadd.f32 %v3789_v47, %v2437_v54 }
0x2280   :  { %v4218_v12 = vpop.eup %4217  ;;  %v3580_v13 = vmul.f32 -1.442695, %v2443_v48 }
0x2281   :  { %v2450_v57 = vadd.f32 1.0, %v4218_v12 }
0x2282   :  { %4219 = vpow2.f32 %v3580_v13  ;;  %v2493_v13 = vpop.f32.mrf.mxu3 }
0x2283   :  { %4221 = vrcp.f32 %v2450_v57  ;;  %v2463_v22 = vand.u32 2147483648, %v2450_v57  ;;  %v2461_v35 = vand.u32 2147483647, %v2450_v57  ;;  %vm2457_vm3 = vweird.f32 %v2450_v57 }
0x2285   :  { %v2464_v23 = vor.u32 1.1754944e-38, %v2463_v22  ;;  %vm2462_vm5 = vcmp.eq.f32.partialorder %v2461_v35, 8.507059e+37 }
0x2288   :  { %v4220_v9 = vpop.eup %4219 }
0x2289   :  { %v4222_v16 = vpop.eup %4221  ;;  %v2451_v15 = vadd.f32 1.0, %v4220_v9 }
0x228a   :  { %v2453_v60 = vmul.f32 %v4222_v16, %v2450_v57  ;;  %vm2458_vm2 = vweird.f32 %v4222_v16 }
0x228b   :  { %4223 = vrcp.f32 %v2451_v15  ;;  %vm2459_vm4 = vmor %vm2457_vm3, %vm2458_vm2  ;;  %v2478_v54 = vand.u32 2147483648, %v2451_v15  ;;  %v2476_v12 = vand.u32 2147483647, %v2451_v15  ;;  %vm2472_vm7 = vweird.f32 %v2451_v15 }
0x228c   :  { %v2454_v19 = vsub.f32 1.0, %v2453_v60 }
0x228d   :  { %v2479_v57 = vor.u32 1.1754944e-38, %v2478_v54  ;;  %vm2477_vm9 = vcmp.eq.f32.partialorder %v2476_v12, 8.507059e+37 }
0x228e   :  { %v2455_v29 = vmul.f32 %v4222_v16, %v2454_v19 }
0x2290   :  { %v2456_v25 = vadd.f32 %v4222_v16, %v2455_v29 }
0x2291   :  { %v4224_v40 = vpop.eup %4223 }
0x2292   :  { %v2460_v34 = vsel %vm2459_vm4, %v4222_v16, %v2456_v25  ;;  %v2468_v31 = vmul.f32 %v4224_v40, %v2451_v15  ;;  %vm2473_vm6 = vweird.f32 %v4224_v40  ;;  %v2494_v16 = vadd.f32 %v4759_v43, %v2493_v13 }
0x2293   :  { %v2465_v27 = vsel %vm2462_vm5, %v2464_v23, %v2460_v34  ;;  %vm2474_vm8 = vmor %vm2472_vm7, %vm2473_vm6 }
0x2294   :  { %v2496_v0 = vmul.f32 %v2492_v42, %v2465_v27  ;;  %v2469_v39 = vsub.f32 1.0, %v2468_v31  ;;  %v2510_v34 = vsub.f32 1.0, %v2465_v27 }
0x2296   :  { %v2470_v48 = vmul.f32 %v4224_v40, %v2469_v39  ;;  %2500 = vrot.lane.b32.xlu0 %v2496_v0, %s4315_s6  ;;  %v2522_v39 = vmul.f32 %v2465_v27, %v4843_v56  ;;  %v3876_v27 = vld [vmem:[%s5425_s0 + $0x90] sm:$0xff]  }
0x2298   :  { %v2471_v9 = vadd.f32 %v4224_v40, %v2470_v48 }
0x229a   :  { %v2475_v60 = vsel %vm2474_vm8, %v4224_v40, %v2471_v9  ;;  %v3796_v9 = vunpack.c.l.bf16 %v3876_v27 }
0x229b   :  { %v2480_v19 = vsel %vm2477_vm9, %v2479_v57, %v2475_v60 }
0x229c   :  { %v2497_v22 = vmul.f32 %v2494_v16, %v2480_v19  ;;  %v2511_v31 = vsub.f32 1.0, %v2480_v19  ;;  %v2523_v54 = vmul.f32 %v2480_v19, %v4841_v61  ;;  %v3797_v19 = vunpack.c.h.bf16 %v3876_v27 }
0x229e   :  { %2502 = vrot.lane.b32.xlu1 %v2497_v22, %s4315_s6 }
0x2308   :  { %v2501_v24 = vpop.permute.xlu0 %2500 }
0x2309   :  { %v2506_v29 = vadd.f32 %v3788_v26, %v2501_v24 }
0x230b   :  { %4225 = vtanh.f32 %v2506_v29 }
0x2310   :  { %v2503_v35 = vpop.permute.xlu1 %2502 }
0x2311   :  { %v4226_v25 = vpop.eup %4225  ;;  %v2507_v23 = vadd.f32 %v3789_v47, %v2503_v35 }
0x2312   :  { %2514 = vrot.lane.b32.xlu2 %v4226_v25, %s4316_s7 }
0x2313   :  { %4227 = vtanh.f32 %v2507_v23 }
0x2319   :  { %v4228_v15 = vpop.eup %4227 }
0x231a   :  { %2516 = vrot.lane.b32.xlu0 %v4228_v15, %s4316_s7 }
0x236c   :  { %v2515_v40 = vpop.permute.xlu2 %2514 }
0x236d   :  { %v2520_v42 = vmul.f32 %v2515_v40, %v2510_v34 }
0x236f   :  { %v4865_v48 = vadd.f32 %v2522_v39, %v2520_v42 }
0x238c   :  { %v2517_v0 = vpop.permute.xlu0 %2516 }
0x238d   :  { %v2521_v26 = vmul.f32 %v2517_v0, %v2511_v31 }
0x238f   :  { %v4867_v12 = vadd.f32 %v2523_v54, %v2521_v26 }
0x2391   :  { %v2557_v47 = vpack.c.bf16 %v4867_v12, %v4865_v48 }
0x2393   :  { %2559 = vrot.lane.b32.xlu1 %v2557_v47, %s4316_s7 }
0x2405   :  { %v2560_v13 = vpop.permute.xlu1 %2559 }
0x2406   :  { %3588 = vmatmul.msk.bf16.vlgmr.msrb.gmra.mxu0 %vm25_vm0, %v2560_v13  ;;  %3591 = vmatmul.msk.bf16.vlgmr.msrb.gmra.mxu1 %vm25_vm0, %v2560_v13 }
0x2407   :  { %3122 = vmatpush.bf16.msrb.mxu0 %v4732_v49  ;;  %3178 = vmatpush.bf16.msrb.mxu1 %v4738_v38 }
0x240b   :  { %3123 = vmatpush.bf16.msrb.mxu0 %v4744_v4  ;;  %3179 = vmatpush.bf16.msrb.mxu1 %v4750_v53 }
0x2483   :  { %v2573_v57 = vpop.f32.mrf.mxu0  ;;  %v2629_v0 = vpop.f32.mrf.mxu1 }
0x2484   :  { %v2580_v60 = vadd.f32 %v3796_v9, %v2573_v57  ;;  %v2630_v57 = vadd.f32 %v4759_v43, %v2629_v0 }
0x2486   :  { %v3589_v16 = vmul.f32 -1.442695, %v2580_v60 }
0x2488   :  { %4229 = vpow2.f32 %v3589_v16 }
0x248b   :  { %v2575_v22 = vpop.f32.mrf.mxu0 }
0x248c   :  { %v2581_v24 = vadd.f32 %v3797_v19, %v2575_v22 }
0x248e   :  { %v4230_v29 = vpop.eup %4229  ;;  %v3590_v35 = vmul.f32 -1.442695, %v2581_v24 }
0x248f   :  { %v2588_v25 = vadd.f32 1.0, %v4230_v29 }
0x2490   :  { %4231 = vpow2.f32 %v3590_v35 }
0x2491   :  { %4233 = vrcp.f32 %v2588_v25  ;;  %v2601_v31 = vand.u32 2147483648, %v2588_v25  ;;  %v2599_v54 = vand.u32 2147483647, %v2588_v25  ;;  %vm2595_vm11 = vweird.f32 %v2588_v25 }
0x2493   :  { %v2602_v13 = vor.u32 1.1754944e-38, %v2601_v31  ;;  %vm2600_vm13 = vcmp.eq.f32.partialorder %v2599_v54, 8.507059e+37 }
0x2496   :  { %v4232_v23 = vpop.eup %4231 }
0x2497   :  { %v4234_v15 = vpop.eup %4233  ;;  %v2589_v40 = vadd.f32 1.0, %v4232_v23 }
0x2498   :  { %v2591_v34 = vmul.f32 %v4234_v15, %v2588_v25  ;;  %vm2596_vm10 = vweird.f32 %v4234_v15 }
0x2499   :  { %4235 = vrcp.f32 %v2589_v40  ;;  %vm2597_vm12 = vmor %vm2595_vm11, %vm2596_vm10  ;;  %v2616_v29 = vand.u32 2147483648, %v2589_v40  ;;  %v2614_v23 = vand.u32 2147483647, %v2589_v40  ;;  %vm2610_vm15 = vweird.f32 %v2589_v40 }
0x249a   :  { %v2592_v42 = vsub.f32 1.0, %v2591_v34  ;;  %v2631_v34 = vpop.f32.mrf.mxu1 }
0x249b   :  { %v2617_v25 = vor.u32 1.1754944e-38, %v2616_v29  ;;  %vm2615_vm2 = vcmp.eq.f32.partialorder %v2614_v23, 8.507059e+37 }
0x249c   :  { %v2593_v39 = vmul.f32 %v4234_v15, %v2592_v42 }
0x249e   :  { %v2594_v26 = vadd.f32 %v4234_v15, %v2593_v39 }
0x249f   :  { %v4236_v47 = vpop.eup %4235 }
0x24a0   :  { %v2598_v27 = vsel %vm2597_vm12, %v4234_v15, %v2594_v26  ;;  %v2606_v60 = vmul.f32 %v4236_v47, %v2589_v40  ;;  %vm2611_vm14 = vweird.f32 %v4236_v47  ;;  %v2632_v15 = vadd.f32 %v4759_v43, %v2631_v34 }
0x24a1   :  { %v2603_v16 = vsel %vm2600_vm13, %v2602_v13, %v2598_v27  ;;  %vm2612_vm1 = vmor %vm2610_vm15, %vm2611_vm14 }
0x24a2   :  { %v2634_v22 = vmul.f32 %v2630_v57, %v2603_v16  ;;  %v2607_v24 = vsub.f32 1.0, %v2606_v60  ;;  %v2648_v60 = vsub.f32 1.0, %v2603_v16 }
0x24a4   :  { %v2608_v35 = vmul.f32 %v4236_v47, %v2607_v24  ;;  %2638 = vrot.lane.b32.xlu2 %v2634_v22, %s4315_s6 }
0x24a6   :  { %v2609_v42 = vadd.f32 %v4236_v47, %v2608_v35  ;;  %v2660_v35 = vmul.f32 %v2603_v16, %v4865_v48  ;;  %v3878_v16 = vld [vmem:[%s5425_s0 + $0x98] sm:$0xff]  }
0x24a8   :  { %v2613_v31 = vsel %vm2612_vm1, %v4236_v47, %v2609_v42 }
0x24a9   :  { %v2618_v0 = vsel %vm2615_vm2, %v2617_v25, %v2613_v31  ;;  %v3804_v31 = vunpack.c.l.bf16 %v3878_v16 }
0x24aa   :  { %v2635_v39 = vmul.f32 %v2632_v15, %v2618_v0  ;;  %v2649_v24 = vsub.f32 1.0, %v2618_v0  ;;  %v2661_v23 = vmul.f32 %v2618_v0, %v4867_v12 }
0x24ac   :  { %2640 = vrot.lane.b32.xlu0 %v2635_v39, %s4315_s6 }
0x24fe   :  { %v2639_v54 = vpop.permute.xlu2 %2638 }
0x24ff   :  { %v2644_v26 = vadd.f32 %v3796_v9, %v2639_v54  ;;  %v3805_v54 = vunpack.c.h.bf16 %v3878_v16 }
0x2501   :  { %4237 = vtanh.f32 %v2644_v26 }
0x2507   :  { %v4238_v13 = vpop.eup %4237 }
0x2508   :  { %2652 = vrot.lane.b32.xlu1 %v4238_v13, %s4316_s7 }
0x251e   :  { %v2641_v27 = vpop.permute.xlu0 %2640 }
0x251f   :  { %v2645_v57 = vadd.f32 %v3797_v19, %v2641_v27 }
0x2521   :  { %4239 = vtanh.f32 %v2645_v57 }
0x2527   :  { %v4240_v40 = vpop.eup %4239 }
0x2528   :  { %2654 = vrot.lane.b32.xlu2 %v4240_v40, %s4316_s7 }
0x257a   :  { %v2653_v47 = vpop.permute.xlu1 %2652 }
0x257b   :  { %v2658_v22 = vmul.f32 %v2653_v47, %v2648_v60 }
0x257d   :  { %v4889_v34 = vadd.f32 %v2660_v35, %v2658_v22 }
0x2582   :  { %v2655_v29 = vpop.permute.xlu2 %2654 }
0x2583   :  { %v2659_v9 = vmul.f32 %v2655_v29, %v2649_v24 }
0x2585   :  { %v4891_v42 = vadd.f32 %v2661_v23, %v2659_v9 }
0x2587   :  { %v2695_v19 = vpack.c.bf16 %v4891_v42, %v4889_v34 }
0x2589   :  { %2697 = vrot.lane.b32.xlu0 %v2695_v19, %s4316_s7 }
0x25fb   :  { %v2698_v25 = vpop.permute.xlu0 %2697 }
0x25fc   :  { %3598 = vmatmul.msk.bf16.vlgmr.msrb.gmra.mxu2 %vm25_vm0, %v2698_v25  ;;  %3601 = vmatmul.msk.bf16.vlgmr.msrb.gmra.mxu3 %vm25_vm0, %v2698_v25 }
0x25fd   :  { %3260 = vmatpush.bf16.msrb.mxu2 %v4732_v49  ;;  %3316 = vmatpush.bf16.msrb.mxu3 %v4738_v38 }
0x2601   :  { %3261 = vmatpush.bf16.msrb.mxu2 %v4744_v4  ;;  %3317 = vmatpush.bf16.msrb.mxu3 %v4750_v53 }
0x267f   :  { %v2711_v15 = vpop.f32.mrf.mxu2  ;;  %v2767_v22 = vpop.f32.mrf.mxu3 }
0x2680   :  { %v2718_v0 = vadd.f32 %v3804_v31, %v2711_v15  ;;  %v2768_v25 = vadd.f32 %v4759_v43, %v2767_v22 }
0x2682   :  { %v3599_v39 = vmul.f32 -1.442695, %v2718_v0 }
0x2684   :  { %4241 = vpow2.f32 %v3599_v39 }
0x2687   :  { %v2713_v26 = vpop.f32.mrf.mxu2 }
0x2688   :  { %v2719_v13 = vadd.f32 %v3805_v54, %v2713_v26 }
0x268a   :  { %v4242_v27 = vpop.eup %4241  ;;  %v3600_v49 = vmul.f32 -1.442695, %v2719_v13 }
0x268b   :  { %v2726_v57 = vadd.f32 1.0, %v4242_v27 }
0x268c   :  { %4243 = vpow2.f32 %v3600_v49  ;;  %v2769_v49 = vpop.f32.mrf.mxu3 }
0x268d   :  { %4245 = vrcp.f32 %v2726_v57  ;;  %v2739_v60 = vand.u32 2147483648, %v2726_v57  ;;  %v2737_v29 = vand.u32 2147483647, %v2726_v57  ;;  %vm2733_vm4 = vweird.f32 %v2726_v57 }
0x268f   :  { %v2740_v9 = vor.u32 1.1754944e-38, %v2739_v60  ;;  %vm2738_vm6 = vcmp.eq.f32.partialorder %v2737_v29, 8.507059e+37 }
0x2692   :  { %v4244_v38 = vpop.eup %4243 }
0x2693   :  { %v4246_v4 = vpop.eup %4245  ;;  %v2727_v53 = vadd.f32 1.0, %v4244_v38 }
0x2694   :  { %v2729_v40 = vmul.f32 %v4246_v4, %v2726_v57  ;;  %vm2734_vm3 = vweird.f32 %v4246_v4 }
0x2695   :  { %4247 = vrcp.f32 %v2727_v53  ;;  %vm2735_vm5 = vmor %vm2733_vm4, %vm2734_vm3  ;;  %v2754_v26 = vand.u32 2147483648, %v2727_v53  ;;  %v2752_v27 = vand.u32 2147483647, %v2727_v53  ;;  %vm2748_vm8 = vweird.f32 %v2727_v53 }
0x2696   :  { %v2730_v47 = vsub.f32 1.0, %v2729_v40 }
0x2697   :  { %v2755_v57 = vor.u32 1.1754944e-38, %v2754_v26  ;;  %vm2753_vm10 = vcmp.eq.f32.partialorder %v2752_v27, 8.507059e+37 }
0x2698   :  { %v2731_v24 = vmul.f32 %v4246_v4, %v2730_v47 }
0x269a   :  { %v2732_v35 = vadd.f32 %v4246_v4, %v2731_v24 }
0x269b   :  { %v4248_v23 = vpop.eup %4247 }
0x269c   :  { %v2736_v19 = vsel %vm2735_vm5, %v4246_v4, %v2732_v35  ;;  %v2744_v16 = vmul.f32 %v4248_v23, %v2727_v53  ;;  %vm2749_vm7 = vweird.f32 %v4248_v23  ;;  %v2770_v4 = vadd.f32 %v4759_v43, %v2769_v49  ;;  %v3880_v49 = vld [vmem:[%s5425_s0 + $0xa0] sm:$0xff]  }
0x269d   :  { %v2741_v15 = vsel %vm2738_vm6, %v2740_v9, %v2736_v19  ;;  %vm2750_vm9 = vmor %vm2748_vm8, %vm2749_vm7 }
0x269e   :  { %v2772_v0 = vmul.f32 %v2768_v25, %v2741_v15  ;;  %v2745_v39 = vsub.f32 1.0, %v2744_v16  ;;  %v2786_v43 = vsub.f32 1.0, %v2741_v15 }
0x26a0   :  { %v2746_v13 = vmul.f32 %v4248_v23, %v2745_v39  ;;  %2776 = vrot.lane.b32.xlu1 %v2772_v0, %s4315_s6  ;;  %v2798_v39 = vmul.f32 %v2741_v15, %v4889_v34  ;;  %v3812_v15 = vunpack.c.l.bf16 %v3880_v49 }
0x26a2   :  { %v2747_v38 = vadd.f32 %v4248_v23, %v2746_v13 }
0x26a4   :  { %v2751_v40 = vsel %vm2750_vm9, %v4248_v23, %v2747_v38 }
0x26a5   :  { %v2756_v47 = vsel %vm2753_vm10, %v2755_v57, %v2751_v40 }
0x26a6   :  { %v2773_v60 = vmul.f32 %v2770_v4, %v2756_v47  ;;  %v2787_v19 = vsub.f32 1.0, %v2756_v47  ;;  %v2799_v0 = vmul.f32 %v2756_v47, %v4891_v42  ;;  %v3813_v4 = vunpack.c.h.bf16 %v3880_v49  ;;  %v4928_v49 = vld [vmem:[%s5424_s4] ss:$0 sm:$0xff] }
0x26a8   :  { %2778 = vrot.lane.b32.xlu2 %v2773_v60, %s4315_s6 }
0x2702   :  { %v2779_v22 = vpop.permute.xlu2 %2778 }
0x2703   :  { %v2783_v24 = vadd.f32 %v3805_v54, %v2779_v22 }
0x2705   :  { %4249 = vtanh.f32 %v2783_v24 }
0x270b   :  { %v4250_v29 = vpop.eup %4249 }
0x270c   :  { %2792 = vrot.lane.b32.xlu1 %v4250_v29, %s4316_s7 }
0x2712   :  { %v2777_v35 = vpop.permute.xlu1 %2776 }
0x2713   :  { %v2782_v9 = vadd.f32 %v3804_v31, %v2777_v35 }
0x2715   :  { %4251 = vtanh.f32 %v2782_v9 }
0x271b   :  { %v4252_v53 = vpop.eup %4251 }
0x271c   :  { %2790 = vrot.lane.b32.xlu0 %v4252_v53, %s4316_s7 }
0x277e   :  { %v2793_v23 = vpop.permute.xlu1 %2792 }
0x277f   :  { %v2797_v25 = vmul.f32 %v2793_v23, %v2787_v19 }
0x2781   :  { %v4913_v26 = vadd.f32 %v2799_v0, %v2797_v25 }
0x2783   :  { %5430 = vst [vmem:[#allocation3_spill] sm:$0xff] %v4913_v26 }
0x278e   :  { %v2791_v16 = vpop.permute.xlu0 %2790 }
0x278f   :  { %v2796_v54 = vmul.f32 %v2791_v16, %v2786_v43 }
0x2791   :  { %v4915_v13 = vadd.f32 %v2798_v39, %v2796_v54 }
0x2793   :  { %v2833_v31 = vpack.c.bf16 %v4913_v26, %v4915_v13 }
0x2795   :  { %2835 = vrot.lane.b32.xlu2 %v2833_v31, %s4316_s7 }
0x27ef   :  { %v2836_v27 = vpop.permute.xlu2 %2835 }
0x27f0   :  { %3608 = vmatmul.msk.bf16.vlgmr.msra.gmra.mxu0 %vm25_vm0, %v2836_v27  ;;  %3611 = vmatmul.msk.bf16.vlgmr.msra.gmra.mxu1 %vm25_vm0, %v2836_v27 }
0x286d   :  { %v2849_v38 = vpop.f32.mrf.mxu0  ;;  %v2905_v43 = vpop.f32.mrf.mxu1 }
0x286e   :  { %v2856_v57 = vadd.f32 %v3812_v15, %v2849_v38  ;;  %v2906_v38 = vadd.f32 %v4928_v49, %v2905_v43 }
0x2870   :  { %v3609_v40 = vmul.f32 -1.442695, %v2856_v57 }
0x2872   :  { %4253 = vpow2.f32 %v3609_v40 }
0x2875   :  { %v2851_v47 = vpop.f32.mrf.mxu0 }
0x2876   :  { %v2857_v60 = vadd.f32 %v3813_v4, %v2851_v47 }
0x2878   :  { %v4254_v22 = vpop.eup %4253  ;;  %v3610_v24 = vmul.f32 -1.442695, %v2857_v60 }
0x2879   :  { %v2864_v29 = vadd.f32 1.0, %v4254_v22 }
0x287a   :  { %4255 = vpow2.f32 %v3610_v24 }
0x287b   :  { %4257 = vrcp.f32 %v2864_v29  ;;  %v2877_v25 = vand.u32 2147483648, %v2864_v29  ;;  %v2875_v0 = vand.u32 2147483647, %v2864_v29  ;;  %vm2871_vm12 = vweird.f32 %v2864_v29 }
0x287d   :  { %v2878_v31 = vor.u32 1.1754944e-38, %v2877_v25  ;;  %vm2876_vm14 = vcmp.eq.f32.partialorder %v2875_v0, 8.507059e+37 }
0x2880   :  { %v4256_v35 = vpop.eup %4255 }
0x2881   :  { %v4258_v9 = vpop.eup %4257  ;;  %v2865_v53 = vadd.f32 1.0, %v4256_v35  ;;  %v2907_v35 = vpop.f32.mrf.mxu1 }
0x2882   :  { %v2867_v23 = vmul.f32 %v4258_v9, %v2864_v29  ;;  %vm2872_vm11 = vweird.f32 %v4258_v9  ;;  %v2908_v25 = vadd.f32 %v4928_v49, %v2907_v35 }
0x2883   :  { %4259 = vrcp.f32 %v2865_v53  ;;  %vm2873_vm13 = vmor %vm2871_vm12, %vm2872_vm11  ;;  %v2892_v22 = vand.u32 2147483648, %v2865_v53  ;;  %v2890_v29 = vand.u32 2147483647, %v2865_v53  ;;  %vm2886_vm1 = vweird.f32 %v2865_v53 }
0x2884   :  { %v2868_v19 = vsub.f32 1.0, %v2867_v23 }
0x2885   :  { %v2893_v23 = vor.u32 1.1754944e-38, %v2892_v22  ;;  %vm2891_vm3 = vcmp.eq.f32.partialorder %v2890_v29, 8.507059e+37 }
0x2886   :  { %v2869_v16 = vmul.f32 %v4258_v9, %v2868_v19 }
0x2888   :  { %v2870_v39 = vadd.f32 %v4258_v9, %v2869_v16 }
0x2889   :  { %v4260_v54 = vpop.eup %4259 }
0x288a   :  { %v2874_v27 = vsel %vm2873_vm13, %v4258_v9, %v2870_v39  ;;  %v2882_v57 = vmul.f32 %v4260_v54, %v2865_v53  ;;  %vm2887_vm15 = vweird.f32 %v4260_v54 }
0x288b   :  { %v2879_v40 = vsel %vm2876_vm14, %v2878_v31, %v2874_v27  ;;  %vm2888_vm2 = vmor %vm2886_vm1, %vm2887_vm15 }
0x288c   :  { %v2910_v47 = vmul.f32 %v2906_v38, %v2879_v40  ;;  %v2883_v60 = vsub.f32 1.0, %v2882_v57  ;;  %v2924_v57 = vsub.f32 1.0, %v2879_v40 }
0x288e   :  { %v2884_v24 = vmul.f32 %v4260_v54, %v2883_v60  ;;  %2914 = vrot.lane.b32.xlu0 %v2910_v47, %s4315_s6 }
0x2890   :  { %v2885_v9 = vadd.f32 %v4260_v54, %v2884_v24  ;;  %v2936_v24 = vmul.f32 %v2879_v40, %v4915_v13  ;;  %v3882_v40 = vld [vmem:[%s5425_s0 + $0xa8] sm:$0xff]  }
0x2892   :  { %v2889_v19 = vsel %vm2888_vm2, %v4260_v54, %v2885_v9 }
0x2893   :  { %v2894_v43 = vsel %vm2891_vm3, %v2893_v23, %v2889_v19  ;;  %v3820_v19 = vunpack.c.l.bf16 %v3882_v40 }
0x2894   :  { %v2911_v16 = vmul.f32 %v2908_v25, %v2894_v43  ;;  %v2925_v60 = vsub.f32 1.0, %v2894_v43  ;;  %v2937_v29 = vmul.f32 %v2894_v43, %v4913_v26 }
0x2896   :  { %2916 = vrot.lane.b32.xlu1 %v2911_v16, %s4315_s6 }
0x2900   :  { %v2915_v0 = vpop.permute.xlu0 %2914 }
0x2901   :  { %v2920_v39 = vadd.f32 %v3812_v15, %v2915_v0  ;;  %v3821_v0 = vunpack.c.h.bf16 %v3882_v40 }
0x2903   :  { %4261 = vtanh.f32 %v2920_v39 }
0x2908   :  { %v2917_v31 = vpop.permute.xlu1 %2916 }
0x2909   :  { %v4262_v27 = vpop.eup %4261  ;;  %v2921_v38 = vadd.f32 %v3813_v4, %v2917_v31 }
0x290a   :  { %2928 = vrot.lane.b32.xlu2 %v4262_v27, %s4316_s7 }
0x290b   :  { %4263 = vtanh.f32 %v2921_v38 }
0x2911   :  { %v4264_v53 = vpop.eup %4263 }
0x2912   :  { %2930 = vrot.lane.b32.xlu0 %v4264_v53, %s4316_s7 }
0x2964   :  { %v2929_v54 = vpop.permute.xlu2 %2928 }
0x2965   :  { %v2934_v47 = vmul.f32 %v2929_v54, %v2924_v57 }
0x2967   :  { %v4938_v35 = vadd.f32 %v2936_v24, %v2934_v47 }
0x2969   :  { %5431 = vst [vmem:[#allocation4_spill] sm:$0xff] %v4938_v35 }
0x2984   :  { %v2931_v22 = vpop.permute.xlu0 %2930 }
0x2985   :  { %v2935_v15 = vmul.f32 %v2931_v22, %v2925_v60 }
0x2987   :  { %v4940_v9 = vadd.f32 %v2937_v29, %v2935_v15 }
0x2989   :  { %v2971_v4 = vpack.c.bf16 %v4940_v9, %v4938_v35 }
0x298b   :  { %2973 = vrot.lane.b32.xlu1 %v2971_v4, %s4316_s7 }
0x29fd   :  { %v2974_v23 = vpop.permute.xlu1 %2973 }
0x29fe   :  { %3618 = vmatmul.msk.bf16.vlgmr.msra.gmra.mxu2 %vm25_vm0, %v2974_v23  ;;  %3621 = vmatmul.msk.bf16.vlgmr.msra.gmra.mxu3 %vm25_vm0, %v2974_v23 }
0x2a81   :  { %v2987_v25 = vpop.f32.mrf.mxu2  ;;  %v3043_v29 = vpop.f32.mrf.mxu3 }
0x2a82   :  { %v2994_v43 = vadd.f32 %v3820_v19, %v2987_v25 }
0x2a84   :  { %v3619_v16 = vmul.f32 -1.442695, %v2994_v43 }
0x2a86   :  { %4265 = vpow2.f32 %v3619_v16  ;;  %v3044_v16 = vadd.f32 %v4928_v49, %v3043_v29 }
0x2a89   :  { %v2989_v39 = vpop.f32.mrf.mxu2 }
0x2a8a   :  { %v2995_v31 = vadd.f32 %v3821_v0, %v2989_v39 }
0x2a8c   :  { %v4266_v27 = vpop.eup %4265  ;;  %v3620_v38 = vmul.f32 -1.442695, %v2995_v31 }
0x2a8d   :  { %v3002_v53 = vadd.f32 1.0, %v4266_v27 }
0x2a8e   :  { %4267 = vpow2.f32 %v3620_v38 }
0x2a8f   :  { %4269 = vrcp.f32 %v3002_v53  ;;  %v3015_v24 = vand.u32 2147483648, %v3002_v53  ;;  %v3013_v4 = vand.u32 2147483647, %v3002_v53  ;;  %vm3009_vm5 = vweird.f32 %v3002_v53 }
0x2a91   :  { %v3016_v25 = vor.u32 1.1754944e-38, %v3015_v24  ;;  %vm3014_vm7 = vcmp.eq.f32.partialorder %v3013_v4, 8.507059e+37 }
0x2a94   :  { %v4268_v54 = vpop.eup %4267 }
0x2a95   :  { %v4270_v57 = vpop.eup %4269  ;;  %v3003_v47 = vadd.f32 1.0, %v4268_v54 }
0x2a96   :  { %v3005_v60 = vmul.f32 %v4270_v57, %v3002_v53  ;;  %vm3010_vm4 = vweird.f32 %v4270_v57 }
0x2a97   :  { %4271 = vrcp.f32 %v3003_v47  ;;  %vm3011_vm6 = vmor %vm3009_vm5, %vm3010_vm4  ;;  %v3030_v54 = vand.u32 2147483648, %v3003_v47  ;;  %v3028_v26 = vand.u32 2147483647, %v3003_v47  ;;  %vm3024_vm9 = vweird.f32 %v3003_v47 }
0x2a98   :  { %v3006_v22 = vsub.f32 1.0, %v3005_v60  ;;  %vm205_vm5 = vcmask 257024  }
0x2a99   :  { %v3031_v53 = vor.u32 1.1754944e-38, %v3030_v54  ;;  %vm3029_vm11 = vcmp.eq.f32.partialorder %v3028_v26, 8.507059e+37 }
0x2a9a   :  { %v3007_v15 = vmul.f32 %v4270_v57, %v3006_v22  ;;  %v3045_v22 = vpop.f32.mrf.mxu3 }
0x2a9c   :  { %v3008_v23 = vadd.f32 %v4270_v57, %v3007_v15 }
0x2a9d   :  { %v4272_v40 = vpop.eup %4271 }
0x2a9e   :  { %v3012_v43 = vsel %vm3011_vm6, %v4270_v57, %v3008_v23  ;;  %v3020_v39 = vmul.f32 %v4272_v40, %v3003_v47  ;;  %vm3025_vm8 = vweird.f32 %v4272_v40  ;;  %v3046_v57 = vadd.f32 %v4928_v49, %v3045_v22 }
0x2a9f   :  { %v3017_v31 = vsel %vm3014_vm7, %v3016_v25, %v3012_v43  ;;  %vm3026_vm10 = vmor %vm3024_vm9, %vm3025_vm8 }
0x2aa0   :  { %v3048_v27 = vmul.f32 %v3044_v16, %v3017_v31  ;;  %v3021_v38 = vsub.f32 1.0, %v3020_v39  ;;  %v3062_v26 = vsub.f32 1.0, %v3017_v31 }
0x2aa2   :  { %v3022_v60 = vmul.f32 %v4272_v40, %v3021_v38  ;;  %3052 = vrot.lane.b32.xlu2 %v3048_v27, %s4315_s6 }
0x2aa4   :  { %v3023_v15 = vadd.f32 %v4272_v40, %v3022_v60  ;;  %v3074_v60 = vmul.f32 %v3017_v31, %v4938_v35  ;;  %v3884_v31 = vld [vmem:[%s5425_s0 + $0xb0] sm:$0xff]  }
0x2aa6   :  { %v3027_v24 = vsel %vm3026_vm10, %v4272_v40, %v3023_v15 }
0x2aa7   :  { %v3032_v29 = vsel %vm3029_vm11, %v3031_v53, %v3027_v24 }
0x2aa8   :  { %v3049_v4 = vmul.f32 %v3046_v57, %v3032_v29  ;;  %v3063_v38 = vsub.f32 1.0, %v3032_v29  ;;  %v3075_v22 = vmul.f32 %v3032_v29, %v4940_v9  ;;  %v3828_v57 = vunpack.c.l.bf16 %v3884_v31 }
0x2aaa   :  { %3054 = vrot.lane.b32.xlu0 %v3049_v4, %s4315_s6 }
0x2afc   :  { %v3053_v23 = vpop.permute.xlu2 %3052 }
0x2afd   :  { %v3058_v25 = vadd.f32 %v3820_v19, %v3053_v23 }
0x2aff   :  { %4273 = vtanh.f32 %v3058_v25  ;;  %v3829_v25 = vunpack.c.h.bf16 %v3884_v31 }
0x2b05   :  { %v4274_v43 = vpop.eup %4273 }
0x2b06   :  { %3066 = vrot.lane.b32.xlu1 %v4274_v43, %s4316_s7 }
0x2b1c   :  { %v3055_v16 = vpop.permute.xlu0 %3054 }
0x2b1d   :  { %v3059_v39 = vadd.f32 %v3821_v0, %v3055_v16 }
0x2b1f   :  { %4275 = vtanh.f32 %v3059_v39 }
0x2b25   :  { %v4276_v47 = vpop.eup %4275 }
0x2b26   :  { %3068 = vrot.lane.b32.xlu2 %v4276_v47, %s4316_s7 }
0x2b78   :  { %v3067_v40 = vpop.permute.xlu1 %3066 }
0x2b79   :  { %v3072_v27 = vmul.f32 %v3067_v40, %v3062_v26 }
0x2b7b   :  { %v4958_v15 = vadd.f32 %v3074_v60, %v3072_v27 }
0x2b80   :  { %v3069_v54 = vpop.permute.xlu2 %3068 }
0x2b81   :  { %v3073_v19 = vmul.f32 %v3069_v54, %v3063_v38 }
0x2b83   :  { %v4960_v53 = vadd.f32 %v3075_v22, %v3073_v19 }
0x2b85   :  { %v3109_v0 = vpack.c.bf16 %v4960_v53, %v4958_v15 }
0x2b87   :  { %3111 = vrot.lane.b32.xlu0 %v3109_v0, %s4316_s7 }
0x2bf9   :  { %v3112_v24 = vpop.permute.xlu0 %3111 }
0x2bfa   :  { %3628 = vmatmul.msk.bf16.vlgmr.msrb.gmra.mxu0 %vm25_vm0, %v3112_v24  ;;  %3631 = vmatmul.msk.bf16.vlgmr.msrb.gmra.mxu1 %vm25_vm0, %v3112_v24 }
0x2c77   :  { %v3125_v29 = vpop.f32.mrf.mxu0  ;;  %v3181_v19 = vpop.f32.mrf.mxu1 }
0x2c78   :  { %v3132_v4 = vadd.f32 %v3828_v57, %v3125_v29 }
0x2c7a   :  { %v3629_v23 = vmul.f32 -1.442695, %v3132_v4 }
0x2c7c   :  { %4277 = vpow2.f32 %v3629_v23 }
0x2c7f   :  { %v3127_v43 = vpop.f32.mrf.mxu0 }
0x2c80   :  { %v3133_v16 = vadd.f32 %v3829_v25, %v3127_v43  ;;  %v3182_v43 = vadd.f32 %v4928_v49, %v3181_v19 }
0x2c82   :  { %v4278_v39 = vpop.eup %4277  ;;  %v3630_v47 = vmul.f32 -1.442695, %v3133_v16 }
0x2c83   :  { %v3140_v40 = vadd.f32 1.0, %v4278_v39 }
0x2c84   :  { %4279 = vpow2.f32 %v3630_v47 }
0x2c85   :  { %4281 = vrcp.f32 %v3140_v40  ;;  %v3153_v22 = vand.u32 2147483648, %v3140_v40  ;;  %v3151_v24 = vand.u32 2147483647, %v3140_v40  ;;  %vm3147_vm13 = vweird.f32 %v3140_v40 }
0x2c87   :  { %v3154_v4 = vor.u32 1.1754944e-38, %v3153_v22  ;;  %vm3152_vm15 = vcmp.eq.f32.partialorder %v3151_v24, 8.507059e+37 }
0x2c8a   :  { %v4280_v26 = vpop.eup %4279 }
0x2c8b   :  { %v4282_v27 = vpop.eup %4281  ;;  %v3141_v38 = vadd.f32 1.0, %v4280_v26 }
0x2c8c   :  { %v3143_v54 = vmul.f32 %v4282_v27, %v3140_v40  ;;  %vm3148_vm12 = vweird.f32 %v4282_v27  ;;  %v3183_v40 = vpop.f32.mrf.mxu1 }
0x2c8d   :  { %4283 = vrcp.f32 %v3141_v38  ;;  %vm3149_vm14 = vmor %vm3147_vm13, %vm3148_vm12  ;;  %vm3162_vm2 = vweird.f32 %v3141_v38  ;;  %v3184_v19 = vadd.f32 %v4928_v49, %v3183_v40 }
0x2c8e   :  { %v3144_v60 = vsub.f32 1.0, %v3143_v54  ;;  %v3168_v54 = vand.u32 2147483648, %v3141_v38 }
0x2c90   :  { %v3145_v0 = vmul.f32 %v4282_v27, %v3144_v60  ;;  %v3166_v60 = vand.u32 2147483647, %v3141_v38 }
0x2c92   :  { %v3146_v29 = vadd.f32 %v4282_v27, %v3145_v0  ;;  %vm3167_vm4 = vcmp.eq.f32.partialorder %v3166_v60, 8.507059e+37 }
0x2c93   :  { %v4284_v31 = vpop.eup %4283 }
0x2c94   :  { %v3150_v23 = vsel %vm3149_vm14, %v4282_v27, %v3146_v29  ;;  %v3158_v16 = vmul.f32 %v4284_v31, %v3141_v38  ;;  %vm3163_vm1 = vweird.f32 %v4284_v31  ;;  %v3169_v27 = vor.u32 1.1754944e-38, %v3168_v54 }
0x2c95   :  { %v4971_v39 = vsel %vm3152_vm15, %v3154_v4, %v3150_v23  ;;  %vm3164_vm3 = vmor %vm3162_vm2, %vm3163_vm1 }
0x2c96   :  { %v3186_v47 = vmul.f32 %v3182_v43, %v4971_v39  ;;  %v3159_v26 = vsub.f32 1.0, %v3158_v16 }
0x2c98   :  { %v3160_v35 = vmul.f32 %v4284_v31, %v3159_v26  ;;  %3190 = vrot.lane.b32.xlu1 %v3186_v47, %s4315_s6 }
0x2c9a   :  { %v3161_v0 = vadd.f32 %v4284_v31, %v3160_v35 }
0x2c9c   :  { %v3165_v22 = vsel %vm3164_vm3, %v4284_v31, %v3161_v0  ;;  %v3655_v31 = vld [vmem:[%s5426_s1] sm:$0xff]   ;;  %v3845_v0 = vld [vmem:[%s5426_s1 + $0x10] sm:$0xff]  }
0x2c9d   :  { %v4976_v24 = vsel %vm3167_vm4, %v3169_v27, %v3165_v22  ;;  %v3656_v47 = vunpack.c.l.bf16 %v3655_v31  ;;  %v3657_v26 = vunpack.c.h.bf16 %v3655_v31  ;;  %v3672_v27 = vunpack.c.l.bf16 %v3845_v0 }
0x2c9e   :  { %v3187_v29 = vmul.f32 %v3184_v19, %v4976_v24  ;;  %v3673_v22 = vunpack.c.h.bf16 %v3845_v0 }
0x2c9f   :  { %v3892_v54 = vpack.i.bf16 %v3657_v26, %v3656_v47  ;;  %v3851_v47 = vld [vmem:[%s5426_s1 + $0x28] sm:$0xff]  }
0x2ca0   :  { %3192 = vrot.lane.b32.xlu2 %v3187_v29, %s4315_s6  ;;  %v3902_v19 = vpack.i.bf16 %v3673_v22, %v3672_v27  ;;  %v3847_v29 = vld [vmem:[%s5426_s1 + $0x18] sm:$0xff]   ;;  %v3696_v26 = vunpack.c.l.bf16 %v3851_v47 }
0x2ca1   :  { %v3855_v27 = vld [vmem:[%s5426_s1 + $0x38] sm:$0xff]  }
0x2ca2   :  { %v3712_v22 = vunpack.c.l.bf16 %v3855_v27 }
0x2cfa   :  { %v3193_v4 = vpop.permute.xlu2 %3192 }
0x2cfb   :  { %v3197_v23 = vadd.f32 %v3829_v25, %v3193_v4  ;;  %v3843_v25 = vld [vmem:[%s5426_s1 + $0x8] sm:$0xff]   ;;  %v3680_v4 = vunpack.c.l.bf16 %v3847_v29 }
0x2cfc   :  { %v3664_v60 = vunpack.c.l.bf16 %v3843_v25  ;;  %v3665_v40 = vunpack.c.h.bf16 %v3843_v25 }
0x2cfd   :  { %4285 = vtanh.f32 %v3197_v23  ;;  %v3681_v23 = vunpack.c.h.bf16 %v3847_v29 }
0x2d03   :  { %v4286_v43 = vpop.eup %4285 }
0x2d04   :  { %3206 = vrot.lane.b32.xlu1 %v4286_v43, %s4316_s7  ;;  %v3907_v43 = vpack.i.bf16 %v3681_v23, %v3680_v4  ;;  %v3857_v4 = vld [vmem:[%s5426_s1 + $0x40] sm:$0xff]  }
0x2d05   :  { %v3720_v23 = vunpack.c.l.bf16 %v3857_v4 }
0x2d0a   :  { %v3191_v35 = vpop.permute.xlu1 %3190 }
0x2d0b   :  { %v3196_v38 = vadd.f32 %v3828_v57, %v3191_v35  ;;  %v3897_v57 = vpack.i.bf16 %v3665_v40, %v3664_v60  ;;  %v3849_v35 = vld [vmem:[%s5426_s1 + $0x20] sm:$0xff]   ;;  %v3853_v60 = vld [vmem:[%s5426_s1 + $0x30] sm:$0xff]  }
0x2d0c   :  { %v3689_v31 = vunpack.c.h.bf16 %v3849_v35  ;;  %v3704_v40 = vunpack.c.l.bf16 %v3853_v60 }
0x2d0d   :  { %4287 = vtanh.f32 %v3196_v38  ;;  %v3688_v38 = vunpack.c.l.bf16 %v3849_v35 }
0x2d13   :  { %v4288_v16 = vpop.eup %4287 }
0x2d14   :  { %3204 = vrot.lane.b32.xlu0 %v4288_v16, %s4316_s7  ;;  %v3912_v16 = vpack.i.bf16 %v3689_v31, %v3688_v38  ;;  %v3859_v38 = vld [vmem:[%s5426_s1 + $0x48] sm:$0xff]  }
0x2d15   :  { %v3728_v31 = vunpack.c.l.bf16 %v3859_v38 }
0x2d1c   :  { %3893 = vrot.lane.b32.xlu0 %v3892_v54, %s4314_s26  ;;  %v3697_v54 = vunpack.c.h.bf16 %v3851_v47 }
0x2d1e   :  { %v3917_v25 = vpack.i.bf16 %v3697_v54, %v3696_v26  ;;  %v3861_v26 = vld [vmem:[%s5426_s1 + $0x50] sm:$0xff]  }
0x2d1f   :  { %v3736_v54 = vunpack.c.l.bf16 %v3861_v26 }
0x2d24   :  { %3898 = vrot.lane.b32.xlu0 %v3897_v57, %s4314_s26  ;;  %v3705_v57 = vunpack.c.h.bf16 %v3853_v60 }
0x2d26   :  { %v3922_v0 = vpack.i.bf16 %v3705_v57, %v3704_v40  ;;  %v3863_v40 = vld [vmem:[%s5426_s1 + $0x58] sm:$0xff]  }
0x2d27   :  { %v3744_v57 = vunpack.c.l.bf16 %v3863_v40 }
0x2d2c   :  { %3903 = vrot.lane.b32.xlu0 %v3902_v19, %s4314_s26  ;;  %v3713_v19 = vunpack.c.h.bf16 %v3855_v27 }
0x2d2e   :  { %v3927_v29 = vpack.i.bf16 %v3713_v19, %v3712_v22  ;;  %v3865_v22 = vld [vmem:[%s5426_s1 + $0x60] sm:$0xff]  }
0x2d2f   :  { %v3752_v19 = vunpack.c.l.bf16 %v3865_v22 }
0x2d34   :  { %3908 = vrot.lane.b32.xlu0 %v3907_v43, %s4314_s26  ;;  %v3721_v43 = vunpack.c.h.bf16 %v3857_v4 }
0x2d36   :  { %v3932_v35 = vpack.i.bf16 %v3721_v43, %v3720_v23  ;;  %v3867_v23 = vld [vmem:[%s5426_s1 + $0x68] sm:$0xff]  }
0x2d37   :  { %v3760_v43 = vunpack.c.l.bf16 %v3867_v23 }
0x2d3c   :  { %3913 = vrot.lane.b32.xlu0 %v3912_v16, %s4314_s26  ;;  %v3729_v16 = vunpack.c.h.bf16 %v3859_v38 }
0x2d3e   :  { %v3937_v47 = vpack.i.bf16 %v3729_v16, %v3728_v31  ;;  %v3869_v31 = vld [vmem:[%s5426_s1 + $0x70] sm:$0xff]  }
0x2d44   :  { %3918 = vrot.lane.b32.xlu0 %v3917_v25, %s4314_s26  ;;  %v3737_v25 = vunpack.c.h.bf16 %v3861_v26  ;;  %v3768_v26 = vunpack.c.l.bf16 %v3869_v31 }
0x2d46   :  { %v3942_v60 = vpack.i.bf16 %v3737_v25, %v3736_v54  ;;  %v3769_v54 = vunpack.c.h.bf16 %v3869_v31 }
0x2d4c   :  { %3923 = vrot.lane.b32.xlu0 %v3922_v0, %s4314_s26  ;;  %v3745_v0 = vunpack.c.h.bf16 %v3863_v40 }
0x2d4e   :  { %v3947_v27 = vpack.i.bf16 %v3745_v0, %v3744_v57  ;;  %v3213_v57 = vmul.f32 %v4976_v24, %v4960_v53  ;;  %v3212_v0 = vmul.f32 %v4971_v39, %v4958_v15 }
0x2d54   :  { %3928 = vrot.lane.b32.xlu0 %v3927_v29, %s4314_s26  ;;  %v3753_v29 = vunpack.c.h.bf16 %v3865_v22  ;;  %v3962_v22 = vpack.i.bf16 %v3769_v54, %v3768_v26 }
0x2d56   :  { %v3952_v4 = vpack.i.bf16 %v3753_v29, %v3752_v19 }
0x2d5c   :  { %3933 = vrot.lane.b32.xlu0 %v3932_v35, %s4314_s26  ;;  %v3761_v35 = vunpack.c.h.bf16 %v3867_v23 }
0x2d5e   :  { %v3957_v38 = vpack.i.bf16 %v3761_v35, %v3760_v43 }
0x2d64   :  { %3938 = vrot.lane.b32.xlu0 %v3937_v47, %s4314_s26  ;;  %v3201_v47 = vsub.f32 1.0, %v4976_v24 }
0x2d6c   :  { %3943 = vrot.lane.b32.xlu0 %v3942_v60, %s4314_s26  ;;  %v3200_v60 = vsub.f32 1.0, %v4971_v39 }
0x2d74   :  { %3948 = vrot.lane.b32.xlu0 %v3947_v27, %s4314_s26 }
0x2d76   :  { %v3207_v16 = vpop.permute.xlu1 %3206 }
0x2d77   :  { %v3211_v25 = vmul.f32 %v3207_v16, %v3201_v47 }
0x2d79   :  { %v5047_v19 = vadd.f32 %v3213_v57, %v3211_v25 }
0x2d7c   :  { %3953 = vrot.lane.b32.xlu0 %v3952_v4, %s4314_s26 }
0x2d84   :  { %3958 = vrot.lane.b32.xlu0 %v3957_v38, %s4314_s26 }
0x2d86   :  { %v3205_v40 = vpop.permute.xlu0 %3204 }
0x2d87   :  { %v3210_v27 = vmul.f32 %v3205_v40, %v3200_v60 }
0x2d89   :  { %v5049_v29 = vadd.f32 %v3212_v0, %v3210_v27 }
0x2d8b   :  { %v3247_v4 = vpack.c.bf16 %v5047_v19, %v5049_v29 }
0x2d8c   :  { %3963 = vrot.lane.b32.xlu0 %v3962_v22, %s4314_s26 }
0x2d8d   :  { %3249 = vrot.lane.b32.xlu2 %v3247_v4, %s4316_s7 }
0x2d8e   :  { %v3894_v23 = vpop.permute.xlu0 %3893 }
0x2d8f   :  { %v3896_v43 = vunpack.i.h.bf16 %v3894_v23  ;;  %v3895_v35 = vunpack.i.l.bf16 %v3894_v23 }
0x2d91   :  { %v194_v24 = vadd.f32 %v3896_v43, %v4409_v5  ;;  %v193_v39 = vadd.f32 %v3895_v35, %v4407_v1 }
0x2d93   :  { %v195_v38 = vpack.c.bf16 %v193_v39, %v193_v39  ;;  %v196_v31 = vpack.c.bf16 %v194_v24, %v194_v24 }
0x2d95   :  { %199 = vrot.lane.b32.xlu1 %v195_v38, %s4316_s7  ;;  %201 = vrot.lane.b32.xlu2 %v196_v31, %s4316_s7 }
0x2d96   :  { %v3899_v16 = vpop.permute.xlu0 %3898 }
0x2d97   :  { %v3901_v47 = vunpack.i.h.bf16 %v3899_v16  ;;  %v3900_v26 = vunpack.i.l.bf16 %v3899_v16 }
0x2d99   :  { %v332_v54 = vadd.f32 %v3901_v47, %v4431_v62  ;;  %v331_v25 = vadd.f32 %v3900_v26, %v4433_v63 }
0x2d9b   :  { %v333_v60 = vpack.c.bf16 %v331_v25, %v331_v25  ;;  %v334_v40 = vpack.c.bf16 %v332_v54, %v332_v54 }
0x2d9d   :  { %337 = vrot.lane.b32.xlu1 %v333_v60, %s4316_s7  ;;  %339 = vrot.lane.b32.xlu2 %v334_v40, %s4316_s7 }
0x2d9e   :  { %v3904_v1 = vpop.permute.xlu0 %3903 }
0x2d9f   :  { %v3906_v5 = vunpack.i.h.bf16 %v3904_v1  ;;  %v3905_v57 = vunpack.i.l.bf16 %v3904_v1 }
0x2da1   :  { %v470_v0 = vadd.f32 %v3906_v5, %v4457_v7  ;;  %v469_v27 = vadd.f32 %v3905_v57, %v4455_v6 }
0x2da3   :  { %v471_v22 = vpack.c.bf16 %v469_v27, %v469_v27  ;;  %v472_v4 = vpack.c.bf16 %v470_v0, %v470_v0 }
0x2da5   :  { %475 = vrot.lane.b32.xlu1 %v471_v22, %s4316_s7  ;;  %477 = vrot.lane.b32.xlu2 %v472_v4, %s4316_s7 }
0x2da6   :  { %v3909_v62 = vpop.permute.xlu0 %3908 }
0x2da7   :  { %v3911_v63 = vunpack.i.h.bf16 %v3909_v62  ;;  %v3910_v23 = vunpack.i.l.bf16 %v3909_v62 }
0x2da9   :  { %v608_v43 = vadd.f32 %v3911_v63, %v4481_v11  ;;  %v607_v35 = vadd.f32 %v3910_v23, %v4479_v10 }
0x2dab   :  { %v609_v24 = vpack.c.bf16 %v607_v35, %v607_v35  ;;  %v610_v39 = vpack.c.bf16 %v608_v43, %v608_v43 }
0x2dad   :  { %613 = vrot.lane.b32.xlu1 %v609_v24, %s4316_s7  ;;  %615 = vrot.lane.b32.xlu2 %v610_v39, %s4316_s7 }
0x2dae   :  { %v3914_v6 = vpop.permute.xlu0 %3913 }
0x2daf   :  { %v3916_v7 = vunpack.i.h.bf16 %v3914_v6  ;;  %v3915_v38 = vunpack.i.l.bf16 %v3914_v6 }
0x2db1   :  { %v746_v31 = vadd.f32 %v3916_v7, %v4503_v17  ;;  %v745_v16 = vadd.f32 %v3915_v38, %v4505_v18 }
0x2db3   :  { %v747_v47 = vpack.c.bf16 %v745_v16, %v745_v16  ;;  %v748_v26 = vpack.c.bf16 %v746_v31, %v746_v31 }
0x2db5   :  { %751 = vrot.lane.b32.xlu1 %v747_v47, %s4316_s7  ;;  %753 = vrot.lane.b32.xlu2 %v748_v26, %s4316_s7 }
0x2db6   :  { %v3919_v10 = vpop.permute.xlu0 %3918 }
0x2db7   :  { %v3921_v11 = vunpack.i.h.bf16 %v3919_v10  ;;  %v3920_v54 = vunpack.i.l.bf16 %v3919_v10 }
0x2db9   :  { %v884_v25 = vadd.f32 %v3921_v11, %v4529_v21  ;;  %v883_v60 = vadd.f32 %v3920_v54, %v4527_v20 }
0x2dbb   :  { %v885_v40 = vpack.c.bf16 %v883_v60, %v883_v60  ;;  %v886_v1 = vpack.c.bf16 %v884_v25, %v884_v25 }
0x2dbd   :  { %889 = vrot.lane.b32.xlu1 %v885_v40, %s4316_s7  ;;  %891 = vrot.lane.b32.xlu2 %v886_v1, %s4316_s7 }
0x2dbe   :  { %v3924_v17 = vpop.permute.xlu0 %3923 }
0x2dbf   :  { %v3926_v18 = vunpack.i.h.bf16 %v3924_v17  ;;  %v3925_v5 = vunpack.i.l.bf16 %v3924_v17 }
0x2dc1   :  { %v1022_v57 = vadd.f32 %v3926_v18, %v4578_v33  ;;  %v1021_v0 = vadd.f32 %v3925_v5, %v4576_v32 }
0x2dc3   :  { %v1023_v27 = vpack.c.bf16 %v1021_v0, %v1021_v0  ;;  %v1024_v22 = vpack.c.bf16 %v1022_v57, %v1022_v57 }
0x2dc5   :  { %1027 = vrot.lane.b32.xlu1 %v1023_v27, %s4316_s7  ;;  %1029 = vrot.lane.b32.xlu2 %v1024_v22, %s4316_s7 }
0x2dc6   :  { %v3929_v20 = vpop.permute.xlu0 %3928 }
0x2dc7   :  { %v3931_v21 = vunpack.i.h.bf16 %v3929_v20  ;;  %v3930_v4 = vunpack.i.l.bf16 %v3929_v20 }
0x2dc9   :  { %v1160_v62 = vadd.f32 %v3931_v21, %v4600_v44  ;;  %v1159_v63 = vadd.f32 %v3930_v4, %v4602_v45 }
0x2dcb   :  { %v1161_v23 = vpack.c.bf16 %v1159_v63, %v1159_v63  ;;  %v1162_v43 = vpack.c.bf16 %v1160_v62, %v1160_v62 }
0x2dcd   :  { %1165 = vrot.lane.b32.xlu1 %v1161_v23, %s4316_s7  ;;  %1167 = vrot.lane.b32.xlu2 %v1162_v43, %s4316_s7 }
0x2dce   :  { %v3934_v32 = vpop.permute.xlu0 %3933 }
0x2dcf   :  { %v3936_v33 = vunpack.i.h.bf16 %v3934_v32  ;;  %v3935_v35 = vunpack.i.l.bf16 %v3934_v32 }
0x2dd1   :  { %v1298_v24 = vadd.f32 %v3936_v33, %v4626_v59  ;;  %v1297_v39 = vadd.f32 %v3935_v35, %v4624_v58 }
0x2dd3   :  { %v1299_v6 = vpack.c.bf16 %v1297_v39, %v1297_v39  ;;  %v1300_v7 = vpack.c.bf16 %v1298_v24, %v1298_v24 }
0x2dd5   :  { %1303 = vrot.lane.b32.xlu1 %v1299_v6, %s4316_s7  ;;  %1305 = vrot.lane.b32.xlu2 %v1300_v7, %s4316_s7 }
0x2dd6   :  { %v3939_v44 = vpop.permute.xlu0 %3938 }
0x2dd7   :  { %v3941_v45 = vunpack.i.h.bf16 %v3939_v44  ;;  %v3940_v38 = vunpack.i.l.bf16 %v3939_v44 }
0x2dd9   :  { %v1436_v31 = vadd.f32 %v3941_v45, %v4650_v3  ;;  %v1435_v16 = vadd.f32 %v3940_v38, %v4648_v2 }
0x2ddb   :  { %v1437_v47 = vpack.c.bf16 %v1435_v16, %v1435_v16  ;;  %v1438_v26 = vpack.c.bf16 %v1436_v31, %v1436_v31 }
0x2ddd   :  { %1441 = vrot.lane.b32.xlu1 %v1437_v47, %s4316_s7  ;;  %1443 = vrot.lane.b32.xlu2 %v1438_v26, %s4316_s7 }
0x2dde   :  { %v3944_v58 = vpop.permute.xlu0 %3943 }
0x2ddf   :  { %v3946_v59 = vunpack.i.h.bf16 %v3944_v58  ;;  %v3945_v10 = vunpack.i.l.bf16 %v3944_v58 }
0x2de1   :  { %v1574_v11 = vadd.f32 %v3946_v59, %v4672_v50  ;;  %v1573_v54 = vadd.f32 %v3945_v10, %v4674_v51 }
0x2de3   :  { %v1576_v25 = vpack.c.bf16 %v1574_v11, %v1574_v11  ;;  %v1575_v60 = vpack.c.bf16 %v1573_v54, %v1573_v54 }
0x2de5   :  { %1579 = vrot.lane.b32.xlu1 %v1575_v60, %s4316_s7  ;;  %1581 = vrot.lane.b32.xlu2 %v1576_v25, %s4316_s7 }
0x2de6   :  { %v3949_v2 = vpop.permute.xlu0 %3948 }
0x2de7   :  { %v3951_v3 = vunpack.i.h.bf16 %v3949_v2  ;;  %v3950_v40 = vunpack.i.l.bf16 %v3949_v2  ;;  %v3250_v1 = vpop.permute.xlu2 %3249 }
0x2de8   :  { %3638 = vmatmul.msk.bf16.vlgmr.msrb.gmra.mxu2 %vm25_vm0, %v3250_v1  ;;  %3641 = vmatmul.msk.bf16.vlgmr.msrb.gmra.mxu3 %vm25_vm0, %v3250_v1 }
0x2de9   :  { %v1712_v17 = vadd.f32 %v3951_v3, %v4698_v8  ;;  %v1711_v50 = vadd.f32 %v3950_v40, %v4696_v30 }
0x2deb   :  { %v1714_v18 = vpack.c.bf16 %v1712_v17, %v1712_v17  ;;  %v1713_v51 = vpack.c.bf16 %v1711_v50, %v1711_v50  ;;  %v5225_v17 = vld [vmem:[%s5425_s0 + $0xb8] sm:$0xff]  }
0x2ded   :  { %1717 = vrot.lane.b32.xlu1 %v1713_v51, %s4316_s7  ;;  %1719 = vrot.lane.b32.xlu2 %v1714_v18, %s4316_s7  ;;  %v3836_v18 = vunpack.c.l.bf16 %v5225_v17 }
0x2dee   :  { %v3954_v5 = vpop.permute.xlu0 %3953 }
0x2def   :  { %v3956_v57 = vunpack.i.h.bf16 %v3954_v5  ;;  %v3955_v0 = vunpack.i.l.bf16 %v3954_v5  ;;  %v202_v27 = vpop.permute.xlu2 %201 }
0x2df0   :  { %207 = vst.msk [vmem:[%s5427_s5 + $0x4] sm:$0xf] %vm205_vm5, %v202_v27  ;;  %v3837_v27 = vunpack.c.h.bf16 %v5225_v17 }
0x2df1   :  { %v1850_v8 = vadd.f32 %v3956_v57, %v4722_v46  ;;  %v1849_v30 = vadd.f32 %v3955_v0, %v4720_v36 }
0x2df3   :  { %v1852_v22 = vpack.c.bf16 %v1850_v8, %v1850_v8  ;;  %v1851_v20 = vpack.c.bf16 %v1849_v30, %v1849_v30 }
0x2df5   :  { %1855 = vrot.lane.b32.xlu1 %v1851_v20, %s4316_s7  ;;  %1857 = vrot.lane.b32.xlu2 %v1852_v22, %s4316_s7 }
0x2df6   :  { %v3959_v21 = vpop.permute.xlu0 %3958 }
0x2df7   :  { %v3961_v4 = vunpack.i.h.bf16 %v3959_v21  ;;  %v3960_v62 = vunpack.i.l.bf16 %v3959_v21  ;;  %v340_v63 = vpop.permute.xlu2 %339 }
0x2df8   :  { %3425 = vst.msk [vmem:[%s5427_s5 + $0xc] sm:$0xf] %vm205_vm5, %v340_v63 }
0x2df9   :  { %v1988_v23 = vadd.f32 %v3961_v4, %v4769_v37  ;;  %v1987_v46 = vadd.f32 %v3960_v62, %v4771_v41 }
0x2dfb   :  { %v1990_v36 = vpack.c.bf16 %v1988_v23, %v1988_v23  ;;  %v1989_v43 = vpack.c.bf16 %v1987_v46, %v1987_v46 }
0x2dfd   :  { %1993 = vrot.lane.b32.xlu1 %v1989_v43, %s4316_s7  ;;  %1995 = vrot.lane.b32.xlu2 %v1990_v36, %s4316_s7 }
0x2dfe   :  { %v5121_v32 = vpop.permute.xlu0 %3963 }
0x2dff   :  { %v3965_v33 = vunpack.i.l.bf16 %v5121_v32  ;;  %v478_v35 = vpop.permute.xlu2 %477 }
0x2e00   :  { %3435 = vst.msk [vmem:[%s5427_s5 + $0x14] sm:$0xf] %vm205_vm5, %v478_v35 }
0x2e01   :  { %v2125_v37 = vadd.f32 %v3965_v33, %v4793_v52 }
0x2e03   :  { %v2127_v24 = vpack.c.bf16 %v2125_v37, %v2125_v37 }
0x2e05   :  { %2131 = vrot.lane.b32.xlu0 %v2127_v24, %s4316_s7 }
0x2e07   :  { %v616_v41 = vpop.permute.xlu2 %615  ;;  %v200_v39 = vpop.permute.xlu1 %199 }
0x2e08   :  { %3445 = vst.msk [vmem:[%s5427_s5 + $0x1c] sm:$0xf] %vm205_vm5, %v616_v41 }
0x2e09   :  { %206 = vst.msk [vmem:[%s5427_s5] sm:$0xf] %vm205_vm5, %v200_v39 }
0x2e0f   :  { %v754_v6 = vpop.permute.xlu2 %753  ;;  %v338_v7 = vpop.permute.xlu1 %337 }
0x2e10   :  { %3455 = vst.msk [vmem:[%s5427_s5 + $0x24] sm:$0xf] %vm205_vm5, %v754_v6 }
0x2e11   :  { %3424 = vst.msk [vmem:[%s5427_s5 + $0x8] sm:$0xf] %vm205_vm5, %v338_v7 }
0x2e17   :  { %v892_v52 = vpop.permute.xlu2 %891  ;;  %v476_v44 = vpop.permute.xlu1 %475 }
0x2e18   :  { %3465 = vst.msk [vmem:[%s5427_s5 + $0x2c] sm:$0xf] %vm205_vm5, %v892_v52 }
0x2e19   :  { %3434 = vst.msk [vmem:[%s5427_s5 + $0x10] sm:$0xf] %vm205_vm5, %v476_v44 }
0x2e1f   :  { %v1030_v45 = vpop.permute.xlu2 %1029  ;;  %v614_v38 = vpop.permute.xlu1 %613 }
0x2e20   :  { %3475 = vst.msk [vmem:[%s5427_s5 + $0x34] sm:$0xf] %vm205_vm5, %v1030_v45  ;;  %v3966_v45 = vunpack.i.h.bf16 %v5121_v32  ;;  %v4312_v32 = vld [vmem:[%s5424_s4] ss:$0 sm:$0xff] }
0x2e21   :  { %3444 = vst.msk [vmem:[%s5427_s5 + $0x18] sm:$0xf] %vm205_vm5, %v614_v38 }
0x2e27   :  { %v1168_v31 = vpop.permute.xlu2 %1167  ;;  %v752_v16 = vpop.permute.xlu1 %751 }
0x2e28   :  { %3485 = vst.msk [vmem:[%s5427_s5 + $0x3c] sm:$0xf] %vm205_vm5, %v1168_v31 }
0x2e29   :  { %3454 = vst.msk [vmem:[%s5427_s5 + $0x20] sm:$0xf] %vm205_vm5, %v752_v16 }
0x2e2f   :  { %v1306_v47 = vpop.permute.xlu2 %1305  ;;  %v890_v26 = vpop.permute.xlu1 %889 }
0x2e30   :  { %3495 = vst.msk [vmem:[%s5427_s5 + $0x44] sm:$0xf] %vm205_vm5, %v1306_v47 }
0x2e31   :  { %3464 = vst.msk [vmem:[%s5427_s5 + $0x28] sm:$0xf] %vm205_vm5, %v890_v26 }
0x2e37   :  { %v1444_v58 = vpop.permute.xlu2 %1443  ;;  %v1028_v59 = vpop.permute.xlu1 %1027 }
0x2e38   :  { %3505 = vst.msk [vmem:[%s5427_s5 + $0x4c] sm:$0xf] %vm205_vm5, %v1444_v58 }
0x2e39   :  { %3474 = vst.msk [vmem:[%s5427_s5 + $0x30] sm:$0xf] %vm205_vm5, %v1028_v59  ;;  %v2126_v59 = vadd.f32 %v3966_v45, %v4795_v14 }
0x2e3f   :  { %v1582_v10 = vpop.permute.xlu2 %1581  ;;  %v1166_v11 = vpop.permute.xlu1 %1165 }
0x2e40   :  { %3515 = vst.msk [vmem:[%s5427_s5 + $0x54] sm:$0xf] %vm205_vm5, %v1582_v10 }
0x2e41   :  { %3484 = vst.msk [vmem:[%s5427_s5 + $0x38] sm:$0xf] %vm205_vm5, %v1166_v11 }
0x2e47   :  { %v1720_v54 = vpop.permute.xlu2 %1719  ;;  %v1304_v25 = vpop.permute.xlu1 %1303 }
0x2e48   :  { %3525 = vst.msk [vmem:[%s5427_s5 + $0x5c] sm:$0xf] %vm205_vm5, %v1720_v54 }
0x2e49   :  { %3494 = vst.msk [vmem:[%s5427_s5 + $0x40] sm:$0xf] %vm205_vm5, %v1304_v25 }
0x2e4f   :  { %v1858_v60 = vpop.permute.xlu2 %1857  ;;  %v1442_v2 = vpop.permute.xlu1 %1441 }
0x2e50   :  { %3535 = vst.msk [vmem:[%s5427_s5 + $0x64] sm:$0xf] %vm205_vm5, %v1858_v60  ;;  %v3871_v60 = vld [vmem:[%s5426_s1 + $0x78] sm:$0xff]  }
0x2e51   :  { %3504 = vst.msk [vmem:[%s5427_s5 + $0x48] sm:$0xf] %vm205_vm5, %v1442_v2  ;;  %v2128_v2 = vpack.c.bf16 %v2126_v59, %v2126_v59 }
0x2e57   :  { %v1996_v3 = vpop.permute.xlu2 %1995  ;;  %v1580_v40 = vpop.permute.xlu1 %1579 }
0x2e58   :  { %3545 = vst.msk [vmem:[%s5427_s5 + $0x6c] sm:$0xf] %vm205_vm5, %v1996_v3  ;;  %v3776_v3 = vunpack.c.l.bf16 %v3871_v60 }
0x2e59   :  { %3514 = vst.msk [vmem:[%s5427_s5 + $0x50] sm:$0xf] %vm205_vm5, %v1580_v40  ;;  %v3777_v40 = vunpack.c.h.bf16 %v3871_v60 }
0x2e5f   :  { %v1718_v1 = vpop.permute.xlu1 %1717 }
0x2e60   :  { %3524 = vst.msk [vmem:[%s5427_s5 + $0x58] sm:$0xf] %vm205_vm5, %v1718_v1  ;;  %v3967_v1 = vpack.i.bf16 %v3777_v40, %v3776_v3 }
0x2e67   :  { %v1856_v50 = vpop.permute.xlu1 %1855 }
0x2e68   :  { %3534 = vst.msk [vmem:[%s5427_s5 + $0x60] sm:$0xf] %vm205_vm5, %v1856_v50  ;;  %v3873_v50 = vld [vmem:[%s5426_s1 + $0x80] sm:$0xff]  }
0x2e6b   :  { %v3263_v51 = vpop.f32.mrf.mxu2  ;;  %v3319_v33 = vpop.f32.mrf.mxu3 }
0x2e6c   :  { %v3270_v5 = vadd.f32 %v3836_v18, %v3263_v51  ;;  %v3320_v7 = vadd.f32 %v4928_v49, %v3319_v33  ;;  %v3784_v51 = vunpack.c.l.bf16 %v3873_v50 }
0x2e6e   :  { %v3639_v57 = vmul.f32 -1.442695, %v3270_v5  ;;  %v3785_v5 = vunpack.c.h.bf16 %v3873_v50 }
0x2e6f   :  { %v1994_v0 = vpop.permute.xlu1 %1993 }
0x2e70   :  { %4289 = vpow2.f32 %v3639_v57  ;;  %3544 = vst.msk [vmem:[%s5427_s5 + $0x68] sm:$0xf] %vm205_vm5, %v1994_v0  ;;  %v3972_v57 = vpack.i.bf16 %v3785_v5, %v3784_v51  ;;  %v3875_v0 = vld [vmem:[%s5426_s1 + $0x88] sm:$0xff]  }
0x2e73   :  { %v3265_v8 = vpop.f32.mrf.mxu2  ;;  %v3321_v58 = vpop.f32.mrf.mxu3 }
0x2e74   :  { %v3271_v30 = vadd.f32 %v3837_v27, %v3265_v8  ;;  %v3322_v54 = vadd.f32 %v4312_v32, %v3321_v58  ;;  %v3792_v8 = vunpack.c.l.bf16 %v3875_v0 }
0x2e76   :  { %v4290_v22 = vpop.eup %4289  ;;  %v3640_v20 = vmul.f32 -1.442695, %v3271_v30  ;;  %v3793_v30 = vunpack.c.h.bf16 %v3875_v0 }
0x2e77   :  { %v3278_v21 = vadd.f32 1.0, %v4290_v22  ;;  %v2132_v4 = vpop.permute.xlu0 %2131 }
0x2e78   :  { %4291 = vpow2.f32 %v3640_v20  ;;  %3554 = vst.msk [vmem:[%s5427_s5 + $0x70] sm:$0xf] %vm205_vm5, %v2132_v4  ;;  %v3977_v22 = vpack.i.bf16 %v3793_v30, %v3792_v8  ;;  %v3879_v20 = vld [vmem:[%s5426_s1 + $0x98] sm:$0xff]  }
0x2e79   :  { %4293 = vrcp.f32 %v3278_v21  ;;  %v3291_v43 = vand.u32 2147483648, %v3278_v21  ;;  %v3289_v37 = vand.u32 2147483647, %v3278_v21  ;;  %vm3285_vm7 = vweird.f32 %v3278_v21 }
0x2e7a   :  { %v3809_v4 = vunpack.c.h.bf16 %v3879_v20 }
0x2e7b   :  { %v3292_v39 = vor.u32 1.1754944e-38, %v3291_v43  ;;  %vm3290_vm9 = vcmp.eq.f32.partialorder %v3289_v37, 8.507059e+37 }
0x2e7e   :  { %v4292_v62 = vpop.eup %4291 }
0x2e7f   :  { %v4294_v63 = vpop.eup %4293  ;;  %v3279_v23 = vadd.f32 1.0, %v4292_v62 }
0x2e80   :  { %v3281_v46 = vmul.f32 %v4294_v63, %v3278_v21  ;;  %vm3286_vm6 = vweird.f32 %v4294_v63  ;;  %v3808_v21 = vunpack.c.l.bf16 %v3879_v20 }
0x2e81   :  { %4295 = vrcp.f32 %v3279_v23  ;;  %vm3287_vm8 = vmor %vm3285_vm7, %vm3286_vm6  ;;  %v3306_v16 = vand.u32 2147483648, %v3279_v23  ;;  %v3304_v26 = vand.u32 2147483647, %v3279_v23  ;;  %vm3300_vm11 = vweird.f32 %v3279_v23 }
0x2e82   :  { %v3282_v36 = vsub.f32 1.0, %v3281_v46  ;;  %v3987_v62 = vpack.i.bf16 %v3809_v4, %v3808_v21 }
0x2e83   :  { %v3307_v49 = vor.u32 1.1754944e-38, %v3306_v16  ;;  %vm3305_vm13 = vcmp.eq.f32.partialorder %v3304_v26, 8.507059e+37 }
0x2e84   :  { %v3283_v35 = vmul.f32 %v4294_v63, %v3282_v36 }
0x2e86   :  { %v3284_v24 = vadd.f32 %v4294_v63, %v3283_v35 }
0x2e87   :  { %v4296_v41 = vpop.eup %4295 }
0x2e88   :  { %v3288_v6 = vsel %vm3287_vm8, %v4294_v63, %v3284_v24  ;;  %v3296_v52 = vmul.f32 %v4296_v41, %v3279_v23  ;;  %vm3301_vm10 = vweird.f32 %v4296_v41 }
0x2e89   :  { %v5246_v44 = vsel %vm3290_vm9, %v3292_v39, %v3288_v6  ;;  %vm3302_vm12 = vmor %vm3300_vm11, %vm3301_vm10 }
0x2e8a   :  { %v3324_v38 = vmul.f32 %v3320_v7, %v5246_v44  ;;  %v3297_v31 = vsub.f32 1.0, %v3296_v52 }
0x2e8c   :  { %v3298_v47 = vmul.f32 %v4296_v41, %v3297_v31  ;;  %3328 = vrot.lane.b32.xlu1 %v3324_v38, %s4315_s6  ;;  %v3885_v38 = vld [vmem:[%s5426_s1 + $0xb0] sm:$0xff]  }
0x2e8e   :  { %v3299_v10 = vadd.f32 %v4296_v41, %v3298_v47 }
0x2e90   :  { %v3303_v11 = vsel %vm3302_vm12, %v4296_v41, %v3299_v10  ;;  %v3877_v10 = vld [vmem:[%s5426_s1 + $0x90] sm:$0xff]  }
0x2e91   :  { %v5255_v25 = vsel %vm3305_vm13, %v3307_v49, %v3303_v11  ;;  %v3881_v49 = vld [vmem:[%s5426_s1 + $0xa0] sm:$0xff]   ;;  %v3800_v60 = vunpack.c.l.bf16 %v3877_v10 }
0x2e92   :  { %v3325_v14 = vmul.f32 %v3322_v54, %v5255_v25 }
0x2e94   :  { %2133 = vrot.lane.b32.xlu1 %v2128_v2, %s4316_s7  ;;  %3330 = vrot.lane.b32.xlu2 %v3325_v14, %s4315_s6  ;;  %v3801_v2 = vunpack.c.h.bf16 %v3877_v10  ;;  %v3817_v14 = vunpack.c.h.bf16 %v3881_v49 }
0x2e9c   :  { %3968 = vrot.lane.b32.xlu2 %v3967_v1, %s4314_s26  ;;  %v3883_v1 = vld [vmem:[%s5426_s1 + $0xa8] sm:$0xff]  }
0x2e9d   :  { %v3824_v50 = vunpack.c.l.bf16 %v3883_v1  ;;  %v3825_v51 = vunpack.c.h.bf16 %v3883_v1 }
0x2e9f   :  { %v3997_v5 = vpack.i.bf16 %v3825_v51, %v3824_v50 }
0x2ea4   :  { %3973 = vrot.lane.b32.xlu2 %v3972_v57, %s4314_s26  ;;  %v3887_v57 = vld [vmem:[%s5426_s1 + $0xb8] sm:$0xff]  }
0x2ea5   :  { %v3840_v17 = vunpack.c.l.bf16 %v3887_v57 }
0x2eac   :  { %3978 = vrot.lane.b32.xlu2 %v3977_v22, %s4314_s26 }
0x2eb4   :  { %3988 = vrot.lane.b32.xlu2 %v3987_v62, %s4314_s26 }
0x2eee   :  { %v3331_v63 = vpop.permute.xlu2 %3330 }
0x2eef   :  { %v3335_v40 = vadd.f32 %v3837_v27, %v3331_v63  ;;  %v3841_v27 = vunpack.c.h.bf16 %v3887_v57 }
0x2ef1   :  { %v4007_v30 = vpack.i.bf16 %v3841_v27, %v3840_v17 }
0x2ef6   :  { %v3969_v23 = vpop.permute.xlu2 %3968 }
0x2ef7   :  { %v3971_v46 = vunpack.i.h.bf16 %v3969_v23  ;;  %v3970_v36 = vunpack.i.l.bf16 %v3969_v23 }
0x2ef9   :  { %v2264_v43 = vadd.f32 %v3971_v46, %v4819_v28  ;;  %v2263_v33 = vadd.f32 %v3970_v36, %v4817_v55 }
0x2efb   :  { %v2266_v35 = vpack.c.bf16 %v2264_v43, %v2264_v43  ;;  %v2265_v37 = vpack.c.bf16 %v2263_v33, %v2263_v33 }
0x2efd   :  { %2271 = vrot.lane.b32.xlu1 %v2266_v35, %s4316_s7  ;;  %2269 = vrot.lane.b32.xlu0 %v2265_v37, %s4316_s7 }
0x2efe   :  { %v3974_v24 = vpop.permute.xlu2 %3973  ;;  %v3329_v41 = vpop.permute.xlu1 %3328 }
0x2eff   :  { %v3976_v39 = vunpack.i.h.bf16 %v3974_v24  ;;  %v3975_v6 = vunpack.i.l.bf16 %v3974_v24  ;;  %v3334_v7 = vadd.f32 %v3836_v18, %v3329_v41 }
0x2f01   :  { %v2402_v52 = vadd.f32 %v3976_v39, %v4841_v61  ;;  %v2401_v45 = vadd.f32 %v3975_v6, %v4843_v56  ;;  %4297 = vtanh.f32 %v3334_v7  ;;  %v3832_v61 = vunpack.c.l.bf16 %v3885_v38 }
0x2f02   :  { %v3833_v56 = vunpack.c.h.bf16 %v3885_v38  ;;  %4299 = vtanh.f32 %v3335_v40 }
0x2f03   :  { %v2404_v28 = vpack.c.bf16 %v2402_v52, %v2402_v52  ;;  %v2403_v55 = vpack.c.bf16 %v2401_v45, %v2401_v45 }
0x2f04   :  { %v4002_v54 = vpack.i.bf16 %v3833_v56, %v3832_v61  ;;  %v3339_v61 = vsub.f32 1.0, %v5255_v25 }
0x2f05   :  { %2409 = vrot.lane.b32.xlu1 %v2404_v28, %s4316_s7  ;;  %2407 = vrot.lane.b32.xlu0 %v2403_v55, %s4316_s7 }
0x2f06   :  { %v3979_v31 = vpop.permute.xlu2 %3978  ;;  %v2134_v16 = vpop.permute.xlu1 %2133 }
0x2f07   :  { %v4298_v47 = vpop.eup %4297  ;;  %v3981_v26 = vunpack.i.h.bf16 %v3979_v31  ;;  %v3980_v18 = vunpack.i.l.bf16 %v3979_v31  ;;  %3555 = vst.msk [vmem:[%s5427_s5 + $0x74] sm:$0xf] %vm205_vm5, %v2134_v16 }
0x2f08   :  { %3342 = vrot.lane.b32.xlu2 %v4298_v47, %s4316_s7  ;;  %v4300_v0 = vpop.eup %4299 }
0x2f09   :  { %v2540_v58 = vadd.f32 %v3981_v26, %v4867_v12  ;;  %v2539_v59 = vadd.f32 %v3980_v18, %v4865_v48  ;;  %v3816_v12 = vunpack.c.l.bf16 %v3881_v49  ;;  %v3982_v48 = vpack.i.bf16 %v3801_v2, %v3800_v60 }
0x2f0a   :  { %v3338_v60 = vsub.f32 1.0, %v5246_v44 }
0x2f0b   :  { %v2542_v11 = vpack.c.bf16 %v2540_v58, %v2540_v58  ;;  %v2541_v32 = vpack.c.bf16 %v2539_v59, %v2539_v59  ;;  %v3992_v3 = vpack.i.bf16 %v3817_v14, %v3816_v12 }
0x2f0d   :  { %2547 = vrot.lane.b32.xlu1 %v2542_v11, %s4316_s7  ;;  %2545 = vrot.lane.b32.xlu0 %v2541_v32, %s4316_s7  ;;  %v3351_v32 = vmul.f32 %v5255_v25, %v5047_v19  ;;  %v3350_v25 = vmul.f32 %v5246_v44, %v5049_v29 }
0x2f0e   :  { %v3989_v8 = vpop.permute.xlu2 %3988 }
0x2f0f   :  { %v3990_v22 = vunpack.i.l.bf16 %v3989_v8  ;;  %v3991_v31 = vunpack.i.h.bf16 %v3989_v8 }
0x2f10   :  { %4003 = vrot.lane.b32.xlu2 %v4002_v54, %s4314_s26 }
0x2f11   :  { %v2815_v20 = vadd.f32 %v3990_v22, %v4915_v13 }
0x2f13   :  { %v2817_v21 = vpack.c.bf16 %v2815_v20, %v2815_v20 }
0x2f15   :  { %3983 = vrot.lane.b32.xlu1 %v3982_v48, %s4314_s26  ;;  %3993 = vrot.lane.b32.xlu0 %v3992_v3, %s4314_s26 }
0x2f1d   :  { %3998 = vrot.lane.b32.xlu1 %v3997_v5, %s4314_s26  ;;  %3344 = vrot.lane.b32.xlu0 %v4300_v0, %s4316_s7 }
0x2f25   :  { %4008 = vrot.lane.b32.xlu0 %v4007_v30, %s4314_s26 }
0x2f2d   :  { %2821 = vrot.lane.b32.xlu0 %v2817_v21, %s4316_s7 }
0x2f62   :  { %v3343_v13 = vpop.permute.xlu2 %3342 }
0x2f63   :  { %v3348_v3 = vmul.f32 %v3343_v13, %v3338_v60 }
0x2f65   :  { %v3352_v0 = vadd.f32 %v3350_v25, %v3348_v3 }
0x2f6a   :  { %v4004_v35 = vpop.permute.xlu2 %4003 }
0x2f6b   :  { %v4005_v52 = vunpack.i.l.bf16 %v4004_v35  ;;  %v4006_v5 = vunpack.i.h.bf16 %v4004_v35 }
0x2f6d   :  { %v3229_v47 = vadd.f32 %v4005_v52, %v5049_v29 }
0x2f6f   :  { %v2270_v4 = vpop.permute.xlu0 %2269  ;;  %v2272_v62 = vpop.permute.xlu1 %2271  ;;  %v3231_v56 = vpack.c.bf16 %v3229_v47, %v3229_v47 }
0x2f70   :  { %3564 = vst.msk [vmem:[%s5427_s5 + $0x78] sm:$0xf] %vm205_vm5, %v2270_v4 }
0x2f71   :  { %3565 = vst.msk [vmem:[%s5427_s5 + $0x7c] sm:$0xf] %vm205_vm5, %v2272_v62 }
0x2f77   :  { %v2408_v63 = vpop.permute.xlu0 %2407  ;;  %v2410_v23 = vpop.permute.xlu1 %2409 }
0x2f78   :  { %3574 = vst.msk [vmem:[%s5427_s5 + $0x80] sm:$0xf] %vm205_vm5, %v2408_v63 }
0x2f79   :  { %3575 = vst.msk [vmem:[%s5427_s5 + $0x84] sm:$0xf] %vm205_vm5, %v2410_v23 }
0x2f7f   :  { %v2546_v46 = vpop.permute.xlu0 %2545  ;;  %v2548_v36 = vpop.permute.xlu1 %2547 }
0x2f80   :  { %3584 = vst.msk [vmem:[%s5427_s5 + $0x88] sm:$0xf] %vm205_vm5, %v2546_v46 }
0x2f81   :  { %3585 = vst.msk [vmem:[%s5427_s5 + $0x8c] sm:$0xf] %vm205_vm5, %v2548_v36 }
0x2f87   :  { %v3994_v43 = vpop.permute.xlu0 %3993  ;;  %v3984_v33 = vpop.permute.xlu1 %3983 }
0x2f88   :  { %v3996_v37 = vunpack.i.h.bf16 %v3994_v43  ;;  %v3986_v24 = vunpack.i.h.bf16 %v3984_v33  ;;  %v3985_v41 = vunpack.i.l.bf16 %v3984_v33  ;;  %v3995_v28 = vunpack.i.l.bf16 %v3994_v43 }
0x2f8a   :  { %v2954_v39 = vadd.f32 %v3996_v37, %v4940_v9  ;;  %v2678_v6 = vadd.f32 %v3986_v24, %v4891_v42  ;;  %v2677_v7 = vadd.f32 %v3985_v41, %v4889_v34  ;;  %v5432_v9 = vld [vmem:[#allocation4_spill] sm:$0xff]  ;;  %v5433_v42 = vld [vmem:[#allocation3_spill] sm:$0xff] }
0x2f8b   :  { %v2953_v26 = vadd.f32 %v3995_v28, %v5432_v9  ;;  %v2816_v18 = vadd.f32 %v3991_v31, %v5433_v42 }
0x2f8c   :  { %v2956_v45 = vpack.c.bf16 %v2954_v39, %v2954_v39  ;;  %v2680_v55 = vpack.c.bf16 %v2678_v6, %v2678_v6  ;;  %v2679_v38 = vpack.c.bf16 %v2677_v7, %v2677_v7 }
0x2f8d   :  { %v2955_v58 = vpack.c.bf16 %v2953_v26, %v2953_v26  ;;  %v2818_v49 = vpack.c.bf16 %v2816_v18, %v2816_v18 }
0x2f8e   :  { %2961 = vrot.lane.b32.xlu0 %v2956_v45, %s4316_s7  ;;  %2685 = vrot.lane.b32.xlu2 %v2680_v55, %s4316_s7 }
0x2f8f   :  { %2683 = vrot.lane.b32.xlu1 %v2679_v38, %s4316_s7  ;;  %v3345_v16 = vpop.permute.xlu0 %3344  ;;  %v3999_v34 = vpop.permute.xlu1 %3998 }
0x2f90   :  { %v3349_v59 = vmul.f32 %v3345_v16, %v3339_v61  ;;  %v4001_v10 = vunpack.i.h.bf16 %v3999_v34  ;;  %v4000_v11 = vunpack.i.l.bf16 %v3999_v34 }
0x2f92   :  { %v3353_v2 = vadd.f32 %v3351_v32, %v3349_v59  ;;  %v3092_v12 = vadd.f32 %v4001_v10, %v4960_v53  ;;  %v3091_v48 = vadd.f32 %v4000_v11, %v4958_v15  ;;  %v3230_v15 = vadd.f32 %v4006_v5, %v5047_v19 }
0x2f94   :  { %v3094_v1 = vpack.c.bf16 %v3092_v12, %v3092_v12  ;;  %v3093_v57 = vpack.c.bf16 %v3091_v48, %v3091_v48  ;;  %v3232_v44 = vpack.c.bf16 %v3230_v15, %v3230_v15 }
0x2f96   :  { %3235 = vrot.lane.b32.xlu0 %v3231_v56, %s4316_s7  ;;  %2959 = vrot.lane.b32.xlu2 %v2955_v58, %s4316_s7 }
0x2f97   :  { %2823 = vrot.lane.b32.xlu1 %v2818_v49, %s4316_s7  ;;  %v4009_v54 = vpop.permute.xlu0 %4008 }
0x2f98   :  { %v4011_v14 = vunpack.i.h.bf16 %v4009_v54  ;;  %v4010_v51 = vunpack.i.l.bf16 %v4009_v54 }
0x2f9a   :  { %v3368_v40 = vadd.f32 %v4011_v14, %v3353_v2  ;;  %v3367_v17 = vadd.f32 %v4010_v51, %v3352_v0 }
0x2f9c   :  { %v3370_v50 = vpack.c.bf16 %v3368_v40, %v3368_v40  ;;  %v3369_v29 = vpack.c.bf16 %v3367_v17, %v3367_v17 }
0x2f9e   :  { %3375 = vrot.lane.b32.xlu0 %v3370_v50, %s4316_s7  ;;  %3099 = vrot.lane.b32.xlu2 %v3094_v1, %s4316_s7 }
0x2f9f   :  { %3097 = vrot.lane.b32.xlu1 %v3093_v57, %s4316_s7  ;;  %v2822_v53 = vpop.permute.xlu0 %2821 }
0x2fa0   :  { %3604 = vst.msk [vmem:[%s5427_s5 + $0x98] sm:$0xf] %vm205_vm5, %v2822_v53 }
0x2fa6   :  { %3373 = vrot.lane.b32.xlu2 %v3369_v29, %s4316_s7 }
0x2fa7   :  { %3237 = vrot.lane.b32.xlu1 %v3232_v44, %s4316_s7 }
0x2fae   :  { %3386 = vrot.lane.b32.xlu2 %v3353_v2, %s4316_s7 }
0x2faf   :  { %3384 = vrot.lane.b32.xlu1 %v3352_v0, %s4316_s7 }
0x2fe8   :  { %v2686_v27 = vpop.permute.xlu2 %2685 }
0x2fe9   :  { %3595 = vst.msk [vmem:[%s5427_s5 + $0x94] sm:$0xf] %vm205_vm5, %v2686_v27 }
0x2ff0   :  { %v2960_v8 = vpop.permute.xlu2 %2959 }
0x2ff1   :  { %3614 = vst.msk [vmem:[%s5427_s5 + $0xa0] sm:$0xf] %vm205_vm5, %v2960_v8 }
0x2ff8   :  { %v3100_v19 = vpop.permute.xlu2 %3099 }
0x2ff9   :  { %3625 = vst.msk [vmem:[%s5427_s5 + $0xac] sm:$0xf] %vm205_vm5, %v3100_v19 }
0x3000   :  { %v2962_v30 = vpop.permute.xlu0 %2961  ;;  %v3374_v22 = vpop.permute.xlu2 %3373 }
0x3001   :  { %3615 = vst.msk [vmem:[%s5427_s5 + $0xa4] sm:$0xf] %vm205_vm5, %v2962_v30  ;;  %v2684_v20 = vpop.permute.xlu1 %2683 }
0x3002   :  { %3644 = vst.msk [vmem:[%s5427_s5 + $0xb8] sm:$0xf] %vm205_vm5, %v3374_v22 }
0x3003   :  { %3594 = vst.msk [vmem:[%s5427_s5 + $0x90] sm:$0xf] %vm205_vm5, %v2684_v20 }
0x3008   :  { %v3236_v21 = vpop.permute.xlu0 %3235  ;;  %v3387_v4 = vpop.permute.xlu2 %3386 }
0x3009   :  { %3634 = vst.msk [vmem:[%s5427_s5 + $0xb0] sm:$0xf] %vm205_vm5, %v3236_v21  ;;  %v2824_v62 = vpop.permute.xlu1 %2823 }
0x300a   :  { %3391 = vst.msk [vmem:[#allocation2 + $0x8] sm:$0xff] %vm25_vm0, %v3387_v4 }
0x300b   :  { %3605 = vst.msk [vmem:[%s5427_s5 + $0x9c] sm:$0xf] %vm205_vm5, %v2824_v62 }
0x3010   :  { %v3376_v63 = vpop.permute.xlu0 %3375 }
0x3011   :  { %3645 = vst.msk [vmem:[%s5427_s5 + $0xbc] sm:$0xf] %vm205_vm5, %v3376_v63  ;;  %v3098_v23 = vpop.permute.xlu1 %3097 }
0x3012   :  { %3624 = vst.msk [vmem:[%s5427_s5 + $0xa8] sm:$0xf] %vm205_vm5, %v3098_v23 }
0x3019   :  { %v3238_v13 = vpop.permute.xlu1 %3237 }
0x301a   :  { %3635 = vst.msk [vmem:[%s5427_s5 + $0xb4] sm:$0xf] %vm205_vm5, %v3238_v13 }
0x3021   :  { %v3385_v46 = vpop.permute.xlu1 %3384 }
0x3022   :  { %3390 = vst.msk [vmem:[#allocation2] sm:$0xff] %vm25_vm0, %v3385_v46 }

</bundles_post_ra>
